<compile_context>
chip_gen: v7x
topology: tpu7x:2x2x1
jax: 0.10.0
libtpu: 0.0.40
codegen_flags: <defaults>
</compile_context>

<pallas_src>
import jax
import jax.numpy as jnp
from jax.experimental import pallas as pl
from jax.experimental.pallas import tpu as pltpu

# ------------------------- configuration (small) ---------------------------
PATCH    = 8
C_IN     = 3
IMG      = 16                    # spatial size (scaled down from 224)
D_VIT    = 128                   # transformer width (real CLIP ViT-B/16 = 768)
N_HEADS  = 2
HEAD_DIM = D_VIT // N_HEADS
D_MLP    = 4 * D_VIT
D_CLIP   = 512                   # CLIP visual projection dim (vit_l1 in_features)
D_OUT    = 768                   # vit_l2 out_features
LN_EPS   = 1e-5

N_PATCH  = (IMG // PATCH) ** 2   # patches per image
SEQ      = N_PATCH + 1           # +1 class token
T_PAD    = 8                     # sequence padded to one full sublane group
K_RAW    = C_IN * PATCH * PATCH  # 192 im2col features
K_PAD    = 256                   # lane-padded im2col width

FUSED_KEYS = ["w_patch", "tok_emb", "ln_pre_g", "ln_pre_b",
              "ln1_g", "ln1_b", "wqkv", "bqkv", "wo", "bo",
              "ln2_g", "ln2_b", "wfc", "bfc", "wpr", "bpr",
              "ln_post_g", "ln_post_b", "w_proj_l1", "b_l1", "w_l2", "b_l2"]

# big tail weights: stay in HBM, kernel double-overlaps their DMA with compute
HBM_WEIGHTS = ("wfc", "wpr", "w_proj_l1", "w_l2")


def _full_spec(shape):
    # whole-array block, constant index map (one grid step)
    return pl.BlockSpec(shape, lambda i, n=len(shape): (0,) * n)


def _layernorm(x, g, b):
    mu = jnp.mean(x, axis=-1, keepdims=True)
    var = jnp.mean(jnp.square(x - mu), axis=-1, keepdims=True)
    return (x - mu) * jax.lax.rsqrt(var + LN_EPS) * g + b


def _bf16(x):
    return x.astype(jnp.bfloat16)


# --------------------------- single fused kernel ----------------------------
def _vit_fused_kernel(patches_ref, w_patch_ref, tok_ref, g_pre_ref, b_pre_ref,
                      g1_ref, b1_ref, wqkv_ref, bqkv_ref, wo_ref, bo_ref,
                      g2_ref, b2_ref, wfc_hbm, bfc_ref, wpr_hbm, bpr_ref,
                      g_post_ref, b_post_ref, wp1_hbm, bl1_ref, wl2_hbm, bl2_ref,
                      emb_ref,
                      wfc_v, wpr_v, wp1_v, wl2_v, dma_sem):
    N = emb_ref.shape[0]
    R = N * T_PAD

    # 0) kick off the tail-weight DMAs *now*; they complete while the MXU is
    #    busy with patch-embed / QKV / attention.
    cp_fc = pltpu.make_async_copy(wfc_hbm, wfc_v, dma_sem.at[0])
    cp_pr = pltpu.make_async_copy(wpr_hbm, wpr_v, dma_sem.at[1])
    cp_p1 = pltpu.make_async_copy(wp1_hbm, wp1_v, dma_sem.at[2])
    cp_l2 = pltpu.make_async_copy(wl2_hbm, wl2_v, dma_sem.at[3])
    cp_fc.start(); cp_pr.start(); cp_p1.start(); cp_l2.start()

    # 1) patch embedding: conv1(kernel=stride=PATCH, bias=False) as im2col matmul.
    #    cls-token and padding rows of `patches` are zero, so pe is already laid
    #    out as (N, T_PAD, D) token rows.
    pe = jnp.dot(patches_ref[...], w_patch_ref[...],
                 preferred_element_type=jnp.float32)                  # (R, D)

    # 2) add class-token + positional embedding (precombined per token slot), ln_pre
    x = (pe.reshape(N, T_PAD, D_VIT) + tok_ref[...][None]).reshape(R, D_VIT)
    x = _layernorm(x, g_pre_ref[...], b_pre_ref[...])

    # 3) transformer block (pre-LN, QuickGELU MLP)
    h = _layernorm(x, g1_ref[...], b1_ref[...])
    qkv = jnp.dot(_bf16(h), wqkv_ref[...],
                  preferred_element_type=jnp.float32) + bqkv_ref[...]  # (R, 3D)
    q3 = qkv[:, 0:D_VIT].reshape(N, T_PAD, D_VIT)
    k3 = qkv[:, D_VIT:2 * D_VIT].reshape(N, T_PAD, D_VIT)
    v3 = qkv[:, 2 * D_VIT:3 * D_VIT].reshape(N, T_PAD, D_VIT)

    # stack both heads along the batch dim -> (N*H, T_PAD, HEAD_DIM) so the
    # whole attention (and its softmax chain) runs ONCE, batched over heads.
    qh = jnp.concatenate(
        [q3[:, :, hh * HEAD_DIM:(hh + 1) * HEAD_DIM] for hh in range(N_HEADS)], axis=0)
    kh = jnp.concatenate(
        [k3[:, :, hh * HEAD_DIM:(hh + 1) * HEAD_DIM] for hh in range(N_HEADS)], axis=0)
    vh = jnp.concatenate(
        [v3[:, :, hh * HEAD_DIM:(hh + 1) * HEAD_DIM] for hh in range(N_HEADS)], axis=0)

    scale = 1.0 / float(HEAD_DIM) ** 0.5
    s = jnp.einsum('bqd,bkd->bqk', _bf16(qh), _bf16(kh),
                   preferred_element_type=jnp.float32) * scale         # (N*H, T, T)
    key_mask = jax.lax.broadcasted_iota(jnp.int32, s.shape, 2) < SEQ
    s = jnp.where(key_mask, s, -1e30)        # mask padded key positions
    s = s - jnp.max(s, axis=-1, keepdims=True)
    e = jnp.exp(s)
    p = e * pl.reciprocal(jnp.sum(e, axis=-1, keepdims=True), approx=True)
    oh = jnp.einsum('bqk,bkd->bqd', _bf16(p), _bf16(vh),
                    preferred_element_type=jnp.float32)                # (N*H, T, Hd)

    # merge heads back with a cheap lane concat, then ONE K=128 output projection
    attn_in = jnp.concatenate(
        [oh[hh * N:(hh + 1) * N] for hh in range(N_HEADS)], axis=-1)   # (N, T, D)
    attn = jnp.dot(_bf16(attn_in.reshape(R, D_VIT)), wo_ref[...],
                   preferred_element_type=jnp.float32)
    x = x + attn + bo_ref[...]

    h = _layernorm(x, g2_ref[...], b2_ref[...])
    cp_fc.wait()                                                       # wfc ready
    h = jnp.dot(_bf16(h), wfc_v[...],
                preferred_element_type=jnp.float32) + bfc_ref[...]
    h = h * jax.nn.sigmoid(1.702 * h)          # QuickGELU (OpenAI CLIP)
    cp_pr.wait()                                                       # wpr ready
    h = jnp.dot(_bf16(h), wpr_v[...],
                preferred_element_type=jnp.float32) + bpr_ref[...]
    x = x + h

    # 4) ln_post on the class token, fused (CLIP proj @ vit_l1) + b_l1, ReLU, vit_l2
    cls_tok = x.reshape(N, T_PAD, D_VIT)[:, 0, :]                      # x[:, 0]
    c = _layernorm(cls_tok, g_post_ref[...], b_post_ref[...])
    cp_p1.wait()                                                       # proj@l1 ready
    f = jnp.dot(_bf16(c), wp1_v[...],
                preferred_element_type=jnp.float32) + bl1_ref[...]
    f = jnp.maximum(f, 0.0)                                            # F.relu
    cp_l2.wait()                                                       # w_l2 ready
    f = jnp.dot(_bf16(f), wl2_v[...],
                preferred_element_type=jnp.float32) + bl2_ref[...]
    emb_ref[...] = f


# ------------------------------ full forward --------------------------------
def _im2col(img):
    """(N,C,H,W) -> (N*T_PAD, K_PAD) im2col rows, channel-major inside each patch.

    Row layout per image: [cls slot (zeros), patches, seq padding (zeros)];
    feature axis zero-padded 192 -> 256 lanes.
    """
    N, C, H, W = img.shape
    gh, gw = H // PATCH, W // PATCH
    p = img.reshape(N, C, gh, PATCH, gw, PATCH)
    p = p.transpose(0, 2, 4, 1, 3, 5).reshape(N, gh * gw, C * PATCH * PATCH)
    p = jnp.pad(p, ((0, 0), (1, T_PAD - SEQ), (0, K_PAD - K_RAW)))
    return p.reshape(N * T_PAD, K_PAD).astype(jnp.bfloat16)


def model_vit_forward(img, fp):
    """img: (N, C, H, W) float32 (NCHW, like PyTorch). Returns (out_emb, out_pool).

    Per-call fixed cost (launch, weight DMA) is amortized over the batch, so
    callers should pass as many images per call as available (N up to ~16+).
    """
    N = img.shape[0]
    patches = _im2col(img)

    args = [patches] + [fp[k] for k in FUSED_KEYS]
    in_specs = [_full_spec(patches.shape)]
    for k in FUSED_KEYS:
        if k in HBM_WEIGHTS:
            in_specs.append(pl.BlockSpec(memory_space=pl.ANY))   # manual DMA
        else:
            in_specs.append(_full_spec(fp[k].shape))

    emb = pl.pallas_call(
        _vit_fused_kernel,
        out_shape=jax.ShapeDtypeStruct((N, D_OUT), jnp.float32),
        grid=(1,),
        in_specs=in_specs,
        out_specs=_full_spec((N, D_OUT)),
        scratch_shapes=[
            pltpu.VMEM((D_VIT, D_MLP), jnp.bfloat16),    # wfc
            pltpu.VMEM((D_MLP, D_VIT), jnp.bfloat16),    # wpr
            pltpu.VMEM((D_VIT, D_CLIP), jnp.bfloat16),   # proj @ vit_l1
            pltpu.VMEM((D_CLIP, D_OUT), jnp.bfloat16),   # vit_l2
            pltpu.SemaphoreType.DMA((4,)),
        ],
        compiler_params=pltpu.CompilerParams(dimension_semantics=("arbitrary",)),
    )(*args)

    out_emb = emb[:, None, :]      # vit_fea.unsqueeze(1)
    out_pool = emb                 # torch.mean over the size-1 axis == identity
    return out_emb, out_pool


# ------------------------------ parameters ----------------------------------
def init_params(key):
    ks = jax.random.split(key, 12)

    def nrm(k, shape, scale=0.02):
        return (scale * jax.random.normal(k, shape)).astype(jnp.float32)

    f32 = jnp.float32
    return {
        # CLIP-style visual backbone (reduced size)
        "w_patch":   nrm(ks[0], (K_RAW, D_VIT)),
        "class_emb": nrm(ks[1], (D_VIT,)),
        "pos_emb":   nrm(ks[2], (SEQ, D_VIT), 0.01),
        "ln_pre_g":  jnp.ones((D_VIT,), f32), "ln_pre_b": jnp.zeros((D_VIT,), f32),
        "ln1_g": jnp.ones((D_VIT,), f32),  "ln1_b": jnp.zeros((D_VIT,), f32),
        "wq": nrm(ks[3], (D_VIT, D_VIT)),  "bq": jnp.zeros((D_VIT,), f32),
        "wk": nrm(ks[4], (D_VIT, D_VIT)),  "bk": jnp.zeros((D_VIT,), f32),
        "wv": nrm(ks[5], (D_VIT, D_VIT)),  "bv": jnp.zeros((D_VIT,), f32),
        "wo": nrm(ks[6], (D_VIT, D_VIT)),  "bo": jnp.zeros((D_VIT,), f32),
        "ln2_g": jnp.ones((D_VIT,), f32),  "ln2_b": jnp.zeros((D_VIT,), f32),
        "wfc": nrm(ks[7], (D_VIT, D_MLP)), "bfc": jnp.zeros((D_MLP,), f32),
        "wpr": nrm(ks[8], (D_MLP, D_VIT)), "bpr": jnp.zeros((D_VIT,), f32),
        "ln_post_g": jnp.ones((D_VIT,), f32), "ln_post_b": jnp.zeros((D_VIT,), f32),
        "proj": nrm(ks[9], (D_VIT, D_CLIP)),
        # ModelViT head: nn.Linear(512, 512), nn.Linear(512, 768); weights stored
        # as (in, out) so the kernel does x @ W + b (== x @ W_pt.T + b).
        "w_l1": nrm(ks[10], (D_CLIP, D_CLIP)), "b_l1": jnp.zeros((D_CLIP,), f32),
        "w_l2": nrm(ks[11], (D_CLIP, D_OUT)),  "b_l2": jnp.zeros((D_OUT,), f32),
    }


def fuse_params(p):
    """One-time preprocessing into the fused/padded/bf16 layout the kernel expects."""
    bf16, f32 = jnp.bfloat16, jnp.float32
    row = lambda v: v.reshape(1, -1).astype(f32)

    # pos_emb padded to T_PAD rows + class_emb added to token slot 0 (slot-wise
    # constants, identical for every image) -> single (T_PAD, D) "token embedding".
    pos_pad = jnp.pad(p["pos_emb"], ((0, T_PAD - SEQ), (0, 0)))
    cls_rows = jnp.concatenate(
        [p["class_emb"][None, :], jnp.zeros((T_PAD - 1, D_VIT), f32)], axis=0)
    tok_emb = (pos_pad + cls_rows).astype(f32)

    return {
        "w_patch": jnp.pad(p["w_patch"], ((0, K_PAD - K_RAW), (0, 0))).astype(bf16),
        "tok_emb": tok_emb,
        "ln_pre_g": row(p["ln_pre_g"]), "ln_pre_b": row(p["ln_pre_b"]),
        "ln1_g": row(p["ln1_g"]), "ln1_b": row(p["ln1_b"]),
        "wqkv": jnp.concatenate([p["wq"], p["wk"], p["wv"]], axis=1).astype(bf16),
        "bqkv": jnp.concatenate([p["bq"], p["bk"], p["bv"]]).reshape(1, -1).astype(f32),
        "wo": p["wo"].astype(bf16), "bo": row(p["bo"]),
        "ln2_g": row(p["ln2_g"]), "ln2_b": row(p["ln2_b"]),
        "wfc": p["wfc"].astype(bf16), "bfc": row(p["bfc"]),
        "wpr": p["wpr"].astype(bf16), "bpr": row(p["bpr"]),
        "ln_post_g": row(p["ln_post_g"]), "ln_post_b": row(p["ln_post_b"]),
        # no nonlinearity between the CLIP visual projection and vit_l1 -> fuse offline
        "w_proj_l1": (p["proj"] @ p["w_l1"]).astype(bf16), "b_l1": row(p["b_l1"]),
        "w_l2": p["w_l2"].astype(bf16), "b_l2": row(p["b_l2"]),
    }


if __name__ == "__main__":
    key = jax.random.PRNGKey(0)
    pkey, xkey = jax.random.split(key)
    fparams = fuse_params(init_params(pkey))

    N_BATCH = 8                    # amortize per-call launch / weight-DMA cost
    img = jax.random.normal(xkey, (N_BATCH, C_IN, IMG, IMG), jnp.float32)   # NCHW

    fwd = jax.jit(model_vit_forward)
    out_emb, out_pool = fwd(img, fparams)
    jax.block_until_ready((out_emb, out_pool))

    assert out_emb.shape == (N_BATCH, 1, D_OUT), out_emb.shape
    assert out_pool.shape == (N_BATCH, D_OUT), out_pool.shape
    assert bool(jnp.all(jnp.isfinite(out_emb))) and bool(jnp.all(jnp.isfinite(out_pool)))
    print("KERNEL_OK")
</pallas_src>

<mosaic_0001>
module attributes {stable_mosaic.version = 11 : i64} {
  func.func @_vit_fused_kernel(%arg0: i32, %arg1: memref<64x256xbf16, #tpu.memory_space<vmem>>, %arg2: memref<256x128xbf16, #tpu.memory_space<vmem>>, %arg3: memref<8x128xf32, #tpu.memory_space<vmem>>, %arg4: memref<1x128xf32, #tpu.memory_space<vmem>>, %arg5: memref<1x128xf32, #tpu.memory_space<vmem>>, %arg6: memref<1x128xf32, #tpu.memory_space<vmem>>, %arg7: memref<1x128xf32, #tpu.memory_space<vmem>>, %arg8: memref<128x384xbf16, #tpu.memory_space<vmem>>, %arg9: memref<1x384xf32, #tpu.memory_space<vmem>>, %arg10: memref<128x128xbf16, #tpu.memory_space<vmem>>, %arg11: memref<1x128xf32, #tpu.memory_space<vmem>>, %arg12: memref<1x128xf32, #tpu.memory_space<vmem>>, %arg13: memref<1x128xf32, #tpu.memory_space<vmem>>, %arg14: memref<128x512xbf16, #tpu.memory_space<any>>, %arg15: memref<1x512xf32, #tpu.memory_space<vmem>>, %arg16: memref<512x128xbf16, #tpu.memory_space<any>>, %arg17: memref<1x128xf32, #tpu.memory_space<vmem>>, %arg18: memref<1x128xf32, #tpu.memory_space<vmem>>, %arg19: memref<1x128xf32, #tpu.memory_space<vmem>>, %arg20: memref<128x512xbf16, #tpu.memory_space<any>>, %arg21: memref<1x512xf32, #tpu.memory_space<vmem>>, %arg22: memref<512x768xbf16, #tpu.memory_space<any>>, %arg23: memref<1x768xf32, #tpu.memory_space<vmem>>, %arg24: memref<8x768xf32, #tpu.memory_space<vmem>>, %arg25: memref<128x512xbf16, #tpu.memory_space<vmem>>, %arg26: memref<512x128xbf16, #tpu.memory_space<vmem>>, %arg27: memref<128x512xbf16, #tpu.memory_space<vmem>>, %arg28: memref<512x768xbf16, #tpu.memory_space<vmem>>, %arg29: memref<4x!tpu.dma_semaphore, #tpu.memory_space<semaphore_mem>>) attributes {dimension_semantics = [#tpu.dimension_semantics<arbitrary>], iteration_bounds = array<i64: 1>, scalar_prefetch = 0 : i64, scratch_operands = 5 : i64, tpu.core_type = #tpu.core_type<tc>, window_params = [{pipeline_mode = #tpu.pipeline_mode<synchronous>, transform_indices = @transform_0, window_bounds = array<i64: 64, 256>}, {pipeline_mode = #tpu.pipeline_mode<synchronous>, transform_indices = @transform_1, window_bounds = array<i64: 256, 128>}, {pipeline_mode = #tpu.pipeline_mode<synchronous>, transform_indices = @transform_2, window_bounds = array<i64: 8, 128>}, {pipeline_mode = #tpu.pipeline_mode<synchronous>, transform_indices = @transform_3, window_bounds = array<i64: 1, 128>}, {pipeline_mode = #tpu.pipeline_mode<synchronous>, transform_indices = @transform_4, window_bounds = array<i64: 1, 128>}, {pipeline_mode = #tpu.pipeline_mode<synchronous>, transform_indices = @transform_5, window_bounds = array<i64: 1, 128>}, {pipeline_mode = #tpu.pipeline_mode<synchronous>, transform_indices = @transform_6, window_bounds = array<i64: 1, 128>}, {pipeline_mode = #tpu.pipeline_mode<synchronous>, transform_indices = @transform_7, window_bounds = array<i64: 128, 384>}, {pipeline_mode = #tpu.pipeline_mode<synchronous>, transform_indices = @transform_8, window_bounds = array<i64: 1, 384>}, {pipeline_mode = #tpu.pipeline_mode<synchronous>, transform_indices = @transform_9, window_bounds = array<i64: 128, 128>}, {pipeline_mode = #tpu.pipeline_mode<synchronous>, transform_indices = @transform_10, window_bounds = array<i64: 1, 128>}, {pipeline_mode = #tpu.pipeline_mode<synchronous>, transform_indices = @transform_11, window_bounds = array<i64: 1, 128>}, {pipeline_mode = #tpu.pipeline_mode<synchronous>, transform_indices = @transform_12, window_bounds = array<i64: 1, 128>}, {}, {pipeline_mode = #tpu.pipeline_mode<synchronous>, transform_indices = @transform_14, window_bounds = array<i64: 1, 512>}, {}, {pipeline_mode = #tpu.pipeline_mode<synchronous>, transform_indices = @transform_16, window_bounds = array<i64: 1, 128>}, {pipeline_mode = #tpu.pipeline_mode<synchronous>, transform_indices = @transform_17, window_bounds = array<i64: 1, 128>}, {pipeline_mode = #tpu.pipeline_mode<synchronous>, transform_indices = @transform_18, window_bounds = array<i64: 1, 128>}, {}, {pipeline_mode = #tpu.pipeline_mode<synchronous>, transform_indices = @transform_20, window_bounds = array<i64: 1, 512>}, {}, {pipeline_mode = #tpu.pipeline_mode<synchronous>, transform_indices = @transform_22, window_bounds = array<i64: 1, 768>}, {pipeline_mode = #tpu.pipeline_mode<synchronous>, transform_indices = @transform_23, window_bounds = array<i64: 8, 768>}]} {
    %c0_i32 = arith.constant 0 : i32
    %0 = tpu.memref_slice %arg29[%c0_i32] : memref<4x!tpu.dma_semaphore, #tpu.memory_space<semaphore_mem>> -> memref<1x!tpu.dma_semaphore, #tpu.memory_space<semaphore_mem>>
    %1 = tpu.memref_squeeze %0 : memref<1x!tpu.dma_semaphore, #tpu.memory_space<semaphore_mem>> -> memref<!tpu.dma_semaphore, #tpu.memory_space<semaphore_mem>>
    tpu.enqueue_dma source(%arg14 : memref<128x512xbf16, #tpu.memory_space<any>>) target(%arg25 : memref<128x512xbf16, #tpu.memory_space<vmem>>) target_semaphore(%1 : memref<!tpu.dma_semaphore, #tpu.memory_space<semaphore_mem>>)
    %c1_i32 = arith.constant 1 : i32
    %2 = tpu.memref_slice %arg29[%c1_i32] : memref<4x!tpu.dma_semaphore, #tpu.memory_space<semaphore_mem>> -> memref<1x!tpu.dma_semaphore, #tpu.memory_space<semaphore_mem>>
    %3 = tpu.memref_squeeze %2 : memref<1x!tpu.dma_semaphore, #tpu.memory_space<semaphore_mem>> -> memref<!tpu.dma_semaphore, #tpu.memory_space<semaphore_mem>>
    tpu.enqueue_dma source(%arg16 : memref<512x128xbf16, #tpu.memory_space<any>>) target(%arg26 : memref<512x128xbf16, #tpu.memory_space<vmem>>) target_semaphore(%3 : memref<!tpu.dma_semaphore, #tpu.memory_space<semaphore_mem>>)
    %c2_i32 = arith.constant 2 : i32
    %4 = tpu.memref_slice %arg29[%c2_i32] : memref<4x!tpu.dma_semaphore, #tpu.memory_space<semaphore_mem>> -> memref<1x!tpu.dma_semaphore, #tpu.memory_space<semaphore_mem>>
    %5 = tpu.memref_squeeze %4 : memref<1x!tpu.dma_semaphore, #tpu.memory_space<semaphore_mem>> -> memref<!tpu.dma_semaphore, #tpu.memory_space<semaphore_mem>>
    tpu.enqueue_dma source(%arg20 : memref<128x512xbf16, #tpu.memory_space<any>>) target(%arg27 : memref<128x512xbf16, #tpu.memory_space<vmem>>) target_semaphore(%5 : memref<!tpu.dma_semaphore, #tpu.memory_space<semaphore_mem>>)
    %c3_i32 = arith.constant 3 : i32
    %6 = tpu.memref_slice %arg29[%c3_i32] : memref<4x!tpu.dma_semaphore, #tpu.memory_space<semaphore_mem>> -> memref<1x!tpu.dma_semaphore, #tpu.memory_space<semaphore_mem>>
    %7 = tpu.memref_squeeze %6 : memref<1x!tpu.dma_semaphore, #tpu.memory_space<semaphore_mem>> -> memref<!tpu.dma_semaphore, #tpu.memory_space<semaphore_mem>>
    tpu.enqueue_dma source(%arg22 : memref<512x768xbf16, #tpu.memory_space<any>>) target(%arg28 : memref<512x768xbf16, #tpu.memory_space<vmem>>) target_semaphore(%7 : memref<!tpu.dma_semaphore, #tpu.memory_space<semaphore_mem>>)
    %c0 = arith.constant 0 : index
    %c0_0 = arith.constant 0 : index
    %8 = vector.load %arg1[%c0, %c0_0] : memref<64x256xbf16, #tpu.memory_space<vmem>>, vector<64x256xbf16>
    %c0_1 = arith.constant 0 : index
    %c0_2 = arith.constant 0 : index
    %9 = vector.load %arg2[%c0_1, %c0_2] : memref<256x128xbf16, #tpu.memory_space<vmem>>, vector<256x128xbf16>
    %cst = arith.constant dense<0.000000e+00> : vector<64x128xf32>
    %10 = tpu.matmul %8, %9, %cst {dimension_numbers = #tpu.dot_dimension_numbers<[1], [0], [0], [1], [0, 0, 1, 1], [], []>} : vector<64x256xbf16>, vector<256x128xbf16>, vector<64x128xf32> -> vector<64x128xf32>
    %11 = vector.shape_cast %10 : vector<64x128xf32> to vector<8x8x128xf32>
    %c0_3 = arith.constant 0 : index
    %c0_4 = arith.constant 0 : index
    %12 = vector.load %arg3[%c0_3, %c0_4] : memref<8x128xf32, #tpu.memory_space<vmem>>, vector<8x128xf32>
    %13 = vector.shape_cast %12 : vector<8x128xf32> to vector<1x8x128xf32>
    %14 = vector.broadcast %13 : vector<1x8x128xf32> to vector<8x8x128xf32>
    %15 = arith.addf %11, %14 : vector<8x8x128xf32>
    %16 = vector.shape_cast %15 : vector<8x8x128xf32> to vector<64x128xf32>
    %c0_5 = arith.constant 0 : index
    %c0_6 = arith.constant 0 : index
    %17 = vector.load %arg4[%c0_5, %c0_6] : memref<1x128xf32, #tpu.memory_space<vmem>>, vector<1x128xf32>
    %c0_7 = arith.constant 0 : index
    %c0_8 = arith.constant 0 : index
    %18 = vector.load %arg5[%c0_7, %c0_8] : memref<1x128xf32, #tpu.memory_space<vmem>>, vector<1x128xf32>
    %cst_9 = arith.constant dense<0.000000e+00> : vector<64xf32>
    %19 = vector.multi_reduction <add>, %16, %cst_9 [1] : vector<64x128xf32> to vector<64xf32>
    %20 = vector.shape_cast %19 : vector<64xf32> to vector<64x1xf32>
    %cst_10 = arith.constant 1.280000e+02 : f32
    %21 = vector.broadcast %cst_10 : f32 to vector<64x1xf32>
    %22 = arith.divf %20, %21 : vector<64x1xf32>
    %23 = vector.broadcast %22 : vector<64x1xf32> to vector<64x128xf32>
    %24 = arith.subf %16, %23 : vector<64x128xf32>
    %25 = arith.mulf %24, %24 : vector<64x128xf32>
    %cst_11 = arith.constant dense<0.000000e+00> : vector<64xf32>
    %26 = vector.multi_reduction <add>, %25, %cst_11 [1] : vector<64x128xf32> to vector<64xf32>
    %27 = vector.shape_cast %26 : vector<64xf32> to vector<64x1xf32>
    %cst_12 = arith.constant 1.280000e+02 : f32
    %28 = vector.broadcast %cst_12 : f32 to vector<64x1xf32>
    %29 = arith.divf %27, %28 : vector<64x1xf32>
    %30 = vector.broadcast %22 : vector<64x1xf32> to vector<64x128xf32>
    %31 = arith.subf %16, %30 : vector<64x128xf32>
    %cst_13 = arith.constant 9.99999974E-6 : f32
    %32 = vector.broadcast %cst_13 : f32 to vector<64x1xf32>
    %33 = arith.addf %29, %32 : vector<64x1xf32>
    %34 = math.rsqrt %33 : vector<64x1xf32>
    %35 = vector.broadcast %34 : vector<64x1xf32> to vector<64x128xf32>
    %36 = arith.mulf %31, %35 : vector<64x128xf32>
    %37 = vector.broadcast %17 : vector<1x128xf32> to vector<64x128xf32>
    %38 = arith.mulf %36, %37 : vector<64x128xf32>
    %39 = vector.broadcast %18 : vector<1x128xf32> to vector<64x128xf32>
    %40 = arith.addf %38, %39 : vector<64x128xf32>
    %c0_14 = arith.constant 0 : index
    %c0_15 = arith.constant 0 : index
    %41 = vector.load %arg6[%c0_14, %c0_15] : memref<1x128xf32, #tpu.memory_space<vmem>>, vector<1x128xf32>
    %c0_16 = arith.constant 0 : index
    %c0_17 = arith.constant 0 : index
    %42 = vector.load %arg7[%c0_16, %c0_17] : memref<1x128xf32, #tpu.memory_space<vmem>>, vector<1x128xf32>
    %cst_18 = arith.constant dense<0.000000e+00> : vector<64xf32>
    %43 = vector.multi_reduction <add>, %40, %cst_18 [1] : vector<64x128xf32> to vector<64xf32>
    %44 = vector.shape_cast %43 : vector<64xf32> to vector<64x1xf32>
    %cst_19 = arith.constant 1.280000e+02 : f32
    %45 = vector.broadcast %cst_19 : f32 to vector<64x1xf32>
    %46 = arith.divf %44, %45 : vector<64x1xf32>
    %47 = vector.broadcast %46 : vector<64x1xf32> to vector<64x128xf32>
    %48 = arith.subf %40, %47 : vector<64x128xf32>
    %49 = arith.mulf %48, %48 : vector<64x128xf32>
    %cst_20 = arith.constant dense<0.000000e+00> : vector<64xf32>
    %50 = vector.multi_reduction <add>, %49, %cst_20 [1] : vector<64x128xf32> to vector<64xf32>
    %51 = vector.shape_cast %50 : vector<64xf32> to vector<64x1xf32>
    %cst_21 = arith.constant 1.280000e+02 : f32
    %52 = vector.broadcast %cst_21 : f32 to vector<64x1xf32>
    %53 = arith.divf %51, %52 : vector<64x1xf32>
    %54 = vector.broadcast %46 : vector<64x1xf32> to vector<64x128xf32>
    %55 = arith.subf %40, %54 : vector<64x128xf32>
    %cst_22 = arith.constant 9.99999974E-6 : f32
    %56 = vector.broadcast %cst_22 : f32 to vector<64x1xf32>
    %57 = arith.addf %53, %56 : vector<64x1xf32>
    %58 = math.rsqrt %57 : vector<64x1xf32>
    %59 = vector.broadcast %58 : vector<64x1xf32> to vector<64x128xf32>
    %60 = arith.mulf %55, %59 : vector<64x128xf32>
    %61 = vector.broadcast %41 : vector<1x128xf32> to vector<64x128xf32>
    %62 = arith.mulf %60, %61 : vector<64x128xf32>
    %63 = vector.broadcast %42 : vector<1x128xf32> to vector<64x128xf32>
    %64 = arith.addf %62, %63 : vector<64x128xf32>
    %65 = arith.truncf %64 : vector<64x128xf32> to vector<64x128xbf16>
    %c0_23 = arith.constant 0 : index
    %c0_24 = arith.constant 0 : index
    %66 = vector.load %arg8[%c0_23, %c0_24] : memref<128x384xbf16, #tpu.memory_space<vmem>>, vector<128x384xbf16>
    %cst_25 = arith.constant dense<0.000000e+00> : vector<64x384xf32>
    %67 = tpu.matmul %65, %66, %cst_25 {dimension_numbers = #tpu.dot_dimension_numbers<[1], [0], [0], [1], [0, 0, 1, 1], [], []>} : vector<64x128xbf16>, vector<128x384xbf16>, vector<64x384xf32> -> vector<64x384xf32>
    %c0_26 = arith.constant 0 : index
    %c0_27 = arith.constant 0 : index
    %68 = vector.load %arg9[%c0_26, %c0_27] : memref<1x384xf32, #tpu.memory_space<vmem>>, vector<1x384xf32>
    %69 = vector.broadcast %68 : vector<1x384xf32> to vector<64x384xf32>
    %70 = arith.addf %67, %69 : vector<64x384xf32>
    %71 = vector.extract_strided_slice %70 {offsets = [0, 0], sizes = [64, 128], strides = [1, 1]} : vector<64x384xf32> to vector<64x128xf32>
    %72 = vector.shape_cast %71 : vector<64x128xf32> to vector<8x8x128xf32>
    %73 = vector.extract_strided_slice %70 {offsets = [0, 128], sizes = [64, 128], strides = [1, 1]} : vector<64x384xf32> to vector<64x128xf32>
    %74 = vector.shape_cast %73 : vector<64x128xf32> to vector<8x8x128xf32>
    %75 = vector.extract_strided_slice %70 {offsets = [0, 256], sizes = [64, 128], strides = [1, 1]} : vector<64x384xf32> to vector<64x128xf32>
    %76 = vector.shape_cast %75 : vector<64x128xf32> to vector<8x8x128xf32>
    %77 = vector.extract_strided_slice %72 {offsets = [0, 0, 0], sizes = [8, 8, 64], strides = [1, 1, 1]} : vector<8x8x128xf32> to vector<8x8x64xf32>
    %78 = vector.extract_strided_slice %72 {offsets = [0, 0, 64], sizes = [8, 8, 64], strides = [1, 1, 1]} : vector<8x8x128xf32> to vector<8x8x64xf32>
    %79 = tpu.concatenate %77, %78 in 0 : vector<8x8x64xf32>, vector<8x8x64xf32> -> vector<16x8x64xf32>
    %80 = vector.extract_strided_slice %74 {offsets = [0, 0, 0], sizes = [8, 8, 64], strides = [1, 1, 1]} : vector<8x8x128xf32> to vector<8x8x64xf32>
    %81 = vector.extract_strided_slice %74 {offsets = [0, 0, 64], sizes = [8, 8, 64], strides = [1, 1, 1]} : vector<8x8x128xf32> to vector<8x8x64xf32>
    %82 = tpu.concatenate %80, %81 in 0 : vector<8x8x64xf32>, vector<8x8x64xf32> -> vector<16x8x64xf32>
    %83 = vector.extract_strided_slice %76 {offsets = [0, 0, 0], sizes = [8, 8, 64], strides = [1, 1, 1]} : vector<8x8x128xf32> to vector<8x8x64xf32>
    %84 = vector.extract_strided_slice %76 {offsets = [0, 0, 64], sizes = [8, 8, 64], strides = [1, 1, 1]} : vector<8x8x128xf32> to vector<8x8x64xf32>
    %85 = tpu.concatenate %83, %84 in 0 : vector<8x8x64xf32>, vector<8x8x64xf32> -> vector<16x8x64xf32>
    %86 = arith.truncf %79 : vector<16x8x64xf32> to vector<16x8x64xbf16>
    %87 = arith.truncf %82 : vector<16x8x64xf32> to vector<16x8x64xbf16>
    "tpu.trace_start"() <{level = 10 : i32, message = "bqd,bkd->bqk"}> : () -> ()
    %cst_28 = arith.constant dense<0.000000e+00> : vector<16x8x8xf32>
    %88 = tpu.matmul %86, %87, %cst_28 {dimension_numbers = #tpu.dot_dimension_numbers<[2], [2], [1], [1], [0, 0, 0, 1, 1, 1], [0], [0]>} : vector<16x8x64xbf16>, vector<16x8x64xbf16>, vector<16x8x8xf32> -> vector<16x8x8xf32>
    "tpu.trace_stop"() : () -> ()
    %cst_29 = arith.constant 1.250000e-01 : f32
    %89 = vector.broadcast %cst_29 : f32 to vector<16x8x8xf32>
    %90 = arith.mulf %88, %89 : vector<16x8x8xf32>
    %91 = tpu.iota {dimensions = array<i32: 2>} : vector<16x8x8xi32>
    %c5_i32 = arith.constant 5 : i32
    %92 = vector.broadcast %c5_i32 : i32 to vector<16x8x8xi32>
    %93 = arith.cmpi slt, %91, %92 : vector<16x8x8xi32>
    %cst_30 = arith.constant -1.000000e+30 : f32
    %94 = vector.broadcast %cst_30 : f32 to vector<16x8x8xf32>
    %95 = arith.select %93, %90, %94 : vector<16x8x8xi1>, vector<16x8x8xf32>
    %cst_31 = arith.constant dense<0xFF800000> : vector<16x8xf32>
    %96 = vector.multi_reduction <maximumf>, %95, %cst_31 [2] : vector<16x8x8xf32> to vector<16x8xf32>
    %97 = vector.shape_cast %96 : vector<16x8xf32> to vector<16x8x1xf32>
    %98 = vector.broadcast %97 : vector<16x8x1xf32> to vector<16x8x8xf32>
    %99 = arith.subf %95, %98 : vector<16x8x8xf32>
    %100 = math.exp %99 : vector<16x8x8xf32>
    %cst_32 = arith.constant dense<0.000000e+00> : vector<16x8xf32>
    %101 = vector.multi_reduction <add>, %100, %cst_32 [2] : vector<16x8x8xf32> to vector<16x8xf32>
    %102 = vector.shape_cast %101 : vector<16x8xf32> to vector<16x8x1xf32>
    %103 = tpu.reciprocal %102 {approx = true} : vector<16x8x1xf32> -> vector<16x8x1xf32>
    %104 = vector.broadcast %103 : vector<16x8x1xf32> to vector<16x8x8xf32>
    %105 = arith.mulf %100, %104 : vector<16x8x8xf32>
    %106 = arith.truncf %105 : vector<16x8x8xf32> to vector<16x8x8xbf16>
    %107 = arith.truncf %85 : vector<16x8x64xf32> to vector<16x8x64xbf16>
    "tpu.trace_start"() <{level = 10 : i32, message = "bqk,bkd->bqd"}> : () -> ()
    %cst_33 = arith.constant dense<0.000000e+00> : vector<16x8x64xf32>
    %108 = tpu.matmul %106, %107, %cst_33 {dimension_numbers = #tpu.dot_dimension_numbers<[2], [1], [1], [2], [0, 0, 0, 1, 1, 2], [0], [0]>} : vector<16x8x8xbf16>, vector<16x8x64xbf16>, vector<16x8x64xf32> -> vector<16x8x64xf32>
    "tpu.trace_stop"() : () -> ()
    %109 = vector.extract_strided_slice %108 {offsets = [0, 0, 0], sizes = [8, 8, 64], strides = [1, 1, 1]} : vector<16x8x64xf32> to vector<8x8x64xf32>
    %110 = vector.extract_strided_slice %108 {offsets = [8, 0, 0], sizes = [8, 8, 64], strides = [1, 1, 1]} : vector<16x8x64xf32> to vector<8x8x64xf32>
    %111 = tpu.concatenate %109, %110 in 2 : vector<8x8x64xf32>, vector<8x8x64xf32> -> vector<8x8x128xf32>
    %112 = vector.shape_cast %111 : vector<8x8x128xf32> to vector<64x128xf32>
    %113 = arith.truncf %112 : vector<64x128xf32> to vector<64x128xbf16>
    %c0_34 = arith.constant 0 : index
    %c0_35 = arith.constant 0 : index
    %114 = vector.load %arg10[%c0_34, %c0_35] : memref<128x128xbf16, #tpu.memory_space<vmem>>, vector<128x128xbf16>
    %cst_36 = arith.constant dense<0.000000e+00> : vector<64x128xf32>
    %115 = tpu.matmul %113, %114, %cst_36 {dimension_numbers = #tpu.dot_dimension_numbers<[1], [0], [0], [1], [0, 0, 1, 1], [], []>} : vector<64x128xbf16>, vector<128x128xbf16>, vector<64x128xf32> -> vector<64x128xf32>
    %116 = arith.addf %40, %115 : vector<64x128xf32>
    %c0_37 = arith.constant 0 : index
    %c0_38 = arith.constant 0 : index
    %117 = vector.load %arg11[%c0_37, %c0_38] : memref<1x128xf32, #tpu.memory_space<vmem>>, vector<1x128xf32>
    %118 = vector.broadcast %117 : vector<1x128xf32> to vector<64x128xf32>
    %119 = arith.addf %116, %118 : vector<64x128xf32>
    %c0_39 = arith.constant 0 : index
    %c0_40 = arith.constant 0 : index
    %120 = vector.load %arg12[%c0_39, %c0_40] : memref<1x128xf32, #tpu.memory_space<vmem>>, vector<1x128xf32>
    %c0_41 = arith.constant 0 : index
    %c0_42 = arith.constant 0 : index
    %121 = vector.load %arg13[%c0_41, %c0_42] : memref<1x128xf32, #tpu.memory_space<vmem>>, vector<1x128xf32>
    %cst_43 = arith.constant dense<0.000000e+00> : vector<64xf32>
    %122 = vector.multi_reduction <add>, %119, %cst_43 [1] : vector<64x128xf32> to vector<64xf32>
    %123 = vector.shape_cast %122 : vector<64xf32> to vector<64x1xf32>
    %cst_44 = arith.constant 1.280000e+02 : f32
    %124 = vector.broadcast %cst_44 : f32 to vector<64x1xf32>
    %125 = arith.divf %123, %124 : vector<64x1xf32>
    %126 = vector.broadcast %125 : vector<64x1xf32> to vector<64x128xf32>
    %127 = arith.subf %119, %126 : vector<64x128xf32>
    %128 = arith.mulf %127, %127 : vector<64x128xf32>
    %cst_45 = arith.constant dense<0.000000e+00> : vector<64xf32>
    %129 = vector.multi_reduction <add>, %128, %cst_45 [1] : vector<64x128xf32> to vector<64xf32>
    %130 = vector.shape_cast %129 : vector<64xf32> to vector<64x1xf32>
    %cst_46 = arith.constant 1.280000e+02 : f32
    %131 = vector.broadcast %cst_46 : f32 to vector<64x1xf32>
    %132 = arith.divf %130, %131 : vector<64x1xf32>
    %133 = vector.broadcast %125 : vector<64x1xf32> to vector<64x128xf32>
    %134 = arith.subf %119, %133 : vector<64x128xf32>
    %cst_47 = arith.constant 9.99999974E-6 : f32
    %135 = vector.broadcast %cst_47 : f32 to vector<64x1xf32>
    %136 = arith.addf %132, %135 : vector<64x1xf32>
    %137 = math.rsqrt %136 : vector<64x1xf32>
    %138 = vector.broadcast %137 : vector<64x1xf32> to vector<64x128xf32>
    %139 = arith.mulf %134, %138 : vector<64x128xf32>
    %140 = vector.broadcast %120 : vector<1x128xf32> to vector<64x128xf32>
    %141 = arith.mulf %139, %140 : vector<64x128xf32>
    %142 = vector.broadcast %121 : vector<1x128xf32> to vector<64x128xf32>
    %143 = arith.addf %141, %142 : vector<64x128xf32>
    %c0_i32_48 = arith.constant 0 : i32
    %144 = tpu.memref_slice %arg29[%c0_i32_48] : memref<4x!tpu.dma_semaphore, #tpu.memory_space<semaphore_mem>> -> memref<1x!tpu.dma_semaphore, #tpu.memory_space<semaphore_mem>>
    %145 = tpu.memref_squeeze %144 : memref<1x!tpu.dma_semaphore, #tpu.memory_space<semaphore_mem>> -> memref<!tpu.dma_semaphore, #tpu.memory_space<semaphore_mem>>
    tpu.wait_dma2 semaphore(%145 : memref<!tpu.dma_semaphore, #tpu.memory_space<semaphore_mem>>) src(%arg14 : memref<128x512xbf16, #tpu.memory_space<any>>) dst(%arg25 : memref<128x512xbf16, #tpu.memory_space<vmem>>)
    %146 = arith.truncf %143 : vector<64x128xf32> to vector<64x128xbf16>
    %c0_49 = arith.constant 0 : index
    %c0_50 = arith.constant 0 : index
    %147 = vector.load %arg25[%c0_49, %c0_50] : memref<128x512xbf16, #tpu.memory_space<vmem>>, vector<128x512xbf16>
    %cst_51 = arith.constant dense<0.000000e+00> : vector<64x512xf32>
    %148 = tpu.matmul %146, %147, %cst_51 {dimension_numbers = #tpu.dot_dimension_numbers<[1], [0], [0], [1], [0, 0, 1, 1], [], []>} : vector<64x128xbf16>, vector<128x512xbf16>, vector<64x512xf32> -> vector<64x512xf32>
    %c0_52 = arith.constant 0 : index
    %c0_53 = arith.constant 0 : index
    %149 = vector.load %arg15[%c0_52, %c0_53] : memref<1x512xf32, #tpu.memory_space<vmem>>, vector<1x512xf32>
    %150 = vector.broadcast %149 : vector<1x512xf32> to vector<64x512xf32>
    %151 = arith.addf %148, %150 : vector<64x512xf32>
    %cst_54 = arith.constant 1.702000e+00 : f32
    %152 = vector.broadcast %cst_54 : f32 to vector<64x512xf32>
    %153 = arith.mulf %152, %151 : vector<64x512xf32>
    %154 = arith.negf %153 : vector<64x512xf32>
    %155 = math.exp %154 : vector<64x512xf32>
    %cst_55 = arith.constant 1.000000e+00 : f32
    %156 = vector.broadcast %cst_55 : f32 to vector<64x512xf32>
    %157 = arith.addf %156, %155 : vector<64x512xf32>
    %158 = arith.divf %156, %157 : vector<64x512xf32>
    %159 = arith.mulf %151, %158 : vector<64x512xf32>
    %c1_i32_56 = arith.constant 1 : i32
    %160 = tpu.memref_slice %arg29[%c1_i32_56] : memref<4x!tpu.dma_semaphore, #tpu.memory_space<semaphore_mem>> -> memref<1x!tpu.dma_semaphore, #tpu.memory_space<semaphore_mem>>
    %161 = tpu.memref_squeeze %160 : memref<1x!tpu.dma_semaphore, #tpu.memory_space<semaphore_mem>> -> memref<!tpu.dma_semaphore, #tpu.memory_space<semaphore_mem>>
    tpu.wait_dma2 semaphore(%161 : memref<!tpu.dma_semaphore, #tpu.memory_space<semaphore_mem>>) src(%arg16 : memref<512x128xbf16, #tpu.memory_space<any>>) dst(%arg26 : memref<512x128xbf16, #tpu.memory_space<vmem>>)
    %162 = arith.truncf %159 : vector<64x512xf32> to vector<64x512xbf16>
    %c0_57 = arith.constant 0 : index
    %c0_58 = arith.constant 0 : index
    %163 = vector.load %arg26[%c0_57, %c0_58] : memref<512x128xbf16, #tpu.memory_space<vmem>>, vector<512x128xbf16>
    %cst_59 = arith.constant dense<0.000000e+00> : vector<64x128xf32>
    %164 = tpu.matmul %162, %163, %cst_59 {dimension_numbers = #tpu.dot_dimension_numbers<[1], [0], [0], [1], [0, 0, 1, 1], [], []>} : vector<64x512xbf16>, vector<512x128xbf16>, vector<64x128xf32> -> vector<64x128xf32>
    %c0_60 = arith.constant 0 : index
    %c0_61 = arith.constant 0 : index
    %165 = vector.load %arg17[%c0_60, %c0_61] : memref<1x128xf32, #tpu.memory_space<vmem>>, vector<1x128xf32>
    %166 = vector.broadcast %165 : vector<1x128xf32> to vector<64x128xf32>
    %167 = arith.addf %164, %166 : vector<64x128xf32>
    %168 = arith.addf %119, %167 : vector<64x128xf32>
    %169 = vector.shape_cast %168 : vector<64x128xf32> to vector<8x8x128xf32>
    %170 = vector.extract_strided_slice %169 {offsets = [0, 0, 0], sizes = [8, 1, 128], strides = [1, 1, 1]} : vector<8x8x128xf32> to vector<8x1x128xf32>
    %171 = vector.shape_cast %170 : vector<8x1x128xf32> to vector<8x128xf32>
    %c0_62 = arith.constant 0 : index
    %c0_63 = arith.constant 0 : index
    %172 = vector.load %arg18[%c0_62, %c0_63] : memref<1x128xf32, #tpu.memory_space<vmem>>, vector<1x128xf32>
    %c0_64 = arith.constant 0 : index
    %c0_65 = arith.constant 0 : index
    %173 = vector.load %arg19[%c0_64, %c0_65] : memref<1x128xf32, #tpu.memory_space<vmem>>, vector<1x128xf32>
    %cst_66 = arith.constant dense<0.000000e+00> : vector<8xf32>
    %174 = vector.multi_reduction <add>, %171, %cst_66 [1] : vector<8x128xf32> to vector<8xf32>
    %175 = vector.shape_cast %174 : vector<8xf32> to vector<8x1xf32>
    %cst_67 = arith.constant 1.280000e+02 : f32
    %176 = vector.broadcast %cst_67 : f32 to vector<8x1xf32>
    %177 = arith.divf %175, %176 : vector<8x1xf32>
    %178 = vector.broadcast %177 : vector<8x1xf32> to vector<8x128xf32>
    %179 = arith.subf %171, %178 : vector<8x128xf32>
    %180 = arith.mulf %179, %179 : vector<8x128xf32>
    %cst_68 = arith.constant dense<0.000000e+00> : vector<8xf32>
    %181 = vector.multi_reduction <add>, %180, %cst_68 [1] : vector<8x128xf32> to vector<8xf32>
    %182 = vector.shape_cast %181 : vector<8xf32> to vector<8x1xf32>
    %cst_69 = arith.constant 1.280000e+02 : f32
    %183 = vector.broadcast %cst_69 : f32 to vector<8x1xf32>
    %184 = arith.divf %182, %183 : vector<8x1xf32>
    %185 = vector.broadcast %177 : vector<8x1xf32> to vector<8x128xf32>
    %186 = arith.subf %171, %185 : vector<8x128xf32>
    %cst_70 = arith.constant 9.99999974E-6 : f32
    %187 = vector.broadcast %cst_70 : f32 to vector<8x1xf32>
    %188 = arith.addf %184, %187 : vector<8x1xf32>
    %189 = math.rsqrt %188 : vector<8x1xf32>
    %190 = vector.broadcast %189 : vector<8x1xf32> to vector<8x128xf32>
    %191 = arith.mulf %186, %190 : vector<8x128xf32>
    %192 = vector.broadcast %172 : vector<1x128xf32> to vector<8x128xf32>
    %193 = arith.mulf %191, %192 : vector<8x128xf32>
    %194 = vector.broadcast %173 : vector<1x128xf32> to vector<8x128xf32>
    %195 = arith.addf %193, %194 : vector<8x128xf32>
    %c2_i32_71 = arith.constant 2 : i32
    %196 = tpu.memref_slice %arg29[%c2_i32_71] : memref<4x!tpu.dma_semaphore, #tpu.memory_space<semaphore_mem>> -> memref<1x!tpu.dma_semaphore, #tpu.memory_space<semaphore_mem>>
    %197 = tpu.memref_squeeze %196 : memref<1x!tpu.dma_semaphore, #tpu.memory_space<semaphore_mem>> -> memref<!tpu.dma_semaphore, #tpu.memory_space<semaphore_mem>>
    tpu.wait_dma2 semaphore(%197 : memref<!tpu.dma_semaphore, #tpu.memory_space<semaphore_mem>>) src(%arg20 : memref<128x512xbf16, #tpu.memory_space<any>>) dst(%arg27 : memref<128x512xbf16, #tpu.memory_space<vmem>>)
    %198 = arith.truncf %195 : vector<8x128xf32> to vector<8x128xbf16>
    %c0_72 = arith.constant 0 : index
    %c0_73 = arith.constant 0 : index
    %199 = vector.load %arg27[%c0_72, %c0_73] : memref<128x512xbf16, #tpu.memory_space<vmem>>, vector<128x512xbf16>
    %cst_74 = arith.constant dense<0.000000e+00> : vector<8x512xf32>
    %200 = tpu.matmul %198, %199, %cst_74 {dimension_numbers = #tpu.dot_dimension_numbers<[1], [0], [0], [1], [0, 0, 1, 1], [], []>} : vector<8x128xbf16>, vector<128x512xbf16>, vector<8x512xf32> -> vector<8x512xf32>
    %c0_75 = arith.constant 0 : index
    %c0_76 = arith.constant 0 : index
    %201 = vector.load %arg21[%c0_75, %c0_76] : memref<1x512xf32, #tpu.memory_space<vmem>>, vector<1x512xf32>
    %202 = vector.broadcast %201 : vector<1x512xf32> to vector<8x512xf32>
    %203 = arith.addf %200, %202 : vector<8x512xf32>
    %cst_77 = arith.constant 0.000000e+00 : f32
    %204 = vector.broadcast %cst_77 : f32 to vector<8x512xf32>
    %205 = arith.maximumf %203, %204 : vector<8x512xf32>
    %c3_i32_78 = arith.constant 3 : i32
    %206 = tpu.memref_slice %arg29[%c3_i32_78] : memref<4x!tpu.dma_semaphore, #tpu.memory_space<semaphore_mem>> -> memref<1x!tpu.dma_semaphore, #tpu.memory_space<semaphore_mem>>
    %207 = tpu.memref_squeeze %206 : memref<1x!tpu.dma_semaphore, #tpu.memory_space<semaphore_mem>> -> memref<!tpu.dma_semaphore, #tpu.memory_space<semaphore_mem>>
    tpu.wait_dma2 semaphore(%207 : memref<!tpu.dma_semaphore, #tpu.memory_space<semaphore_mem>>) src(%arg22 : memref<512x768xbf16, #tpu.memory_space<any>>) dst(%arg28 : memref<512x768xbf16, #tpu.memory_space<vmem>>)
    %208 = arith.truncf %205 : vector<8x512xf32> to vector<8x512xbf16>
    %c0_79 = arith.constant 0 : index
    %c0_80 = arith.constant 0 : index
    %209 = vector.load %arg28[%c0_79, %c0_80] : memref<512x768xbf16, #tpu.memory_space<vmem>>, vector<512x768xbf16>
    %cst_81 = arith.constant dense<0.000000e+00> : vector<8x768xf32>
    %210 = tpu.matmul %208, %209, %cst_81 {dimension_numbers = #tpu.dot_dimension_numbers<[1], [0], [0], [1], [0, 0, 1, 1], [], []>} : vector<8x512xbf16>, vector<512x768xbf16>, vector<8x768xf32> -> vector<8x768xf32>
    %c0_82 = arith.constant 0 : index
    %c0_83 = arith.constant 0 : index
    %211 = vector.load %arg23[%c0_82, %c0_83] : memref<1x768xf32, #tpu.memory_space<vmem>>, vector<1x768xf32>
    %212 = vector.broadcast %211 : vector<1x768xf32> to vector<8x768xf32>
    %213 = arith.addf %210, %212 : vector<8x768xf32>
    %c0_84 = arith.constant 0 : index
    %c0_85 = arith.constant 0 : index
    %214 = vector.load %arg24[%c0_84, %c0_85] : memref<8x768xf32, #tpu.memory_space<vmem>>, vector<8x768xf32>
    tpu.vector_store %arg24[%c0_84, %c0_85], %213 {strides = array<i32>} : memref<8x768xf32, #tpu.memory_space<vmem>>, vector<8x768xf32>,
    return
  }
  func.func @transform_0(%arg0: i32) -> (i32, i32) {
    %c0_i32 = arith.constant 0 : i32
    %c0_i32_0 = arith.constant 0 : i32
    %c0_i32_1 = arith.constant 0 : i32
    return %c0_i32, %c0_i32_0 : i32, i32
  }
  func.func @transform_1(%arg0: i32) -> (i32, i32) {
    %c0_i32 = arith.constant 0 : i32
    %c0_i32_0 = arith.constant 0 : i32
    %c0_i32_1 = arith.constant 0 : i32
    return %c0_i32, %c0_i32_0 : i32, i32
  }
  func.func @transform_2(%arg0: i32) -> (i32, i32) {
    %c0_i32 = arith.constant 0 : i32
    %c0_i32_0 = arith.constant 0 : i32
    %c0_i32_1 = arith.constant 0 : i32
    return %c0_i32, %c0_i32_0 : i32, i32
  }
  func.func @transform_3(%arg0: i32) -> (i32, i32) {
    %c0_i32 = arith.constant 0 : i32
    %c0_i32_0 = arith.constant 0 : i32
    %c0_i32_1 = arith.constant 0 : i32
    return %c0_i32, %c0_i32_0 : i32, i32
  }
  func.func @transform_4(%arg0: i32) -> (i32, i32) {
    %c0_i32 = arith.constant 0 : i32
    %c0_i32_0 = arith.constant 0 : i32
    %c0_i32_1 = arith.constant 0 : i32
    return %c0_i32, %c0_i32_0 : i32, i32
  }
  func.func @transform_5(%arg0: i32) -> (i32, i32) {
    %c0_i32 = arith.constant 0 : i32
    %c0_i32_0 = arith.constant 0 : i32
    %c0_i32_1 = arith.constant 0 : i32
    return %c0_i32, %c0_i32_0 : i32, i32
  }
  func.func @transform_6(%arg0: i32) -> (i32, i32) {
    %c0_i32 = arith.constant 0 : i32
    %c0_i32_0 = arith.constant 0 : i32
    %c0_i32_1 = arith.constant 0 : i32
    return %c0_i32, %c0_i32_0 : i32, i32
  }
  func.func @transform_7(%arg0: i32) -> (i32, i32) {
    %c0_i32 = arith.constant 0 : i32
    %c0_i32_0 = arith.constant 0 : i32
    %c0_i32_1 = arith.constant 0 : i32
    return %c0_i32, %c0_i32_0 : i32, i32
  }
  func.func @transform_8(%arg0: i32) -> (i32, i32) {
    %c0_i32 = arith.constant 0 : i32
    %c0_i32_0 = arith.constant 0 : i32
    %c0_i32_1 = arith.constant 0 : i32
    return %c0_i32, %c0_i32_0 : i32, i32
  }
  func.func @transform_9(%arg0: i32) -> (i32, i32) {
    %c0_i32 = arith.constant 0 : i32
    %c0_i32_0 = arith.constant 0 : i32
    %c0_i32_1 = arith.constant 0 : i32
    return %c0_i32, %c0_i32_0 : i32, i32
  }
  func.func @transform_10(%arg0: i32) -> (i32, i32) {
    %c0_i32 = arith.constant 0 : i32
    %c0_i32_0 = arith.constant 0 : i32
    %c0_i32_1 = arith.constant 0 : i32
    return %c0_i32, %c0_i32_0 : i32, i32
  }
  func.func @transform_11(%arg0: i32) -> (i32, i32) {
    %c0_i32 = arith.constant 0 : i32
    %c0_i32_0 = arith.constant 0 : i32
    %c0_i32_1 = arith.constant 0 : i32
    return %c0_i32, %c0_i32_0 : i32, i32
  }
  func.func @transform_12(%arg0: i32) -> (i32, i32) {
    %c0_i32 = arith.constant 0 : i32
    %c0_i32_0 = arith.constant 0 : i32
    %c0_i32_1 = arith.constant 0 : i32
    return %c0_i32, %c0_i32_0 : i32, i32
  }
  func.func @transform_14(%arg0: i32) -> (i32, i32) {
    %c0_i32 = arith.constant 0 : i32
    %c0_i32_0 = arith.constant 0 : i32
    %c0_i32_1 = arith.constant 0 : i32
    return %c0_i32, %c0_i32_0 : i32, i32
  }
  func.func @transform_16(%arg0: i32) -> (i32, i32) {
    %c0_i32 = arith.constant 0 : i32
    %c0_i32_0 = arith.constant 0 : i32
    %c0_i32_1 = arith.constant 0 : i32
    return %c0_i32, %c0_i32_0 : i32, i32
  }
  func.func @transform_17(%arg0: i32) -> (i32, i32) {
    %c0_i32 = arith.constant 0 : i32
    %c0_i32_0 = arith.constant 0 : i32
    %c0_i32_1 = arith.constant 0 : i32
    return %c0_i32, %c0_i32_0 : i32, i32
  }
  func.func @transform_18(%arg0: i32) -> (i32, i32) {
    %c0_i32 = arith.constant 0 : i32
    %c0_i32_0 = arith.constant 0 : i32
    %c0_i32_1 = arith.constant 0 : i32
    return %c0_i32, %c0_i32_0 : i32, i32
  }
  func.func @transform_20(%arg0: i32) -> (i32, i32) {
    %c0_i32 = arith.constant 0 : i32
    %c0_i32_0 = arith.constant 0 : i32
    %c0_i32_1 = arith.constant 0 : i32
    return %c0_i32, %c0_i32_0 : i32, i32
  }
  func.func @transform_22(%arg0: i32) -> (i32, i32) {
    %c0_i32 = arith.constant 0 : i32
    %c0_i32_0 = arith.constant 0 : i32
    %c0_i32_1 = arith.constant 0 : i32
    return %c0_i32, %c0_i32_0 : i32, i32
  }
  func.func @transform_23(%arg0: i32) -> (i32, i32) {
    %c0_i32 = arith.constant 0 : i32
    %c0_i32_0 = arith.constant 0 : i32
    %c0_i32_1 = arith.constant 0 : i32
    return %c0_i32, %c0_i32_0 : i32, i32
  }
}

</mosaic_0001>

<bundles_post_ra>
// kernel: model_vit_forward.1
= control target key start
LH: loop header
LB: loop body
LE: loop exit
PB: predicated region body
PF: predicated region fallthrough
CT: control target
= control target key end

     0   :  { %s11663_s0 = inlined_call_operand.vmem [shape: bf16[64,256], index: 0, kind: input, shape index: {}]   ;;  %s11664_s1 = inlined_call_operand.hbm [shape: bf16[256,128], index: 1, kind: input, shape index: {}]   ;;  %s11665_s2 = inlined_call_operand.hbm [shape: f32[8,128], index: 2, kind: input, shape index: {}]   ;;  %s11666_s3 = inlined_call_operand.hbm [shape: f32[1,128], index: 3, kind: input, shape index: {}]   ;;  %s11667_s4 = inlined_call_operand.hbm [shape: f32[1,128], index: 4, kind: input, shape index: {}]   ;;  %s11668_s5 = inlined_call_operand.hbm [shape: f32[1,128], index: 5, kind: input, shape index: {}]   ;;  %s11669_s6 = inlined_call_operand.hbm [shape: f32[1,128], index: 6, kind: input, shape index: {}]   ;;  %s11670_s7 = inlined_call_operand.vmem [shape: bf16[128,384], index: 7, kind: input, shape index: {}]   ;;  %s11671_s8 = inlined_call_operand.hbm [shape: f32[1,384], index: 8, kind: input, shape index: {}]   ;;  %s11672_s9 = inlined_call_operand.hbm [shape: bf16[128,128], index: 9, kind: input, shape index: {}]   ;;  %s11673_s10 = inlined_call_operand.hbm [shape: f32[1,128], index: 10, kind: input, shape index: {}]   ;;  %s11674_s11 = inlined_call_operand.hbm [shape: f32[1,128], index: 11, kind: input, shape index: {}]   ;;  %s11675_s12 = inlined_call_operand.hbm [shape: f32[1,128], index: 12, kind: input, shape index: {}]   ;;  %s11676_s13 = inlined_call_operand.vmem [shape: bf16[128,512], index: 13, kind: input, shape index: {}]   ;;  %s11677_s14 = inlined_call_operand.hbm [shape: f32[1,512], index: 14, kind: input, shape index: {}]   ;;  %s11678_s15 = inlined_call_operand.vmem [shape: bf16[512,128], index: 15, kind: input, shape index: {}]   ;;  %s11679_s16 = inlined_call_operand.hbm [shape: f32[1,128], index: 16, kind: input, shape index: {}]   ;;  %s11680_s17 = inlined_call_operand.hbm [shape: f32[1,128], index: 17, kind: input, shape index: {}]   ;;  %s11681_s18 = inlined_call_operand.hbm [shape: f32[1,128], index: 18, kind: input, shape index: {}]   ;;  %s11682_s19 = inlined_call_operand.vmem [shape: bf16[128,512], index: 19, kind: input, shape index: {}]   ;;  %s11683_s20 = inlined_call_operand.hbm [shape: f32[1,512], index: 20, kind: input, shape index: {}]   ;;  %s11684_s21 = inlined_call_operand.vmem [shape: bf16[512,768], index: 21, kind: input, shape index: {}]   ;;  %s11685_s22 = inlined_call_operand.hbm [shape: f32[1,768], index: 22, kind: input, shape index: {}]   ;;  %s11686_s23 = inlined_call_operand.vmem [shape: f32[8,768], index: 23, kind: output, shape index: {}]  }
   0x1   :  { %11719 = sst [smem:[#allocation87_spill]] %s11663_s0 }
   0x2   :  { %11720 = sst [smem:[#allocation88_spill]] %s11664_s1 }
   0x3   :  { %11721 = sst [smem:[#allocation89_spill]] %s11665_s2 }
   0x4   :  { %11722 = sst [smem:[#allocation90_spill]] %s11666_s3 }
   0x5   :  { %11723 = sst [smem:[#allocation91_spill]] %s11667_s4 }
   0x6   :  { %11724 = sst [smem:[#allocation92_spill]] %s11668_s5 }
   0x7   :  { %11725 = sst [smem:[#allocation93_spill]] %s11669_s6 }
   0x8   :  { %11726 = sst [smem:[#allocation94_spill]] %s11670_s7 }
   0x9   :  { %28 = vsyncpa [#allocation8], 0 }
   0xa   :  { %29 = vsyncpa [#allocation10], 0 }
   0xb   :  { %30 = vsyncpa [#allocation13], 0 }
   0xc   :  { %31 = vsyncpa [#allocation16], 0 }
   0xd   :  { %32 = vsyncpa [#allocation19], 0 }
   0xe   :  { %33 = vsyncpa [#allocation22], 0 }
   0xf   :  { %34 = vsyncpa [#allocation25], 0 }
  0x10   :  { %35 = vsyncpa [#allocation28], 0 }
  0x11   :  { %36 = vsyncpa [#allocation31], 0  ;;  %s8507_s4 = smov [#allocation9]   ;;  %s8508_s24 = smov [#allocation12]  }
  0x12   :  { %s57_s30 = sshll.u32 %s8507_s4, 4  ;;  %s77_s25 = sshll.u32 %s8508_s24, 4  ;;  %s58_s30 = int_to_ptr.vmem [resolvable:$true] %s57_s30  ;;  %s78_s25 = int_to_ptr.vmem [resolvable:$true] %s77_s25 }
  0x13   :  { %s11727_s26 = sld [smem:[#allocation89_spill]] }
  0x19   :  { %s8107_s2 = scalar_lea.hbm %s11727_s26, 128 }
  0x1a   :  { %p8108_p0 = scmp.ne.s32.totalorder %s11727_s26, %s8107_s2  ;;  %p8111_p1 = scmp.lt.u32.totalorder %s8107_s2, %s11727_s26 }
  0x1c   :  { %p8113_p2 = pnand %p8111_p1, %p8108_p0 }
  0x1e   :  { %8116 = shalt.err (!%p8113_p2)
}
  0x1f   :  { %s8117_s29 = scalar_lea.vmem %s58_s30, 128  ;;  %p8122_p4 = scmp.lt.s32.totalorder %s58_s30, %s58_s30 }
  0x20   :  { %p8118_p3 = scmp.ne.s32.totalorder %s58_s30, %s8117_s29  ;;  %p8123_p5 = scmp.lt.s32.totalorder %s8117_s29, %s8117_s29 }
  0x22   :  { %p8124_p6 = por %p8123_p5, %p8122_p4 }
  0x24   :  { %p8125_p7 = pnand %p8124_p6, %p8118_p3 }
  0x26   :  { %8128 = shalt.err (!%p8125_p7)
}
  0x27   :  { %60 = dma.hbm_to_vmem [thread:$0]  %s11727_s26, 128, %s58_s30, [#allocation10]  }
  0x28   :  { %s11728_s5 = sld [smem:[#allocation91_spill]] }
  0x2e   :  { %s8129_s1 = scalar_lea.hbm %s11728_s5, 16 }
  0x2f   :  { %p8130_p8 = scmp.ne.s32.totalorder %s11728_s5, %s8129_s1  ;;  %p8133_p9 = scmp.lt.u32.totalorder %s8129_s1, %s11728_s5 }
  0x31   :  { %p8135_p10 = pnand %p8133_p9, %p8130_p8 }
  0x33   :  { %8138 = shalt.err (!%p8135_p10)
}
  0x34   :  { %s8139_s28 = scalar_lea.vmem %s78_s25, 16  ;;  %s8143_s29 = scalar_lea.vmem %s78_s25, 32 }
  0x35   :  { %p8140_p11 = scmp.ne.s32.totalorder %s78_s25, %s8139_s28  ;;  %p8144_p12 = scmp.lt.s32.totalorder %s78_s25, %s78_s25 }
  0x36   :  { %p8145_p13 = scmp.lt.s32.totalorder %s8143_s29, %s8139_s28 }
  0x38   :  { %p8146_p0 = por %p8145_p13, %p8144_p12 }
  0x3a   :  { %p8147_p1 = pnand %p8146_p0, %p8140_p11 }
  0x3c   :  { %8150 = shalt.err (!%p8147_p1)
}
  0x3d   :  { %80 = dma.hbm_to_vmem [thread:$0]  %s11728_s5, 16, %s78_s25, [#allocation13]  }
  0x3e   :  { %s8509_s3 = smov [#allocation15]   ;;  %s11729_s1 = sld [smem:[#allocation93_spill]] }
  0x3f   :  { %s97_s0 = sshll.u32 %s8509_s3, 4  ;;  %s98_s0 = int_to_ptr.vmem [resolvable:$true] %s97_s0 }
  0x44   :  { %s8151_s6 = scalar_lea.hbm %s11729_s1, 16 }
  0x45   :  { %p8152_p2 = scmp.ne.s32.totalorder %s11729_s1, %s8151_s6  ;;  %p8155_p3 = scmp.lt.u32.totalorder %s8151_s6, %s11729_s1 }
  0x47   :  { %p8157_p4 = pnand %p8155_p3, %p8152_p2 }
  0x49   :  { %8160 = shalt.err (!%p8157_p4)
}
  0x4a   :  { %s8161_s29 = scalar_lea.vmem %s98_s0, 16  ;;  %s8165_s25 = scalar_lea.vmem %s98_s0, 32 }
  0x4b   :  { %p8162_p5 = scmp.ne.s32.totalorder %s98_s0, %s8161_s29  ;;  %p8166_p6 = scmp.lt.s32.totalorder %s98_s0, %s98_s0 }
  0x4c   :  { %p8167_p7 = scmp.lt.s32.totalorder %s8165_s25, %s8161_s29 }
  0x4e   :  { %p8168_p8 = por %p8167_p7, %p8166_p6 }
  0x50   :  { %p8169_p9 = pnand %p8168_p8, %p8162_p5 }
  0x52   :  { %8172 = shalt.err (!%p8169_p9)
}
  0x53   :  { %100 = dma.hbm_to_vmem [thread:$0]  %s11729_s1, 16, %s98_s0, [#allocation16]  }
  0x54   :  { %s8510_s26 = smov [#allocation18]   ;;  %s8511_s4 = smov [#allocation21]  }
  0x55   :  { %s118_s3 = sshll.u32 %s8510_s26, 4  ;;  %s141_s24 = sshll.u32 %s8511_s4, 4  ;;  %s119_s3 = int_to_ptr.vmem [resolvable:$true] %s118_s3  ;;  %s142_s24 = int_to_ptr.vmem [resolvable:$true] %s141_s24 }
  0x56   :  { %s8173_s2 = scalar_lea.hbm %s11672_s9, 1024 }
  0x57   :  { %p8174_p10 = scmp.ne.s32.totalorder %s11672_s9, %s8173_s2  ;;  %p8177_p11 = scmp.lt.u32.totalorder %s8173_s2, %s11672_s9 }
  0x59   :  { %p8179_p12 = pnand %p8177_p11, %p8174_p10 }
  0x5b   :  { %8182 = shalt.err (!%p8179_p12)
}
  0x5c   :  { %s8183_s0 = scalar_lea.vmem %s119_s3, 1024  ;;  %p8188_p0 = scmp.lt.s32.totalorder %s119_s3, %s119_s3 }
  0x5d   :  { %p8184_p13 = scmp.ne.s32.totalorder %s119_s3, %s8183_s0  ;;  %p8189_p1 = scmp.lt.s32.totalorder %s8183_s0, %s8183_s0 }
  0x5f   :  { %p8190_p2 = por %p8189_p1, %p8188_p0 }
  0x61   :  { %p8191_p3 = pnand %p8190_p2, %p8184_p13 }
  0x63   :  { %8194 = shalt.err (!%p8191_p3)
}
  0x64   :  { %s8512_s1 = smov 64   ;;  %s8513_s5 = smov 4  }
  0x65   :  { %124 = dma.hbm_to_vmem [thread:$0]  %s11672_s9, 1024, %s119_s3, [#allocation19], %s8512_s1, %s8512_s1, %s8513_s5  }
  0x66   :  { %s8195_s27 = scalar_lea.hbm %s11674_s11, 16 }
  0x67   :  { %p8196_p4 = scmp.ne.s32.totalorder %s11674_s11, %s8195_s27  ;;  %p8199_p5 = scmp.lt.u32.totalorder %s8195_s27, %s11674_s11 }
  0x69   :  { %p8201_p6 = pnand %p8199_p5, %p8196_p4 }
  0x6b   :  { %8204 = shalt.err (!%p8201_p6)
}
  0x6c   :  { %s8205_s25 = scalar_lea.vmem %s142_s24, 16  ;;  %s8209_s0 = scalar_lea.vmem %s142_s24, 32 }
  0x6d   :  { %p8206_p7 = scmp.ne.s32.totalorder %s142_s24, %s8205_s25  ;;  %p8210_p8 = scmp.lt.s32.totalorder %s142_s24, %s142_s24 }
  0x6e   :  { %p8211_p9 = scmp.lt.s32.totalorder %s8209_s0, %s8205_s25 }
  0x70   :  { %p8212_p10 = por %p8211_p9, %p8210_p8 }
  0x72   :  { %p8213_p11 = pnand %p8212_p10, %p8206_p7 }
  0x74   :  { %8216 = shalt.err (!%p8213_p11)
}
  0x75   :  { %144 = dma.hbm_to_vmem [thread:$0]  %s11674_s11, 16, %s142_s24, [#allocation22]  }
  0x76   :  { %s8514_s30 = smov [#allocation24]   ;;  %s8515_s4 = smov [#allocation27]  }
  0x77   :  { %s161_s26 = sshll.u32 %s8514_s30, 4  ;;  %s181_s6 = sshll.u32 %s8515_s4, 4  ;;  %s162_s26 = int_to_ptr.vmem [resolvable:$true] %s161_s26  ;;  %s182_s6 = int_to_ptr.vmem [resolvable:$true] %s181_s6 }
  0x78   :  { %s8217_s7 = scalar_lea.hbm %s11677_s14, 64 }
  0x79   :  { %p8218_p12 = scmp.ne.s32.totalorder %s11677_s14, %s8217_s7  ;;  %p8221_p13 = scmp.lt.u32.totalorder %s8217_s7, %s11677_s14 }
  0x7b   :  { %p8223_p0 = pnand %p8221_p13, %p8218_p12 }
  0x7d   :  { %8226 = shalt.err (!%p8223_p0)
}
  0x7e   :  { %s8227_s11 = scalar_lea.vmem %s162_s26, 64  ;;  %p8232_p2 = scmp.lt.s32.totalorder %s162_s26, %s162_s26 }
  0x7f   :  { %p8228_p1 = scmp.ne.s32.totalorder %s162_s26, %s8227_s11  ;;  %p8233_p3 = scmp.lt.s32.totalorder %s8227_s11, %s8227_s11 }
  0x81   :  { %p8234_p4 = por %p8233_p3, %p8232_p2 }
  0x83   :  { %p8235_p5 = pnand %p8234_p4, %p8228_p1 }
  0x85   :  { %8238 = shalt.err (!%p8235_p5)
}
  0x86   :  { %164 = dma.hbm_to_vmem [thread:$0]  %s11677_s14, 64, %s162_s26, [#allocation25]  }
  0x87   :  { %s8239_s4 = scalar_lea.hbm %s11680_s17, 16 }
  0x88   :  { %p8240_p6 = scmp.ne.s32.totalorder %s11680_s17, %s8239_s4  ;;  %p8243_p7 = scmp.lt.u32.totalorder %s8239_s4, %s11680_s17 }
  0x8a   :  { %p8245_p8 = pnand %p8243_p7, %p8240_p6 }
  0x8c   :  { %8248 = shalt.err (!%p8245_p8)
}
  0x8d   :  { %s8249_s29 = scalar_lea.vmem %s182_s6, 16  ;;  %s8253_s25 = scalar_lea.vmem %s182_s6, 32 }
  0x8e   :  { %p8250_p9 = scmp.ne.s32.totalorder %s182_s6, %s8249_s29  ;;  %p8254_p10 = scmp.lt.s32.totalorder %s182_s6, %s182_s6 }
  0x8f   :  { %p8255_p11 = scmp.lt.s32.totalorder %s8253_s25, %s8249_s29 }
  0x91   :  { %p8256_p12 = por %p8255_p11, %p8254_p10 }
  0x93   :  { %p8257_p13 = pnand %p8256_p12, %p8250_p9 }
  0x95   :  { %8260 = shalt.err (!%p8257_p13)
}
  0x96   :  { %184 = dma.hbm_to_vmem [thread:$0]  %s11680_s17, 16, %s182_s6, [#allocation28]  }
  0x97   :  { %s8516_s0 = smov [#allocation30]   ;;  %s8517_s24 = smov [#allocation7]  }
  0x98   :  { %s201_s11 = sshll.u32 %s8516_s0, 4  ;;  %s44_s9 = sshll.u32 %s8517_s24, 4  ;;  %s202_s11 = int_to_ptr.vmem [resolvable:$true] %s201_s11  ;;  %s45_s9 = int_to_ptr.vmem [resolvable:$true] %s44_s9 }
  0x99   :  { %s8261_s4 = scalar_lea.hbm %s11683_s20, 64 }
  0x9a   :  { %p8262_p0 = scmp.ne.s32.totalorder %s11683_s20, %s8261_s4  ;;  %p8265_p1 = scmp.lt.u32.totalorder %s8261_s4, %s11683_s20 }
  0x9c   :  { %p8267_p2 = pnand %p8265_p1, %p8262_p0 }
  0x9e   :  { %8270 = shalt.err (!%p8267_p2)
}
  0x9f   :  { %s8271_s17 = scalar_lea.vmem %s202_s11, 64  ;;  %p8276_p4 = scmp.lt.s32.totalorder %s202_s11, %s202_s11 }
  0xa0   :  { %p8272_p3 = scmp.ne.s32.totalorder %s202_s11, %s8271_s17  ;;  %p8277_p5 = scmp.lt.s32.totalorder %s8271_s17, %s8271_s17 }
  0xa2   :  { %p8278_p6 = por %p8277_p5, %p8276_p4 }
  0xa4   :  { %p8279_p7 = pnand %p8278_p6, %p8272_p3 }
  0xa6   :  { %8282 = shalt.err (!%p8279_p7)
}
  0xa7   :  { %204 = dma.hbm_to_vmem [thread:$0]  %s11683_s20, 64, %s202_s11, [#allocation31]  }
  0xa8   :  { %s11730_s26 = sld [smem:[#allocation88_spill]] }
  0xae   :  { %s8283_s0 = scalar_lea.hbm %s11730_s26, 2048 }
  0xaf   :  { %p8284_p8 = scmp.ne.s32.totalorder %s11730_s26, %s8283_s0  ;;  %p8287_p9 = scmp.lt.u32.totalorder %s8283_s0, %s11730_s26 }
  0xb1   :  { %p8289_p10 = pnand %p8287_p9, %p8284_p8 }
  0xb3   :  { %8292 = shalt.err (!%p8289_p10)
}
  0xb4   :  { %s8293_s27 = scalar_lea.vmem %s45_s9, 2048  ;;  %p8298_p12 = scmp.lt.s32.totalorder %s45_s9, %s45_s9 }
  0xb5   :  { %p8294_p11 = scmp.ne.s32.totalorder %s45_s9, %s8293_s27  ;;  %p8299_p13 = scmp.lt.s32.totalorder %s8293_s27, %s8293_s27 }
  0xb7   :  { %p8300_p0 = por %p8299_p13, %p8298_p12 }
  0xb9   :  { %p8301_p1 = pnand %p8300_p0, %p8294_p11 }
  0xbb   :  { %8304 = shalt.err (!%p8301_p1)
}
  0xbc   :  { %50 = dma.hbm_to_vmem [thread:$0]  %s11730_s26, 2048, %s45_s9, [#allocation8], %s8512_s1, %s8512_s1, %s8513_s5  }
  0xbd   :  { %s8518_s2 = smov [#allocation11]   ;;  %s8519_s28 = smov [#allocation14]  }
  0xbe   :  { %s67_s7 = sshll.u32 %s8518_s2, 4  ;;  %s87_s17 = sshll.u32 %s8519_s28, 4  ;;  %s68_s7 = int_to_ptr.vmem [resolvable:$true] %s67_s7  ;;  %s88_s17 = int_to_ptr.vmem [resolvable:$true] %s87_s17 }
  0xbf   :  { %s11731_s25 = sld [smem:[#allocation90_spill]] }
  0xc5   :  { %s8305_s14 = scalar_lea.hbm %s11731_s25, 16 }
  0xc6   :  { %p8306_p2 = scmp.ne.s32.totalorder %s11731_s25, %s8305_s14  ;;  %p8309_p3 = scmp.lt.u32.totalorder %s8305_s14, %s11731_s25 }
  0xc8   :  { %p8311_p4 = pnand %p8309_p3, %p8306_p2 }
  0xca   :  { %8314 = shalt.err (!%p8311_p4)
}
  0xcb   :  { %s8315_s5 = scalar_lea.vmem %s68_s7, 16  ;;  %s8319_s9 = scalar_lea.vmem %s68_s7, 32 }
  0xcc   :  { %p8316_p5 = scmp.ne.s32.totalorder %s68_s7, %s8315_s5  ;;  %p8320_p6 = scmp.lt.s32.totalorder %s68_s7, %s68_s7 }
  0xcd   :  { %p8321_p7 = scmp.lt.s32.totalorder %s8319_s9, %s8315_s5 }
  0xcf   :  { %p8322_p8 = por %p8321_p7, %p8320_p6 }
  0xd1   :  { %p8323_p9 = pnand %p8322_p8, %p8316_p5 }
  0xd3   :  { %8326 = shalt.err (!%p8323_p9)
}
  0xd4   :  { %70 = dma.hbm_to_vmem [thread:$0]  %s11731_s25, 16, %s68_s7, [#allocation10]  }
  0xd5   :  { %s11732_s11 = sld [smem:[#allocation92_spill]] }
  0xdb   :  { %s8327_s2 = scalar_lea.hbm %s11732_s11, 16 }
  0xdc   :  { %p8328_p10 = scmp.ne.s32.totalorder %s11732_s11, %s8327_s2  ;;  %p8331_p11 = scmp.lt.u32.totalorder %s8327_s2, %s11732_s11 }
  0xde   :  { %p8333_p12 = pnand %p8331_p11, %p8328_p10 }
  0xe0   :  { %8336 = shalt.err (!%p8333_p12)
}
  0xe1   :  { %s8337_s0 = scalar_lea.vmem %s88_s17, 16  ;;  %s8341_s24 = scalar_lea.vmem %s88_s17, 32 }
  0xe2   :  { %p8338_p13 = scmp.ne.s32.totalorder %s88_s17, %s8337_s0  ;;  %p8342_p0 = scmp.lt.s32.totalorder %s88_s17, %s88_s17 }
  0xe3   :  { %p8343_p1 = scmp.lt.s32.totalorder %s8341_s24, %s8337_s0 }
  0xe5   :  { %p8344_p2 = por %p8343_p1, %p8342_p0 }
  0xe7   :  { %p8345_p3 = pnand %p8344_p2, %p8338_p13 }
  0xe9   :  { %8348 = shalt.err (!%p8345_p3)
}
  0xea   :  { %90 = dma.hbm_to_vmem [thread:$0]  %s11732_s11, 16, %s88_s17, [#allocation13]  }
  0xeb   :  { %s8520_s3 = smov [#allocation17]   ;;  %s8521_s5 = smov [#allocation20]  }
  0xec   :  { %s109_s30 = sshll.u32 %s8520_s3, 4  ;;  %s131_s9 = sshll.u32 %s8521_s5, 4  ;;  %s110_s30 = int_to_ptr.vmem [resolvable:$true] %s109_s30  ;;  %s132_s9 = int_to_ptr.vmem [resolvable:$true] %s131_s9 }
  0xed   :  { %s8349_s27 = scalar_lea.hbm %s11671_s8, 48 }
  0xee   :  { %p8350_p4 = scmp.ne.s32.totalorder %s11671_s8, %s8349_s27  ;;  %p8353_p5 = scmp.lt.u32.totalorder %s8349_s27, %s11671_s8 }
  0xf0   :  { %p8355_p6 = pnand %p8353_p5, %p8350_p4 }
  0xf2   :  { %8358 = shalt.err (!%p8355_p6)
}
  0xf3   :  { %s8359_s17 = scalar_lea.vmem %s110_s30, 48  ;;  %s8363_s11 = scalar_lea.vmem %s110_s30, 64 }
  0xf4   :  { %p8360_p7 = scmp.ne.s32.totalorder %s110_s30, %s8359_s17  ;;  %p8364_p8 = scmp.lt.s32.totalorder %s110_s30, %s110_s30 }
  0xf5   :  { %p8365_p9 = scmp.lt.s32.totalorder %s8363_s11, %s8359_s17 }
  0xf7   :  { %p8366_p10 = por %p8365_p9, %p8364_p8 }
  0xf9   :  { %p8367_p11 = pnand %p8366_p10, %p8360_p7 }
  0xfb   :  { %8370 = shalt.err (!%p8367_p11)
}
  0xfc   :  { %112 = dma.hbm_to_vmem [thread:$0]  %s11671_s8, 48, %s110_s30, [#allocation16]  }
  0xfd   :  { %s8371_s7 = scalar_lea.hbm %s11673_s10, 16 }
  0xfe   :  { %p8372_p12 = scmp.ne.s32.totalorder %s11673_s10, %s8371_s7  ;;  %p8375_p13 = scmp.lt.u32.totalorder %s8371_s7, %s11673_s10 }
 0x100   :  { %p8377_p0 = pnand %p8375_p13, %p8372_p12 }
 0x102   :  { %8380 = shalt.err (!%p8377_p0)
}
 0x103   :  { %s8381_s4 = scalar_lea.vmem %s132_s9, 16  ;;  %s8385_s27 = scalar_lea.vmem %s132_s9, 32 }
 0x104   :  { %p8382_p1 = scmp.ne.s32.totalorder %s132_s9, %s8381_s4  ;;  %p8386_p2 = scmp.lt.s32.totalorder %s132_s9, %s132_s9 }
 0x105   :  { %p8387_p3 = scmp.lt.s32.totalorder %s8385_s27, %s8381_s4 }
 0x107   :  { %p8388_p4 = por %p8387_p3, %p8386_p2 }
 0x109   :  { %p8389_p5 = pnand %p8388_p4, %p8382_p1 }
 0x10b   :  { %8392 = shalt.err (!%p8389_p5)
}
 0x10c   :  { %134 = dma.hbm_to_vmem [thread:$0]  %s11673_s10, 16, %s132_s9, [#allocation19]  }
 0x10d   :  { %s8522_s20 = smov [#allocation23]   ;;  %s8523_s28 = smov [#allocation26]  }
 0x10e   :  { %s151_s2 = sshll.u32 %s8522_s20, 4  ;;  %s171_s6 = sshll.u32 %s8523_s28, 4  ;;  %s152_s2 = int_to_ptr.vmem [resolvable:$true] %s151_s2  ;;  %s172_s6 = int_to_ptr.vmem [resolvable:$true] %s171_s6 }
 0x10f   :  { %s8393_s29 = scalar_lea.hbm %s11675_s12, 16 }
 0x110   :  { %p8394_p6 = scmp.ne.s32.totalorder %s11675_s12, %s8393_s29  ;;  %p8397_p7 = scmp.lt.u32.totalorder %s8393_s29, %s11675_s12 }
 0x112   :  { %p8399_p8 = pnand %p8397_p7, %p8394_p6 }
 0x114   :  { %8402 = shalt.err (!%p8399_p8)
}
 0x115   :  { %s8403_s10 = scalar_lea.vmem %s152_s2, 16  ;;  %s8407_s9 = scalar_lea.vmem %s152_s2, 32 }
 0x116   :  { %p8404_p9 = scmp.ne.s32.totalorder %s152_s2, %s8403_s10  ;;  %p8408_p10 = scmp.lt.s32.totalorder %s152_s2, %s152_s2 }
 0x117   :  { %p8409_p11 = scmp.lt.s32.totalorder %s8407_s9, %s8403_s10 }
 0x119   :  { %p8410_p12 = por %p8409_p11, %p8408_p10 }
 0x11b   :  { %p8411_p13 = pnand %p8410_p12, %p8404_p9 }
 0x11d   :  { %8414 = shalt.err (!%p8411_p13)
}
 0x11e   :  { %154 = dma.hbm_to_vmem [thread:$0]  %s11675_s12, 16, %s152_s2, [#allocation22]  }
 0x11f   :  { %s8415_s4 = scalar_lea.hbm %s11679_s16, 16 }
 0x120   :  { %p8416_p0 = scmp.ne.s32.totalorder %s11679_s16, %s8415_s4  ;;  %p8419_p1 = scmp.lt.u32.totalorder %s8415_s4, %s11679_s16 }
 0x122   :  { %p8421_p2 = pnand %p8419_p1, %p8416_p0 }
 0x124   :  { %8424 = shalt.err (!%p8421_p2)
}
 0x125   :  { %s8425_s28 = scalar_lea.vmem %s172_s6, 16  ;;  %s8429_s17 = scalar_lea.vmem %s172_s6, 32 }
 0x126   :  { %p8426_p3 = scmp.ne.s32.totalorder %s172_s6, %s8425_s28  ;;  %p8430_p4 = scmp.lt.s32.totalorder %s172_s6, %s172_s6 }
 0x127   :  { %p8431_p5 = scmp.lt.s32.totalorder %s8429_s17, %s8425_s28 }
 0x129   :  { %p8432_p6 = por %p8431_p5, %p8430_p4 }
 0x12b   :  { %p8433_p7 = pnand %p8432_p6, %p8426_p3 }
 0x12d   :  { %8436 = shalt.err (!%p8433_p7)
}
 0x12e   :  { %174 = dma.hbm_to_vmem [thread:$0]  %s11679_s16, 16, %s172_s6, [#allocation25]  }
 0x12f   :  { %s8524_s11 = smov [#allocation29]   ;;  %s8525_s14 = smov [#allocation32]  }
 0x130   :  { %s191_s29 = sshll.u32 %s8524_s11, 4  ;;  %s211_s0 = sshll.u32 %s8525_s14, 4  ;;  %s192_s29 = int_to_ptr.vmem [resolvable:$true] %s191_s29  ;;  %s212_s0 = int_to_ptr.vmem [resolvable:$true] %s211_s0 }
 0x131   :  { %s8437_s10 = scalar_lea.hbm %s11681_s18, 16 }
 0x132   :  { %p8438_p8 = scmp.ne.s32.totalorder %s11681_s18, %s8437_s10  ;;  %p8441_p9 = scmp.lt.u32.totalorder %s8437_s10, %s11681_s18 }
 0x134   :  { %p8443_p10 = pnand %p8441_p9, %p8438_p8 }
 0x136   :  { %8446 = shalt.err (!%p8443_p10)
}
 0x137   :  { %s8447_s16 = scalar_lea.vmem %s192_s29, 16  ;;  %s8451_s6 = scalar_lea.vmem %s192_s29, 32 }
 0x138   :  { %p8448_p11 = scmp.ne.s32.totalorder %s192_s29, %s8447_s16  ;;  %p8452_p12 = scmp.lt.s32.totalorder %s192_s29, %s192_s29 }
 0x139   :  { %p8453_p13 = scmp.lt.s32.totalorder %s8451_s6, %s8447_s16 }
 0x13b   :  { %p8454_p0 = por %p8453_p13, %p8452_p12 }
 0x13d   :  { %p8455_p1 = pnand %p8454_p0, %p8448_p11 }
 0x13f   :  { %8458 = shalt.err (!%p8455_p1)
}
 0x140   :  { %194 = dma.hbm_to_vmem [thread:$0]  %s11681_s18, 16, %s192_s29, [#allocation28]  }
 0x141   :  { %s8459_s30 = scalar_lea.hbm %s11685_s22, 96 }
 0x142   :  { %p8460_p2 = scmp.ne.s32.totalorder %s11685_s22, %s8459_s30  ;;  %p8463_p3 = scmp.lt.u32.totalorder %s8459_s30, %s11685_s22 }
 0x144   :  { %p8465_p4 = pnand %p8463_p3, %p8460_p2 }
 0x146   :  { %8468 = shalt.err (!%p8465_p4)
}
 0x147   :  { %s8469_s2 = scalar_lea.vmem %s212_s0, 96  ;;  %p8474_p6 = scmp.lt.s32.totalorder %s212_s0, %s212_s0 }
 0x148   :  { %p8470_p5 = scmp.ne.s32.totalorder %s212_s0, %s8469_s2  ;;  %p8475_p7 = scmp.lt.s32.totalorder %s8469_s2, %s8469_s2 }
 0x14a   :  { %p8476_p8 = por %p8475_p7, %p8474_p6 }
 0x14c   :  { %p8477_p9 = pnand %p8476_p8, %p8470_p5 }
 0x14e   :  { %8480 = shalt.err (!%p8477_p9)
}
 0x14f   :  { %214 = dma.hbm_to_vmem [thread:$0]  %s11685_s22, 96, %s212_s0, [#allocation31]  }
 0x150   :  { %8481 = dma.done.wait [#allocation8], 2048  }
 0x151   :  { %8482 = vsyncadd [#allocation8], 4294965248 }
 0x152   :  { %8483 = dma.done.wait [#allocation10], 144  }
 0x153   :  { %8484 = vsyncadd [#allocation10], 4294967152 }
 0x154   :  { %8485 = dma.done.wait [#allocation13], 32  }
 0x155   :  { %8486 = vsyncadd [#allocation13], 4294967264 }
 0x156   :  { %8487 = dma.done.wait [#allocation16], 64  }
 0x157   :  { %8488 = vsyncadd [#allocation16], 4294967232 }
 0x158   :  { %8489 = dma.done.wait [#allocation19], 1040  }
 0x159   :  { %8490 = vsyncadd [#allocation19], 4294966256 }
 0x15a   :  { %8491 = dma.done.wait [#allocation22], 32  }
 0x15b   :  { %8492 = vsyncadd [#allocation22], 4294967264 }
 0x15c   :  { %8493 = dma.done.wait [#allocation25], 80  }
 0x15d   :  { %8494 = vsyncadd [#allocation25], 4294967216 }
 0x15e   :  { %8495 = dma.done.wait [#allocation28], 32  }
 0x15f   :  { %8496 = vsyncadd [#allocation28], 4294967264 }
 0x160   :  { %8497 = dma.done.wait [#allocation31], 160  }
 0x161   :  { %8498 = vsyncadd [#allocation31], 4294967136  ;;  %v284_v0 = vld [vmem:[%s11676_s13] sm:$0xf]  ;;  %v286_v1 = vld [vmem:[%s11676_s13 + $0x10] sm:$0xf] }
 0x162   :  { %v288_v2 = vld [vmem:[%s11676_s13 + $0x4] sm:$0xf]  ;;  %285 = vst [vmem:[#allocation2] sm:$0xf] %v284_v0  ;;  %287 = vst [vmem:[#allocation2 + $0x4] sm:$0xf] %v286_v1 }
 0x163   :  { %289 = vst [vmem:[#allocation2 + $0x8] sm:$0xf] %v288_v2  ;;  %v290_v3 = vld [vmem:[%s11676_s13 + $0x14] sm:$0xf]  ;;  %v292_v4 = vld [vmem:[%s11676_s13 + $0x8] sm:$0xf] }
 0x164   :  { %v294_v5 = vld [vmem:[%s11676_s13 + $0x18] sm:$0xf]  ;;  %291 = vst [vmem:[#allocation2 + $0xc] sm:$0xf] %v290_v3  ;;  %293 = vst [vmem:[#allocation2 + $0x10] sm:$0xf] %v292_v4 }
 0x165   :  { %295 = vst [vmem:[#allocation2 + $0x14] sm:$0xf] %v294_v5  ;;  %v296_v6 = vld [vmem:[%s11676_s13 + $0xc] sm:$0xf]  ;;  %v298_v7 = vld [vmem:[%s11676_s13 + $0x1c] sm:$0xff]  }
 0x166   :  { %v302_v8 = vld [vmem:[%s11676_s13 + $0x30] sm:$0xf]  ;;  %297 = vst [vmem:[#allocation2 + $0x18] sm:$0xf] %v296_v6  ;;  %299 = vst [vmem:[#allocation2 + $0x1c] sm:$0xff] %v298_v7   ;;  %v314_v14 = vld [vmem:[%s11676_s13 + $0x3c] sm:$0xff]  }
 0x167   :  { %303 = vst [vmem:[#allocation2 + $0x24] sm:$0xf] %v302_v8  ;;  %v304_v9 = vld [vmem:[%s11676_s13 + $0x24] sm:$0xf]  ;;  %v306_v10 = vld [vmem:[%s11676_s13 + $0x34] sm:$0xf] }
 0x168   :  { %v308_v11 = vld [vmem:[%s11676_s13 + $0x28] sm:$0xf]  ;;  %305 = vst [vmem:[#allocation2 + $0x28] sm:$0xf] %v304_v9  ;;  %307 = vst [vmem:[#allocation2 + $0x2c] sm:$0xf] %v306_v10 }
 0x169   :  { %309 = vst [vmem:[#allocation2 + $0x30] sm:$0xf] %v308_v11  ;;  %v310_v12 = vld [vmem:[%s11676_s13 + $0x38] sm:$0xf]  ;;  %v312_v13 = vld [vmem:[%s11676_s13 + $0x2c] sm:$0xf] }
 0x16a   :  { %311 = vst [vmem:[#allocation2 + $0x34] sm:$0xf] %v310_v12  ;;  %313 = vst [vmem:[#allocation2 + $0x38] sm:$0xf] %v312_v13  ;;  %v318_v15 = vld [vmem:[%s11676_s13 + $0x50] sm:$0xf] }
 0x16b   :  { %315 = vst [vmem:[#allocation2 + $0x3c] sm:$0xff] %v314_v14   ;;  %v320_v16 = vld [vmem:[%s11676_s13 + $0x44] sm:$0xf]  ;;  %v322_v17 = vld [vmem:[%s11676_s13 + $0x54] sm:$0xf]  ;;  %v330_v21 = vld [vmem:[%s11676_s13 + $0x5c] sm:$0xff]  }
 0x16c   :  { %319 = vst [vmem:[#allocation2 + $0x44] sm:$0xf] %v318_v15  ;;  %321 = vst [vmem:[#allocation2 + $0x48] sm:$0xf] %v320_v16  ;;  %v324_v18 = vld [vmem:[%s11676_s13 + $0x48] sm:$0xf] }
 0x16d   :  { %323 = vst [vmem:[#allocation2 + $0x4c] sm:$0xf] %v322_v17  ;;  %v326_v19 = vld [vmem:[%s11676_s13 + $0x58] sm:$0xf]  ;;  %v328_v20 = vld [vmem:[%s11676_s13 + $0x4c] sm:$0xf] }
 0x16e   :  { %325 = vst [vmem:[#allocation2 + $0x50] sm:$0xf] %v324_v18  ;;  %327 = vst [vmem:[#allocation2 + $0x54] sm:$0xf] %v326_v19  ;;  %v334_v22 = vld [vmem:[%s11676_s13 + $0x70] sm:$0xf] }
 0x16f   :  { %329 = vst [vmem:[#allocation2 + $0x58] sm:$0xf] %v328_v20  ;;  %v336_v23 = vld [vmem:[%s11676_s13 + $0x64] sm:$0xf]  ;;  %331 = vst [vmem:[#allocation2 + $0x5c] sm:$0xff] %v330_v21   ;;  %v346_v28 = vld [vmem:[%s11676_s13 + $0x7c] sm:$0xff]  }
 0x170   :  { %335 = vst [vmem:[#allocation2 + $0x64] sm:$0xf] %v334_v22  ;;  %337 = vst [vmem:[#allocation2 + $0x68] sm:$0xf] %v336_v23  ;;  %v338_v24 = vld [vmem:[%s11676_s13 + $0x74] sm:$0xf] }
 0x171   :  { %v340_v25 = vld [vmem:[%s11676_s13 + $0x68] sm:$0xf]  ;;  %v342_v26 = vld [vmem:[%s11676_s13 + $0x78] sm:$0xf]  ;;  %339 = vst [vmem:[#allocation2 + $0x6c] sm:$0xf] %v338_v24 }
 0x172   :  { %341 = vst [vmem:[#allocation2 + $0x70] sm:$0xf] %v340_v25  ;;  %343 = vst [vmem:[#allocation2 + $0x74] sm:$0xf] %v342_v26  ;;  %v344_v27 = vld [vmem:[%s11676_s13 + $0x6c] sm:$0xf] }
 0x173   :  { %v350_v29 = vld [vmem:[%s11676_s13 + $0x90] sm:$0xf]  ;;  %345 = vst [vmem:[#allocation2 + $0x78] sm:$0xf] %v344_v27  ;;  %347 = vst [vmem:[#allocation2 + $0x7c] sm:$0xff] %v346_v28   ;;  %v362_v35 = vld [vmem:[%s11676_s13 + $0x9c] sm:$0xff]  }
 0x174   :  { %351 = vst [vmem:[#allocation2 + $0x84] sm:$0xf] %v350_v29  ;;  %v352_v30 = vld [vmem:[%s11676_s13 + $0x84] sm:$0xf]  ;;  %v354_v31 = vld [vmem:[%s11676_s13 + $0x94] sm:$0xf] }
 0x175   :  { %v356_v32 = vld [vmem:[%s11676_s13 + $0x88] sm:$0xf]  ;;  %353 = vst [vmem:[#allocation2 + $0x88] sm:$0xf] %v352_v30  ;;  %355 = vst [vmem:[#allocation2 + $0x8c] sm:$0xf] %v354_v31 }
 0x176   :  { %357 = vst [vmem:[#allocation2 + $0x90] sm:$0xf] %v356_v32  ;;  %v358_v33 = vld [vmem:[%s11676_s13 + $0x98] sm:$0xf]  ;;  %v360_v34 = vld [vmem:[%s11676_s13 + $0x8c] sm:$0xf] }
 0x177   :  { %359 = vst [vmem:[#allocation2 + $0x94] sm:$0xf] %v358_v33  ;;  %361 = vst [vmem:[#allocation2 + $0x98] sm:$0xf] %v360_v34  ;;  %v366_v36 = vld [vmem:[%s11676_s13 + $0xb0] sm:$0xf] }
 0x178   :  { %363 = vst [vmem:[#allocation2 + $0x9c] sm:$0xff] %v362_v35   ;;  %v368_v37 = vld [vmem:[%s11676_s13 + $0xa4] sm:$0xf]  ;;  %v370_v38 = vld [vmem:[%s11676_s13 + $0xb4] sm:$0xf]  ;;  %v378_v42 = vld [vmem:[%s11676_s13 + $0xbc] sm:$0xff]  }
 0x179   :  { %367 = vst [vmem:[#allocation2 + $0xa4] sm:$0xf] %v366_v36  ;;  %369 = vst [vmem:[#allocation2 + $0xa8] sm:$0xf] %v368_v37  ;;  %v372_v39 = vld [vmem:[%s11676_s13 + $0xa8] sm:$0xf] }
 0x17a   :  { %371 = vst [vmem:[#allocation2 + $0xac] sm:$0xf] %v370_v38  ;;  %v374_v40 = vld [vmem:[%s11676_s13 + $0xb8] sm:$0xf]  ;;  %v376_v41 = vld [vmem:[%s11676_s13 + $0xac] sm:$0xf] }
 0x17b   :  { %373 = vst [vmem:[#allocation2 + $0xb0] sm:$0xf] %v372_v39  ;;  %375 = vst [vmem:[#allocation2 + $0xb4] sm:$0xf] %v374_v40  ;;  %v382_v43 = vld [vmem:[%s11676_s13 + $0xd0] sm:$0xf] }
 0x17c   :  { %377 = vst [vmem:[#allocation2 + $0xb8] sm:$0xf] %v376_v41  ;;  %v384_v44 = vld [vmem:[%s11676_s13 + $0xc4] sm:$0xf]  ;;  %379 = vst [vmem:[#allocation2 + $0xbc] sm:$0xff] %v378_v42   ;;  %v394_v49 = vld [vmem:[%s11676_s13 + $0xdc] sm:$0xff]  }
 0x17d   :  { %383 = vst [vmem:[#allocation2 + $0xc4] sm:$0xf] %v382_v43  ;;  %385 = vst [vmem:[#allocation2 + $0xc8] sm:$0xf] %v384_v44  ;;  %v386_v45 = vld [vmem:[%s11676_s13 + $0xd4] sm:$0xf] }
 0x17e   :  { %v388_v46 = vld [vmem:[%s11676_s13 + $0xc8] sm:$0xf]  ;;  %v390_v47 = vld [vmem:[%s11676_s13 + $0xd8] sm:$0xf]  ;;  %387 = vst [vmem:[#allocation2 + $0xcc] sm:$0xf] %v386_v45 }
 0x17f   :  { %389 = vst [vmem:[#allocation2 + $0xd0] sm:$0xf] %v388_v46  ;;  %391 = vst [vmem:[#allocation2 + $0xd4] sm:$0xf] %v390_v47  ;;  %v392_v48 = vld [vmem:[%s11676_s13 + $0xcc] sm:$0xf] }
 0x180   :  { %v398_v50 = vld [vmem:[%s11676_s13 + $0xf0] sm:$0xf]  ;;  %393 = vst [vmem:[#allocation2 + $0xd8] sm:$0xf] %v392_v48  ;;  %395 = vst [vmem:[#allocation2 + $0xdc] sm:$0xff] %v394_v49  }
 0x181   :  { %399 = vst [vmem:[#allocation2 + $0xe4] sm:$0xf] %v398_v50  ;;  %v400_v51 = vld [vmem:[%s11676_s13 + $0xe4] sm:$0xf]  ;;  %v402_v52 = vld [vmem:[%s11676_s13 + $0xf4] sm:$0xf] }
 0x182   :  { %v404_v53 = vld [vmem:[%s11676_s13 + $0xe8] sm:$0xf]  ;;  %401 = vst [vmem:[#allocation2 + $0xe8] sm:$0xf] %v400_v51  ;;  %403 = vst [vmem:[#allocation2 + $0xec] sm:$0xf] %v402_v52 }
 0x183   :  { %405 = vst [vmem:[#allocation2 + $0xf0] sm:$0xf] %v404_v53  ;;  %v406_v54 = vld [vmem:[%s11676_s13 + $0xf8] sm:$0xf]  ;;  %v408_v55 = vld [vmem:[%s11676_s13 + $0xec] sm:$0xf] }
 0x184   :  { %v410_v56 = vld [vmem:[%s11676_s13 + $0xfc] sm:$0xf]  ;;  %407 = vst [vmem:[#allocation2 + $0xf4] sm:$0xf] %v406_v54  ;;  %409 = vst [vmem:[#allocation2 + $0xf8] sm:$0xf] %v408_v55 }
 0x185   :  { %411 = vst [vmem:[#allocation2 + $0xfc] sm:$0xf] %v410_v56 }
 0x186   :  { %570 = vsyncadd [#allocation6], 4096  ;;  %v9033_v57 = vld [vmem:[%s11678_s15] sm:$0xff]  ;;  %v9038_v58 = vld [vmem:[%s11678_s15 + $0x8] sm:$0xff] }
 0x187   :  { %v9043_v59 = vld [vmem:[%s11678_s15 + $0x10] sm:$0xff]  ;;  %v9048_v60 = vld [vmem:[%s11678_s15 + $0x18] sm:$0xff]  ;;  %v9053_v61 = vld [vmem:[%s11678_s15 + $0x20] sm:$0xff] }
 0x188   :  { %11733 = vst [vmem:[#allocation50_spill] sm:$0xff] %v9043_v59  ;;  %11734 = vst [vmem:[#allocation51_spill] sm:$0xff] %v9048_v60  ;;  %v9058_v62 = vld [vmem:[%s11678_s15 + $0x28] sm:$0xff]  ;;  %v9063_v63 = vld [vmem:[%s11678_s15 + $0x30] sm:$0xff] }
 0x189   :  { %11735 = vst [vmem:[#allocation52_spill] sm:$0xff] %v9053_v61  ;;  %11736 = vst [vmem:[#allocation53_spill] sm:$0xff] %v9058_v62  ;;  %v9068_v0 = vld [vmem:[%s11678_s15 + $0x38] sm:$0xff]  ;;  %v9073_v1 = vld [vmem:[%s11678_s15 + $0x40] sm:$0xff] }
 0x18a   :  { %11737 = vst [vmem:[#allocation54_spill] sm:$0xff] %v9063_v63  ;;  %11738 = vst [vmem:[#allocation55_spill] sm:$0xff] %v9068_v0  ;;  %v9078_v2 = vld [vmem:[%s11678_s15 + $0x48] sm:$0xff]  ;;  %v9083_v3 = vld [vmem:[%s11678_s15 + $0x50] sm:$0xff] }
 0x18b   :  { %v9088_v4 = vld [vmem:[%s11678_s15 + $0x58] sm:$0xff]  ;;  %v9093_v5 = vld [vmem:[%s11678_s15 + $0x60] sm:$0xff]  ;;  %v9098_v6 = vld [vmem:[%s11678_s15 + $0x68] sm:$0xff] }
 0x18c   :  { %11739 = vst [vmem:[#allocation56_spill] sm:$0xff] %v9088_v4  ;;  %11740 = vst [vmem:[#allocation57_spill] sm:$0xff] %v9093_v5  ;;  %v9103_v7 = vld [vmem:[%s11678_s15 + $0x70] sm:$0xff]  ;;  %v9108_v8 = vld [vmem:[%s11678_s15 + $0x78] sm:$0xff] }
 0x18d   :  { %11741 = vst [vmem:[#allocation58_spill] sm:$0xff] %v9098_v6  ;;  %11742 = vst [vmem:[#allocation59_spill] sm:$0xff] %v9103_v7  ;;  %v9113_v9 = vld [vmem:[%s11678_s15 + $0x80] sm:$0xff]  ;;  %v9118_v10 = vld [vmem:[%s11678_s15 + $0x88] sm:$0xff] }
 0x18e   :  { %11743 = vst [vmem:[#allocation60_spill] sm:$0xff] %v9108_v8  ;;  %v9123_v11 = vld [vmem:[%s11678_s15 + $0x90] sm:$0xff]  ;;  %v9128_v12 = vld [vmem:[%s11678_s15 + $0x98] sm:$0xff]  ;;  %v9133_v13 = vld [vmem:[%s11678_s15 + $0xa0] sm:$0xff] }
 0x18f   :  { %11744 = vst [vmem:[#allocation61_spill] sm:$0xff] %v9123_v11  ;;  %11745 = vst [vmem:[#allocation62_spill] sm:$0xff] %v9128_v12  ;;  %v9138_v14 = vld [vmem:[%s11678_s15 + $0xa8] sm:$0xff]  ;;  %v9143_v15 = vld [vmem:[%s11678_s15 + $0xb0] sm:$0xff] }
 0x190   :  { %11746 = vst [vmem:[#allocation63_spill] sm:$0xff] %v9133_v13  ;;  %11747 = vst [vmem:[#allocation64_spill] sm:$0xff] %v9138_v14  ;;  %v9148_v16 = vld [vmem:[%s11678_s15 + $0xb8] sm:$0xff]  ;;  %v9153_v17 = vld [vmem:[%s11678_s15 + $0xc0] sm:$0xff] }
 0x191   :  { %11748 = vst [vmem:[#allocation65_spill] sm:$0xff] %v9143_v15  ;;  %11749 = vst [vmem:[#allocation66_spill] sm:$0xff] %v9148_v16  ;;  %v9158_v18 = vld [vmem:[%s11678_s15 + $0xc8] sm:$0xff]  ;;  %v9163_v19 = vld [vmem:[%s11678_s15 + $0xd0] sm:$0xff] }
 0x192   :  { %11750 = vst [vmem:[#allocation67_spill] sm:$0xff] %v9163_v19  ;;  %v9168_v20 = vld [vmem:[%s11678_s15 + $0xd8] sm:$0xff]  ;;  %v9173_v21 = vld [vmem:[%s11678_s15 + $0xe0] sm:$0xff]  ;;  %v9178_v22 = vld [vmem:[%s11678_s15 + $0xe8] sm:$0xff] }
 0x193   :  { %11751 = vst [vmem:[#allocation68_spill] sm:$0xff] %v9168_v20  ;;  %11752 = vst [vmem:[#allocation69_spill] sm:$0xff] %v9173_v21  ;;  %v9183_v23 = vld [vmem:[%s11678_s15 + $0xf0] sm:$0xff]  ;;  %v9188_v24 = vld [vmem:[%s11678_s15 + $0xf8] sm:$0xff] }
 0x194   :  { %11753 = vst [vmem:[#allocation70_spill] sm:$0xff] %v9178_v22  ;;  %11754 = vst [vmem:[#allocation71_spill] sm:$0xff] %v9183_v23 }
 0x195   :  { %11755 = vst [vmem:[#allocation72_spill] sm:$0xff] %v9188_v24 }
 0x196   :  { %675 = vsyncadd [#allocation6 + $0x1], 4096  ;;  %v694_v25 = vld [vmem:[%s11682_s19] sm:$0xf]  ;;  %v696_v26 = vld [vmem:[%s11682_s19 + $0x10] sm:$0xf] }
 0x197   :  { %695 = vst [vmem:[#allocation4] sm:$0xf] %v694_v25  ;;  %697 = vst [vmem:[#allocation4 + $0x4] sm:$0xf] %v696_v26  ;;  %v698_v27 = vld [vmem:[%s11682_s19 + $0x4] sm:$0xf] }
 0x198   :  { %v700_v28 = vld [vmem:[%s11682_s19 + $0x14] sm:$0xf]  ;;  %v702_v29 = vld [vmem:[%s11682_s19 + $0x8] sm:$0xf]  ;;  %699 = vst [vmem:[#allocation4 + $0x8] sm:$0xf] %v698_v27 }
 0x199   :  { %701 = vst [vmem:[#allocation4 + $0xc] sm:$0xf] %v700_v28  ;;  %703 = vst [vmem:[#allocation4 + $0x10] sm:$0xf] %v702_v29  ;;  %v704_v30 = vld [vmem:[%s11682_s19 + $0x18] sm:$0xf] }
 0x19a   :  { %v706_v31 = vld [vmem:[%s11682_s19 + $0xc] sm:$0xf]  ;;  %v708_v32 = vld [vmem:[%s11682_s19 + $0x1c] sm:$0xff]   ;;  %705 = vst [vmem:[#allocation4 + $0x14] sm:$0xf] %v704_v30 }
 0x19b   :  { %707 = vst [vmem:[#allocation4 + $0x18] sm:$0xf] %v706_v31  ;;  %709 = vst [vmem:[#allocation4 + $0x1c] sm:$0xff] %v708_v32   ;;  %v712_v33 = vld [vmem:[%s11682_s19 + $0x30] sm:$0xf]  ;;  %v724_v39 = vld [vmem:[%s11682_s19 + $0x3c] sm:$0xff]  }
 0x19c   :  { %v714_v34 = vld [vmem:[%s11682_s19 + $0x24] sm:$0xf]  ;;  %v716_v35 = vld [vmem:[%s11682_s19 + $0x34] sm:$0xf]  ;;  %713 = vst [vmem:[#allocation4 + $0x24] sm:$0xf] %v712_v33 }
 0x19d   :  { %715 = vst [vmem:[#allocation4 + $0x28] sm:$0xf] %v714_v34  ;;  %717 = vst [vmem:[#allocation4 + $0x2c] sm:$0xf] %v716_v35  ;;  %v718_v36 = vld [vmem:[%s11682_s19 + $0x28] sm:$0xf] }
 0x19e   :  { %v720_v37 = vld [vmem:[%s11682_s19 + $0x38] sm:$0xf]  ;;  %v722_v38 = vld [vmem:[%s11682_s19 + $0x2c] sm:$0xf]  ;;  %719 = vst [vmem:[#allocation4 + $0x30] sm:$0xf] %v718_v36 }
 0x19f   :  { %721 = vst [vmem:[#allocation4 + $0x34] sm:$0xf] %v720_v37  ;;  %723 = vst [vmem:[#allocation4 + $0x38] sm:$0xf] %v722_v38  ;;  %v728_v40 = vld [vmem:[%s11682_s19 + $0x50] sm:$0xf] }
 0x1a0   :  { %v730_v41 = vld [vmem:[%s11682_s19 + $0x44] sm:$0xf]  ;;  %725 = vst [vmem:[#allocation4 + $0x3c] sm:$0xff] %v724_v39   ;;  %729 = vst [vmem:[#allocation4 + $0x44] sm:$0xf] %v728_v40  ;;  %v740_v46 = vld [vmem:[%s11682_s19 + $0x5c] sm:$0xff]  }
 0x1a1   :  { %731 = vst [vmem:[#allocation4 + $0x48] sm:$0xf] %v730_v41  ;;  %v732_v42 = vld [vmem:[%s11682_s19 + $0x54] sm:$0xf]  ;;  %v734_v43 = vld [vmem:[%s11682_s19 + $0x48] sm:$0xf] }
 0x1a2   :  { %v736_v44 = vld [vmem:[%s11682_s19 + $0x58] sm:$0xf]  ;;  %733 = vst [vmem:[#allocation4 + $0x4c] sm:$0xf] %v732_v42  ;;  %735 = vst [vmem:[#allocation4 + $0x50] sm:$0xf] %v734_v43 }
 0x1a3   :  { %737 = vst [vmem:[#allocation4 + $0x54] sm:$0xf] %v736_v44  ;;  %v738_v45 = vld [vmem:[%s11682_s19 + $0x4c] sm:$0xf]  ;;  %v744_v47 = vld [vmem:[%s11682_s19 + $0x70] sm:$0xf] }
 0x1a4   :  { %739 = vst [vmem:[#allocation4 + $0x58] sm:$0xf] %v738_v45  ;;  %741 = vst [vmem:[#allocation4 + $0x5c] sm:$0xff] %v740_v46   ;;  %v746_v48 = vld [vmem:[%s11682_s19 + $0x64] sm:$0xf]  ;;  %v756_v53 = vld [vmem:[%s11682_s19 + $0x7c] sm:$0xff]  }
 0x1a5   :  { %745 = vst [vmem:[#allocation4 + $0x64] sm:$0xf] %v744_v47  ;;  %v748_v49 = vld [vmem:[%s11682_s19 + $0x74] sm:$0xf]  ;;  %v750_v50 = vld [vmem:[%s11682_s19 + $0x68] sm:$0xf] }
 0x1a6   :  { %747 = vst [vmem:[#allocation4 + $0x68] sm:$0xf] %v746_v48  ;;  %749 = vst [vmem:[#allocation4 + $0x6c] sm:$0xf] %v748_v49  ;;  %v752_v51 = vld [vmem:[%s11682_s19 + $0x78] sm:$0xf] }
 0x1a7   :  { %751 = vst [vmem:[#allocation4 + $0x70] sm:$0xf] %v750_v50  ;;  %v754_v52 = vld [vmem:[%s11682_s19 + $0x6c] sm:$0xf]  ;;  %753 = vst [vmem:[#allocation4 + $0x74] sm:$0xf] %v752_v51 }
 0x1a8   :  { %755 = vst [vmem:[#allocation4 + $0x78] sm:$0xf] %v754_v52  ;;  %757 = vst [vmem:[#allocation4 + $0x7c] sm:$0xff] %v756_v53   ;;  %v760_v54 = vld [vmem:[%s11682_s19 + $0x90] sm:$0xf]  ;;  %v772_v28 = vld [vmem:[%s11682_s19 + $0x9c] sm:$0xff]  }
 0x1a9   :  { %v762_v55 = vld [vmem:[%s11682_s19 + $0x84] sm:$0xf]  ;;  %v764_v56 = vld [vmem:[%s11682_s19 + $0x94] sm:$0xf]  ;;  %761 = vst [vmem:[#allocation4 + $0x84] sm:$0xf] %v760_v54 }
 0x1aa   :  { %763 = vst [vmem:[#allocation4 + $0x88] sm:$0xf] %v762_v55  ;;  %765 = vst [vmem:[#allocation4 + $0x8c] sm:$0xf] %v764_v56  ;;  %v766_v25 = vld [vmem:[%s11682_s19 + $0x88] sm:$0xf] }
 0x1ab   :  { %v768_v26 = vld [vmem:[%s11682_s19 + $0x98] sm:$0xf]  ;;  %v770_v27 = vld [vmem:[%s11682_s19 + $0x8c] sm:$0xf]  ;;  %767 = vst [vmem:[#allocation4 + $0x90] sm:$0xf] %v766_v25 }
 0x1ac   :  { %769 = vst [vmem:[#allocation4 + $0x94] sm:$0xf] %v768_v26  ;;  %771 = vst [vmem:[#allocation4 + $0x98] sm:$0xf] %v770_v27  ;;  %v776_v29 = vld [vmem:[%s11682_s19 + $0xb0] sm:$0xf] }
 0x1ad   :  { %v778_v30 = vld [vmem:[%s11682_s19 + $0xa4] sm:$0xf]  ;;  %773 = vst [vmem:[#allocation4 + $0x9c] sm:$0xff] %v772_v28   ;;  %777 = vst [vmem:[#allocation4 + $0xa4] sm:$0xf] %v776_v29  ;;  %v788_v35 = vld [vmem:[%s11682_s19 + $0xbc] sm:$0xff]  }
 0x1ae   :  { %779 = vst [vmem:[#allocation4 + $0xa8] sm:$0xf] %v778_v30  ;;  %v780_v31 = vld [vmem:[%s11682_s19 + $0xb4] sm:$0xf]  ;;  %v782_v32 = vld [vmem:[%s11682_s19 + $0xa8] sm:$0xf] }
 0x1af   :  { %v784_v33 = vld [vmem:[%s11682_s19 + $0xb8] sm:$0xf]  ;;  %781 = vst [vmem:[#allocation4 + $0xac] sm:$0xf] %v780_v31  ;;  %783 = vst [vmem:[#allocation4 + $0xb0] sm:$0xf] %v782_v32 }
 0x1b0   :  { %785 = vst [vmem:[#allocation4 + $0xb4] sm:$0xf] %v784_v33  ;;  %v786_v34 = vld [vmem:[%s11682_s19 + $0xac] sm:$0xf]  ;;  %v792_v36 = vld [vmem:[%s11682_s19 + $0xd0] sm:$0xf] }
 0x1b1   :  { %787 = vst [vmem:[#allocation4 + $0xb8] sm:$0xf] %v786_v34  ;;  %789 = vst [vmem:[#allocation4 + $0xbc] sm:$0xff] %v788_v35   ;;  %v794_v37 = vld [vmem:[%s11682_s19 + $0xc4] sm:$0xf]  ;;  %v804_v42 = vld [vmem:[%s11682_s19 + $0xdc] sm:$0xff]  }
 0x1b2   :  { %793 = vst [vmem:[#allocation4 + $0xc4] sm:$0xf] %v792_v36  ;;  %v796_v38 = vld [vmem:[%s11682_s19 + $0xd4] sm:$0xf]  ;;  %v798_v39 = vld [vmem:[%s11682_s19 + $0xc8] sm:$0xf] }
 0x1b3   :  { %795 = vst [vmem:[#allocation4 + $0xc8] sm:$0xf] %v794_v37  ;;  %797 = vst [vmem:[#allocation4 + $0xcc] sm:$0xf] %v796_v38  ;;  %v800_v40 = vld [vmem:[%s11682_s19 + $0xd8] sm:$0xf] }
 0x1b4   :  { %799 = vst [vmem:[#allocation4 + $0xd0] sm:$0xf] %v798_v39  ;;  %v802_v41 = vld [vmem:[%s11682_s19 + $0xcc] sm:$0xf]  ;;  %801 = vst [vmem:[#allocation4 + $0xd4] sm:$0xf] %v800_v40 }
 0x1b5   :  { %803 = vst [vmem:[#allocation4 + $0xd8] sm:$0xf] %v802_v41  ;;  %805 = vst [vmem:[#allocation4 + $0xdc] sm:$0xff] %v804_v42   ;;  %v808_v43 = vld [vmem:[%s11682_s19 + $0xf0] sm:$0xf] }
 0x1b6   :  { %v810_v44 = vld [vmem:[%s11682_s19 + $0xe4] sm:$0xf]  ;;  %v812_v45 = vld [vmem:[%s11682_s19 + $0xf4] sm:$0xf]  ;;  %809 = vst [vmem:[#allocation4 + $0xe4] sm:$0xf] %v808_v43 }
 0x1b7   :  { %811 = vst [vmem:[#allocation4 + $0xe8] sm:$0xf] %v810_v44  ;;  %813 = vst [vmem:[#allocation4 + $0xec] sm:$0xf] %v812_v45  ;;  %v814_v46 = vld [vmem:[%s11682_s19 + $0xe8] sm:$0xf] }
 0x1b8   :  { %v816_v47 = vld [vmem:[%s11682_s19 + $0xf8] sm:$0xf]  ;;  %v818_v48 = vld [vmem:[%s11682_s19 + $0xec] sm:$0xf]  ;;  %815 = vst [vmem:[#allocation4 + $0xf0] sm:$0xf] %v814_v46 }
 0x1b9   :  { %817 = vst [vmem:[#allocation4 + $0xf4] sm:$0xf] %v816_v47  ;;  %819 = vst [vmem:[#allocation4 + $0xf8] sm:$0xf] %v818_v48  ;;  %v820_v49 = vld [vmem:[%s11682_s19 + $0xfc] sm:$0xf] }
 0x1ba   :  { %821 = vst [vmem:[#allocation4 + $0xfc] sm:$0xf] %v820_v49 }
 0x1bb   :  { %980 = vsyncadd [#allocation6 + $0x2], 4096  ;;  %v999_v50 = vld [vmem:[%s11684_s21] sm:$0xf]  ;;  %v1001_v51 = vld [vmem:[%s11684_s21 + $0x18] sm:$0xf] }
 0x1bc   :  { %1000 = vst [vmem:[#allocation5] sm:$0xf] %v999_v50  ;;  %1002 = vst [vmem:[#allocation5 + $0x4] sm:$0xf] %v1001_v51  ;;  %v1003_v52 = vld [vmem:[%s11684_s21 + $0x4] sm:$0xf] }
 0x1bd   :  { %v1005_v53 = vld [vmem:[%s11684_s21 + $0x1c] sm:$0xf]  ;;  %v1007_v54 = vld [vmem:[%s11684_s21 + $0x8] sm:$0xf]  ;;  %1004 = vst [vmem:[#allocation5 + $0x8] sm:$0xf] %v1003_v52 }
 0x1be   :  { %1006 = vst [vmem:[#allocation5 + $0xc] sm:$0xf] %v1005_v53  ;;  %1008 = vst [vmem:[#allocation5 + $0x10] sm:$0xf] %v1007_v54  ;;  %v1009_v55 = vld [vmem:[%s11684_s21 + $0x20] sm:$0xf] }
 0x1bf   :  { %v1011_v56 = vld [vmem:[%s11684_s21 + $0xc] sm:$0xf]  ;;  %v1013_v25 = vld [vmem:[%s11684_s21 + $0x24] sm:$0xf]  ;;  %1010 = vst [vmem:[#allocation5 + $0x14] sm:$0xf] %v1009_v55 }
 0x1c0   :  { %1012 = vst [vmem:[#allocation5 + $0x18] sm:$0xf] %v1011_v56  ;;  %1014 = vst [vmem:[#allocation5 + $0x1c] sm:$0xf] %v1013_v25  ;;  %v1015_v26 = vld [vmem:[%s11684_s21 + $0x10] sm:$0xf] }
 0x1c1   :  { %v1017_v27 = vld [vmem:[%s11684_s21 + $0x28] sm:$0xf]  ;;  %v1019_v28 = vld [vmem:[%s11684_s21 + $0x14] sm:$0xf]  ;;  %1016 = vst [vmem:[#allocation5 + $0x20] sm:$0xf] %v1015_v26 }
 0x1c2   :  { %1018 = vst [vmem:[#allocation5 + $0x24] sm:$0xf] %v1017_v27  ;;  %1020 = vst [vmem:[#allocation5 + $0x28] sm:$0xf] %v1019_v28  ;;  %v1021_v29 = vld [vmem:[%s11684_s21 + $0x2c] sm:$0xff]   ;;  %v1045_v40 = vld [vmem:[%s11684_s21 + $0x5c] sm:$0xff]  }
 0x1c3   :  { %v1025_v30 = vld [vmem:[%s11684_s21 + $0x48] sm:$0xf]  ;;  %v1027_v31 = vld [vmem:[%s11684_s21 + $0x34] sm:$0xf]  ;;  %1022 = vst [vmem:[#allocation5 + $0x2c] sm:$0xff] %v1021_v29   ;;  %1046 = vst [vmem:[#allocation5 + $0x5c] sm:$0xff] %v1045_v40  }
 0x1c4   :  { %1026 = vst [vmem:[#allocation5 + $0x34] sm:$0xf] %v1025_v30  ;;  %1028 = vst [vmem:[#allocation5 + $0x38] sm:$0xf] %v1027_v31  ;;  %v1029_v32 = vld [vmem:[%s11684_s21 + $0x4c] sm:$0xf] }
 0x1c5   :  { %v1031_v33 = vld [vmem:[%s11684_s21 + $0x38] sm:$0xf]  ;;  %v1033_v34 = vld [vmem:[%s11684_s21 + $0x50] sm:$0xf]  ;;  %1030 = vst [vmem:[#allocation5 + $0x3c] sm:$0xf] %v1029_v32 }
 0x1c6   :  { %1032 = vst [vmem:[#allocation5 + $0x40] sm:$0xf] %v1031_v33  ;;  %1034 = vst [vmem:[#allocation5 + $0x44] sm:$0xf] %v1033_v34  ;;  %v1035_v35 = vld [vmem:[%s11684_s21 + $0x3c] sm:$0xf] }
 0x1c7   :  { %v1037_v36 = vld [vmem:[%s11684_s21 + $0x54] sm:$0xf]  ;;  %v1039_v37 = vld [vmem:[%s11684_s21 + $0x40] sm:$0xf]  ;;  %1036 = vst [vmem:[#allocation5 + $0x48] sm:$0xf] %v1035_v35 }
 0x1c8   :  { %1038 = vst [vmem:[#allocation5 + $0x4c] sm:$0xf] %v1037_v36  ;;  %1040 = vst [vmem:[#allocation5 + $0x50] sm:$0xf] %v1039_v37  ;;  %v1041_v38 = vld [vmem:[%s11684_s21 + $0x58] sm:$0xf] }
 0x1c9   :  { %v1043_v39 = vld [vmem:[%s11684_s21 + $0x44] sm:$0xf]  ;;  %1042 = vst [vmem:[#allocation5 + $0x54] sm:$0xf] %v1041_v38  ;;  %v1049_v41 = vld [vmem:[%s11684_s21 + $0x78] sm:$0xf] }
 0x1ca   :  { %1044 = vst [vmem:[#allocation5 + $0x58] sm:$0xf] %v1043_v39  ;;  %v1051_v42 = vld [vmem:[%s11684_s21 + $0x64] sm:$0xf]  ;;  %v1053_v43 = vld [vmem:[%s11684_s21 + $0x7c] sm:$0xf] }
 0x1cb   :  { %1050 = vst [vmem:[#allocation5 + $0x64] sm:$0xf] %v1049_v41  ;;  %1052 = vst [vmem:[#allocation5 + $0x68] sm:$0xf] %v1051_v42  ;;  %v1055_v44 = vld [vmem:[%s11684_s21 + $0x68] sm:$0xf] }
 0x1cc   :  { %1054 = vst [vmem:[#allocation5 + $0x6c] sm:$0xf] %v1053_v43  ;;  %v1057_v45 = vld [vmem:[%s11684_s21 + $0x80] sm:$0xf]  ;;  %v1059_v46 = vld [vmem:[%s11684_s21 + $0x6c] sm:$0xf] }
 0x1cd   :  { %1056 = vst [vmem:[#allocation5 + $0x70] sm:$0xf] %v1055_v44  ;;  %1058 = vst [vmem:[#allocation5 + $0x74] sm:$0xf] %v1057_v45  ;;  %v1061_v47 = vld [vmem:[%s11684_s21 + $0x84] sm:$0xf] }
 0x1ce   :  { %1060 = vst [vmem:[#allocation5 + $0x78] sm:$0xf] %v1059_v46  ;;  %v1063_v48 = vld [vmem:[%s11684_s21 + $0x70] sm:$0xf]  ;;  %v1065_v49 = vld [vmem:[%s11684_s21 + $0x88] sm:$0xf] }
 0x1cf   :  { %1062 = vst [vmem:[#allocation5 + $0x7c] sm:$0xf] %v1061_v47  ;;  %1064 = vst [vmem:[#allocation5 + $0x80] sm:$0xf] %v1063_v48  ;;  %v1067_v50 = vld [vmem:[%s11684_s21 + $0x74] sm:$0xf] }
 0x1d0   :  { %1066 = vst [vmem:[#allocation5 + $0x84] sm:$0xf] %v1065_v49  ;;  %v1069_v51 = vld [vmem:[%s11684_s21 + $0x8c] sm:$0xff]   ;;  %v1073_v52 = vld [vmem:[%s11684_s21 + $0xa8] sm:$0xf]  ;;  %v1093_v30 = vld [vmem:[%s11684_s21 + $0xbc] sm:$0xff]  }
 0x1d1   :  { %1068 = vst [vmem:[#allocation5 + $0x88] sm:$0xf] %v1067_v50  ;;  %1070 = vst [vmem:[#allocation5 + $0x8c] sm:$0xff] %v1069_v51   ;;  %v1075_v53 = vld [vmem:[%s11684_s21 + $0x94] sm:$0xf]  ;;  %v1117_v41 = vld [vmem:[%s11684_s21 + $0xec] sm:$0xff]  }
 0x1d2   :  { %1074 = vst [vmem:[#allocation5 + $0x94] sm:$0xf] %v1073_v52  ;;  %v1077_v54 = vld [vmem:[%s11684_s21 + $0xac] sm:$0xf]  ;;  %v1079_v55 = vld [vmem:[%s11684_s21 + $0x98] sm:$0xf] }
 0x1d3   :  { %1076 = vst [vmem:[#allocation5 + $0x98] sm:$0xf] %v1075_v53  ;;  %1078 = vst [vmem:[#allocation5 + $0x9c] sm:$0xf] %v1077_v54  ;;  %v1081_v56 = vld [vmem:[%s11684_s21 + $0xb0] sm:$0xf] }
 0x1d4   :  { %1080 = vst [vmem:[#allocation5 + $0xa0] sm:$0xf] %v1079_v55  ;;  %v1083_v25 = vld [vmem:[%s11684_s21 + $0x9c] sm:$0xf]  ;;  %v1085_v26 = vld [vmem:[%s11684_s21 + $0xb4] sm:$0xf] }
 0x1d5   :  { %1082 = vst [vmem:[#allocation5 + $0xa4] sm:$0xf] %v1081_v56  ;;  %1084 = vst [vmem:[#allocation5 + $0xa8] sm:$0xf] %v1083_v25  ;;  %v1087_v27 = vld [vmem:[%s11684_s21 + $0xa0] sm:$0xf] }
 0x1d6   :  { %1086 = vst [vmem:[#allocation5 + $0xac] sm:$0xf] %v1085_v26  ;;  %v1089_v28 = vld [vmem:[%s11684_s21 + $0xb8] sm:$0xf]  ;;  %v1091_v29 = vld [vmem:[%s11684_s21 + $0xa4] sm:$0xf] }
 0x1d7   :  { %1088 = vst [vmem:[#allocation5 + $0xb0] sm:$0xf] %v1087_v27  ;;  %1090 = vst [vmem:[#allocation5 + $0xb4] sm:$0xf] %v1089_v28  ;;  %v1097_v31 = vld [vmem:[%s11684_s21 + $0xd8] sm:$0xf] }
 0x1d8   :  { %1092 = vst [vmem:[#allocation5 + $0xb8] sm:$0xf] %v1091_v29  ;;  %v1099_v32 = vld [vmem:[%s11684_s21 + $0xc4] sm:$0xf]  ;;  %1094 = vst [vmem:[#allocation5 + $0xbc] sm:$0xff] %v1093_v30   ;;  %v1141_v52 = vld [vmem:[%s11684_s21 + $0x11c] sm:$0xff]  }
 0x1d9   :  { %1098 = vst [vmem:[#allocation5 + $0xc4] sm:$0xf] %v1097_v31  ;;  %1100 = vst [vmem:[#allocation5 + $0xc8] sm:$0xf] %v1099_v32  ;;  %v1101_v33 = vld [vmem:[%s11684_s21 + $0xdc] sm:$0xf] }
 0x1da   :  { %v1103_v34 = vld [vmem:[%s11684_s21 + $0xc8] sm:$0xf]  ;;  %v1105_v35 = vld [vmem:[%s11684_s21 + $0xe0] sm:$0xf]  ;;  %1102 = vst [vmem:[#allocation5 + $0xcc] sm:$0xf] %v1101_v33 }
 0x1db   :  { %1104 = vst [vmem:[#allocation5 + $0xd0] sm:$0xf] %v1103_v34  ;;  %1106 = vst [vmem:[#allocation5 + $0xd4] sm:$0xf] %v1105_v35  ;;  %v1107_v36 = vld [vmem:[%s11684_s21 + $0xcc] sm:$0xf] }
 0x1dc   :  { %v1109_v37 = vld [vmem:[%s11684_s21 + $0xe4] sm:$0xf]  ;;  %v1111_v38 = vld [vmem:[%s11684_s21 + $0xd0] sm:$0xf]  ;;  %1108 = vst [vmem:[#allocation5 + $0xd8] sm:$0xf] %v1107_v36 }
 0x1dd   :  { %1110 = vst [vmem:[#allocation5 + $0xdc] sm:$0xf] %v1109_v37  ;;  %1112 = vst [vmem:[#allocation5 + $0xe0] sm:$0xf] %v1111_v38  ;;  %v1113_v39 = vld [vmem:[%s11684_s21 + $0xe8] sm:$0xf] }
 0x1de   :  { %v1115_v40 = vld [vmem:[%s11684_s21 + $0xd4] sm:$0xf]  ;;  %1114 = vst [vmem:[#allocation5 + $0xe4] sm:$0xf] %v1113_v39  ;;  %1118 = vst [vmem:[#allocation5 + $0xec] sm:$0xff] %v1117_v41   ;;  %v1165_v31 = vld [vmem:[%s11684_s21 + $0x14c] sm:$0xff]  }
 0x1df   :  { %1116 = vst [vmem:[#allocation5 + $0xe8] sm:$0xf] %v1115_v40  ;;  %v1121_v42 = vld [vmem:[%s11684_s21 + $0x108] sm:$0xf]  ;;  %v1123_v43 = vld [vmem:[%s11684_s21 + $0xf4] sm:$0xf] }
 0x1e0   :  { %v1125_v44 = vld [vmem:[%s11684_s21 + $0x10c] sm:$0xf]  ;;  %1122 = vst [vmem:[#allocation5 + $0xf4] sm:$0xf] %v1121_v42  ;;  %1124 = vst [vmem:[#allocation5 + $0xf8] sm:$0xf] %v1123_v43 }
 0x1e1   :  { %1126 = vst [vmem:[#allocation5 + $0xfc] sm:$0xf] %v1125_v44  ;;  %v1127_v45 = vld [vmem:[%s11684_s21 + $0xf8] sm:$0xf]  ;;  %v1129_v46 = vld [vmem:[%s11684_s21 + $0x110] sm:$0xf] }
 0x1e2   :  { %v1131_v47 = vld [vmem:[%s11684_s21 + $0xfc] sm:$0xf]  ;;  %1128 = vst [vmem:[#allocation5 + $0x100] sm:$0xf] %v1127_v45  ;;  %1130 = vst [vmem:[#allocation5 + $0x104] sm:$0xf] %v1129_v46 }
 0x1e3   :  { %1132 = vst [vmem:[#allocation5 + $0x108] sm:$0xf] %v1131_v47  ;;  %v1133_v48 = vld [vmem:[%s11684_s21 + $0x114] sm:$0xf]  ;;  %v1135_v49 = vld [vmem:[%s11684_s21 + $0x100] sm:$0xf] }
 0x1e4   :  { %v1137_v50 = vld [vmem:[%s11684_s21 + $0x118] sm:$0xf]  ;;  %1134 = vst [vmem:[#allocation5 + $0x10c] sm:$0xf] %v1133_v48  ;;  %1136 = vst [vmem:[#allocation5 + $0x110] sm:$0xf] %v1135_v49 }
 0x1e5   :  { %1138 = vst [vmem:[#allocation5 + $0x114] sm:$0xf] %v1137_v50  ;;  %v1139_v51 = vld [vmem:[%s11684_s21 + $0x104] sm:$0xf]  ;;  %v1145_v53 = vld [vmem:[%s11684_s21 + $0x138] sm:$0xf] }
 0x1e6   :  { %1140 = vst [vmem:[#allocation5 + $0x118] sm:$0xf] %v1139_v51  ;;  %1142 = vst [vmem:[#allocation5 + $0x11c] sm:$0xff] %v1141_v52   ;;  %v1147_v54 = vld [vmem:[%s11684_s21 + $0x124] sm:$0xf]  ;;  %v1189_v42 = vld [vmem:[%s11684_s21 + $0x17c] sm:$0xff]  }
 0x1e7   :  { %1146 = vst [vmem:[#allocation5 + $0x124] sm:$0xf] %v1145_v53  ;;  %v1149_v55 = vld [vmem:[%s11684_s21 + $0x13c] sm:$0xf]  ;;  %v1151_v56 = vld [vmem:[%s11684_s21 + $0x128] sm:$0xf] }
 0x1e8   :  { %1148 = vst [vmem:[#allocation5 + $0x128] sm:$0xf] %v1147_v54  ;;  %1150 = vst [vmem:[#allocation5 + $0x12c] sm:$0xf] %v1149_v55  ;;  %v1153_v25 = vld [vmem:[%s11684_s21 + $0x140] sm:$0xf] }
 0x1e9   :  { %1152 = vst [vmem:[#allocation5 + $0x130] sm:$0xf] %v1151_v56  ;;  %v1155_v26 = vld [vmem:[%s11684_s21 + $0x12c] sm:$0xf]  ;;  %v1157_v27 = vld [vmem:[%s11684_s21 + $0x144] sm:$0xf] }
 0x1ea   :  { %1154 = vst [vmem:[#allocation5 + $0x134] sm:$0xf] %v1153_v25  ;;  %1156 = vst [vmem:[#allocation5 + $0x138] sm:$0xf] %v1155_v26  ;;  %v1159_v28 = vld [vmem:[%s11684_s21 + $0x130] sm:$0xf] }
 0x1eb   :  { %1158 = vst [vmem:[#allocation5 + $0x13c] sm:$0xf] %v1157_v27  ;;  %v1161_v29 = vld [vmem:[%s11684_s21 + $0x148] sm:$0xf]  ;;  %v1163_v30 = vld [vmem:[%s11684_s21 + $0x134] sm:$0xf] }
 0x1ec   :  { %1160 = vst [vmem:[#allocation5 + $0x140] sm:$0xf] %v1159_v28  ;;  %1162 = vst [vmem:[#allocation5 + $0x144] sm:$0xf] %v1161_v29  ;;  %v1169_v32 = vld [vmem:[%s11684_s21 + $0x168] sm:$0xf] }
 0x1ed   :  { %1164 = vst [vmem:[#allocation5 + $0x148] sm:$0xf] %v1163_v30  ;;  %v1171_v33 = vld [vmem:[%s11684_s21 + $0x154] sm:$0xf]  ;;  %1166 = vst [vmem:[#allocation5 + $0x14c] sm:$0xff] %v1165_v31   ;;  %v1213_v53 = vld [vmem:[%s11684_s21 + $0x1ac] sm:$0xff]  }
 0x1ee   :  { %1170 = vst [vmem:[#allocation5 + $0x154] sm:$0xf] %v1169_v32  ;;  %1172 = vst [vmem:[#allocation5 + $0x158] sm:$0xf] %v1171_v33  ;;  %v1173_v34 = vld [vmem:[%s11684_s21 + $0x16c] sm:$0xf] }
 0x1ef   :  { %v1175_v35 = vld [vmem:[%s11684_s21 + $0x158] sm:$0xf]  ;;  %v1177_v36 = vld [vmem:[%s11684_s21 + $0x170] sm:$0xf]  ;;  %1174 = vst [vmem:[#allocation5 + $0x15c] sm:$0xf] %v1173_v34 }
 0x1f0   :  { %1176 = vst [vmem:[#allocation5 + $0x160] sm:$0xf] %v1175_v35  ;;  %1178 = vst [vmem:[#allocation5 + $0x164] sm:$0xf] %v1177_v36  ;;  %v1179_v37 = vld [vmem:[%s11684_s21 + $0x15c] sm:$0xf] }
 0x1f1   :  { %v1181_v38 = vld [vmem:[%s11684_s21 + $0x174] sm:$0xf]  ;;  %v1183_v39 = vld [vmem:[%s11684_s21 + $0x160] sm:$0xf]  ;;  %1180 = vst [vmem:[#allocation5 + $0x168] sm:$0xf] %v1179_v37 }
 0x1f2   :  { %1182 = vst [vmem:[#allocation5 + $0x16c] sm:$0xf] %v1181_v38  ;;  %1184 = vst [vmem:[#allocation5 + $0x170] sm:$0xf] %v1183_v39  ;;  %v1185_v40 = vld [vmem:[%s11684_s21 + $0x178] sm:$0xf] }
 0x1f3   :  { %v1187_v41 = vld [vmem:[%s11684_s21 + $0x164] sm:$0xf]  ;;  %1186 = vst [vmem:[#allocation5 + $0x174] sm:$0xf] %v1185_v40  ;;  %1190 = vst [vmem:[#allocation5 + $0x17c] sm:$0xff] %v1189_v42   ;;  %v1237_v32 = vld [vmem:[%s11684_s21 + $0x1dc] sm:$0xff]  }
 0x1f4   :  { %1188 = vst [vmem:[#allocation5 + $0x178] sm:$0xf] %v1187_v41  ;;  %v1193_v43 = vld [vmem:[%s11684_s21 + $0x198] sm:$0xf]  ;;  %v1195_v44 = vld [vmem:[%s11684_s21 + $0x184] sm:$0xf] }
 0x1f5   :  { %v1197_v45 = vld [vmem:[%s11684_s21 + $0x19c] sm:$0xf]  ;;  %1194 = vst [vmem:[#allocation5 + $0x184] sm:$0xf] %v1193_v43  ;;  %1196 = vst [vmem:[#allocation5 + $0x188] sm:$0xf] %v1195_v44 }
 0x1f6   :  { %1198 = vst [vmem:[#allocation5 + $0x18c] sm:$0xf] %v1197_v45  ;;  %v1199_v46 = vld [vmem:[%s11684_s21 + $0x188] sm:$0xf]  ;;  %v1201_v47 = vld [vmem:[%s11684_s21 + $0x1a0] sm:$0xf] }
 0x1f7   :  { %v1203_v48 = vld [vmem:[%s11684_s21 + $0x18c] sm:$0xf]  ;;  %1200 = vst [vmem:[#allocation5 + $0x190] sm:$0xf] %v1199_v46  ;;  %1202 = vst [vmem:[#allocation5 + $0x194] sm:$0xf] %v1201_v47 }
 0x1f8   :  { %1204 = vst [vmem:[#allocation5 + $0x198] sm:$0xf] %v1203_v48  ;;  %v1205_v49 = vld [vmem:[%s11684_s21 + $0x1a4] sm:$0xf]  ;;  %v1207_v50 = vld [vmem:[%s11684_s21 + $0x190] sm:$0xf] }
 0x1f9   :  { %v1209_v51 = vld [vmem:[%s11684_s21 + $0x1a8] sm:$0xf]  ;;  %1206 = vst [vmem:[#allocation5 + $0x19c] sm:$0xf] %v1205_v49  ;;  %1208 = vst [vmem:[#allocation5 + $0x1a0] sm:$0xf] %v1207_v50 }
 0x1fa   :  { %1210 = vst [vmem:[#allocation5 + $0x1a4] sm:$0xf] %v1209_v51  ;;  %v1211_v52 = vld [vmem:[%s11684_s21 + $0x194] sm:$0xf]  ;;  %v1217_v54 = vld [vmem:[%s11684_s21 + $0x1c8] sm:$0xf] }
 0x1fb   :  { %1212 = vst [vmem:[#allocation5 + $0x1a8] sm:$0xf] %v1211_v52  ;;  %1214 = vst [vmem:[#allocation5 + $0x1ac] sm:$0xff] %v1213_v53   ;;  %v1219_v55 = vld [vmem:[%s11684_s21 + $0x1b4] sm:$0xf]  ;;  %v1261_v43 = vld [vmem:[%s11684_s21 + $0x20c] sm:$0xff]  }
 0x1fc   :  { %1218 = vst [vmem:[#allocation5 + $0x1b4] sm:$0xf] %v1217_v54  ;;  %v1221_v56 = vld [vmem:[%s11684_s21 + $0x1cc] sm:$0xf]  ;;  %v1223_v25 = vld [vmem:[%s11684_s21 + $0x1b8] sm:$0xf] }
 0x1fd   :  { %1220 = vst [vmem:[#allocation5 + $0x1b8] sm:$0xf] %v1219_v55  ;;  %1222 = vst [vmem:[#allocation5 + $0x1bc] sm:$0xf] %v1221_v56  ;;  %v1225_v26 = vld [vmem:[%s11684_s21 + $0x1d0] sm:$0xf] }
 0x1fe   :  { %1224 = vst [vmem:[#allocation5 + $0x1c0] sm:$0xf] %v1223_v25  ;;  %v1227_v27 = vld [vmem:[%s11684_s21 + $0x1bc] sm:$0xf]  ;;  %v1229_v28 = vld [vmem:[%s11684_s21 + $0x1d4] sm:$0xf] }
 0x1ff   :  { %1226 = vst [vmem:[#allocation5 + $0x1c4] sm:$0xf] %v1225_v26  ;;  %1228 = vst [vmem:[#allocation5 + $0x1c8] sm:$0xf] %v1227_v27  ;;  %v1231_v29 = vld [vmem:[%s11684_s21 + $0x1c0] sm:$0xf] }
 0x200   :  { %1230 = vst [vmem:[#allocation5 + $0x1cc] sm:$0xf] %v1229_v28  ;;  %v1233_v30 = vld [vmem:[%s11684_s21 + $0x1d8] sm:$0xf]  ;;  %v1235_v31 = vld [vmem:[%s11684_s21 + $0x1c4] sm:$0xf] }
 0x201   :  { %1232 = vst [vmem:[#allocation5 + $0x1d0] sm:$0xf] %v1231_v29  ;;  %1234 = vst [vmem:[#allocation5 + $0x1d4] sm:$0xf] %v1233_v30  ;;  %v1241_v33 = vld [vmem:[%s11684_s21 + $0x1f8] sm:$0xf] }
 0x202   :  { %1236 = vst [vmem:[#allocation5 + $0x1d8] sm:$0xf] %v1235_v31  ;;  %v1243_v34 = vld [vmem:[%s11684_s21 + $0x1e4] sm:$0xf]  ;;  %1238 = vst [vmem:[#allocation5 + $0x1dc] sm:$0xff] %v1237_v32   ;;  %v1285_v54 = vld [vmem:[%s11684_s21 + $0x23c] sm:$0xff]  }
 0x203   :  { %1242 = vst [vmem:[#allocation5 + $0x1e4] sm:$0xf] %v1241_v33  ;;  %1244 = vst [vmem:[#allocation5 + $0x1e8] sm:$0xf] %v1243_v34  ;;  %v1245_v35 = vld [vmem:[%s11684_s21 + $0x1fc] sm:$0xf] }
 0x204   :  { %v1247_v36 = vld [vmem:[%s11684_s21 + $0x1e8] sm:$0xf]  ;;  %v1249_v37 = vld [vmem:[%s11684_s21 + $0x200] sm:$0xf]  ;;  %1246 = vst [vmem:[#allocation5 + $0x1ec] sm:$0xf] %v1245_v35 }
 0x205   :  { %1248 = vst [vmem:[#allocation5 + $0x1f0] sm:$0xf] %v1247_v36  ;;  %1250 = vst [vmem:[#allocation5 + $0x1f4] sm:$0xf] %v1249_v37  ;;  %v1251_v38 = vld [vmem:[%s11684_s21 + $0x1ec] sm:$0xf] }
 0x206   :  { %v1253_v39 = vld [vmem:[%s11684_s21 + $0x204] sm:$0xf]  ;;  %v1255_v40 = vld [vmem:[%s11684_s21 + $0x1f0] sm:$0xf]  ;;  %1252 = vst [vmem:[#allocation5 + $0x1f8] sm:$0xf] %v1251_v38 }
 0x207   :  { %1254 = vst [vmem:[#allocation5 + $0x1fc] sm:$0xf] %v1253_v39  ;;  %1256 = vst [vmem:[#allocation5 + $0x200] sm:$0xf] %v1255_v40  ;;  %v1257_v41 = vld [vmem:[%s11684_s21 + $0x208] sm:$0xf] }
 0x208   :  { %v1259_v42 = vld [vmem:[%s11684_s21 + $0x1f4] sm:$0xf]  ;;  %1258 = vst [vmem:[#allocation5 + $0x204] sm:$0xf] %v1257_v41  ;;  %1262 = vst [vmem:[#allocation5 + $0x20c] sm:$0xff] %v1261_v43   ;;  %v1309_v33 = vld [vmem:[%s11684_s21 + $0x26c] sm:$0xff]  }
 0x209   :  { %1260 = vst [vmem:[#allocation5 + $0x208] sm:$0xf] %v1259_v42  ;;  %v1265_v44 = vld [vmem:[%s11684_s21 + $0x228] sm:$0xf]  ;;  %v1267_v45 = vld [vmem:[%s11684_s21 + $0x214] sm:$0xf] }
 0x20a   :  { %v1269_v46 = vld [vmem:[%s11684_s21 + $0x22c] sm:$0xf]  ;;  %1266 = vst [vmem:[#allocation5 + $0x214] sm:$0xf] %v1265_v44  ;;  %1268 = vst [vmem:[#allocation5 + $0x218] sm:$0xf] %v1267_v45 }
 0x20b   :  { %1270 = vst [vmem:[#allocation5 + $0x21c] sm:$0xf] %v1269_v46  ;;  %v1271_v47 = vld [vmem:[%s11684_s21 + $0x218] sm:$0xf]  ;;  %v1273_v48 = vld [vmem:[%s11684_s21 + $0x230] sm:$0xf] }
 0x20c   :  { %v1275_v49 = vld [vmem:[%s11684_s21 + $0x21c] sm:$0xf]  ;;  %1272 = vst [vmem:[#allocation5 + $0x220] sm:$0xf] %v1271_v47  ;;  %1274 = vst [vmem:[#allocation5 + $0x224] sm:$0xf] %v1273_v48 }
 0x20d   :  { %1276 = vst [vmem:[#allocation5 + $0x228] sm:$0xf] %v1275_v49  ;;  %v1277_v50 = vld [vmem:[%s11684_s21 + $0x234] sm:$0xf]  ;;  %v1279_v51 = vld [vmem:[%s11684_s21 + $0x220] sm:$0xf] }
 0x20e   :  { %v1281_v52 = vld [vmem:[%s11684_s21 + $0x238] sm:$0xf]  ;;  %1278 = vst [vmem:[#allocation5 + $0x22c] sm:$0xf] %v1277_v50  ;;  %1280 = vst [vmem:[#allocation5 + $0x230] sm:$0xf] %v1279_v51 }
 0x20f   :  { %1282 = vst [vmem:[#allocation5 + $0x234] sm:$0xf] %v1281_v52  ;;  %v1283_v53 = vld [vmem:[%s11684_s21 + $0x224] sm:$0xf]  ;;  %v1289_v55 = vld [vmem:[%s11684_s21 + $0x258] sm:$0xf] }
 0x210   :  { %1284 = vst [vmem:[#allocation5 + $0x238] sm:$0xf] %v1283_v53  ;;  %1286 = vst [vmem:[#allocation5 + $0x23c] sm:$0xff] %v1285_v54   ;;  %v1291_v56 = vld [vmem:[%s11684_s21 + $0x244] sm:$0xf]  ;;  %v1333_v44 = vld [vmem:[%s11684_s21 + $0x29c] sm:$0xff]  }
 0x211   :  { %1290 = vst [vmem:[#allocation5 + $0x244] sm:$0xf] %v1289_v55  ;;  %v1293_v25 = vld [vmem:[%s11684_s21 + $0x25c] sm:$0xf]  ;;  %v1295_v26 = vld [vmem:[%s11684_s21 + $0x248] sm:$0xf] }
 0x212   :  { %1292 = vst [vmem:[#allocation5 + $0x248] sm:$0xf] %v1291_v56  ;;  %1294 = vst [vmem:[#allocation5 + $0x24c] sm:$0xf] %v1293_v25  ;;  %v1297_v27 = vld [vmem:[%s11684_s21 + $0x260] sm:$0xf] }
 0x213   :  { %1296 = vst [vmem:[#allocation5 + $0x250] sm:$0xf] %v1295_v26  ;;  %v1299_v28 = vld [vmem:[%s11684_s21 + $0x24c] sm:$0xf]  ;;  %v1301_v29 = vld [vmem:[%s11684_s21 + $0x264] sm:$0xf] }
 0x214   :  { %1298 = vst [vmem:[#allocation5 + $0x254] sm:$0xf] %v1297_v27  ;;  %1300 = vst [vmem:[#allocation5 + $0x258] sm:$0xf] %v1299_v28  ;;  %v1303_v30 = vld [vmem:[%s11684_s21 + $0x250] sm:$0xf] }
 0x215   :  { %1302 = vst [vmem:[#allocation5 + $0x25c] sm:$0xf] %v1301_v29  ;;  %v1305_v31 = vld [vmem:[%s11684_s21 + $0x268] sm:$0xf]  ;;  %v1307_v32 = vld [vmem:[%s11684_s21 + $0x254] sm:$0xf] }
 0x216   :  { %1304 = vst [vmem:[#allocation5 + $0x260] sm:$0xf] %v1303_v30  ;;  %1306 = vst [vmem:[#allocation5 + $0x264] sm:$0xf] %v1305_v31  ;;  %v1313_v34 = vld [vmem:[%s11684_s21 + $0x288] sm:$0xf] }
 0x217   :  { %1308 = vst [vmem:[#allocation5 + $0x268] sm:$0xf] %v1307_v32  ;;  %v1315_v35 = vld [vmem:[%s11684_s21 + $0x274] sm:$0xf]  ;;  %1310 = vst [vmem:[#allocation5 + $0x26c] sm:$0xff] %v1309_v33   ;;  %v1357_v55 = vld [vmem:[%s11684_s21 + $0x2cc] sm:$0xff]  }
 0x218   :  { %1314 = vst [vmem:[#allocation5 + $0x274] sm:$0xf] %v1313_v34  ;;  %1316 = vst [vmem:[#allocation5 + $0x278] sm:$0xf] %v1315_v35  ;;  %v1317_v36 = vld [vmem:[%s11684_s21 + $0x28c] sm:$0xf] }
 0x219   :  { %v1319_v37 = vld [vmem:[%s11684_s21 + $0x278] sm:$0xf]  ;;  %v1321_v38 = vld [vmem:[%s11684_s21 + $0x290] sm:$0xf]  ;;  %1318 = vst [vmem:[#allocation5 + $0x27c] sm:$0xf] %v1317_v36 }
 0x21a   :  { %1320 = vst [vmem:[#allocation5 + $0x280] sm:$0xf] %v1319_v37  ;;  %1322 = vst [vmem:[#allocation5 + $0x284] sm:$0xf] %v1321_v38  ;;  %v1323_v39 = vld [vmem:[%s11684_s21 + $0x27c] sm:$0xf] }
 0x21b   :  { %v1325_v40 = vld [vmem:[%s11684_s21 + $0x294] sm:$0xf]  ;;  %v1327_v41 = vld [vmem:[%s11684_s21 + $0x280] sm:$0xf]  ;;  %1324 = vst [vmem:[#allocation5 + $0x288] sm:$0xf] %v1323_v39 }
 0x21c   :  { %1326 = vst [vmem:[#allocation5 + $0x28c] sm:$0xf] %v1325_v40  ;;  %1328 = vst [vmem:[#allocation5 + $0x290] sm:$0xf] %v1327_v41  ;;  %v1329_v42 = vld [vmem:[%s11684_s21 + $0x298] sm:$0xf] }
 0x21d   :  { %v1331_v43 = vld [vmem:[%s11684_s21 + $0x284] sm:$0xf]  ;;  %1330 = vst [vmem:[#allocation5 + $0x294] sm:$0xf] %v1329_v42  ;;  %1334 = vst [vmem:[#allocation5 + $0x29c] sm:$0xff] %v1333_v44   ;;  %v1381_v34 = vld [vmem:[%s11684_s21 + $0x2fc] sm:$0xff]  }
 0x21e   :  { %1332 = vst [vmem:[#allocation5 + $0x298] sm:$0xf] %v1331_v43  ;;  %v1337_v45 = vld [vmem:[%s11684_s21 + $0x2b8] sm:$0xf]  ;;  %v1339_v46 = vld [vmem:[%s11684_s21 + $0x2a4] sm:$0xf] }
 0x21f   :  { %v1341_v47 = vld [vmem:[%s11684_s21 + $0x2bc] sm:$0xf]  ;;  %1338 = vst [vmem:[#allocation5 + $0x2a4] sm:$0xf] %v1337_v45  ;;  %1340 = vst [vmem:[#allocation5 + $0x2a8] sm:$0xf] %v1339_v46 }
 0x220   :  { %1342 = vst [vmem:[#allocation5 + $0x2ac] sm:$0xf] %v1341_v47  ;;  %v1343_v48 = vld [vmem:[%s11684_s21 + $0x2a8] sm:$0xf]  ;;  %v1345_v49 = vld [vmem:[%s11684_s21 + $0x2c0] sm:$0xf] }
 0x221   :  { %v1347_v50 = vld [vmem:[%s11684_s21 + $0x2ac] sm:$0xf]  ;;  %1344 = vst [vmem:[#allocation5 + $0x2b0] sm:$0xf] %v1343_v48  ;;  %1346 = vst [vmem:[#allocation5 + $0x2b4] sm:$0xf] %v1345_v49 }
 0x222   :  { %1348 = vst [vmem:[#allocation5 + $0x2b8] sm:$0xf] %v1347_v50  ;;  %v1349_v51 = vld [vmem:[%s11684_s21 + $0x2c4] sm:$0xf]  ;;  %v1351_v52 = vld [vmem:[%s11684_s21 + $0x2b0] sm:$0xf] }
 0x223   :  { %v1353_v53 = vld [vmem:[%s11684_s21 + $0x2c8] sm:$0xf]  ;;  %1350 = vst [vmem:[#allocation5 + $0x2bc] sm:$0xf] %v1349_v51  ;;  %1352 = vst [vmem:[#allocation5 + $0x2c0] sm:$0xf] %v1351_v52 }
 0x224   :  { %1354 = vst [vmem:[#allocation5 + $0x2c4] sm:$0xf] %v1353_v53  ;;  %v1355_v54 = vld [vmem:[%s11684_s21 + $0x2b4] sm:$0xf]  ;;  %v1361_v56 = vld [vmem:[%s11684_s21 + $0x2e8] sm:$0xf] }
 0x225   :  { %1356 = vst [vmem:[#allocation5 + $0x2c8] sm:$0xf] %v1355_v54  ;;  %1358 = vst [vmem:[#allocation5 + $0x2cc] sm:$0xff] %v1357_v55   ;;  %v1363_v25 = vld [vmem:[%s11684_s21 + $0x2d4] sm:$0xf]  ;;  %v1405_v45 = vld [vmem:[%s11684_s21 + $0x32c] sm:$0xff]  }
 0x226   :  { %1362 = vst [vmem:[#allocation5 + $0x2d4] sm:$0xf] %v1361_v56  ;;  %v1365_v26 = vld [vmem:[%s11684_s21 + $0x2ec] sm:$0xf]  ;;  %v1367_v27 = vld [vmem:[%s11684_s21 + $0x2d8] sm:$0xf] }
 0x227   :  { %1364 = vst [vmem:[#allocation5 + $0x2d8] sm:$0xf] %v1363_v25  ;;  %1366 = vst [vmem:[#allocation5 + $0x2dc] sm:$0xf] %v1365_v26  ;;  %v1369_v28 = vld [vmem:[%s11684_s21 + $0x2f0] sm:$0xf] }
 0x228   :  { %1368 = vst [vmem:[#allocation5 + $0x2e0] sm:$0xf] %v1367_v27  ;;  %v1371_v29 = vld [vmem:[%s11684_s21 + $0x2dc] sm:$0xf]  ;;  %v1373_v30 = vld [vmem:[%s11684_s21 + $0x2f4] sm:$0xf] }
 0x229   :  { %1370 = vst [vmem:[#allocation5 + $0x2e4] sm:$0xf] %v1369_v28  ;;  %1372 = vst [vmem:[#allocation5 + $0x2e8] sm:$0xf] %v1371_v29  ;;  %v1375_v31 = vld [vmem:[%s11684_s21 + $0x2e0] sm:$0xf] }
 0x22a   :  { %1374 = vst [vmem:[#allocation5 + $0x2ec] sm:$0xf] %v1373_v30  ;;  %v1377_v32 = vld [vmem:[%s11684_s21 + $0x2f8] sm:$0xf]  ;;  %v1379_v33 = vld [vmem:[%s11684_s21 + $0x2e4] sm:$0xf] }
 0x22b   :  { %1376 = vst [vmem:[#allocation5 + $0x2f0] sm:$0xf] %v1375_v31  ;;  %1378 = vst [vmem:[#allocation5 + $0x2f4] sm:$0xf] %v1377_v32  ;;  %v1385_v35 = vld [vmem:[%s11684_s21 + $0x318] sm:$0xf] }
 0x22c   :  { %1380 = vst [vmem:[#allocation5 + $0x2f8] sm:$0xf] %v1379_v33  ;;  %v1387_v36 = vld [vmem:[%s11684_s21 + $0x304] sm:$0xf]  ;;  %1382 = vst [vmem:[#allocation5 + $0x2fc] sm:$0xff] %v1381_v34   ;;  %v1429_v56 = vld [vmem:[%s11684_s21 + $0x35c] sm:$0xff]  }
 0x22d   :  { %1386 = vst [vmem:[#allocation5 + $0x304] sm:$0xf] %v1385_v35  ;;  %1388 = vst [vmem:[#allocation5 + $0x308] sm:$0xf] %v1387_v36  ;;  %v1389_v37 = vld [vmem:[%s11684_s21 + $0x31c] sm:$0xf] }
 0x22e   :  { %v1391_v38 = vld [vmem:[%s11684_s21 + $0x308] sm:$0xf]  ;;  %v1393_v39 = vld [vmem:[%s11684_s21 + $0x320] sm:$0xf]  ;;  %1390 = vst [vmem:[#allocation5 + $0x30c] sm:$0xf] %v1389_v37 }
 0x22f   :  { %1392 = vst [vmem:[#allocation5 + $0x310] sm:$0xf] %v1391_v38  ;;  %1394 = vst [vmem:[#allocation5 + $0x314] sm:$0xf] %v1393_v39  ;;  %v1395_v40 = vld [vmem:[%s11684_s21 + $0x30c] sm:$0xf] }
 0x230   :  { %v1397_v41 = vld [vmem:[%s11684_s21 + $0x324] sm:$0xf]  ;;  %v1399_v42 = vld [vmem:[%s11684_s21 + $0x310] sm:$0xf]  ;;  %1396 = vst [vmem:[#allocation5 + $0x318] sm:$0xf] %v1395_v40 }
 0x231   :  { %1398 = vst [vmem:[#allocation5 + $0x31c] sm:$0xf] %v1397_v41  ;;  %1400 = vst [vmem:[#allocation5 + $0x320] sm:$0xf] %v1399_v42  ;;  %v1401_v43 = vld [vmem:[%s11684_s21 + $0x328] sm:$0xf] }
 0x232   :  { %v1403_v44 = vld [vmem:[%s11684_s21 + $0x314] sm:$0xf]  ;;  %1402 = vst [vmem:[#allocation5 + $0x324] sm:$0xf] %v1401_v43  ;;  %1406 = vst [vmem:[#allocation5 + $0x32c] sm:$0xff] %v1405_v45   ;;  %v1453_v35 = vld [vmem:[%s11684_s21 + $0x38c] sm:$0xff]  }
 0x233   :  { %1404 = vst [vmem:[#allocation5 + $0x328] sm:$0xf] %v1403_v44  ;;  %v1409_v46 = vld [vmem:[%s11684_s21 + $0x348] sm:$0xf]  ;;  %v1411_v47 = vld [vmem:[%s11684_s21 + $0x334] sm:$0xf] }
 0x234   :  { %v1413_v48 = vld [vmem:[%s11684_s21 + $0x34c] sm:$0xf]  ;;  %1410 = vst [vmem:[#allocation5 + $0x334] sm:$0xf] %v1409_v46  ;;  %1412 = vst [vmem:[#allocation5 + $0x338] sm:$0xf] %v1411_v47 }
 0x235   :  { %1414 = vst [vmem:[#allocation5 + $0x33c] sm:$0xf] %v1413_v48  ;;  %v1415_v49 = vld [vmem:[%s11684_s21 + $0x338] sm:$0xf]  ;;  %v1417_v50 = vld [vmem:[%s11684_s21 + $0x350] sm:$0xf] }
 0x236   :  { %v1419_v51 = vld [vmem:[%s11684_s21 + $0x33c] sm:$0xf]  ;;  %1416 = vst [vmem:[#allocation5 + $0x340] sm:$0xf] %v1415_v49  ;;  %1418 = vst [vmem:[#allocation5 + $0x344] sm:$0xf] %v1417_v50 }
 0x237   :  { %1420 = vst [vmem:[#allocation5 + $0x348] sm:$0xf] %v1419_v51  ;;  %v1421_v52 = vld [vmem:[%s11684_s21 + $0x354] sm:$0xf]  ;;  %v1423_v53 = vld [vmem:[%s11684_s21 + $0x340] sm:$0xf] }
 0x238   :  { %v1425_v54 = vld [vmem:[%s11684_s21 + $0x358] sm:$0xf]  ;;  %1422 = vst [vmem:[#allocation5 + $0x34c] sm:$0xf] %v1421_v52  ;;  %1424 = vst [vmem:[#allocation5 + $0x350] sm:$0xf] %v1423_v53 }
 0x239   :  { %1426 = vst [vmem:[#allocation5 + $0x354] sm:$0xf] %v1425_v54  ;;  %v1427_v55 = vld [vmem:[%s11684_s21 + $0x344] sm:$0xf]  ;;  %v1433_v25 = vld [vmem:[%s11684_s21 + $0x378] sm:$0xf] }
 0x23a   :  { %1428 = vst [vmem:[#allocation5 + $0x358] sm:$0xf] %v1427_v55  ;;  %1430 = vst [vmem:[#allocation5 + $0x35c] sm:$0xff] %v1429_v56   ;;  %v1435_v26 = vld [vmem:[%s11684_s21 + $0x364] sm:$0xf]  ;;  %v1477_v46 = vld [vmem:[%s11684_s21 + $0x3bc] sm:$0xff]  }
 0x23b   :  { %1434 = vst [vmem:[#allocation5 + $0x364] sm:$0xf] %v1433_v25  ;;  %v1437_v27 = vld [vmem:[%s11684_s21 + $0x37c] sm:$0xf]  ;;  %v1439_v28 = vld [vmem:[%s11684_s21 + $0x368] sm:$0xf] }
 0x23c   :  { %1436 = vst [vmem:[#allocation5 + $0x368] sm:$0xf] %v1435_v26  ;;  %1438 = vst [vmem:[#allocation5 + $0x36c] sm:$0xf] %v1437_v27  ;;  %v1441_v29 = vld [vmem:[%s11684_s21 + $0x380] sm:$0xf] }
 0x23d   :  { %1440 = vst [vmem:[#allocation5 + $0x370] sm:$0xf] %v1439_v28  ;;  %v1443_v30 = vld [vmem:[%s11684_s21 + $0x36c] sm:$0xf]  ;;  %v1445_v31 = vld [vmem:[%s11684_s21 + $0x384] sm:$0xf] }
 0x23e   :  { %1442 = vst [vmem:[#allocation5 + $0x374] sm:$0xf] %v1441_v29  ;;  %1444 = vst [vmem:[#allocation5 + $0x378] sm:$0xf] %v1443_v30  ;;  %v1447_v32 = vld [vmem:[%s11684_s21 + $0x370] sm:$0xf] }
 0x23f   :  { %1446 = vst [vmem:[#allocation5 + $0x37c] sm:$0xf] %v1445_v31  ;;  %v1449_v33 = vld [vmem:[%s11684_s21 + $0x388] sm:$0xf]  ;;  %v1451_v34 = vld [vmem:[%s11684_s21 + $0x374] sm:$0xf] }
 0x240   :  { %1448 = vst [vmem:[#allocation5 + $0x380] sm:$0xf] %v1447_v32  ;;  %1450 = vst [vmem:[#allocation5 + $0x384] sm:$0xf] %v1449_v33  ;;  %v1457_v36 = vld [vmem:[%s11684_s21 + $0x3a8] sm:$0xf] }
 0x241   :  { %1452 = vst [vmem:[#allocation5 + $0x388] sm:$0xf] %v1451_v34  ;;  %v1459_v37 = vld [vmem:[%s11684_s21 + $0x394] sm:$0xf]  ;;  %1454 = vst [vmem:[#allocation5 + $0x38c] sm:$0xff] %v1453_v35   ;;  %v1501_v25 = vld [vmem:[%s11684_s21 + $0x3ec] sm:$0xff]  }
 0x242   :  { %1458 = vst [vmem:[#allocation5 + $0x394] sm:$0xf] %v1457_v36  ;;  %1460 = vst [vmem:[#allocation5 + $0x398] sm:$0xf] %v1459_v37  ;;  %v1461_v38 = vld [vmem:[%s11684_s21 + $0x3ac] sm:$0xf] }
 0x243   :  { %v1463_v39 = vld [vmem:[%s11684_s21 + $0x398] sm:$0xf]  ;;  %v1465_v40 = vld [vmem:[%s11684_s21 + $0x3b0] sm:$0xf]  ;;  %1462 = vst [vmem:[#allocation5 + $0x39c] sm:$0xf] %v1461_v38 }
 0x244   :  { %1464 = vst [vmem:[#allocation5 + $0x3a0] sm:$0xf] %v1463_v39  ;;  %1466 = vst [vmem:[#allocation5 + $0x3a4] sm:$0xf] %v1465_v40  ;;  %v1467_v41 = vld [vmem:[%s11684_s21 + $0x39c] sm:$0xf] }
 0x245   :  { %v1469_v42 = vld [vmem:[%s11684_s21 + $0x3b4] sm:$0xf]  ;;  %v1471_v43 = vld [vmem:[%s11684_s21 + $0x3a0] sm:$0xf]  ;;  %1468 = vst [vmem:[#allocation5 + $0x3a8] sm:$0xf] %v1467_v41 }
 0x246   :  { %1470 = vst [vmem:[#allocation5 + $0x3ac] sm:$0xf] %v1469_v42  ;;  %1472 = vst [vmem:[#allocation5 + $0x3b0] sm:$0xf] %v1471_v43  ;;  %v1473_v44 = vld [vmem:[%s11684_s21 + $0x3b8] sm:$0xf] }
 0x247   :  { %v1475_v45 = vld [vmem:[%s11684_s21 + $0x3a4] sm:$0xf]  ;;  %1474 = vst [vmem:[#allocation5 + $0x3b4] sm:$0xf] %v1473_v44  ;;  %1478 = vst [vmem:[#allocation5 + $0x3bc] sm:$0xff] %v1477_v46   ;;  %v1525_v36 = vld [vmem:[%s11684_s21 + $0x41c] sm:$0xff]  }
 0x248   :  { %1476 = vst [vmem:[#allocation5 + $0x3b8] sm:$0xf] %v1475_v45  ;;  %v1481_v47 = vld [vmem:[%s11684_s21 + $0x3d8] sm:$0xf]  ;;  %v1483_v48 = vld [vmem:[%s11684_s21 + $0x3c4] sm:$0xf] }
 0x249   :  { %v1485_v49 = vld [vmem:[%s11684_s21 + $0x3dc] sm:$0xf]  ;;  %1482 = vst [vmem:[#allocation5 + $0x3c4] sm:$0xf] %v1481_v47  ;;  %1484 = vst [vmem:[#allocation5 + $0x3c8] sm:$0xf] %v1483_v48 }
 0x24a   :  { %1486 = vst [vmem:[#allocation5 + $0x3cc] sm:$0xf] %v1485_v49  ;;  %v1487_v50 = vld [vmem:[%s11684_s21 + $0x3c8] sm:$0xf]  ;;  %v1489_v51 = vld [vmem:[%s11684_s21 + $0x3e0] sm:$0xf] }
 0x24b   :  { %v1491_v52 = vld [vmem:[%s11684_s21 + $0x3cc] sm:$0xf]  ;;  %1488 = vst [vmem:[#allocation5 + $0x3d0] sm:$0xf] %v1487_v50  ;;  %1490 = vst [vmem:[#allocation5 + $0x3d4] sm:$0xf] %v1489_v51 }
 0x24c   :  { %1492 = vst [vmem:[#allocation5 + $0x3d8] sm:$0xf] %v1491_v52  ;;  %v1493_v53 = vld [vmem:[%s11684_s21 + $0x3e4] sm:$0xf]  ;;  %v1495_v54 = vld [vmem:[%s11684_s21 + $0x3d0] sm:$0xf] }
 0x24d   :  { %v1497_v55 = vld [vmem:[%s11684_s21 + $0x3e8] sm:$0xf]  ;;  %1494 = vst [vmem:[#allocation5 + $0x3dc] sm:$0xf] %v1493_v53  ;;  %1496 = vst [vmem:[#allocation5 + $0x3e0] sm:$0xf] %v1495_v54 }
 0x24e   :  { %1498 = vst [vmem:[#allocation5 + $0x3e4] sm:$0xf] %v1497_v55  ;;  %v1499_v56 = vld [vmem:[%s11684_s21 + $0x3d4] sm:$0xf]  ;;  %v1505_v26 = vld [vmem:[%s11684_s21 + $0x408] sm:$0xf] }
 0x24f   :  { %1500 = vst [vmem:[#allocation5 + $0x3e8] sm:$0xf] %v1499_v56  ;;  %1502 = vst [vmem:[#allocation5 + $0x3ec] sm:$0xff] %v1501_v25   ;;  %v1507_v27 = vld [vmem:[%s11684_s21 + $0x3f4] sm:$0xf]  ;;  %v1549_v47 = vld [vmem:[%s11684_s21 + $0x44c] sm:$0xff]  }
 0x250   :  { %1506 = vst [vmem:[#allocation5 + $0x3f4] sm:$0xf] %v1505_v26  ;;  %v1509_v28 = vld [vmem:[%s11684_s21 + $0x40c] sm:$0xf]  ;;  %v1511_v29 = vld [vmem:[%s11684_s21 + $0x3f8] sm:$0xf] }
 0x251   :  { %1508 = vst [vmem:[#allocation5 + $0x3f8] sm:$0xf] %v1507_v27  ;;  %1510 = vst [vmem:[#allocation5 + $0x3fc] sm:$0xf] %v1509_v28  ;;  %v1513_v30 = vld [vmem:[%s11684_s21 + $0x410] sm:$0xf] }
 0x252   :  { %1512 = vst [vmem:[#allocation5 + $0x400] sm:$0xf] %v1511_v29  ;;  %v1515_v31 = vld [vmem:[%s11684_s21 + $0x3fc] sm:$0xf]  ;;  %v1517_v32 = vld [vmem:[%s11684_s21 + $0x414] sm:$0xf] }
 0x253   :  { %1514 = vst [vmem:[#allocation5 + $0x404] sm:$0xf] %v1513_v30  ;;  %1516 = vst [vmem:[#allocation5 + $0x408] sm:$0xf] %v1515_v31  ;;  %v1519_v33 = vld [vmem:[%s11684_s21 + $0x400] sm:$0xf] }
 0x254   :  { %1518 = vst [vmem:[#allocation5 + $0x40c] sm:$0xf] %v1517_v32  ;;  %v1521_v34 = vld [vmem:[%s11684_s21 + $0x418] sm:$0xf]  ;;  %v1523_v35 = vld [vmem:[%s11684_s21 + $0x404] sm:$0xf] }
 0x255   :  { %1520 = vst [vmem:[#allocation5 + $0x410] sm:$0xf] %v1519_v33  ;;  %1522 = vst [vmem:[#allocation5 + $0x414] sm:$0xf] %v1521_v34  ;;  %v1529_v37 = vld [vmem:[%s11684_s21 + $0x438] sm:$0xf] }
 0x256   :  { %1524 = vst [vmem:[#allocation5 + $0x418] sm:$0xf] %v1523_v35  ;;  %v1531_v38 = vld [vmem:[%s11684_s21 + $0x424] sm:$0xf]  ;;  %1526 = vst [vmem:[#allocation5 + $0x41c] sm:$0xff] %v1525_v36   ;;  %v1573_v26 = vld [vmem:[%s11684_s21 + $0x47c] sm:$0xff]  }
 0x257   :  { %1530 = vst [vmem:[#allocation5 + $0x424] sm:$0xf] %v1529_v37  ;;  %1532 = vst [vmem:[#allocation5 + $0x428] sm:$0xf] %v1531_v38  ;;  %v1533_v39 = vld [vmem:[%s11684_s21 + $0x43c] sm:$0xf] }
 0x258   :  { %v1535_v40 = vld [vmem:[%s11684_s21 + $0x428] sm:$0xf]  ;;  %v1537_v41 = vld [vmem:[%s11684_s21 + $0x440] sm:$0xf]  ;;  %1534 = vst [vmem:[#allocation5 + $0x42c] sm:$0xf] %v1533_v39 }
 0x259   :  { %1536 = vst [vmem:[#allocation5 + $0x430] sm:$0xf] %v1535_v40  ;;  %1538 = vst [vmem:[#allocation5 + $0x434] sm:$0xf] %v1537_v41  ;;  %v1539_v42 = vld [vmem:[%s11684_s21 + $0x42c] sm:$0xf] }
 0x25a   :  { %v1541_v43 = vld [vmem:[%s11684_s21 + $0x444] sm:$0xf]  ;;  %v1543_v44 = vld [vmem:[%s11684_s21 + $0x430] sm:$0xf]  ;;  %1540 = vst [vmem:[#allocation5 + $0x438] sm:$0xf] %v1539_v42 }
 0x25b   :  { %1542 = vst [vmem:[#allocation5 + $0x43c] sm:$0xf] %v1541_v43  ;;  %1544 = vst [vmem:[#allocation5 + $0x440] sm:$0xf] %v1543_v44  ;;  %v1545_v45 = vld [vmem:[%s11684_s21 + $0x448] sm:$0xf] }
 0x25c   :  { %v1547_v46 = vld [vmem:[%s11684_s21 + $0x434] sm:$0xf]  ;;  %1546 = vst [vmem:[#allocation5 + $0x444] sm:$0xf] %v1545_v45  ;;  %1550 = vst [vmem:[#allocation5 + $0x44c] sm:$0xff] %v1549_v47   ;;  %v1597_v37 = vld [vmem:[%s11684_s21 + $0x4ac] sm:$0xff]  }
 0x25d   :  { %1548 = vst [vmem:[#allocation5 + $0x448] sm:$0xf] %v1547_v46  ;;  %v1553_v48 = vld [vmem:[%s11684_s21 + $0x468] sm:$0xf]  ;;  %v1555_v49 = vld [vmem:[%s11684_s21 + $0x454] sm:$0xf] }
 0x25e   :  { %v1557_v50 = vld [vmem:[%s11684_s21 + $0x46c] sm:$0xf]  ;;  %1554 = vst [vmem:[#allocation5 + $0x454] sm:$0xf] %v1553_v48  ;;  %1556 = vst [vmem:[#allocation5 + $0x458] sm:$0xf] %v1555_v49 }
 0x25f   :  { %1558 = vst [vmem:[#allocation5 + $0x45c] sm:$0xf] %v1557_v50  ;;  %v1559_v51 = vld [vmem:[%s11684_s21 + $0x458] sm:$0xf]  ;;  %v1561_v52 = vld [vmem:[%s11684_s21 + $0x470] sm:$0xf] }
 0x260   :  { %v1563_v53 = vld [vmem:[%s11684_s21 + $0x45c] sm:$0xf]  ;;  %1560 = vst [vmem:[#allocation5 + $0x460] sm:$0xf] %v1559_v51  ;;  %1562 = vst [vmem:[#allocation5 + $0x464] sm:$0xf] %v1561_v52 }
 0x261   :  { %1564 = vst [vmem:[#allocation5 + $0x468] sm:$0xf] %v1563_v53  ;;  %v1565_v54 = vld [vmem:[%s11684_s21 + $0x474] sm:$0xf]  ;;  %v1567_v55 = vld [vmem:[%s11684_s21 + $0x460] sm:$0xf] }
 0x262   :  { %v1569_v56 = vld [vmem:[%s11684_s21 + $0x478] sm:$0xf]  ;;  %1566 = vst [vmem:[#allocation5 + $0x46c] sm:$0xf] %v1565_v54  ;;  %1568 = vst [vmem:[#allocation5 + $0x470] sm:$0xf] %v1567_v55 }
 0x263   :  { %1570 = vst [vmem:[#allocation5 + $0x474] sm:$0xf] %v1569_v56  ;;  %v1571_v25 = vld [vmem:[%s11684_s21 + $0x464] sm:$0xf]  ;;  %v1577_v27 = vld [vmem:[%s11684_s21 + $0x498] sm:$0xf] }
 0x264   :  { %1572 = vst [vmem:[#allocation5 + $0x478] sm:$0xf] %v1571_v25  ;;  %1574 = vst [vmem:[#allocation5 + $0x47c] sm:$0xff] %v1573_v26   ;;  %v1579_v28 = vld [vmem:[%s11684_s21 + $0x484] sm:$0xf]  ;;  %v1621_v48 = vld [vmem:[%s11684_s21 + $0x4dc] sm:$0xff]  }
 0x265   :  { %1578 = vst [vmem:[#allocation5 + $0x484] sm:$0xf] %v1577_v27  ;;  %v1581_v29 = vld [vmem:[%s11684_s21 + $0x49c] sm:$0xf]  ;;  %v1583_v30 = vld [vmem:[%s11684_s21 + $0x488] sm:$0xf] }
 0x266   :  { %1580 = vst [vmem:[#allocation5 + $0x488] sm:$0xf] %v1579_v28  ;;  %1582 = vst [vmem:[#allocation5 + $0x48c] sm:$0xf] %v1581_v29  ;;  %v1585_v31 = vld [vmem:[%s11684_s21 + $0x4a0] sm:$0xf] }
 0x267   :  { %1584 = vst [vmem:[#allocation5 + $0x490] sm:$0xf] %v1583_v30  ;;  %v1587_v32 = vld [vmem:[%s11684_s21 + $0x48c] sm:$0xf]  ;;  %v1589_v33 = vld [vmem:[%s11684_s21 + $0x4a4] sm:$0xf] }
 0x268   :  { %1586 = vst [vmem:[#allocation5 + $0x494] sm:$0xf] %v1585_v31  ;;  %1588 = vst [vmem:[#allocation5 + $0x498] sm:$0xf] %v1587_v32  ;;  %v1591_v34 = vld [vmem:[%s11684_s21 + $0x490] sm:$0xf] }
 0x269   :  { %1590 = vst [vmem:[#allocation5 + $0x49c] sm:$0xf] %v1589_v33  ;;  %v1593_v35 = vld [vmem:[%s11684_s21 + $0x4a8] sm:$0xf]  ;;  %v1595_v36 = vld [vmem:[%s11684_s21 + $0x494] sm:$0xf] }
 0x26a   :  { %1592 = vst [vmem:[#allocation5 + $0x4a0] sm:$0xf] %v1591_v34  ;;  %1594 = vst [vmem:[#allocation5 + $0x4a4] sm:$0xf] %v1593_v35  ;;  %v1601_v38 = vld [vmem:[%s11684_s21 + $0x4c8] sm:$0xf] }
 0x26b   :  { %1596 = vst [vmem:[#allocation5 + $0x4a8] sm:$0xf] %v1595_v36  ;;  %v1603_v39 = vld [vmem:[%s11684_s21 + $0x4b4] sm:$0xf]  ;;  %1598 = vst [vmem:[#allocation5 + $0x4ac] sm:$0xff] %v1597_v37   ;;  %v1645_v27 = vld [vmem:[%s11684_s21 + $0x50c] sm:$0xff]  }
 0x26c   :  { %1602 = vst [vmem:[#allocation5 + $0x4b4] sm:$0xf] %v1601_v38  ;;  %1604 = vst [vmem:[#allocation5 + $0x4b8] sm:$0xf] %v1603_v39  ;;  %v1605_v40 = vld [vmem:[%s11684_s21 + $0x4cc] sm:$0xf] }
 0x26d   :  { %v1607_v41 = vld [vmem:[%s11684_s21 + $0x4b8] sm:$0xf]  ;;  %v1609_v42 = vld [vmem:[%s11684_s21 + $0x4d0] sm:$0xf]  ;;  %1606 = vst [vmem:[#allocation5 + $0x4bc] sm:$0xf] %v1605_v40 }
 0x26e   :  { %1608 = vst [vmem:[#allocation5 + $0x4c0] sm:$0xf] %v1607_v41  ;;  %1610 = vst [vmem:[#allocation5 + $0x4c4] sm:$0xf] %v1609_v42  ;;  %v1611_v43 = vld [vmem:[%s11684_s21 + $0x4bc] sm:$0xf] }
 0x26f   :  { %v1613_v44 = vld [vmem:[%s11684_s21 + $0x4d4] sm:$0xf]  ;;  %v1615_v45 = vld [vmem:[%s11684_s21 + $0x4c0] sm:$0xf]  ;;  %1612 = vst [vmem:[#allocation5 + $0x4c8] sm:$0xf] %v1611_v43 }
 0x270   :  { %1614 = vst [vmem:[#allocation5 + $0x4cc] sm:$0xf] %v1613_v44  ;;  %1616 = vst [vmem:[#allocation5 + $0x4d0] sm:$0xf] %v1615_v45  ;;  %v1617_v46 = vld [vmem:[%s11684_s21 + $0x4d8] sm:$0xf] }
 0x271   :  { %v1619_v47 = vld [vmem:[%s11684_s21 + $0x4c4] sm:$0xf]  ;;  %1618 = vst [vmem:[#allocation5 + $0x4d4] sm:$0xf] %v1617_v46  ;;  %1622 = vst [vmem:[#allocation5 + $0x4dc] sm:$0xff] %v1621_v48   ;;  %v1669_v38 = vld [vmem:[%s11684_s21 + $0x53c] sm:$0xff]  }
 0x272   :  { %1620 = vst [vmem:[#allocation5 + $0x4d8] sm:$0xf] %v1619_v47  ;;  %v1625_v49 = vld [vmem:[%s11684_s21 + $0x4f8] sm:$0xf]  ;;  %v1627_v50 = vld [vmem:[%s11684_s21 + $0x4e4] sm:$0xf] }
 0x273   :  { %v1629_v51 = vld [vmem:[%s11684_s21 + $0x4fc] sm:$0xf]  ;;  %1626 = vst [vmem:[#allocation5 + $0x4e4] sm:$0xf] %v1625_v49  ;;  %1628 = vst [vmem:[#allocation5 + $0x4e8] sm:$0xf] %v1627_v50 }
 0x274   :  { %1630 = vst [vmem:[#allocation5 + $0x4ec] sm:$0xf] %v1629_v51  ;;  %v1631_v52 = vld [vmem:[%s11684_s21 + $0x4e8] sm:$0xf]  ;;  %v1633_v53 = vld [vmem:[%s11684_s21 + $0x500] sm:$0xf] }
 0x275   :  { %v1635_v54 = vld [vmem:[%s11684_s21 + $0x4ec] sm:$0xf]  ;;  %1632 = vst [vmem:[#allocation5 + $0x4f0] sm:$0xf] %v1631_v52  ;;  %1634 = vst [vmem:[#allocation5 + $0x4f4] sm:$0xf] %v1633_v53 }
 0x276   :  { %1636 = vst [vmem:[#allocation5 + $0x4f8] sm:$0xf] %v1635_v54  ;;  %v1637_v55 = vld [vmem:[%s11684_s21 + $0x504] sm:$0xf]  ;;  %v1639_v56 = vld [vmem:[%s11684_s21 + $0x4f0] sm:$0xf] }
 0x277   :  { %v1641_v25 = vld [vmem:[%s11684_s21 + $0x508] sm:$0xf]  ;;  %1638 = vst [vmem:[#allocation5 + $0x4fc] sm:$0xf] %v1637_v55  ;;  %1640 = vst [vmem:[#allocation5 + $0x500] sm:$0xf] %v1639_v56 }
 0x278   :  { %1642 = vst [vmem:[#allocation5 + $0x504] sm:$0xf] %v1641_v25  ;;  %v1643_v26 = vld [vmem:[%s11684_s21 + $0x4f4] sm:$0xf]  ;;  %v1649_v28 = vld [vmem:[%s11684_s21 + $0x528] sm:$0xf] }
 0x279   :  { %1644 = vst [vmem:[#allocation5 + $0x508] sm:$0xf] %v1643_v26  ;;  %1646 = vst [vmem:[#allocation5 + $0x50c] sm:$0xff] %v1645_v27   ;;  %v1651_v29 = vld [vmem:[%s11684_s21 + $0x514] sm:$0xf]  ;;  %v1693_v49 = vld [vmem:[%s11684_s21 + $0x56c] sm:$0xff]  }
 0x27a   :  { %1650 = vst [vmem:[#allocation5 + $0x514] sm:$0xf] %v1649_v28  ;;  %v1653_v30 = vld [vmem:[%s11684_s21 + $0x52c] sm:$0xf]  ;;  %v1655_v31 = vld [vmem:[%s11684_s21 + $0x518] sm:$0xf] }
 0x27b   :  { %1652 = vst [vmem:[#allocation5 + $0x518] sm:$0xf] %v1651_v29  ;;  %1654 = vst [vmem:[#allocation5 + $0x51c] sm:$0xf] %v1653_v30  ;;  %v1657_v32 = vld [vmem:[%s11684_s21 + $0x530] sm:$0xf] }
 0x27c   :  { %1656 = vst [vmem:[#allocation5 + $0x520] sm:$0xf] %v1655_v31  ;;  %v1659_v33 = vld [vmem:[%s11684_s21 + $0x51c] sm:$0xf]  ;;  %v1661_v34 = vld [vmem:[%s11684_s21 + $0x534] sm:$0xf] }
 0x27d   :  { %1658 = vst [vmem:[#allocation5 + $0x524] sm:$0xf] %v1657_v32  ;;  %1660 = vst [vmem:[#allocation5 + $0x528] sm:$0xf] %v1659_v33  ;;  %v1663_v35 = vld [vmem:[%s11684_s21 + $0x520] sm:$0xf] }
 0x27e   :  { %1662 = vst [vmem:[#allocation5 + $0x52c] sm:$0xf] %v1661_v34  ;;  %v1665_v36 = vld [vmem:[%s11684_s21 + $0x538] sm:$0xf]  ;;  %v1667_v37 = vld [vmem:[%s11684_s21 + $0x524] sm:$0xf] }
 0x27f   :  { %1664 = vst [vmem:[#allocation5 + $0x530] sm:$0xf] %v1663_v35  ;;  %1666 = vst [vmem:[#allocation5 + $0x534] sm:$0xf] %v1665_v36  ;;  %v1673_v39 = vld [vmem:[%s11684_s21 + $0x558] sm:$0xf] }
 0x280   :  { %1668 = vst [vmem:[#allocation5 + $0x538] sm:$0xf] %v1667_v37  ;;  %v1675_v40 = vld [vmem:[%s11684_s21 + $0x544] sm:$0xf]  ;;  %1670 = vst [vmem:[#allocation5 + $0x53c] sm:$0xff] %v1669_v38   ;;  %v1717_v28 = vld [vmem:[%s11684_s21 + $0x59c] sm:$0xff]  }
 0x281   :  { %1674 = vst [vmem:[#allocation5 + $0x544] sm:$0xf] %v1673_v39  ;;  %1676 = vst [vmem:[#allocation5 + $0x548] sm:$0xf] %v1675_v40  ;;  %v1677_v41 = vld [vmem:[%s11684_s21 + $0x55c] sm:$0xf] }
 0x282   :  { %v1679_v42 = vld [vmem:[%s11684_s21 + $0x548] sm:$0xf]  ;;  %v1681_v43 = vld [vmem:[%s11684_s21 + $0x560] sm:$0xf]  ;;  %1678 = vst [vmem:[#allocation5 + $0x54c] sm:$0xf] %v1677_v41 }
 0x283   :  { %1680 = vst [vmem:[#allocation5 + $0x550] sm:$0xf] %v1679_v42  ;;  %1682 = vst [vmem:[#allocation5 + $0x554] sm:$0xf] %v1681_v43  ;;  %v1683_v44 = vld [vmem:[%s11684_s21 + $0x54c] sm:$0xf] }
 0x284   :  { %v1685_v45 = vld [vmem:[%s11684_s21 + $0x564] sm:$0xf]  ;;  %v1687_v46 = vld [vmem:[%s11684_s21 + $0x550] sm:$0xf]  ;;  %1684 = vst [vmem:[#allocation5 + $0x558] sm:$0xf] %v1683_v44 }
 0x285   :  { %1686 = vst [vmem:[#allocation5 + $0x55c] sm:$0xf] %v1685_v45  ;;  %1688 = vst [vmem:[#allocation5 + $0x560] sm:$0xf] %v1687_v46  ;;  %v1689_v47 = vld [vmem:[%s11684_s21 + $0x568] sm:$0xf] }
 0x286   :  { %v1691_v48 = vld [vmem:[%s11684_s21 + $0x554] sm:$0xf]  ;;  %1690 = vst [vmem:[#allocation5 + $0x564] sm:$0xf] %v1689_v47  ;;  %1694 = vst [vmem:[#allocation5 + $0x56c] sm:$0xff] %v1693_v49   ;;  %v1741_v39 = vld [vmem:[%s11684_s21 + $0x5cc] sm:$0xff]  }
 0x287   :  { %1692 = vst [vmem:[#allocation5 + $0x568] sm:$0xf] %v1691_v48  ;;  %v1697_v50 = vld [vmem:[%s11684_s21 + $0x588] sm:$0xf]  ;;  %v1699_v51 = vld [vmem:[%s11684_s21 + $0x574] sm:$0xf] }
 0x288   :  { %v1701_v52 = vld [vmem:[%s11684_s21 + $0x58c] sm:$0xf]  ;;  %1698 = vst [vmem:[#allocation5 + $0x574] sm:$0xf] %v1697_v50  ;;  %1700 = vst [vmem:[#allocation5 + $0x578] sm:$0xf] %v1699_v51 }
 0x289   :  { %1702 = vst [vmem:[#allocation5 + $0x57c] sm:$0xf] %v1701_v52  ;;  %v1703_v53 = vld [vmem:[%s11684_s21 + $0x578] sm:$0xf]  ;;  %v1705_v54 = vld [vmem:[%s11684_s21 + $0x590] sm:$0xf] }
 0x28a   :  { %v1707_v55 = vld [vmem:[%s11684_s21 + $0x57c] sm:$0xf]  ;;  %1704 = vst [vmem:[#allocation5 + $0x580] sm:$0xf] %v1703_v53  ;;  %1706 = vst [vmem:[#allocation5 + $0x584] sm:$0xf] %v1705_v54 }
 0x28b   :  { %1708 = vst [vmem:[#allocation5 + $0x588] sm:$0xf] %v1707_v55  ;;  %v1709_v56 = vld [vmem:[%s11684_s21 + $0x594] sm:$0xf]  ;;  %v1711_v25 = vld [vmem:[%s11684_s21 + $0x580] sm:$0xf] }
 0x28c   :  { %v1713_v26 = vld [vmem:[%s11684_s21 + $0x598] sm:$0xf]  ;;  %1710 = vst [vmem:[#allocation5 + $0x58c] sm:$0xf] %v1709_v56  ;;  %1712 = vst [vmem:[#allocation5 + $0x590] sm:$0xf] %v1711_v25 }
 0x28d   :  { %1714 = vst [vmem:[#allocation5 + $0x594] sm:$0xf] %v1713_v26  ;;  %v1715_v27 = vld [vmem:[%s11684_s21 + $0x584] sm:$0xf]  ;;  %v1721_v29 = vld [vmem:[%s11684_s21 + $0x5b8] sm:$0xf] }
 0x28e   :  { %1716 = vst [vmem:[#allocation5 + $0x598] sm:$0xf] %v1715_v27  ;;  %1718 = vst [vmem:[#allocation5 + $0x59c] sm:$0xff] %v1717_v28   ;;  %v1723_v30 = vld [vmem:[%s11684_s21 + $0x5a4] sm:$0xf] }
 0x28f   :  { %1722 = vst [vmem:[#allocation5 + $0x5a4] sm:$0xf] %v1721_v29  ;;  %v1725_v31 = vld [vmem:[%s11684_s21 + $0x5bc] sm:$0xf]  ;;  %v1727_v32 = vld [vmem:[%s11684_s21 + $0x5a8] sm:$0xf] }
 0x290   :  { %1724 = vst [vmem:[#allocation5 + $0x5a8] sm:$0xf] %v1723_v30  ;;  %1726 = vst [vmem:[#allocation5 + $0x5ac] sm:$0xf] %v1725_v31  ;;  %v1729_v33 = vld [vmem:[%s11684_s21 + $0x5c0] sm:$0xf] }
 0x291   :  { %1728 = vst [vmem:[#allocation5 + $0x5b0] sm:$0xf] %v1727_v32  ;;  %v1731_v34 = vld [vmem:[%s11684_s21 + $0x5ac] sm:$0xf]  ;;  %v1733_v35 = vld [vmem:[%s11684_s21 + $0x5c4] sm:$0xf] }
 0x292   :  { %1730 = vst [vmem:[#allocation5 + $0x5b4] sm:$0xf] %v1729_v33  ;;  %1732 = vst [vmem:[#allocation5 + $0x5b8] sm:$0xf] %v1731_v34  ;;  %v1735_v36 = vld [vmem:[%s11684_s21 + $0x5b0] sm:$0xf] }
 0x293   :  { %1734 = vst [vmem:[#allocation5 + $0x5bc] sm:$0xf] %v1733_v35  ;;  %v1737_v37 = vld [vmem:[%s11684_s21 + $0x5c8] sm:$0xf]  ;;  %v1739_v38 = vld [vmem:[%s11684_s21 + $0x5b4] sm:$0xf] }
 0x294   :  { %1736 = vst [vmem:[#allocation5 + $0x5c0] sm:$0xf] %v1735_v36  ;;  %1738 = vst [vmem:[#allocation5 + $0x5c4] sm:$0xf] %v1737_v37  ;;  %v1745_v40 = vld [vmem:[%s11684_s21 + $0x5e8] sm:$0xf] }
 0x295   :  { %1740 = vst [vmem:[#allocation5 + $0x5c8] sm:$0xf] %v1739_v38  ;;  %v1747_v41 = vld [vmem:[%s11684_s21 + $0x5d4] sm:$0xf]  ;;  %1742 = vst [vmem:[#allocation5 + $0x5cc] sm:$0xff] %v1741_v39  }
 0x296   :  { %1746 = vst [vmem:[#allocation5 + $0x5d4] sm:$0xf] %v1745_v40  ;;  %1748 = vst [vmem:[#allocation5 + $0x5d8] sm:$0xf] %v1747_v41  ;;  %v1749_v42 = vld [vmem:[%s11684_s21 + $0x5ec] sm:$0xf] }
 0x297   :  { %v1751_v43 = vld [vmem:[%s11684_s21 + $0x5d8] sm:$0xf]  ;;  %v1753_v44 = vld [vmem:[%s11684_s21 + $0x5f0] sm:$0xf]  ;;  %1750 = vst [vmem:[#allocation5 + $0x5dc] sm:$0xf] %v1749_v42 }
 0x298   :  { %1752 = vst [vmem:[#allocation5 + $0x5e0] sm:$0xf] %v1751_v43  ;;  %1754 = vst [vmem:[#allocation5 + $0x5e4] sm:$0xf] %v1753_v44  ;;  %v1755_v45 = vld [vmem:[%s11684_s21 + $0x5dc] sm:$0xf] }
 0x299   :  { %v1757_v46 = vld [vmem:[%s11684_s21 + $0x5f4] sm:$0xf]  ;;  %v1759_v47 = vld [vmem:[%s11684_s21 + $0x5e0] sm:$0xf]  ;;  %1756 = vst [vmem:[#allocation5 + $0x5e8] sm:$0xf] %v1755_v45 }
 0x29a   :  { %1758 = vst [vmem:[#allocation5 + $0x5ec] sm:$0xf] %v1757_v46  ;;  %1760 = vst [vmem:[#allocation5 + $0x5f0] sm:$0xf] %v1759_v47  ;;  %v1761_v48 = vld [vmem:[%s11684_s21 + $0x5f8] sm:$0xf] }
 0x29b   :  { %v1763_v49 = vld [vmem:[%s11684_s21 + $0x5e4] sm:$0xf]  ;;  %v1765_v50 = vld [vmem:[%s11684_s21 + $0x5fc] sm:$0xf]  ;;  %1762 = vst [vmem:[#allocation5 + $0x5f4] sm:$0xf] %v1761_v48 }
 0x29c   :  { %1764 = vst [vmem:[#allocation5 + $0x5f8] sm:$0xf] %v1763_v49  ;;  %1766 = vst [vmem:[#allocation5 + $0x5fc] sm:$0xf] %v1765_v50 }
 0x29d   :  { %2565 = vsyncadd [#allocation6 + $0x3], 24576  ;;  %v7797_v51 = vld [vmem:[#allocation7 + $0x40] sm:$0xff]   ;;  %v7799_v53 = vld [vmem:[#allocation7 + $0x48] sm:$0xff]   ;;  %s11756_s6 = sld [smem:[#allocation87_spill]]  ;;  %s11757_s14 = sld [smem:[#allocation94_spill]] }
 0x29e   :  { %v7798_v52 = vld [vmem:[#allocation7] sm:$0xff]   ;;  %7229 = vmatprep.subr.bf16.mxu0 %v7797_v51  ;;  %v7800_v54 = vld [vmem:[#allocation7 + $0x8] sm:$0xff]   ;;  %v7801_v55 = vld [vmem:[#allocation7 + $0x50] sm:$0xff]   ;;  %vm8528_vm0 = vmmov 0   ;;  %vm3500_vm1 = vcmask 523264   ;;  %vm4484_vm2 = vcmask 1043456  }
 0x29f   :  { %7230 = vmatpush3.bf16.msra.mxu0 %v7798_v52  ;;  %v7802_v56 = vld [vmem:[#allocation7 + $0x10] sm:$0xff]   ;;  %v7803_v25 = vld [vmem:[#allocation7 + $0x58] sm:$0xff]   ;;  %v7805_v27 = vld [vmem:[#allocation7 + $0x60] sm:$0xff]   ;;  %vm4272_vm4 = vcmask 64512  }
 0x2a0   :  { %7231 = vmatprep.subr.bf16.mxu0 %v7799_v53  ;;  %v7804_v26 = vld [vmem:[#allocation7 + $0x18] sm:$0xff]   ;;  %v7806_v28 = vld [vmem:[#allocation7 + $0x20] sm:$0xff]   ;;  %v7807_v29 = vld [vmem:[#allocation7 + $0x68] sm:$0xff]  }
 0x2a1   :  { %v7808_v31 = vld [vmem:[#allocation7 + $0x28] sm:$0xff]   ;;  %v7809_v32 = vld [vmem:[#allocation7 + $0x70] sm:$0xff]   ;;  %v7811_v34 = vld [vmem:[#allocation7 + $0x78] sm:$0xff]  }
 0x2a2   :  { %v7810_v33 = vld [vmem:[#allocation7 + $0x30] sm:$0xff]   ;;  %v7812_v35 = vld [vmem:[#allocation7 + $0x38] sm:$0xff]   ;;  %v2807_v45 = vld [vmem:[#allocation9] sm:$0xff] }
 0x2a3   :  { %7232 = vmatpush3.bf16.msra.mxu0 %v7800_v54  ;;  %v7815_v30 = vld [vmem:[%s11756_s6 + $0x4] ss:$8 sps:$4 sm:$0xff]   ;;  %v7813_v36 = vld [vmem:[%s11756_s6] ss:$8 sps:$4 sm:$0xff]   ;;  %v7816_v37 = vld [vmem:[%s11756_s6 + $0x14] ss:$8 sps:$4 sm:$0xff]  }
 0x2a4   :  { %7233 = vmatprep.subr.bf16.mxu0 %v7801_v55  ;;  %2774 = vmatprep.mubr.bf16.mxu0 %v7815_v30  ;;  %v7818_v38 = vld [vmem:[%s11756_s6 + $0x10] ss:$8 sps:$4 sm:$0xff]   ;;  %v7819_v39 = vld [vmem:[%s11756_s6 + $0x24] ss:$8 sps:$4 sm:$0xff]   ;;  %v7821_v40 = vld [vmem:[%s11756_s6 + $0x20] ss:$8 sps:$4 sm:$0xff]  }
 0x2a5   :  { %v7822_v41 = vld [vmem:[%s11756_s6 + $0x34] ss:$8 sps:$4 sm:$0xff]   ;;  %v7824_v42 = vld [vmem:[%s11756_s6 + $0x30] ss:$8 sps:$4 sm:$0xff]   ;;  %v10591_v16 = vld [vmem:[#allocation14] ss:$0 sm:$0xff] }
 0x2a7   :  { %7234 = vmatpush3.bf16.msra.mxu0 %v7802_v56 }
 0x2a8   :  { %7235 = vmatprep.subr.bf16.mxu0 %v7803_v25 }
 0x2ab   :  { %7236 = vmatpush3.bf16.msra.mxu0 %v7804_v26 }
 0x2ac   :  { %7237 = vmatprep.subr.bf16.mxu0 %v7805_v27 }
 0x2af   :  { %7238 = vmatpush3.bf16.msra.mxu0 %v7806_v28 }
 0x2b0   :  { %7239 = vmatprep.subr.bf16.mxu0 %v7807_v29 }
 0x2b3   :  { %7240 = vmatpush3.bf16.msra.mxu0 %v7808_v31 }
 0x2b4   :  { %7241 = vmatprep.subr.bf16.mxu0 %v7809_v32 }
 0x2b7   :  { %7242 = vmatpush3.bf16.msra.mxu0 %v7810_v33 }
 0x2b8   :  { %7243 = vmatprep.subr.bf16.mxu0 %v7811_v34 }
 0x2bb   :  { %7244 = vmatpush3.bf16.msra.mxu0 %v7812_v35 }
 0x2be   :  { %2775 = vmatmul.mubr.bf16.vlgmr.msra.gmra.mrb[0].mxu0 %v7813_v36 }
 0x2bf   :  { %2782 = vmatprep.mubr.bf16.mxu0 %v7816_v37 }
 0x2c6   :  { %2783 = vmatmul.mubr.bf16.gmra.mrb[4].mxu0 %v7818_v38 }
 0x2c7   :  { %2790 = vmatprep.mubr.bf16.mxu0 %v7819_v39 }
 0x2ce   :  { %2791 = vmatmul.mubr.bf16.gmra.mrb[8].mxu0 %v7821_v40 }
 0x2cf   :  { %2798 = vmatprep.mubr.bf16.mxu0 %v7822_v41 }
 0x2d6   :  { %2799 = vmatmul.mubr.bf16.gmra.mrb[12].mxu0 %v7824_v42 }
 0x391   :  { %v7245_v43 = vpop.f32.mrb[0].mxu0 }
 0x392   :  { %v7246_v44 = vpop.f32.mrb[1].mxu0 }
 0x393   :  { %v7247_v46 = vadd.f32 %v7246_v44, %v7245_v43  ;;  %v7248_v47 = vpop.f32.mrb[2].mxu0 }
 0x394   :  { %v7249_v48 = vpop.f32.mrb[3].mxu0 }
 0x395   :  { %v7250_v49 = vadd.f32 %v7249_v48, %v7248_v47  ;;  %v2808_v50 = vadd.f32 %v7247_v46, %v2807_v45 }
 0x397   :  { %2818 = vadd.xlane.f32.xlu0 %v2808_v50  ;;  %v2809_v52 = vadd.f32 %v7250_v49, %v2807_v45 }
 0x399   :  { %v7251_v51 = vpop.f32.mrb[4].mxu0 }
 0x39a   :  { %v7252_v53 = vpop.f32.mrb[5].mxu0 }
 0x39b   :  { %v7253_v54 = vadd.f32 %v7252_v53, %v7251_v51  ;;  %v7254_v55 = vpop.f32.mrb[6].mxu0  ;;  %2820 = vadd.xlane.f32.xlu0 %v2809_v52 }
 0x39c   :  { %v7255_v56 = vpop.f32.mrb[7].mxu0 }
 0x39d   :  { %v7256_v25 = vadd.f32 %v7255_v56, %v7254_v55  ;;  %v2810_v26 = vadd.f32 %v7253_v54, %v2807_v45 }
 0x39f   :  { %2822 = vadd.xlane.f32.xlu1 %v2810_v26  ;;  %v2811_v28 = vadd.f32 %v7256_v25, %v2807_v45 }
 0x3a1   :  { %v7257_v27 = vpop.f32.mrb[8].mxu0 }
 0x3a2   :  { %v7258_v29 = vpop.f32.mrb[9].mxu0 }
 0x3a3   :  { %v7259_v30 = vadd.f32 %v7258_v29, %v7257_v27  ;;  %v7260_v31 = vpop.f32.mrb[10].mxu0  ;;  %2824 = vadd.xlane.f32.xlu1 %v2811_v28 }
 0x3a4   :  { %v7261_v32 = vpop.f32.mrb[11].mxu0 }
 0x3a5   :  { %v7262_v33 = vadd.f32 %v7261_v32, %v7260_v31  ;;  %v2812_v34 = vadd.f32 %v7259_v30, %v2807_v45 }
 0x3a7   :  { %2826 = vadd.xlane.f32.xlu0 %v2812_v34  ;;  %v2813_v35 = vadd.f32 %v7262_v33, %v2807_v45 }
 0x3a9   :  { %v7263_v36 = vpop.f32.mrb[12].mxu0  ;;  %2828 = vadd.xlane.f32.xlu1 %v2813_v35 }
 0x3aa   :  { %v7264_v37 = vpop.f32.mrb[13].mxu0 }
 0x3ab   :  { %v7265_v38 = vadd.f32 %v7264_v37, %v7263_v36  ;;  %v7266_v39 = vpop.f32.mrb[14].mxu0 }
 0x3ac   :  { %v7267_v40 = vpop.f32.mrb[15].mxu0 }
 0x3ad   :  { %v7268_v41 = vadd.f32 %v7267_v40, %v7266_v39  ;;  %v2814_v42 = vadd.f32 %v7265_v38, %v2807_v45 }
 0x3af   :  { %2830 = vadd.xlane.f32.xlu0 %v2814_v42  ;;  %v2815_v43 = vadd.f32 %v7268_v41, %v2807_v45 }
 0x3b1   :  { %2832 = vadd.xlane.f32.xlu1 %v2815_v43 }
 0x424   :  { %v2819_v44 = vpop.xlane.xlu0 %2818 }
 0x425   :  { %v2835_v46 = vmul.f32 0.0078125, %v2819_v44 }
 0x427   :  { %v2843_v47 = vsub.f32 %v2808_v50, %v2835_v46 }
 0x428   :  { %v2821_v48 = vpop.xlane.xlu0 %2820 }
 0x429   :  { %v2836_v49 = vmul.f32 0.0078125, %v2821_v48  ;;  %v2851_v51 = vmul.f32 %v2843_v47, %v2843_v47 }
 0x42b   :  { %v2844_v53 = vsub.f32 %v2809_v52, %v2836_v49  ;;  %2859 = vadd.xlane.f32.xlu0 %v2851_v51 }
 0x42c   :  { %v2823_v54 = vpop.xlane.xlu1 %2822 }
 0x42d   :  { %v2837_v55 = vmul.f32 0.0078125, %v2823_v54  ;;  %v2852_v56 = vmul.f32 %v2844_v53, %v2844_v53 }
 0x42f   :  { %v10444_v25 = vsub.f32 %v2810_v26, %v2837_v55  ;;  %2861 = vadd.xlane.f32.xlu1 %v2852_v56 }
 0x430   :  { %v2825_v27 = vpop.xlane.xlu1 %2824 }
 0x431   :  { %v2838_v29 = vmul.f32 0.0078125, %v2825_v27  ;;  %v2853_v45 = vmul.f32 %v10444_v25, %v10444_v25 }
 0x433   :  { %v10448_v30 = vsub.f32 %v2811_v28, %v2838_v29  ;;  %2863 = vadd.xlane.f32.xlu0 %v2853_v45 }
 0x434   :  { %v2827_v50 = vpop.xlane.xlu0 %2826 }
 0x435   :  { %v2839_v31 = vmul.f32 0.0078125, %v2827_v50  ;;  %v2854_v52 = vmul.f32 %v10448_v30, %v10448_v30 }
 0x436   :  { %v2829_v32 = vpop.xlane.xlu1 %2828 }
 0x437   :  { %v10452_v33 = vsub.f32 %v2812_v34, %v2839_v31  ;;  %v2840_v36 = vmul.f32 0.0078125, %v2829_v32  ;;  %2865 = vadd.xlane.f32.xlu1 %v2854_v52  ;;  %v7119_v52 = vld [vmem:[#allocation11] ss:$0 sm:$0xff] }
 0x439   :  { %v10454_v26 = vsub.f32 %v2813_v35, %v2840_v36  ;;  %v2855_v37 = vmul.f32 %v10452_v33, %v10452_v33 }
 0x43b   :  { %2867 = vadd.xlane.f32.xlu0 %v2855_v37  ;;  %v2856_v28 = vmul.f32 %v10454_v26, %v10454_v26 }
 0x43c   :  { %v2831_v38 = vpop.xlane.xlu0 %2830 }
 0x43d   :  { %v2841_v39 = vmul.f32 0.0078125, %v2831_v38  ;;  %2869 = vadd.xlane.f32.xlu1 %v2856_v28  ;;  %v7120_v28 = vld [vmem:[#allocation12] ss:$0 sm:$0xff] }
 0x43e   :  { %v2833_v40 = vpop.xlane.xlu1 %2832 }
 0x43f   :  { %v10460_v41 = vsub.f32 %v2814_v42, %v2841_v39  ;;  %v2842_v44 = vmul.f32 0.0078125, %v2833_v40 }
 0x441   :  { %v10462_v34 = vsub.f32 %v2815_v43, %v2842_v44  ;;  %v2857_v35 = vmul.f32 %v10460_v41, %v10460_v41 }
 0x443   :  { %2871 = vadd.xlane.f32.xlu0 %v2857_v35  ;;  %v2858_v46 = vmul.f32 %v10462_v34, %v10462_v34 }
 0x445   :  { %2873 = vadd.xlane.f32.xlu1 %v2858_v46 }
 0x4b8   :  { %v2860_v48 = vpop.xlane.xlu0 %2859 }
 0x4b9   :  { %v2875_v49 = vmul.f32 0.0078125, %v2860_v48 }
 0x4bb   :  { %v2883_v51 = vadd.f32 1e-05, %v2875_v49 }
 0x4bc   :  { %v2862_v54 = vpop.xlane.xlu1 %2861 }
 0x4bd   :  { %7865 = vrsqrt.f32 %v2883_v51  ;;  %v2876_v55 = vmul.f32 0.0078125, %v2862_v54 }
 0x4bf   :  { %v2884_v56 = vadd.f32 1e-05, %v2876_v55 }
 0x4c0   :  { %v2864_v42 = vpop.xlane.xlu0 %2863 }
 0x4c1   :  { %7867 = vrsqrt.f32 %v2884_v56  ;;  %v2877_v27 = vmul.f32 0.0078125, %v2864_v42 }
 0x4c3   :  { %v2885_v43 = vadd.f32 1e-05, %v2877_v27 }
 0x4c4   :  { %v2866_v29 = vpop.xlane.xlu1 %2865 }
 0x4c5   :  { %7869 = vrsqrt.f32 %v2885_v43  ;;  %v2878_v45 = vmul.f32 0.0078125, %v2866_v29 }
 0x4c7   :  { %v7866_v50 = vpop.eup %7865  ;;  %v2886_v31 = vadd.f32 1e-05, %v2878_v45 }
 0x4c8   :  { %v2868_v32 = vpop.xlane.xlu0 %2867  ;;  %v2899_v36 = vmul.f32 %v7866_v50, %v2843_v47 }
 0x4c9   :  { %7871 = vrsqrt.f32 %v2886_v31  ;;  %v2879_v37 = vmul.f32 0.0078125, %v2868_v32 }
 0x4ca   :  { %v2870_v38 = vpop.xlane.xlu1 %2869  ;;  %v2913_v39 = vmul.f32 %v7119_v52, %v2899_v36 }
 0x4cb   :  { %v7868_v40 = vpop.eup %7867  ;;  %v2887_v44 = vadd.f32 1e-05, %v2879_v37  ;;  %v2880_v35 = vmul.f32 0.0078125, %v2870_v38 }
 0x4cc   :  { %v10468_v46 = vadd.f32 %v7120_v28, %v2913_v39  ;;  %v2900_v48 = vmul.f32 %v7868_v40, %v2844_v53 }
 0x4cd   :  { %7873 = vrsqrt.f32 %v2887_v44  ;;  %v2888_v49 = vadd.f32 1e-05, %v2880_v35 }
 0x4ce   :  { %2937 = vadd.xlane.f32.xlu0 %v10468_v46  ;;  %v2914_v51 = vmul.f32 %v7119_v52, %v2900_v48 }
 0x4cf   :  { %v7870_v54 = vpop.eup %7869  ;;  %7875 = vrsqrt.f32 %v2888_v49 }
 0x4d0   :  { %v2872_v55 = vpop.xlane.xlu0 %2871  ;;  %v10471_v47 = vadd.f32 %v7120_v28, %v2914_v51  ;;  %v2901_v56 = vmul.f32 %v7870_v54, %v10444_v25 }
 0x4d1   :  { %v2881_v42 = vmul.f32 0.0078125, %v2872_v55 }
 0x4d2   :  { %2939 = vadd.xlane.f32.xlu1 %v10471_v47  ;;  %v2874_v27 = vpop.xlane.xlu1 %2873  ;;  %v2915_v43 = vmul.f32 %v7119_v52, %v2901_v56 }
 0x4d3   :  { %v7872_v29 = vpop.eup %7871  ;;  %v2889_v45 = vadd.f32 1e-05, %v2881_v42  ;;  %v2882_v53 = vmul.f32 0.0078125, %v2874_v27  ;;  %v7825_v27 = vld [vmem:[%s11757_s14] ss:$12 sps:$4 sm:$0xff]  }
 0x4d4   :  { %v10475_v50 = vadd.f32 %v7120_v28, %v2915_v43  ;;  %v2902_v31 = vmul.f32 %v7872_v29, %v10448_v30 }
 0x4d5   :  { %7877 = vrsqrt.f32 %v2889_v45  ;;  %v2890_v32 = vadd.f32 1e-05, %v2882_v53 }
 0x4d6   :  { %2941 = vadd.xlane.f32.xlu0 %v10475_v50  ;;  %v2916_v36 = vmul.f32 %v7119_v52, %v2902_v31 }
 0x4d7   :  { %v7874_v37 = vpop.eup %7873  ;;  %7879 = vrsqrt.f32 %v2890_v32 }
 0x4d8   :  { %v10479_v25 = vadd.f32 %v7120_v28, %v2916_v36  ;;  %v2903_v38 = vmul.f32 %v7874_v37, %v10452_v33 }
 0x4d9   :  { %v7876_v39 = vpop.eup %7875 }
 0x4da   :  { %2943 = vadd.xlane.f32.xlu1 %v10479_v25  ;;  %v2917_v40 = vmul.f32 %v7119_v52, %v2903_v38  ;;  %v2904_v44 = vmul.f32 %v7876_v39, %v10454_v26 }
 0x4dc   :  { %v10484_v35 = vadd.f32 %v7120_v28, %v2917_v40  ;;  %v2918_v30 = vmul.f32 %v7119_v52, %v2904_v44 }
 0x4de   :  { %2945 = vadd.xlane.f32.xlu0 %v10484_v35  ;;  %v10487_v48 = vadd.f32 %v7120_v28, %v2918_v30 }
 0x4df   :  { %v7878_v49 = vpop.eup %7877 }
 0x4e0   :  { %2947 = vadd.xlane.f32.xlu1 %v10487_v48  ;;  %v2905_v51 = vmul.f32 %v7878_v49, %v10460_v41  ;;  %v7827_v41 = vld [vmem:[%s11757_s14 + $0x4] ss:$12 sps:$4 sm:$0xff]  }
 0x4e1   :  { %v7880_v54 = vpop.eup %7879  ;;  %3234 = vmatprep.subr.bf16.mxu0 %v7827_v41 }
 0x4e2   :  { %v2919_v33 = vmul.f32 %v7119_v52, %v2905_v51  ;;  %v2906_v55 = vmul.f32 %v7880_v54, %v10462_v34  ;;  %v7830_v34 = vld [vmem:[%s11757_s14 + $0x1c] ss:$12 sps:$4 sm:$0xff]   ;;  %3235 = vmatpush1.bf16.msra.mxu0 %v7825_v27 }
 0x4e3   :  { %3236 = vmatprep.subr.bf16.mxu0 %v7830_v34 }
 0x4e4   :  { %v10492_v56 = vadd.f32 %v7120_v28, %v2919_v33  ;;  %v2920_v42 = vmul.f32 %v7119_v52, %v2906_v55  ;;  %v7828_v52 = vld [vmem:[%s11757_s14 + $0x18] ss:$12 sps:$4 sm:$0xff]  }
 0x4e6   :  { %2949 = vadd.xlane.f32.xlu0 %v10492_v56  ;;  %v10495_v26 = vadd.f32 %v7120_v28, %v2920_v42  ;;  %3237 = vmatpush1.bf16.msra.mxu0 %v7828_v52  ;;  %v7833_v52 = vld [vmem:[%s11757_s14 + $0x34] ss:$12 sps:$4 sm:$0xff]  }
 0x4e7   :  { %3238 = vmatprep.subr.bf16.mxu0 %v7833_v52  ;;  %v7843_v52 = vld [vmem:[%s11757_s14 + $0x90] ss:$12 sps:$4 sm:$0xff]  }
 0x4e8   :  { %2951 = vadd.xlane.f32.xlu1 %v10495_v26 }
 0x55b   :  { %v2938_v28 = vpop.xlane.xlu0 %2937 }
 0x55c   :  { %v2953_v43 = vmul.f32 0.0078125, %v2938_v28 }
 0x55e   :  { %v10511_v29 = vsub.f32 %v10468_v46, %v2953_v43  ;;  %v7831_v43 = vld [vmem:[%s11757_s14 + $0x30] ss:$12 sps:$4 sm:$0xff]  }
 0x55f   :  { %v2940_v45 = vpop.xlane.xlu1 %2939  ;;  %3239 = vmatpush1.bf16.msra.mxu0 %v7831_v43  ;;  %v7846_v43 = vld [vmem:[%s11757_s14 + $0xa8] ss:$12 sps:$4 sm:$0xff]  }
 0x560   :  { %v2954_v53 = vmul.f32 0.0078125, %v2940_v45  ;;  %v2969_v31 = vmul.f32 %v10511_v29, %v10511_v29 }
 0x562   :  { %v10516_v32 = vsub.f32 %v10471_v47, %v2954_v53  ;;  %2977 = vadd.xlane.f32.xlu0 %v2969_v31 }
 0x563   :  { %v2942_v36 = vpop.xlane.xlu0 %2941 }
 0x564   :  { %v2955_v37 = vmul.f32 0.0078125, %v2942_v36  ;;  %v2970_v38 = vmul.f32 %v10516_v32, %v10516_v32  ;;  %v7836_v36 = vld [vmem:[%s11757_s14 + $0x4c] ss:$12 sps:$4 sm:$0xff]  }
 0x565   :  { %3240 = vmatprep.subr.bf16.mxu0 %v7836_v36 }
 0x566   :  { %v10521_v39 = vsub.f32 %v10475_v50, %v2955_v37  ;;  %2979 = vadd.xlane.f32.xlu1 %v2970_v38 }
 0x567   :  { %v2944_v40 = vpop.xlane.xlu1 %2943 }
 0x568   :  { %v2956_v44 = vmul.f32 0.0078125, %v2944_v40  ;;  %v2971_v30 = vmul.f32 %v10521_v39, %v10521_v39  ;;  %v7834_v40 = vld [vmem:[%s11757_s14 + $0x48] ss:$12 sps:$4 sm:$0xff]  }
 0x569   :  { %3241 = vmatpush1.bf16.msra.mxu0 %v7834_v40 }
 0x56a   :  { %v10526_v49 = vsub.f32 %v10479_v25, %v2956_v44  ;;  %2981 = vadd.xlane.f32.xlu0 %v2971_v30 }
 0x56b   :  { %v2946_v51 = vpop.xlane.xlu0 %2945 }
 0x56c   :  { %v2957_v54 = vmul.f32 0.0078125, %v2946_v51  ;;  %v2972_v33 = vmul.f32 %v10526_v49, %v10526_v49  ;;  %v7839_v51 = vld [vmem:[%s11757_s14 + $0x64] ss:$12 sps:$4 sm:$0xff]  }
 0x56d   :  { %v2948_v55 = vpop.xlane.xlu1 %2947  ;;  %3242 = vmatprep.subr.bf16.mxu0 %v7839_v51 }
 0x56e   :  { %v10531_v42 = vsub.f32 %v10484_v35, %v2957_v54  ;;  %v2958_v27 = vmul.f32 0.0078125, %v2948_v55  ;;  %2983 = vadd.xlane.f32.xlu1 %v2972_v33  ;;  %v7837_v33 = vld [vmem:[%s11757_s14 + $0x60] ss:$12 sps:$4 sm:$0xff]   ;;  %v7842_v55 = vld [vmem:[%s11757_s14 + $0x7c] ss:$12 sps:$4 sm:$0xff]  }
 0x56f   :  { %3243 = vmatpush1.bf16.msra.mxu0 %v7837_v33 }
 0x570   :  { %v10534_v41 = vsub.f32 %v10487_v48, %v2958_v27  ;;  %v2973_v34 = vmul.f32 %v10531_v42, %v10531_v42  ;;  %v7840_v27 = vld [vmem:[%s11757_s14 + $0x78] ss:$12 sps:$4 sm:$0xff]   ;;  %3244 = vmatprep.subr.bf16.mxu0 %v7842_v55 }
 0x572   :  { %2985 = vadd.xlane.f32.xlu0 %v2973_v34  ;;  %v2974_v28 = vmul.f32 %v10534_v41, %v10534_v41  ;;  %v7845_v34 = vld [vmem:[%s11757_s14 + $0x94] ss:$12 sps:$4 sm:$0xff]  }
 0x573   :  { %v2950_v45 = vpop.xlane.xlu0 %2949  ;;  %3245 = vmatpush1.bf16.msra.mxu0 %v7840_v27 }
 0x574   :  { %v2959_v53 = vmul.f32 0.0078125, %v2950_v45  ;;  %2987 = vadd.xlane.f32.xlu1 %v2974_v28  ;;  %3246 = vmatprep.subr.bf16.mxu0 %v7845_v34  ;;  %v7848_v28 = vld [vmem:[%s11757_s14 + $0xac] ss:$12 sps:$4 sm:$0xff]   ;;  %v7849_v45 = vld [vmem:[%s11757_s14 + $0x8] ss:$12 sps:$4 sm:$0xff]  }
 0x575   :  { %v2952_v31 = vpop.xlane.xlu1 %2951 }
 0x576   :  { %v10550_v37 = vsub.f32 %v10492_v56, %v2959_v53  ;;  %v2960_v38 = vmul.f32 0.0078125, %v2952_v31  ;;  %v11695_v53 = vmov 0  }
 0x577   :  { %3247 = vmatpush1.bf16.msra.mxu0 %v7843_v52  ;;  %3266 = vmatprep.mubr.bf16.mxu0 %v11695_v53 }
 0x578   :  { %v10556_v44 = vsub.f32 %v10495_v26, %v2960_v38  ;;  %v2975_v30 = vmul.f32 %v10550_v37, %v10550_v37  ;;  %3248 = vmatprep.subr.bf16.mxu0 %v7848_v28 }
 0x57a   :  { %2989 = vadd.xlane.f32.xlu0 %v2975_v30  ;;  %v2976_v54 = vmul.f32 %v10556_v44, %v10556_v44 }
 0x57b   :  { %3249 = vmatpush1.bf16.msra.mxu0 %v7846_v43 }
 0x57c   :  { %2991 = vadd.xlane.f32.xlu1 %v2976_v54  ;;  %7437 = vmatprep.subr.bf16.mxu0 %v7849_v45 }
 0x5ef   :  { %v2978_v31 = vpop.xlane.xlu0 %2977 }
 0x5f0   :  { %v2993_v36 = vmul.f32 0.0078125, %v2978_v31 }
 0x5f2   :  { %v3001_v38 = vadd.f32 1e-05, %v2993_v36 }
 0x5f3   :  { %v2980_v40 = vpop.xlane.xlu1 %2979 }
 0x5f4   :  { %7881 = vrsqrt.f32 %v3001_v38  ;;  %v2994_v30 = vmul.f32 0.0078125, %v2980_v40 }
 0x5f6   :  { %v3002_v51 = vadd.f32 1e-05, %v2994_v30 }
 0x5f7   :  { %v2982_v54 = vpop.xlane.xlu0 %2981 }
 0x5f8   :  { %7883 = vrsqrt.f32 %v3002_v51  ;;  %v2995_v33 = vmul.f32 0.0078125, %v2982_v54 }
 0x5fa   :  { %v3003_v55 = vadd.f32 1e-05, %v2995_v33 }
 0x5fb   :  { %v2984_v27 = vpop.xlane.xlu1 %2983 }
 0x5fc   :  { %7885 = vrsqrt.f32 %v3003_v55  ;;  %v2996_v34 = vmul.f32 0.0078125, %v2984_v27  ;;  %v7122_v55 = vld [vmem:[#allocation15] ss:$0 sm:$0xff] }
 0x5fe   :  { %v7882_v52 = vpop.eup %7881  ;;  %v3004_v28 = vadd.f32 1e-05, %v2996_v34 }
 0x5ff   :  { %v3017_v43 = vmul.f32 %v7882_v52, %v10511_v29  ;;  %v2986_v53 = vpop.xlane.xlu0 %2985 }
 0x600   :  { %7887 = vrsqrt.f32 %v3004_v28  ;;  %v2997_v31 = vmul.f32 0.0078125, %v2986_v53 }
 0x601   :  { %v2988_v36 = vpop.xlane.xlu1 %2987  ;;  %v3031_v51 = vmul.f32 %v10591_v16, %v3017_v43  ;;  %v7850_v43 = vld [vmem:[%s11757_s14 + $0x20] ss:$12 sps:$4 sm:$0xff]  }
 0x602   :  { %v7884_v38 = vpop.eup %7883  ;;  %v3005_v40 = vadd.f32 1e-05, %v2997_v31  ;;  %v2998_v30 = vmul.f32 0.0078125, %v2988_v36 }
 0x603   :  { %v3018_v54 = vmul.f32 %v7884_v38, %v10516_v32  ;;  %v3045_v52 = vadd.f32 %v7122_v55, %v3031_v51 }
 0x604   :  { %7889 = vrsqrt.f32 %v3005_v40  ;;  %v3006_v33 = vadd.f32 1e-05, %v2998_v30 }
 0x605   :  { %v3032_v27 = vmul.f32 %v10591_v16, %v3018_v54  ;;  %v11758_v54 = vmov 0  }
 0x606   :  { %v7886_v34 = vpop.eup %7885  ;;  %7891 = vrsqrt.f32 %v3006_v33 }
 0x607   :  { %v2990_v29 = vpop.xlane.xlu0 %2989  ;;  %v3046_v0 = vadd.f32 %v7122_v55, %v3032_v27  ;;  %v3019_v53 = vmul.f32 %v7886_v34, %v10521_v39  ;;  %v7851_v39 = vld [vmem:[%s11757_s14 + $0x38] ss:$12 sps:$4 sm:$0xff]  }
 0x608   :  { %v2999_v28 = vmul.f32 0.0078125, %v2990_v29 }
 0x609   :  { %v2992_v24 = vpop.xlane.xlu1 %2991  ;;  %v3053_v31 = vpack.c.bf16 %v3046_v0, %v3045_v52  ;;  %v3033_v30 = vmul.f32 %v10591_v16, %v3019_v53 }
 0x60a   :  { %v7888_v32 = vpop.eup %7887  ;;  %v3007_v36 = vadd.f32 1e-05, %v2999_v28  ;;  %v3000_v38 = vmul.f32 0.0078125, %v2992_v24 }
 0x60b   :  { %3267 = vmatmul.mubr.bf16.vlgmr.msra.gmra.mrb[16].mxu0 %v3053_v31  ;;  %v3020_v40 = vmul.f32 %v7888_v32, %v10526_v49  ;;  %v3047_v24 = vadd.f32 %v7122_v55, %v3033_v30  ;;  %v7854_v30 = vld [vmem:[%s11757_s14 + $0x80] ss:$12 sps:$4 sm:$0xff]  }
 0x60c   :  { %7893 = vrsqrt.f32 %v3007_v36  ;;  %v3008_v51 = vadd.f32 1e-05, %v3000_v38  ;;  %7438 = vmatpush3.bf16.msra.mxu0 %v7849_v45  ;;  %3276 = vmatprep.mubr.bf16.mxu0 %v11758_v54  ;;  %v7852_v45 = vld [vmem:[%s11757_s14 + $0x50] ss:$12 sps:$4 sm:$0xff]  }
 0x60d   :  { %7439 = vmatprep.subr.bf16.mxu0 %v7850_v43  ;;  %v3034_v0 = vmul.f32 %v10591_v16, %v3020_v40 }
 0x60e   :  { %v7890_v33 = vpop.eup %7889  ;;  %7895 = vrsqrt.f32 %v3008_v51 }
 0x60f   :  { %v3048_v27 = vadd.f32 %v7122_v55, %v3034_v0  ;;  %v3021_v49 = vmul.f32 %v7890_v33, %v10531_v42  ;;  %v7855_v33 = vld [vmem:[%s11757_s14 + $0x98] ss:$12 sps:$4 sm:$0xff]  }
 0x610   :  { %v7892_v34 = vpop.eup %7891  ;;  %7440 = vmatpush3.bf16.msra.mxu0 %v7850_v43  ;;  %v7853_v43 = vld [vmem:[%s11757_s14 + $0x68] ss:$12 sps:$4 sm:$0xff]  }
 0x611   :  { %v3054_v29 = vpack.c.bf16 %v3048_v27, %v3047_v24  ;;  %7441 = vmatprep.subr.bf16.mxu0 %v7851_v39  ;;  %v3022_v52 = vmul.f32 %v7892_v34, %v10534_v41  ;;  %v3035_v53 = vmul.f32 %v10591_v16, %v3021_v49  ;;  %v10644_v34 = vld [vmem:[#allocation17] sm:$0x7] }
 0x613   :  { %3277 = vmatmul.mubr.bf16.gmra.mrb[20].mxu0 %v3054_v29  ;;  %v3036_v28 = vmul.f32 %v10591_v16, %v3022_v52  ;;  %v3049_v36 = vadd.f32 %v7122_v55, %v3035_v53 }
 0x614   :  { %7442 = vmatpush3.bf16.msra.mxu0 %v7851_v39  ;;  %3286 = vmatprep.mubr.bf16.mxu0 %v11758_v54 }
 0x615   :  { %7443 = vmatprep.subr.bf16.mxu0 %v7852_v45  ;;  %v3050_v42 = vadd.f32 %v7122_v55, %v3036_v28 }
 0x616   :  { %v7894_v32 = vpop.eup %7893 }
 0x617   :  { %v3023_v38 = vmul.f32 %v7894_v32, %v10550_v37  ;;  %v3055_v41 = vpack.c.bf16 %v3050_v42, %v3049_v36 }
 0x618   :  { %v7896_v40 = vpop.eup %7895  ;;  %7444 = vmatpush3.bf16.msra.mxu0 %v7852_v45 }
 0x619   :  { %7445 = vmatprep.subr.bf16.mxu0 %v7853_v43  ;;  %v3024_v51 = vmul.f32 %v7896_v40, %v10556_v44  ;;  %v3037_v0 = vmul.f32 %v10591_v16, %v3023_v38  ;;  %v7856_v44 = vld [vmem:[%s11757_s14 + $0xb0] ss:$12 sps:$4 sm:$0xff]  }
 0x61b   :  { %3287 = vmatmul.mubr.bf16.gmra.mrb[24].mxu0 %v3055_v41  ;;  %v3038_v39 = vmul.f32 %v10591_v16, %v3024_v51  ;;  %v3051_v24 = vadd.f32 %v7122_v55, %v3037_v0  ;;  %v11698_v16 = vmov 0.0  }
 0x61c   :  { %7446 = vmatpush3.bf16.msra.mxu0 %v7853_v43  ;;  %3296 = vmatprep.mubr.bf16.mxu0 %v11758_v54 }
 0x61d   :  { %7447 = vmatprep.subr.bf16.mxu0 %v7854_v30  ;;  %v3052_v37 = vadd.f32 %v7122_v55, %v3038_v39  ;;  %7461 = vmatprep.subr.bf16.mxu1 %v11698_v16  ;;  %v11697_v55 = vlaneseq }
 0x61e   :  { %7463 = vmatprep.mubr.msk.bf16.mxu1 %vm8528_vm0, %v11698_v16 }
 0x61f   :  { %v3056_v27 = vpack.c.bf16 %v3052_v37, %v3051_v24 }
 0x620   :  { %7448 = vmatpush3.bf16.msra.mxu0 %v7854_v30 }
 0x621   :  { %7449 = vmatprep.subr.bf16.mxu0 %v7855_v33 }
 0x623   :  { %3297 = vmatmul.mubr.bf16.gmra.mrb[28].mxu0 %v3056_v27 }
 0x624   :  { %7450 = vmatpush3.bf16.msra.mxu0 %v7855_v33  ;;  %7453 = vmatprep.mubr.bf16.mxu0 %v3053_v31  ;;  %v10639_v31 = vshrl.u32 %v11697_v55, 7 }
 0x625   :  { %7451 = vmatprep.subr.bf16.mxu0 %v7856_v44 }
 0x626   :  { %11759 = vst [vmem:[#allocation73_spill] sm:$0xff] %v10639_v31  ;;  %v10642_v49 = vsub.s32 1, %v10639_v31 }
 0x628   :  { %7452 = vmatpush3.bf16.msra.mxu0 %v7856_v44  ;;  %11760 = vst [vmem:[#allocation74_spill] sm:$0xff] %v10642_v49  ;;  %v10651_v45 = vrot.slane %v10644_v34, %v10642_v49 }
 0x629   :  { %7473 = vmatprep.subr.bf16.mxu0 %v11698_v16 }
 0x62b   :  { %7454 = vmatmul.mubr.bf16.vlgmr.msra.gmra.mrb[32].mxu0 %v3054_v29  ;;  %v10647_v29 = vsub.s32 0, %v10639_v31 }
 0x62c   :  { %7457 = vmatprep.mubr.bf16.mxu0 %v3055_v41 }
 0x62d   :  { %11761 = vst [vmem:[#allocation75_spill] sm:$0xff] %v10647_v29  ;;  %v10655_v52 = vrot.slane %v10644_v34, %v10647_v29 }
 0x633   :  { %7458 = vmatmul.mubr.bf16.gmra.mrb[36].mxu0 %v3056_v27 }
 0x634   :  { %7475 = vmatprep.mubr.msk.bf16.mxu0 %vm8528_vm0, %v11698_v16 }
 0x6de   :  { %v3268_v53 = vpop.f32.mrb[16].mxu0 }
 0x6df   :  { %v3270_v28 = vpop.f32.mrb[17].mxu0  ;;  %v3269_v32 = vadd.f32 %v3268_v53, %v10655_v52 }
 0x6e0   :  { %v3271_v42 = vadd.f32 %v3270_v28, %v10651_v45  ;;  %v3272_v43 = vpop.f32.mrb[18].mxu0 }
 0x6e1   :  { %v3273_v36 = vadd.f32 %v3272_v43, %v10655_v52  ;;  %v3274_v38 = vpop.f32.mrb[19].mxu0  ;;  %v3468_v43 = vpack.c.bf16 %v3269_v32, %v3269_v32 }
 0x6e2   :  { %v3275_v40 = vadd.f32 %v3274_v38, %v10651_v45  ;;  %v3484_v41 = vpack.c.bf16 %v3271_v42, %v3271_v42 }
 0x6e3   :  { %v7722_v30 = vpack.i.bf16 %v3273_v36, %v3269_v32 }
 0x6e4   :  { %v3505_v51 = vsel %vm3500_vm1, %v3484_v41, 0  ;;  %v7717_v0 = vpack.i.bf16 %v3275_v40, %v3271_v42  ;;  %v3485_v33 = vpack.c.bf16 %v3275_v40, %v3275_v40 }
 0x6e5   :  { %7462 = vmatpush3.bf16.xpose.msra.mxu1 %v3505_v51  ;;  %7723 = vrot.lane.b32.xlu1 %v7722_v30, %s8512_s1 }
 0x6e6   :  { %7718 = vrot.lane.b32.xlu0 %v7717_v0, %s8512_s1  ;;  %v3278_v39 = vpop.f32.mrb[20].mxu0  ;;  %7467 = vmatprep.subr.bf16.mxu1 %v11698_v16  ;;  %v3551_v30 = vsel %vm3500_vm1, %v3485_v33, 0 }
 0x6e7   :  { %v3280_v37 = vpop.f32.mrb[21].mxu0  ;;  %v3279_v44 = vadd.f32 %v3278_v39, %v10655_v52 }
 0x6e8   :  { %v3281_v24 = vadd.f32 %v3280_v37, %v10651_v45  ;;  %v3282_v27 = vpop.f32.mrb[22].mxu0 }
 0x6e9   :  { %v3283_v53 = vadd.f32 %v3282_v27, %v10655_v52  ;;  %v3284_v28 = vpop.f32.mrb[23].mxu0 }
 0x6ea   :  { %v3486_v42 = vpack.c.bf16 %v3281_v24, %v3281_v24  ;;  %v3285_v38 = vadd.f32 %v3284_v28, %v10651_v45 }
 0x6eb   :  { %v7732_v41 = vpack.i.bf16 %v3283_v53, %v3279_v44 }
 0x6ec   :  { %7464 = vmatmul.mubr.msk.bf16.vlgmr.msra.gmra.mrb[0].mxu1 %vm3500_vm1, %v3468_v43  ;;  %v3597_v51 = vsel %vm3500_vm1, %v3486_v42, 0  ;;  %v7727_v40 = vpack.i.bf16 %v3285_v38, %v3281_v24  ;;  %v3487_v39 = vpack.c.bf16 %v3285_v38, %v3285_v38  ;;  %v3469_v43 = vpack.c.bf16 %v3273_v36, %v3273_v36 }
 0x6ed   :  { %7468 = vmatpush3.bf16.xpose.msra.mxu1 %v3551_v30  ;;  %7474 = vmatpush3.bf16.xpose.msra.mxu0 %v3597_v51  ;;  %v3470_v42 = vpack.c.bf16 %v3279_v44, %v3279_v44 }
 0x6ee   :  { %7728 = vrot.lane.b32.xlu1 %v7727_v40, %s8512_s1  ;;  %v3288_v0 = vpop.f32.mrb[24].mxu0  ;;  %7469 = vmatprep.mubr.msk.bf16.mxu1 %vm8528_vm0, %v11698_v16  ;;  %v3643_v38 = vsel %vm3500_vm1, %v3487_v39, 0 }
 0x6ef   :  { %v3290_v32 = vpop.f32.mrb[25].mxu0  ;;  %7479 = vmatprep.subr.bf16.mxu1 %v11698_v16  ;;  %7485 = vmatprep.subr.bf16.mxu0 %v11698_v16  ;;  %v3289_v27 = vadd.f32 %v3288_v0, %v10655_v52 }
 0x6f0   :  { %v3291_v37 = vadd.f32 %v3290_v32, %v10651_v45  ;;  %v3292_v33 = vpop.f32.mrb[26].mxu0 }
 0x6f1   :  { %v3293_v24 = vadd.f32 %v3292_v33, %v10655_v52  ;;  %v3294_v28 = vpop.f32.mrb[27].mxu0 }
 0x6f2   :  { %v3488_v30 = vpack.c.bf16 %v3291_v37, %v3291_v37  ;;  %v3295_v51 = vadd.f32 %v3294_v28, %v10651_v45  ;;  %7733 = vrot.lane.b32.xlu1 %v7732_v41, %s8512_s1  ;;  %v10693_v41 = vsub.s32 2, %v10639_v31 }
 0x6f3   :  { %v7742_v40 = vpack.i.bf16 %v3293_v24, %v3289_v27 }
 0x6f4   :  { %7470 = vmatmul.mubr.msk.bf16.vlgmr.msra.gmra.mrb[4].mxu1 %vm3500_vm1, %v3469_v43  ;;  %7476 = vmatmul.mubr.msk.bf16.vlgmr.msra.gmra.mrb[40].mxu0 %vm3500_vm1, %v3470_v42  ;;  %v3689_v32 = vsel %vm3500_vm1, %v3488_v30, 0  ;;  %v7737_v0 = vpack.i.bf16 %v3295_v51, %v3291_v37  ;;  %11762 = vst [vmem:[#allocation76_spill] sm:$0xff] %v10693_v41  ;;  %v3489_v39 = vpack.c.bf16 %v3295_v51, %v3295_v51 }
 0x6f5   :  { %7480 = vmatpush3.bf16.xpose.msra.mxu1 %v3643_v38  ;;  %7486 = vmatpush3.bf16.xpose.msra.mxu0 %v3689_v32  ;;  %v3471_v30 = vpack.c.bf16 %v3283_v53, %v3283_v53  ;;  %v3102_v51 = vrot.slane %v10644_v34, %v10693_v41 }
 0x6f6   :  { %7738 = vrot.lane.b32.xlu0 %v7737_v0, %s8512_s1  ;;  %7743 = vrot.lane.b32.xlu1 %v7742_v40, %s8512_s1  ;;  %v3298_v36 = vpop.f32.mrb[28].mxu0  ;;  %v3472_v40 = vpack.c.bf16 %v3289_v27, %v3289_v27 }
 0x6f7   :  { %v3300_v44 = vpop.f32.mrb[29].mxu0  ;;  %7481 = vmatprep.mubr.msk.bf16.mxu1 %vm8528_vm0, %v11698_v16  ;;  %7487 = vmatprep.mubr.msk.bf16.mxu0 %vm8528_vm0, %v11698_v16  ;;  %v3299_v28 = vadd.f32 %v3298_v36, %v10655_v52 }
 0x6f8   :  { %v3301_v37 = vadd.f32 %v3300_v44, %v10651_v45  ;;  %v3302_v33 = vpop.f32.mrb[30].mxu0  ;;  %7491 = vmatprep.subr.bf16.mxu1 %v11698_v16  ;;  %7497 = vmatprep.subr.bf16.mxu0 %v11698_v16  ;;  %v3735_v44 = vsel %vm3500_vm1, %v3489_v39, 0 }
 0x6f9   :  { %v3303_v43 = vadd.f32 %v3302_v33, %v10655_v52  ;;  %v3304_v42 = vpop.f32.mrb[31].mxu0  ;;  %v3473_v33 = vpack.c.bf16 %v3293_v24, %v3293_v24 }
 0x6fa   :  { %v3490_v38 = vpack.c.bf16 %v3301_v37, %v3301_v37  ;;  %v3305_v32 = vadd.f32 %v3304_v42, %v10651_v45 }
 0x6fb   :  { %v7752_v0 = vpack.i.bf16 %v3303_v43, %v3299_v28 }
 0x6fc   :  { %7482 = vmatmul.mubr.msk.bf16.vlgmr.msra.gmra.mrb[8].mxu1 %vm3500_vm1, %v3471_v30  ;;  %7488 = vmatmul.mubr.msk.bf16.vlgmr.msra.gmra.mrb[44].mxu0 %vm3500_vm1, %v3472_v40  ;;  %v3781_v36 = vsel %vm3500_vm1, %v3490_v38, 0  ;;  %v7747_v55 = vpack.i.bf16 %v3305_v32, %v3301_v37  ;;  %v3491_v34 = vpack.c.bf16 %v3305_v32, %v3305_v32 }
 0x6fd   :  { %7492 = vmatpush3.bf16.xpose.msra.mxu1 %v3735_v44  ;;  %7498 = vmatpush3.bf16.xpose.msra.mxu0 %v3781_v36 }
 0x6fe   :  { %7753 = vrot.lane.b32.xlu1 %v7752_v0, %s8512_s1  ;;  %v7455_v52 = vpop.f32.mrb[32].mxu0  ;;  %7748 = vrot.lane.b32.xlu0 %v7747_v55, %s8512_s1  ;;  %v3474_v55 = vpack.c.bf16 %v3299_v28, %v3299_v28  ;;  %v3827_v38 = vsel %vm3500_vm1, %v3491_v34, 0  ;;  %v3475_v34 = vpack.c.bf16 %v3303_v43, %v3303_v43 }
 0x6ff   :  { %v10709_v45 = vadd.f32 %v7455_v52, %v3102_v51  ;;  %v3341_v53 = vpop.f32.mrb[33].mxu0  ;;  %7493 = vmatprep.mubr.msk.bf16.mxu1 %vm8528_vm0, %v11698_v16  ;;  %7499 = vmatprep.mubr.msk.bf16.mxu0 %vm8528_vm0, %v11698_v16 }
 0x700   :  { %v7456_v27 = vpop.f32.mrb[34].mxu0  ;;  %7503 = vmatprep.subr.bf16.mxu1 %v11698_v16  ;;  %7509 = vmatprep.subr.bf16.mxu0 %v11698_v16  ;;  %v10719_v42 = vadd.f32 %v3341_v53, %v3102_v51 }
 0x701   :  { %v10717_v39 = vadd.f32 %v7456_v27, %v3102_v51  ;;  %v3344_v37 = vpop.f32.mrb[35].mxu0 }
 0x702   :  { %v10721_v30 = vadd.f32 %v3344_v37, %v3102_v51 }
 0x704   :  { %7494 = vmatmul.mubr.msk.bf16.vlgmr.msra.gmra.mrb[12].mxu1 %vm3500_vm1, %v3473_v33  ;;  %7500 = vmatmul.mubr.msk.bf16.vlgmr.msra.gmra.mrb[48].mxu0 %vm3500_vm1, %v3474_v55 }
 0x705   :  { %7504 = vmatpush3.bf16.xpose.msra.mxu1 %v3827_v38  ;;  %7505 = vmatprep.mubr.msk.bf16.mxu1 %vm8528_vm0, %v11698_v16 }
 0x706   :  { %v7459_v24 = vpop.f32.mrb[36].mxu0  ;;  %7515 = vmatprep.subr.bf16.mxu1 %v11698_v16  ;;  %7511 = vmatprep.mubr.msk.bf16.mxu0 %vm8528_vm0, %v11698_v16 }
 0x707   :  { %v10735_v28 = vadd.f32 %v7459_v24, %v3102_v51  ;;  %v3357_v0 = vpop.f32.mrb[37].mxu0 }
 0x708   :  { %v10737_v44 = vadd.f32 %v3357_v0, %v3102_v51  ;;  %v7460_v36 = vpop.f32.mrb[38].mxu0 }
 0x709   :  { %v10739_v52 = vadd.f32 %v7460_v36, %v3102_v51  ;;  %v3360_v53 = vpop.f32.mrb[39].mxu0 }
 0x70a   :  { %v10741_v27 = vadd.f32 %v3360_v53, %v3102_v51 }
 0x70c   :  { %7506 = vmatmul.mubr.msk.bf16.vlgmr.msra.gmra.mrb[16].mxu1 %vm3500_vm1, %v3475_v34 }
 0x70d   :  { %7517 = vmatprep.mubr.msk.bf16.mxu1 %vm8528_vm0, %v11698_v16 }
 0x757   :  { %v7724_v32 = vpop.permute.xlu1 %7723 }
 0x758   :  { %v7719_v55 = vpop.permute.xlu0 %7718  ;;  %v7726_v53 = vunpack.i.h.bf16 %v7724_v32  ;;  %v7725_v34 = vunpack.i.l.bf16 %v7724_v32 }
 0x759   :  { %v7721_v38 = vunpack.i.h.bf16 %v7719_v55  ;;  %v7720_v24 = vunpack.i.l.bf16 %v7719_v55 }
 0x75a   :  { %v3477_v8 = vpack.c.bf16 %v7726_v53, %v7726_v53  ;;  %v3476_v55 = vpack.c.bf16 %v7725_v34, %v7725_v34 }
 0x75b   :  { %v3493_v0 = vpack.c.bf16 %v7721_v38, %v7721_v38  ;;  %v3492_v36 = vpack.c.bf16 %v7720_v24, %v7720_v24 }
 0x75d   :  { %v3873_v43 = vsel %vm3500_vm1, %v3492_v36, 0  ;;  %v3919_v51 = vsel %vm3500_vm1, %v3493_v0, 0 }
 0x75e   :  { %7510 = vmatpush3.bf16.xpose.msra.mxu0 %v3873_v43  ;;  %7516 = vmatpush3.bf16.xpose.msra.mxu1 %v3919_v51 }
 0x75f   :  { %7521 = vmatprep.subr.bf16.mxu0 %v11698_v16  ;;  %7527 = vmatprep.subr.bf16.mxu1 %v11698_v16 }
 0x760   :  { %v7729_v37 = vpop.permute.xlu1 %7728 }
 0x761   :  { %v7731_v33 = vunpack.i.h.bf16 %v7729_v37  ;;  %v7730_v40 = vunpack.i.l.bf16 %v7729_v37 }
 0x763   :  { %v3495_v38 = vpack.c.bf16 %v7731_v33, %v7731_v33  ;;  %v3494_v24 = vpack.c.bf16 %v7730_v40, %v7730_v40 }
 0x764   :  { %v7734_v15 = vpop.permute.xlu1 %7733 }
 0x765   :  { %7512 = vmatmul.mubr.msk.bf16.vlgmr.msra.gmra.mrb[52].mxu0 %vm3500_vm1, %v3476_v55  ;;  %7518 = vmatmul.mubr.msk.bf16.vlgmr.msra.gmra.mrb[20].mxu1 %vm3500_vm1, %v3477_v8  ;;  %v3965_v0 = vsel %vm3500_vm1, %v3494_v24, 0  ;;  %v4011_v32 = vsel %vm3500_vm1, %v3495_v38, 0  ;;  %v7736_v36 = vunpack.i.h.bf16 %v7734_v15  ;;  %v7735_v43 = vunpack.i.l.bf16 %v7734_v15 }
 0x766   :  { %7522 = vmatpush3.bf16.xpose.msra.mxu0 %v3965_v0  ;;  %7528 = vmatpush3.bf16.xpose.msra.mxu1 %v4011_v32 }
 0x767   :  { %7523 = vmatprep.mubr.msk.bf16.mxu0 %vm8528_vm0, %v11698_v16  ;;  %7529 = vmatprep.mubr.msk.bf16.mxu1 %vm8528_vm0, %v11698_v16  ;;  %v3479_v33 = vpack.c.bf16 %v7736_v36, %v7736_v36  ;;  %v3478_v51 = vpack.c.bf16 %v7735_v43, %v7735_v43 }
 0x768   :  { %v7739_v40 = vpop.permute.xlu0 %7738  ;;  %7533 = vmatprep.subr.bf16.mxu0 %v11698_v16  ;;  %7539 = vmatprep.subr.bf16.mxu1 %v11698_v16  ;;  %v7744_v55 = vpop.permute.xlu1 %7743 }
 0x769   :  { %v7741_v8 = vunpack.i.h.bf16 %v7739_v40  ;;  %v7740_v37 = vunpack.i.l.bf16 %v7739_v40  ;;  %v7746_v24 = vunpack.i.h.bf16 %v7744_v55  ;;  %v7745_v0 = vunpack.i.l.bf16 %v7744_v55 }
 0x76b   :  { %v3497_v53 = vpack.c.bf16 %v7741_v8, %v7741_v8  ;;  %v3496_v34 = vpack.c.bf16 %v7740_v37, %v7740_v37  ;;  %v3481_v40 = vpack.c.bf16 %v7746_v24, %v7746_v24  ;;  %v3480_v8 = vpack.c.bf16 %v7745_v0, %v7745_v0 }
 0x76c   :  { %v4466_v24 = vpack.c.bf16 %v10721_v30, %v10721_v30 }
 0x76d   :  { %7524 = vmatmul.mubr.msk.bf16.vlgmr.msra.gmra.mrb[56].mxu0 %vm3500_vm1, %v3478_v51  ;;  %7530 = vmatmul.mubr.msk.bf16.vlgmr.msra.gmra.mrb[24].mxu1 %vm3500_vm1, %v3479_v33  ;;  %v4057_v15 = vsel %vm3500_vm1, %v3496_v34, 0  ;;  %v4103_v38 = vsel %vm3500_vm1, %v3497_v53, 0 }
 0x76e   :  { %7534 = vmatpush3.bf16.xpose.msra.mxu0 %v4057_v15  ;;  %7540 = vmatpush3.bf16.xpose.msra.mxu1 %v4103_v38  ;;  %v4465_v38 = vpack.c.bf16 %v10719_v42, %v10719_v42 }
 0x76f   :  { %7535 = vmatprep.mubr.msk.bf16.mxu0 %vm8528_vm0, %v11698_v16  ;;  %7541 = vmatprep.mubr.msk.bf16.mxu1 %vm8528_vm0, %v11698_v16 }
 0x770   :  { %v7749_v32 = vpop.permute.xlu0 %7748  ;;  %7545 = vmatprep.subr.bf16.mxu0 %v11698_v16  ;;  %7551 = vmatprep.subr.bf16.mxu1 %v11698_v16  ;;  %v7754_v51 = vpop.permute.xlu1 %7753 }
 0x771   :  { %v7751_v36 = vunpack.i.h.bf16 %v7749_v32  ;;  %v7750_v43 = vunpack.i.l.bf16 %v7749_v32  ;;  %v7756_v55 = vunpack.i.h.bf16 %v7754_v51  ;;  %v7755_v15 = vunpack.i.l.bf16 %v7754_v51 }
 0x773   :  { %v3499_v37 = vpack.c.bf16 %v7751_v36, %v7751_v36  ;;  %v3498_v33 = vpack.c.bf16 %v7750_v43, %v7750_v43  ;;  %v3483_v0 = vpack.c.bf16 %v7756_v55, %v7756_v55  ;;  %v3482_v32 = vpack.c.bf16 %v7755_v15, %v7755_v15 }
 0x774   :  { %v4486_v36 = vsel %vm4484_vm2, %v4465_v38, 0  ;;  %v4532_v43 = vsel %vm4484_vm2, %v4466_v24, 0 }
 0x775   :  { %7536 = vmatmul.mubr.msk.bf16.vlgmr.msra.gmra.mrb[60].mxu0 %vm3500_vm1, %v3480_v8  ;;  %7542 = vmatmul.mubr.msk.bf16.vlgmr.msra.gmra.mrb[28].mxu1 %vm3500_vm1, %v3481_v40  ;;  %v4149_v53 = vsel %vm3500_vm1, %v3498_v33, 0  ;;  %v4195_v34 = vsel %vm3500_vm1, %v3499_v37, 0  ;;  %v11763_v40 = vlaneseq }
 0x776   :  { %7546 = vmatpush3.bf16.xpose.msra.mxu0 %v4149_v53  ;;  %7552 = vmatpush3.bf16.xpose.msra.mxu1 %v4195_v34 }
 0x777   :  { %7547 = vmatprep.mubr.msk.bf16.mxu0 %vm8528_vm0, %v11698_v16  ;;  %7553 = vmatprep.mubr.msk.bf16.mxu1 %vm8528_vm0, %v11698_v16  ;;  %v10799_v8 = vand.u32 127, %v11763_v40 }
 0x778   :  { %7557 = vmatprep.subr.bf16.mxu0 %v11698_v16  ;;  %7563 = vmatprep.subr.bf16.mxu1 %v11698_v16 }
 0x779   :  { %vm4255_vm3 = vcmp.lt.s32.totalorder %v10799_v8, 5 }
 0x77d   :  { %7548 = vmatmul.mubr.msk.bf16.vlgmr.msra.gmra.mrb[64].mxu0 %vm3500_vm1, %v3482_v32  ;;  %7554 = vmatmul.mubr.msk.bf16.vlgmr.msra.gmra.mrb[32].mxu1 %vm3500_vm1, %v3483_v0 }
 0x77e   :  { %7558 = vmatpush3.bf16.msra.mxu0 %v4486_v36  ;;  %7564 = vmatpush3.bf16.msra.mxu1 %v4532_v43 }
 0x77f   :  { %7559 = vmatprep.mubr.msk.bf16.mxu0 %vm8528_vm0, %v11698_v16  ;;  %7569 = vmatprep.subr.bf16.mxu0 %v11698_v16 }
 0x780   :  { %7565 = vmatprep.mubr.msk.bf16.mxu1 %vm8528_vm0, %v11698_v16  ;;  %7575 = vmatprep.subr.bf16.mxu1 %v11698_v16 }
 0x7bf   :  { %v3541_v37 = vpop.f32.mrb[0].mxu1 }
 0x7c0   :  { %v4237_v33 = vmul.f32 0.125, %v3541_v37  ;;  %v7465_v51 = vpop.f32.mrb[1].mxu1 }
 0x7c1   :  { %v3544_v53 = vpop.f32.mrb[2].mxu1 }
 0x7c2   :  { %v7466_v34 = vpop.f32.mrb[3].mxu1  ;;  %v10804_v55 = vsel %vm4255_vm3, %v4237_v33, -1e+30 }
 0x7c3   :  { %v4273_v15 = vsel %vm4272_vm4, %v10804_v55, -inf }
 0x7c4   :  { %4274 = vmax.xlane.f32.xlu0 %v4273_v15 }
 0x7c7   :  { %v3587_v38 = vpop.f32.mrb[4].mxu1  ;;  %v3633_v24 = vpop.f32.mrb[40].mxu0 }
 0x7c8   :  { %v4238_v0 = vmul.f32 0.125, %v3587_v38  ;;  %v4239_v32 = vmul.f32 0.125, %v3633_v24  ;;  %v7471_v36 = vpop.f32.mrb[5].mxu1  ;;  %v7477_v43 = vpop.f32.mrb[41].mxu0 }
 0x7c9   :  { %v3590_v40 = vpop.f32.mrb[6].mxu1  ;;  %v3636_v37 = vpop.f32.mrb[42].mxu0 }
 0x7ca   :  { %v7472_v51 = vpop.f32.mrb[7].mxu1  ;;  %v7478_v16 = vpop.f32.mrb[43].mxu0  ;;  %v10810_v53 = vsel %vm4255_vm3, %v4239_v32, -1e+30  ;;  %v10814_v33 = vsel %vm4255_vm3, %v4238_v0, -1e+30 }
 0x7cb   :  { %v4279_v34 = vsel %vm4272_vm4, %v10810_v53, -inf  ;;  %v4276_v15 = vsel %vm4272_vm4, %v10814_v33, -inf }
 0x7cc   :  { %4280 = vmax.xlane.f32.xlu0 %v4279_v34  ;;  %4277 = vmax.xlane.f32.xlu1 %v4276_v15 }
 0x7cf   :  { %v3679_v38 = vpop.f32.mrb[8].mxu1  ;;  %v3725_v24 = vpop.f32.mrb[44].mxu0 }
 0x7d0   :  { %v4240_v36 = vmul.f32 0.125, %v3679_v38  ;;  %v4241_v16 = vmul.f32 0.125, %v3725_v24  ;;  %v7483_v43 = vpop.f32.mrb[9].mxu1  ;;  %v7489_v40 = vpop.f32.mrb[45].mxu0 }
 0x7d1   :  { %v3682_v32 = vpop.f32.mrb[10].mxu1  ;;  %v3728_v37 = vpop.f32.mrb[46].mxu0 }
 0x7d2   :  { %v7484_v51 = vpop.f32.mrb[11].mxu1  ;;  %v7490_v63 = vpop.f32.mrb[47].mxu0  ;;  %v10822_v0 = vsel %vm4255_vm3, %v4240_v36, -1e+30  ;;  %v10828_v34 = vsel %vm4255_vm3, %v4241_v16, -1e+30 }
 0x7d3   :  { %v4282_v23 = vsel %vm4272_vm4, %v10822_v0, -inf  ;;  %v4285_v24 = vsel %vm4272_vm4, %v10828_v34, -inf }
 0x7d4   :  { %4283 = vmax.xlane.f32.xlu0 %v4282_v23 }
 0x7d7   :  { %v3771_v15 = vpop.f32.mrb[12].mxu1  ;;  %v3817_v38 = vpop.f32.mrb[48].mxu0 }
 0x7d8   :  { %v4242_v43 = vmul.f32 0.125, %v3771_v15  ;;  %v4243_v40 = vmul.f32 0.125, %v3817_v38  ;;  %v7495_v63 = vpop.f32.mrb[13].mxu1  ;;  %4286 = vmax.xlane.f32.xlu0 %v4285_v24  ;;  %v7501_v32 = vpop.f32.mrb[49].mxu0 }
 0x7d9   :  { %v3774_v36 = vpop.f32.mrb[14].mxu1  ;;  %v3820_v37 = vpop.f32.mrb[50].mxu0 }
 0x7da   :  { %v7496_v51 = vpop.f32.mrb[15].mxu1  ;;  %v7502_v7 = vpop.f32.mrb[51].mxu0  ;;  %v10834_v23 = vsel %vm4255_vm3, %v4242_v43, -1e+30  ;;  %v10838_v16 = vsel %vm4255_vm3, %v4243_v40, -1e+30 }
 0x7db   :  { %v4288_v14 = vsel %vm4272_vm4, %v10834_v23, -inf  ;;  %v4291_v15 = vsel %vm4272_vm4, %v10838_v16, -inf }
 0x7dc   :  { %4289 = vmax.xlane.f32.xlu1 %v4288_v14  ;;  %4292 = vmax.xlane.f32.xlu0 %v4291_v15 }
 0x7df   :  { %v3863_v38 = vpop.f32.mrb[16].mxu1 }
 0x7e0   :  { %v4244_v24 = vmul.f32 0.125, %v3863_v38  ;;  %v7507_v63 = vpop.f32.mrb[17].mxu1 }
 0x7e1   :  { %v3866_v7 = vpop.f32.mrb[18].mxu1 }
 0x7e2   :  { %v7508_v32 = vpop.f32.mrb[19].mxu1  ;;  %v10846_v43 = vsel %vm4255_vm3, %v4244_v24, -1e+30 }
 0x7e3   :  { %v4294_v40 = vsel %vm4272_vm4, %v10846_v43, -inf }
 0x7e4   :  { %4295 = vmax.xlane.f32.xlu1 %v4294_v40 }
 0x838   :  { %v3909_v36 = vpop.f32.mrb[52].mxu0  ;;  %v3955_v37 = vpop.f32.mrb[20].mxu1 }
 0x839   :  { %v4245_v51 = vmul.f32 0.125, %v3909_v36  ;;  %v4246_v62 = vmul.f32 0.125, %v3955_v37  ;;  %v7513_v22 = vpop.f32.mrb[53].mxu0  ;;  %v7519_v14 = vpop.f32.mrb[21].mxu1 }
 0x83a   :  { %v3912_v15 = vpop.f32.mrb[54].mxu0  ;;  %v3958_v6 = vpop.f32.mrb[22].mxu1 }
 0x83b   :  { %v7514_v38 = vpop.f32.mrb[55].mxu0  ;;  %v7520_v63 = vpop.f32.mrb[23].mxu1  ;;  %v10852_v7 = vsel %vm4255_vm3, %v4246_v62, -1e+30  ;;  %v10856_v24 = vsel %vm4255_vm3, %v4245_v51, -1e+30 }
 0x83c   :  { %v4300_v32 = vsel %vm4272_vm4, %v10852_v7, -inf  ;;  %v4297_v40 = vsel %vm4272_vm4, %v10856_v24, -inf }
 0x83d   :  { %4301 = vmax.xlane.f32.xlu1 %v4300_v32  ;;  %4298 = vmax.xlane.f32.xlu0 %v4297_v40 }
 0x840   :  { %v4001_v22 = vpop.f32.mrb[56].mxu0  ;;  %v4047_v6 = vpop.f32.mrb[24].mxu1 }
 0x841   :  { %v4247_v36 = vmul.f32 0.125, %v4001_v22  ;;  %v4248_v37 = vmul.f32 0.125, %v4047_v6  ;;  %v7525_v14 = vpop.f32.mrb[57].mxu0  ;;  %v7531_v15 = vpop.f32.mrb[25].mxu1 }
 0x842   :  { %v4004_v62 = vpop.f32.mrb[58].mxu0  ;;  %v4050_v38 = vpop.f32.mrb[26].mxu1 }
 0x843   :  { %v7526_v63 = vpop.f32.mrb[59].mxu0  ;;  %v7532_v13 = vpop.f32.mrb[27].mxu1  ;;  %v10864_v51 = vsel %vm4255_vm3, %v4248_v37, -1e+30  ;;  %v10868_v61 = vsel %vm4255_vm3, %v4247_v36, -1e+30 }
 0x844   :  { %v4306_v32 = vsel %vm4272_vm4, %v10864_v51, -inf  ;;  %v4303_v40 = vsel %vm4272_vm4, %v10868_v61, -inf }
 0x845   :  { %4307 = vmax.xlane.f32.xlu1 %v4306_v32  ;;  %4304 = vmax.xlane.f32.xlu0 %v4303_v40 }
 0x848   :  { %v4093_v22 = vpop.f32.mrb[60].mxu0  ;;  %v4139_v6 = vpop.f32.mrb[28].mxu1 }
 0x849   :  { %v4249_v14 = vmul.f32 0.125, %v4093_v22  ;;  %v4250_v13 = vmul.f32 0.125, %v4139_v6  ;;  %v7537_v15 = vpop.f32.mrb[61].mxu0  ;;  %v7543_v62 = vpop.f32.mrb[29].mxu1 }
 0x84a   :  { %v4096_v37 = vpop.f32.mrb[62].mxu0  ;;  %v4142_v38 = vpop.f32.mrb[30].mxu1 }
 0x84b   :  { %v7538_v63 = vpop.f32.mrb[63].mxu0  ;;  %v7544_v21 = vpop.f32.mrb[31].mxu1  ;;  %v10876_v36 = vsel %vm4255_vm3, %v4250_v13, -1e+30  ;;  %v10880_v5 = vsel %vm4255_vm3, %v4249_v14, -1e+30 }
 0x84c   :  { %v4312_v32 = vsel %vm4272_vm4, %v10876_v36, -inf  ;;  %v4309_v40 = vsel %vm4272_vm4, %v10880_v5, -inf }
 0x84d   :  { %4313 = vmax.xlane.f32.xlu1 %v4312_v32  ;;  %4310 = vmax.xlane.f32.xlu0 %v4309_v40 }
 0x850   :  { %v4185_v22 = vpop.f32.mrb[64].mxu0  ;;  %v4231_v6 = vpop.f32.mrb[32].mxu1 }
 0x851   :  { %v4251_v15 = vmul.f32 0.125, %v4185_v22  ;;  %v4252_v21 = vmul.f32 0.125, %v4231_v6  ;;  %v4275_v62 = vpop.xlane.xlu0 %4274  ;;  %v7549_v37 = vpop.f32.mrb[65].mxu0 }
 0x852   :  { %v4321_v13 = vsub.f32 %v10804_v55, %v4275_v62  ;;  %v7555_v38 = vpop.f32.mrb[33].mxu1  ;;  %v4188_v63 = vpop.f32.mrb[66].mxu0 }
 0x853   :  { %v4234_v14 = vpop.f32.mrb[34].mxu1  ;;  %v7550_v12 = vpop.f32.mrb[67].mxu0  ;;  %v10889_v60 = vsel %vm4255_vm3, %v4252_v21, -1e+30  ;;  %v10893_v32 = vsel %vm4255_vm3, %v4251_v15, -1e+30 }
 0x854   :  { %v4337_v40 = vmul.f32 1.442695, %v4321_v13  ;;  %v7556_v20 = vpop.f32.mrb[35].mxu1  ;;  %v4318_v22 = vsel %vm4272_vm4, %v10889_v60, -inf  ;;  %v4315_v55 = vsel %vm4272_vm4, %v10893_v32, -inf }
 0x855   :  { %4319 = vmax.xlane.f32.xlu1 %v4318_v22  ;;  %4316 = vmax.xlane.f32.xlu0 %v4315_v55 }
 0x856   :  { %7897 = vpow2.f32 %v4337_v40 }
 0x859   :  { %v4278_v12 = vpop.xlane.xlu1 %4277  ;;  %v4281_v6 = vpop.xlane.xlu0 %4280 }
 0x85a   :  { %v4322_v21 = vsub.f32 %v10814_v33, %v4278_v12  ;;  %v4323_v62 = vsub.f32 %v10810_v53, %v4281_v6 }
 0x85c   :  { %v4339_v8 = vmul.f32 1.442695, %v4322_v21  ;;  %v4341_v15 = vmul.f32 1.442695, %v4323_v62 }
 0x85e   :  { %7899 = vpow2.f32 %v4339_v8 }
 0x85f   :  { %7901 = vpow2.f32 %v4341_v15 }
 0x860   :  { %v10901_v20 = vpop.eup %7897 }
 0x861   :  { %v4284_v37 = vpop.xlane.xlu0 %4283  ;;  %v4369_v13 = vsel %vm4272_vm4, %v10901_v20, 0.0 }
 0x862   :  { %v4324_v38 = vsub.f32 %v10822_v0, %v4284_v37  ;;  %4370 = vadd.xlane.f32.xlu0 %v4369_v13 }
 0x864   :  { %v4343_v63 = vmul.f32 1.442695, %v4324_v38 }
 0x865   :  { %v4287_v14 = vpop.xlane.xlu0 %4286 }
 0x866   :  { %7903 = vpow2.f32 %v4343_v63  ;;  %v4325_v33 = vsub.f32 %v10828_v34, %v4287_v14 }
 0x868   :  { %v10907_v40 = vpop.eup %7899  ;;  %v4345_v53 = vmul.f32 1.442695, %v4325_v33  ;;  %v11764_v33 = vpack.i.bf16 %v10717_v39, %v10709_v45 }
 0x869   :  { %v10909_v22 = vpop.eup %7901  ;;  %v4290_v55 = vpop.xlane.xlu1 %4289  ;;  %v4372_v6 = vsel %vm4272_vm4, %v10907_v40, 0.0 }
 0x86a   :  { %v4293_v12 = vpop.xlane.xlu0 %4292  ;;  %7905 = vpow2.f32 %v4345_v53  ;;  %v4326_v21 = vsub.f32 %v10834_v23, %v4290_v55  ;;  %4373 = vadd.xlane.f32.xlu1 %v4372_v6  ;;  %v4375_v62 = vsel %vm4272_vm4, %v10909_v22, 0.0  ;;  %v11765_v53 = vpack.i.bf16 %v10721_v30, %v10719_v42 }
 0x86b   :  { %v4327_v0 = vsub.f32 %v10838_v16, %v4293_v12  ;;  %4376 = vadd.xlane.f32.xlu0 %v4375_v62 }
 0x86c   :  { %v4347_v34 = vmul.f32 1.442695, %v4326_v21 }
 0x86d   :  { %v4349_v8 = vmul.f32 1.442695, %v4327_v0 }
 0x86e   :  { %7907 = vpow2.f32 %v4347_v34 }
 0x86f   :  { %7909 = vpow2.f32 %v4349_v8 }
 0x870   :  { %v10917_v15 = vpop.eup %7903 }
 0x871   :  { %v4378_v37 = vsel %vm4272_vm4, %v10917_v15, 0.0  ;;  %v4296_v55 = vpop.xlane.xlu1 %4295 }
 0x872   :  { %4379 = vadd.xlane.f32.xlu1 %v4378_v37  ;;  %v4328_v12 = vsub.f32 %v10846_v43, %v4296_v55 }
 0x874   :  { %v10921_v13 = vpop.eup %7905  ;;  %v4351_v6 = vmul.f32 1.442695, %v4328_v12 }
 0x875   :  { %v4381_v23 = vsel %vm4272_vm4, %v10921_v13, 0.0 }
 0x876   :  { %4382 = vadd.xlane.f32.xlu0 %v4381_v23  ;;  %7911 = vpow2.f32 %v4351_v6 }
 0x878   :  { %v10925_v16 = vpop.eup %7907 }
 0x879   :  { %v10927_v38 = vpop.eup %7909  ;;  %v4384_v63 = vsel %vm4272_vm4, %v10925_v16, 0.0 }
 0x87a   :  { %4385 = vadd.xlane.f32.xlu1 %v4384_v63  ;;  %v4387_v14 = vsel %vm4272_vm4, %v10927_v38, 0.0 }
 0x87b   :  { %4388 = vadd.xlane.f32.xlu0 %v4387_v14 }
 0x880   :  { %v10942_v21 = vpop.eup %7911 }
 0x881   :  { %v4390_v0 = vsel %vm4272_vm4, %v10942_v21, 0.0 }
 0x88b   :  { %7763 = vrot.lane.b32.xlu1 %v11764_v33, %s8512_s1 }
 0x891   :  { %7758 = vrot.lane.b32.xlu0 %v11765_v53, %s8512_s1 }
 0x8af   :  { %4391 = vadd.xlane.f32.xlu1 %v4390_v0 }
 0x8ca   :  { %v4302_v62 = vpop.xlane.xlu1 %4301  ;;  %v4299_v34 = vpop.xlane.xlu0 %4298 }
 0x8cb   :  { %v4330_v8 = vsub.f32 %v10852_v7, %v4302_v62  ;;  %v4329_v37 = vsub.f32 %v10856_v24, %v4299_v34 }
 0x8cd   :  { %v4355_v23 = vmul.f32 1.442695, %v4330_v8  ;;  %v4353_v42 = vmul.f32 1.442695, %v4329_v37 }
 0x8cf   :  { %7913 = vpow2.f32 %v4355_v23 }
 0x8d0   :  { %7915 = vpow2.f32 %v4353_v42 }
 0x8d2   :  { %v4308_v30 = vpop.xlane.xlu1 %4307  ;;  %v4305_v43 = vpop.xlane.xlu0 %4304 }
 0x8d3   :  { %v4332_v63 = vsub.f32 %v10864_v51, %v4308_v30  ;;  %v4331_v14 = vsub.f32 %v10868_v61, %v4305_v43 }
 0x8d5   :  { %v4359_v33 = vmul.f32 1.442695, %v4332_v63  ;;  %v4357_v53 = vmul.f32 1.442695, %v4331_v14 }
 0x8d7   :  { %7917 = vpow2.f32 %v4359_v33 }
 0x8d8   :  { %7919 = vpow2.f32 %v4357_v53 }
 0x8d9   :  { %v10950_v55 = vpop.eup %7913 }
 0x8da   :  { %v10952_v12 = vpop.eup %7915  ;;  %v4314_v7 = vpop.xlane.xlu1 %4313  ;;  %v4396_v6 = vsel %vm4272_vm4, %v10950_v55, 0.0 }
 0x8db   :  { %v4311_v24 = vpop.xlane.xlu0 %4310  ;;  %v4334_v0 = vsub.f32 %v10876_v36, %v4314_v7  ;;  %4397 = vadd.xlane.f32.xlu1 %v4396_v6  ;;  %v4393_v61 = vsel %vm4272_vm4, %v10952_v12, 0.0 }
 0x8dc   :  { %v4333_v62 = vsub.f32 %v10880_v5, %v4311_v24  ;;  %4394 = vadd.xlane.f32.xlu0 %v4393_v61 }
 0x8dd   :  { %v4363_v51 = vmul.f32 1.442695, %v4334_v0 }
 0x8de   :  { %v4361_v34 = vmul.f32 1.442695, %v4333_v62 }
 0x8df   :  { %7921 = vpow2.f32 %v4363_v51 }
 0x8e0   :  { %7923 = vpow2.f32 %v4361_v34 }
 0x8e1   :  { %v10960_v8 = vpop.eup %7917 }
 0x8e2   :  { %v10962_v37 = vpop.eup %7919  ;;  %v4320_v23 = vpop.xlane.xlu1 %4319  ;;  %v4402_v36 = vsel %vm4272_vm4, %v10960_v8, 0.0 }
 0x8e3   :  { %v4317_v42 = vpop.xlane.xlu0 %4316  ;;  %v4336_v5 = vsub.f32 %v10889_v60, %v4320_v23  ;;  %4403 = vadd.xlane.f32.xlu1 %v4402_v36  ;;  %v4399_v43 = vsel %vm4272_vm4, %v10962_v37, 0.0  ;;  %v4467_v23 = vpack.c.bf16 %v10709_v45, %v10709_v45  ;;  %v11767_v45 = vpack.i.bf16 %v10741_v27, %v10737_v44 }
 0x8e4   :  { %v4335_v30 = vsub.f32 %v10893_v32, %v4317_v42  ;;  %4400 = vadd.xlane.f32.xlu0 %v4399_v43  ;;  %v11766_v43 = vmov 0.0  }
 0x8e5   :  { %v4367_v14 = vmul.f32 1.442695, %v4336_v5 }
 0x8e6   :  { %v4365_v63 = vmul.f32 1.442695, %v4335_v30  ;;  %v4578_v30 = vsel %vm4484_vm2, %v4467_v23, 0  ;;  %v4470_v23 = vpack.c.bf16 %v10741_v27, %v10741_v27 }
 0x8e8   :  { %7925 = vpow2.f32 %v4365_v63 }
 0x8e9   :  { %v10970_v33 = vpop.eup %7921  ;;  %7927 = vpow2.f32 %v4367_v14  ;;  %v4468_v14 = vpack.c.bf16 %v10717_v39, %v10717_v39 }
 0x8ea   :  { %v10972_v53 = vpop.eup %7923  ;;  %v4408_v7 = vsel %vm4272_vm4, %v10970_v33, 0.0 }
 0x8eb   :  { %4409 = vadd.xlane.f32.xlu1 %v4408_v7  ;;  %v4405_v60 = vsel %vm4272_vm4, %v10972_v53, 0.0 }
 0x8ec   :  { %4406 = vadd.xlane.f32.xlu0 %v4405_v60 }
 0x8ef   :  { %v4371_v32 = vpop.xlane.xlu0 %4370 }
 0x8f0   :  { %7929 = vrcp.f32 %v4371_v32  ;;  %v4469_v32 = vpack.c.bf16 %v10737_v44, %v10737_v44  ;;  %v11768_v44 = vpack.i.bf16 %v10739_v52, %v10735_v28 }
 0x8f2   :  { %v10978_v24 = vpop.eup %7925  ;;  %v4670_v39 = vsel %vm4484_vm2, %v4469_v32, 0 }
 0x8f3   :  { %v4411_v6 = vsel %vm4272_vm4, %v10978_v24, 0.0  ;;  %v10982_v0 = vpop.eup %7927 }
 0x8f4   :  { %4412 = vadd.xlane.f32.xlu1 %v4411_v6  ;;  %v4414_v61 = vsel %vm4272_vm4, %v10982_v0, 0.0 }
 0x8f7   :  { %v4374_v62 = vpop.xlane.xlu1 %4373 }
 0x8f8   :  { %7931 = vrcp.f32 %v4374_v62  ;;  %4415 = vadd.xlane.f32.xlu1 %v4414_v61  ;;  %v4377_v51 = vpop.xlane.xlu0 %4376 }
 0x8f9   :  { %7933 = vrcp.f32 %v4377_v51  ;;  %v4624_v51 = vsel %vm4484_vm2, %v4468_v14, 0 }
 0x8fa   :  { %v7930_v34 = vpop.eup %7929 }
 0x8fb   :  { %v4433_v42 = vmul.f32 %v7930_v34, %v10901_v20 }
 0x8fd   :  { %v4449_v36 = vpack.c.bf16 %v4433_v42, %v4433_v42 }
 0x8ff   :  { %v4380_v5 = vpop.xlane.xlu1 %4379  ;;  %7560 = vmatmul.mubr.msk.bf16.vlgmr.msra.gmra.mrb[68].mxu0 %vm4272_vm4, %v4449_v36 }
 0x900   :  { %7935 = vrcp.f32 %v4380_v5  ;;  %7570 = vmatpush3.bf16.msra.mxu0 %v4578_v30  ;;  %7571 = vmatprep.mubr.msk.bf16.mxu0 %vm8528_vm0, %v11766_v43  ;;  %v4471_v30 = vpack.c.bf16 %v10735_v28, %v10735_v28 }
 0x901   :  { %7581 = vmatprep.subr.bf16.mxu0 %v11766_v43 }
 0x902   :  { %v7932_v63 = vpop.eup %7931  ;;  %7768 = vrot.lane.b32.xlu0 %v11767_v45, %s8512_s1  ;;  %v4716_v45 = vsel %vm4484_vm2, %v4470_v23, 0 }
 0x903   :  { %v7934_v20 = vpop.eup %7933  ;;  %v4434_v7 = vmul.f32 %v7932_v63, %v10907_v40  ;;  %v4383_v60 = vpop.xlane.xlu0 %4382 }
 0x904   :  { %v4435_v6 = vmul.f32 %v7934_v20, %v10909_v22  ;;  %7937 = vrcp.f32 %v4383_v60  ;;  %v4762_v60 = vsel %vm4484_vm2, %v4471_v30, 0 }
 0x905   :  { %v4450_v62 = vpack.c.bf16 %v4434_v7, %v4434_v7  ;;  %v4472_v7 = vpack.c.bf16 %v10739_v52, %v10739_v52 }
 0x906   :  { %v4451_v61 = vpack.c.bf16 %v4435_v6, %v4435_v6 }
 0x907   :  { %7566 = vmatmul.mubr.msk.bf16.vlgmr.msra.gmra.mrb[36].mxu1 %vm4272_vm4, %v4450_v62  ;;  %v4386_v34 = vpop.xlane.xlu1 %4385  ;;  %v4808_v52 = vsel %vm4484_vm2, %v4472_v7, 0 }
 0x908   :  { %7576 = vmatpush3.bf16.msra.mxu1 %v4624_v51  ;;  %7939 = vrcp.f32 %v4386_v34  ;;  %7572 = vmatmul.mubr.msk.bf16.vlgmr.msra.gmra.mrb[72].mxu0 %vm4272_vm4, %v4451_v61  ;;  %v4389_v40 = vpop.xlane.xlu0 %4388 }
 0x909   :  { %7582 = vmatpush3.bf16.msra.mxu0 %v4670_v39  ;;  %7941 = vrcp.f32 %v4389_v40  ;;  %7773 = vrot.lane.b32.xlu1 %v11768_v44, %s8512_s1 }
 0x90a   :  { %v7936_v22 = vpop.eup %7935  ;;  %7577 = vmatprep.mubr.msk.bf16.mxu1 %vm8528_vm0, %v11766_v43  ;;  %7587 = vmatprep.subr.bf16.mxu1 %v11766_v43 }
 0x90b   :  { %v4436_v42 = vmul.f32 %v7936_v22, %v10917_v15  ;;  %7583 = vmatprep.mubr.msk.bf16.mxu0 %vm8528_vm0, %v11766_v43  ;;  %7593 = vmatprep.subr.bf16.mxu0 %v11766_v43 }
 0x90c   :  { %v7759_v20 = vpop.permute.xlu0 %7758 }
 0x90d   :  { %v4452_v36 = vpack.c.bf16 %v4436_v42, %v4436_v42  ;;  %v7761_v34 = vunpack.i.h.bf16 %v7759_v20 }
 0x90e   :  { %v7938_v5 = vpop.eup %7937 }
 0x90f   :  { %v4437_v63 = vmul.f32 %v7938_v5, %v10921_v13  ;;  %7578 = vmatmul.mubr.msk.bf16.vlgmr.msra.gmra.mrb[40].mxu1 %vm4272_vm4, %v4452_v36  ;;  %v7760_v13 = vunpack.i.l.bf16 %v7759_v20  ;;  %v4474_v40 = vpack.c.bf16 %v7761_v34, %v7761_v34 }
 0x910   :  { %7588 = vmatpush3.bf16.msra.mxu1 %v4716_v45  ;;  %7589 = vmatprep.mubr.msk.bf16.mxu1 %vm8528_vm0, %v11766_v43 }
 0x911   :  { %v4453_v27 = vpack.c.bf16 %v4437_v63, %v4437_v63  ;;  %7599 = vmatprep.subr.bf16.mxu1 %v11766_v43  ;;  %v4473_v62 = vpack.c.bf16 %v7760_v13, %v7760_v13  ;;  %v4900_v23 = vsel %vm4484_vm2, %v4474_v40, 0 }
 0x912   :  { %v7940_v15 = vpop.eup %7939 }
 0x913   :  { %v7942_v14 = vpop.eup %7941  ;;  %v4438_v28 = vmul.f32 %v7940_v15, %v10925_v16  ;;  %7584 = vmatmul.mubr.msk.bf16.vlgmr.msra.gmra.mrb[76].mxu0 %vm4272_vm4, %v4453_v27  ;;  %v4854_v61 = vsel %vm4484_vm2, %v4473_v62, 0 }
 0x914   :  { %7594 = vmatpush3.bf16.msra.mxu0 %v4762_v60  ;;  %7595 = vmatprep.mubr.msk.bf16.mxu0 %vm8528_vm0, %v11766_v43  ;;  %v4439_v32 = vmul.f32 %v7942_v14, %v10927_v38  ;;  %v7764_v38 = vpop.permute.xlu1 %7763 }
 0x915   :  { %v4454_v6 = vpack.c.bf16 %v4438_v28, %v4438_v28  ;;  %7605 = vmatprep.subr.bf16.mxu0 %v11766_v43  ;;  %v7766_v5 = vunpack.i.h.bf16 %v7764_v38  ;;  %v7765_v63 = vunpack.i.l.bf16 %v7764_v38 }
 0x916   :  { %v4455_v16 = vpack.c.bf16 %v4439_v32, %v4439_v32 }
 0x917   :  { %7590 = vmatmul.mubr.msk.bf16.vlgmr.msra.gmra.mrb[44].mxu1 %vm4272_vm4, %v4454_v6  ;;  %v4476_v27 = vpack.c.bf16 %v7766_v5, %v7766_v5  ;;  %v4475_v14 = vpack.c.bf16 %v7765_v63, %v7765_v63 }
 0x918   :  { %7600 = vmatpush3.bf16.msra.mxu1 %v4808_v52  ;;  %7601 = vmatprep.mubr.msk.bf16.mxu1 %vm8528_vm0, %v11766_v43 }
 0x919   :  { %7611 = vmatprep.subr.bf16.mxu1 %v11766_v43  ;;  %v4992_v32 = vsel %vm4484_vm2, %v4476_v27, 0  ;;  %v4946_v62 = vsel %vm4484_vm2, %v4475_v14, 0 }
 0x91b   :  { %7596 = vmatmul.mubr.msk.bf16.vlgmr.msra.gmra.mrb[80].mxu0 %vm4272_vm4, %v4455_v16 }
 0x91c   :  { %7606 = vmatpush3.bf16.msra.mxu0 %v4854_v61  ;;  %7607 = vmatprep.mubr.msk.bf16.mxu0 %vm8528_vm0, %v11766_v43 }
 0x91d   :  { %7617 = vmatprep.subr.bf16.mxu0 %v11766_v43 }
 0x93c   :  { %v4392_v51 = vpop.xlane.xlu1 %4391 }
 0x93d   :  { %7943 = vrcp.f32 %v4392_v51 }
 0x947   :  { %v7944_v39 = vpop.eup %7943 }
 0x948   :  { %v4440_v44 = vmul.f32 %v7944_v39, %v10942_v21 }
 0x94a   :  { %v4456_v22 = vpack.c.bf16 %v4440_v44, %v4440_v44 }
 0x94c   :  { %7602 = vmatmul.mubr.msk.bf16.vlgmr.msra.gmra.mrb[48].mxu1 %vm4272_vm4, %v4456_v22 }
 0x94d   :  { %7612 = vmatpush3.bf16.msra.mxu1 %v4900_v23  ;;  %7613 = vmatprep.mubr.msk.bf16.mxu1 %vm8528_vm0, %v11766_v43 }
 0x94e   :  { %7623 = vmatprep.subr.bf16.mxu1 %v11766_v43 }
 0x968   :  { %v4398_v42 = vpop.xlane.xlu1 %4397 }
 0x969   :  { %7945 = vrcp.f32 %v4398_v42  ;;  %v4395_v36 = vpop.xlane.xlu0 %4394 }
 0x96a   :  { %7947 = vrcp.f32 %v4395_v36 }
 0x970   :  { %v4404_v30 = vpop.xlane.xlu1 %4403 }
 0x971   :  { %7949 = vrcp.f32 %v4404_v30  ;;  %v4401_v21 = vpop.xlane.xlu0 %4400 }
 0x972   :  { %7951 = vrcp.f32 %v4401_v21 }
 0x973   :  { %v7946_v45 = vpop.eup %7945 }
 0x974   :  { %v7948_v20 = vpop.eup %7947  ;;  %v4442_v15 = vmul.f32 %v7946_v45, %v10950_v55 }
 0x975   :  { %v4441_v7 = vmul.f32 %v7948_v20, %v10952_v12 }
 0x976   :  { %v4458_v28 = vpack.c.bf16 %v4442_v15, %v4442_v15 }
 0x977   :  { %v4457_v13 = vpack.c.bf16 %v4441_v7, %v4441_v7 }
 0x978   :  { %v4410_v60 = vpop.xlane.xlu1 %4409  ;;  %7614 = vmatmul.mubr.msk.bf16.vlgmr.msra.gmra.mrb[52].mxu1 %vm4272_vm4, %v4458_v28 }
 0x979   :  { %7953 = vrcp.f32 %v4410_v60  ;;  %v4407_v6 = vpop.xlane.xlu0 %4406  ;;  %7608 = vmatmul.mubr.msk.bf16.vlgmr.msra.gmra.mrb[84].mxu0 %vm4272_vm4, %v4457_v13  ;;  %7624 = vmatpush3.bf16.msra.mxu1 %v4992_v32 }
 0x97a   :  { %7955 = vrcp.f32 %v4407_v6  ;;  %7618 = vmatpush3.bf16.msra.mxu0 %v4946_v62  ;;  %7619 = vmatprep.mubr.msk.bf16.mxu0 %vm8528_vm0, %v11766_v43 }
 0x97b   :  { %v7950_v55 = vpop.eup %7949  ;;  %7625 = vmatprep.mubr.msk.bf16.mxu1 %vm8528_vm0, %v11766_v43  ;;  %7629 = vmatprep.subr.bf16.mxu0 %v11766_v43 }
 0x97c   :  { %v7952_v12 = vpop.eup %7951  ;;  %v4444_v52 = vmul.f32 %v7950_v55, %v10960_v8  ;;  %7635 = vmatprep.subr.bf16.mxu1 %v11766_v43 }
 0x97d   :  { %v4443_v16 = vmul.f32 %v7952_v12, %v10962_v37  ;;  %v7769_v61 = vpop.permute.xlu0 %7768 }
 0x97e   :  { %v7771_v38 = vunpack.i.h.bf16 %v7769_v61  ;;  %v7770_v51 = vunpack.i.l.bf16 %v7769_v61  ;;  %v4460_v34 = vpack.c.bf16 %v4444_v52, %v4444_v52 }
 0x97f   :  { %v4459_v39 = vpack.c.bf16 %v4443_v16, %v4443_v16 }
 0x980   :  { %v4478_v40 = vpack.c.bf16 %v7771_v38, %v7771_v38  ;;  %v4477_v44 = vpack.c.bf16 %v7770_v51, %v7770_v51  ;;  %7626 = vmatmul.mubr.msk.bf16.vlgmr.msra.gmra.mrb[56].mxu1 %vm4272_vm4, %v4460_v34 }
 0x981   :  { %v4413_v22 = vpop.xlane.xlu1 %4412  ;;  %7620 = vmatmul.mubr.msk.bf16.vlgmr.msra.gmra.mrb[88].mxu0 %vm4272_vm4, %v4459_v39  ;;  %7637 = vmatprep.mubr.msk.bf16.mxu1 %vm8528_vm0, %v11766_v43 }
 0x982   :  { %7957 = vrcp.f32 %v4413_v22  ;;  %v5038_v8 = vsel %vm4484_vm2, %v4477_v44, 0  ;;  %v5084_v37 = vsel %vm4484_vm2, %v4478_v40, 0  ;;  %7631 = vmatprep.mubr.msk.bf16.mxu0 %vm8528_vm0, %v11766_v43 }
 0x983   :  { %v7954_v23 = vpop.eup %7953  ;;  %7630 = vmatpush3.bf16.msra.mxu0 %v5038_v8  ;;  %7636 = vmatpush3.bf16.msra.mxu1 %v5084_v37 }
 0x984   :  { %v7956_v42 = vpop.eup %7955  ;;  %v4446_v36 = vmul.f32 %v7954_v23, %v10970_v33  ;;  %7641 = vmatprep.subr.bf16.mxu0 %v11766_v43  ;;  %7647 = vmatprep.subr.bf16.mxu1 %v11766_v43 }
 0x985   :  { %v4445_v5 = vmul.f32 %v7956_v42, %v10972_v53  ;;  %v4416_v30 = vpop.xlane.xlu1 %4415 }
 0x986   :  { %7959 = vrcp.f32 %v4416_v30  ;;  %v4462_v63 = vpack.c.bf16 %v4446_v36, %v4446_v36  ;;  %v7857_v30 = vld [vmem:[#allocation18] sm:$0xff]  }
 0x987   :  { %v4461_v21 = vpack.c.bf16 %v4445_v5, %v4445_v5 }
 0x988   :  { %7638 = vmatmul.mubr.msk.bf16.vlgmr.msra.gmra.mrb[60].mxu1 %vm4272_vm4, %v4462_v63  ;;  %v7858_v63 = vld [vmem:[#allocation18 + $0x8] sm:$0xff]  }
 0x989   :  { %v7774_v45 = vpop.permute.xlu1 %7773  ;;  %7632 = vmatmul.mubr.msk.bf16.vlgmr.msra.gmra.mrb[92].mxu0 %vm4272_vm4, %v4461_v21  ;;  %7649 = vmatprep.mubr.msk.bf16.mxu1 %vm8528_vm0, %v11766_v43 }
 0x98a   :  { %v7776_v20 = vunpack.i.h.bf16 %v7774_v45  ;;  %v7775_v33 = vunpack.i.l.bf16 %v7774_v45  ;;  %7643 = vmatprep.mubr.msk.bf16.mxu0 %vm8528_vm0, %v11766_v43 }
 0x98c   :  { %v7958_v27 = vpop.eup %7957  ;;  %v4480_v15 = vpack.c.bf16 %v7776_v20, %v7776_v20  ;;  %v4479_v53 = vpack.c.bf16 %v7775_v33, %v7775_v33 }
 0x98d   :  { %v4447_v14 = vmul.f32 %v7958_v27, %v10978_v24  ;;  %v7859_v27 = vld [vmem:[#allocation18 + $0x10] sm:$0xff]  }
 0x98e   :  { %v5130_v7 = vsel %vm4484_vm2, %v4479_v53, 0  ;;  %v5176_v28 = vsel %vm4484_vm2, %v4480_v15, 0 }
 0x98f   :  { %7642 = vmatpush3.bf16.msra.mxu0 %v5130_v7  ;;  %7648 = vmatpush3.bf16.msra.mxu1 %v5176_v28  ;;  %v4463_v13 = vpack.c.bf16 %v4447_v14, %v4447_v14  ;;  %v7860_v14 = vld [vmem:[#allocation18 + $0x18] sm:$0xff]   ;;  %v7861_v7 = vld [vmem:[#allocation18 + $0x20] sm:$0xff]  }
 0x990   :  { %v7960_v60 = vpop.eup %7959  ;;  %7653 = vmatprep.subr.bf16.mxu0 %v7857_v30 }
 0x991   :  { %v4448_v32 = vmul.f32 %v7960_v60, %v10982_v0 }
 0x992   :  { %7644 = vmatmul.mubr.msk.bf16.vlgmr.msra.gmra.mrb[96].mxu0 %vm4272_vm4, %v4463_v13 }
 0x993   :  { %v4464_v6 = vpack.c.bf16 %v4448_v32, %v4448_v32  ;;  %7654 = vmatpush3.bf16.msra.mxu0 %v7857_v30 }
 0x994   :  { %7655 = vmatprep.subr.bf16.mxu0 %v7858_v63 }
 0x995   :  { %7650 = vmatmul.mubr.msk.bf16.vlgmr.msra.gmra.mrb[64].mxu1 %vm4272_vm4, %v4464_v6  ;;  %v7862_v6 = vld [vmem:[#allocation18 + $0x28] sm:$0xff]  }
 0x997   :  { %7656 = vmatpush3.bf16.msra.mxu0 %v7858_v63 }
 0x998   :  { %7657 = vmatprep.subr.bf16.mxu0 %v7859_v27 }
 0x99b   :  { %7658 = vmatpush3.bf16.msra.mxu0 %v7859_v27 }
 0x99c   :  { %7659 = vmatprep.subr.bf16.mxu0 %v7860_v14 }
 0x99f   :  { %7660 = vmatpush3.bf16.msra.mxu0 %v7860_v14 }
 0x9a0   :  { %7661 = vmatprep.subr.bf16.mxu0 %v7861_v7 }
 0x9a3   :  { %7662 = vmatpush3.bf16.msra.mxu0 %v7861_v7 }
 0x9a4   :  { %7663 = vmatprep.subr.bf16.mxu0 %v7862_v6 }
 0x9a7   :  { %7664 = vmatpush3.bf16.msra.mxu0 %v7862_v6 }
 0x9d2   :  { %v11092_v43 = vpop.f32.mrb[68].mxu0 }
 0x9d3   :  { %v7561_v62 = vpop.f32.mrb[69].mxu0 }
 0x9d4   :  { %v4525_v55 = vpop.f32.mrb[70].mxu0  ;;  %v7863_v62 = vld [vmem:[#allocation18 + $0x30] sm:$0xff]  }
 0x9d5   :  { %v7562_v24 = vpop.f32.mrb[71].mxu0  ;;  %7665 = vmatprep.subr.bf16.mxu0 %v7863_v62  ;;  %v7864_v55 = vld [vmem:[#allocation18 + $0x38] sm:$0xff]  }
 0x9d6   :  { %7666 = vmatpush3.bf16.msra.mxu0 %v7863_v62 }
 0x9d7   :  { %7667 = vmatprep.subr.bf16.mxu0 %v7864_v55 }
 0x9da   :  { %v11094_v12 = vpop.f32.mrb[36].mxu1  ;;  %7668 = vmatpush3.bf16.msra.mxu0 %v7864_v55 }
 0x9db   :  { %v11096_v52 = vpop.f32.mrb[72].mxu0  ;;  %v7567_v16 = vpop.f32.mrb[37].mxu1 }
 0x9dc   :  { %v7573_v61 = vpop.f32.mrb[73].mxu0  ;;  %v4571_v38 = vpop.f32.mrb[38].mxu1 }
 0x9dd   :  { %v4617_v51 = vpop.f32.mrb[74].mxu0  ;;  %v7568_v34 = vpop.f32.mrb[39].mxu1 }
 0x9de   :  { %v7574_v0 = vpop.f32.mrb[75].mxu0 }
 0x9e2   :  { %v11098_v39 = vpop.f32.mrb[40].mxu1 }
 0x9e3   :  { %v7579_v40 = vpop.f32.mrb[41].mxu1 }
 0x9e4   :  { %v4663_v44 = vpop.f32.mrb[42].mxu1 }
 0x9e5   :  { %v7580_v22 = vpop.f32.mrb[43].mxu1 }
 0x9e6   :  { %v11100_v8 = vpop.f32.mrb[76].mxu0 }
 0x9e7   :  { %v7585_v37 = vpop.f32.mrb[77].mxu0 }
 0x9e8   :  { %v4709_v23 = vpop.f32.mrb[78].mxu0 }
 0x9e9   :  { %v7586_v42 = vpop.f32.mrb[79].mxu0 }
 0x9ea   :  { %v11102_v36 = vpop.f32.mrb[44].mxu1 }
 0x9eb   :  { %v7591_v5 = vpop.f32.mrb[45].mxu1 }
 0x9ec   :  { %v4755_v21 = vpop.f32.mrb[46].mxu1 }
 0x9ed   :  { %v7592_v45 = vpop.f32.mrb[47].mxu1 }
 0x9ee   :  { %v11104_v20 = vpop.f32.mrb[80].mxu0 }
 0x9ef   :  { %v7597_v33 = vpop.f32.mrb[81].mxu0 }
 0x9f0   :  { %v4801_v15 = vpop.f32.mrb[82].mxu0 }
 0x9f1   :  { %v7598_v53 = vpop.f32.mrb[83].mxu0 }
 0xa1f   :  { %v11106_v28 = vpop.f32.mrb[48].mxu1 }
 0xa20   :  { %v7603_v13 = vpop.f32.mrb[49].mxu1 }
 0xa21   :  { %v4847_v60 = vpop.f32.mrb[50].mxu1 }
 0xa22   :  { %v7604_v32 = vpop.f32.mrb[51].mxu1 }
 0xa4b   :  { %v4936_v24 = vpop.f32.mrb[52].mxu1 }
 0xa4c   :  { %v4890_v16 = vpop.f32.mrb[84].mxu0  ;;  %v7615_v61 = vpop.f32.mrb[53].mxu1 }
 0xa4d   :  { %v7777_v38 = vpack.i.bf16 %v4936_v24, %v4890_v16  ;;  %v7609_v51 = vpop.f32.mrb[85].mxu0  ;;  %v4939_v34 = vpop.f32.mrb[54].mxu1 }
 0xa4e   :  { %v4893_v0 = vpop.f32.mrb[86].mxu0  ;;  %v7616_v40 = vpop.f32.mrb[55].mxu1 }
 0xa4f   :  { %7778 = vrot.lane.b32.xlu0 %v7777_v38, %s8512_s1  ;;  %v7610_v44 = vpop.f32.mrb[87].mxu0 }
 0xa53   :  { %v5028_v22 = vpop.f32.mrb[56].mxu1 }
 0xa54   :  { %v4982_v37 = vpop.f32.mrb[88].mxu0  ;;  %v7627_v23 = vpop.f32.mrb[57].mxu1 }
 0xa55   :  { %v7782_v42 = vpack.i.bf16 %v5028_v22, %v4982_v37  ;;  %v7621_v5 = vpop.f32.mrb[89].mxu0  ;;  %v5031_v30 = vpop.f32.mrb[58].mxu1 }
 0xa56   :  { %v4985_v63 = vpop.f32.mrb[90].mxu0  ;;  %v7628_v21 = vpop.f32.mrb[59].mxu1 }
 0xa57   :  { %7783 = vrot.lane.b32.xlu1 %v7782_v42, %s8512_s1  ;;  %v7622_v45 = vpop.f32.mrb[91].mxu0 }
 0xa5b   :  { %v5120_v33 = vpop.f32.mrb[60].mxu1 }
 0xa5c   :  { %v5074_v27 = vpop.f32.mrb[92].mxu0  ;;  %v7639_v15 = vpop.f32.mrb[61].mxu1 }
 0xa5d   :  { %v7787_v53 = vpack.i.bf16 %v5120_v33, %v5074_v27  ;;  %v7633_v14 = vpop.f32.mrb[93].mxu0  ;;  %v5123_v7 = vpop.f32.mrb[62].mxu1 }
 0xa5e   :  { %v5077_v13 = vpop.f32.mrb[94].mxu0  ;;  %v7640_v60 = vpop.f32.mrb[63].mxu1 }
 0xa5f   :  { %7788 = vrot.lane.b32.xlu0 %v7787_v53, %s8512_s1  ;;  %v7634_v32 = vpop.f32.mrb[95].mxu0 }
 0xa65   :  { %v5166_v6 = vpop.f32.mrb[96].mxu0 }
 0xa66   :  { %v7645_v62 = vpop.f32.mrb[97].mxu0 }
 0xa67   :  { %v5169_v55 = vpop.f32.mrb[98].mxu0 }
 0xa68   :  { %v7646_v24 = vpop.f32.mrb[99].mxu0  ;;  %v5212_v16 = vpop.f32.mrb[64].mxu1 }
 0xa69   :  { %v7792_v61 = vpack.i.bf16 %v5212_v16, %v5166_v6  ;;  %v7651_v38 = vpop.f32.mrb[65].mxu1  ;;  %v7187_v6 = vld [vmem:[#allocation20] ss:$0 sm:$0xff] }
 0xa6a   :  { %v5215_v51 = vpop.f32.mrb[66].mxu1 }
 0xa6b   :  { %v7652_v34 = vpop.f32.mrb[67].mxu1  ;;  %7793 = vrot.lane.b32.xlu1 %v7792_v61, %s8512_s1 }
 0xac1   :  { %v7779_v0 = vpop.permute.xlu0 %7778 }
 0xac2   :  { %v7781_v40 = vunpack.i.h.bf16 %v7779_v0  ;;  %v7780_v44 = vunpack.i.l.bf16 %v7779_v0 }
 0xac4   :  { %v5250_v22 = vsel %vm3500_vm1, %v11092_v43, %v7780_v44  ;;  %v5251_v37 = vsel %vm3500_vm1, %v11094_v12, %v7781_v40 }
 0xac5   :  { %v5258_v23 = vpack.c.bf16 %v5251_v37, %v5250_v22 }
 0xac7   :  { %7669 = vmatprep.mubr.bf16.mxu0 %v5258_v23 }
 0xac9   :  { %v7784_v42 = vpop.permute.xlu1 %7783 }
 0xaca   :  { %v7786_v5 = vunpack.i.h.bf16 %v7784_v42  ;;  %v7785_v30 = vunpack.i.l.bf16 %v7784_v42 }
 0xacc   :  { %v5253_v63 = vsel %vm3500_vm1, %v11098_v39, %v7786_v5  ;;  %v5252_v21 = vsel %vm3500_vm1, %v11096_v52, %v7785_v30 }
 0xacd   :  { %v5259_v45 = vpack.c.bf16 %v5253_v63, %v5252_v21 }
 0xacf   :  { %7670 = vmatmul.mubr.bf16.vlgmr.msra.gmra.mrb[100].mxu0 %v5259_v45 }
 0xad1   :  { %v7789_v33 = vpop.permute.xlu0 %7788 }
 0xad2   :  { %v7791_v27 = vunpack.i.h.bf16 %v7789_v33  ;;  %v7790_v15 = vunpack.i.l.bf16 %v7789_v33 }
 0xad4   :  { %v5254_v43 = vsel %vm3500_vm1, %v11100_v8, %v7790_v15  ;;  %v5255_v12 = vsel %vm3500_vm1, %v11102_v36, %v7791_v27 }
 0xad5   :  { %v5260_v53 = vpack.c.bf16 %v5255_v12, %v5254_v43 }
 0xad7   :  { %7673 = vmatprep.mubr.bf16.mxu0 %v5260_v53 }
 0xadd   :  { %v7794_v14 = vpop.permute.xlu1 %7793 }
 0xade   :  { %v7796_v7 = vunpack.i.h.bf16 %v7794_v14  ;;  %v7795_v13 = vunpack.i.l.bf16 %v7794_v14 }
 0xae0   :  { %v5256_v39 = vsel %vm3500_vm1, %v11104_v20, %v7795_v13  ;;  %v5257_v52 = vsel %vm3500_vm1, %v11106_v28, %v7796_v7 }
 0xae1   :  { %v5261_v60 = vpack.c.bf16 %v5257_v52, %v5256_v39 }
 0xae3   :  { %7674 = vmatmul.mubr.bf16.gmra.mrb[104].mxu0 %v5261_v60 }
 0xba2   :  { %v7671_v32 = vpop.f32.mrb[100].mxu0 }
 0xba3   :  { %v5393_v8 = vadd.f32 %v7671_v32, %v10475_v50  ;;  %v5360_v62 = vpop.f32.mrb[101].mxu0 }
 0xba4   :  { %v7672_v55 = vpop.f32.mrb[102].mxu0  ;;  %v5391_v36 = vadd.f32 %v5360_v62, %v10468_v46 }
 0xba5   :  { %v5363_v24 = vpop.f32.mrb[103].mxu0  ;;  %v11130_v16 = vadd.f32 %v7187_v6, %v5393_v8  ;;  %v5394_v28 = vadd.f32 %v7672_v55, %v10479_v25 }
 0xba6   :  { %v5392_v61 = vadd.f32 %v5363_v24, %v10471_v47  ;;  %v11137_v38 = vadd.f32 %v7187_v6, %v5391_v36 }
 0xba7   :  { %11769 = vst [vmem:[#allocation77_spill] sm:$0xff] %v11130_v16  ;;  %5420 = vadd.xlane.f32.xlu0 %v11130_v16  ;;  %v11141_v50 = vadd.f32 %v7187_v6, %v5394_v28 }
 0xba8   :  { %v11134_v20 = vadd.f32 %v7187_v6, %v5392_v61  ;;  %11771 = vst [vmem:[#allocation79_spill] sm:$0xff] %v11137_v38 }
 0xba9   :  { %11772 = vst [vmem:[#allocation80_spill] sm:$0xff] %v11141_v50 }
 0xbaa   :  { %11770 = vst [vmem:[#allocation78_spill] sm:$0xff] %v11134_v20  ;;  %5418 = vadd.xlane.f32.xlu1 %v11134_v20 }
 0xbab   :  { %5416 = vadd.xlane.f32.xlu0 %v11137_v38 }
 0xbaf   :  { %5422 = vadd.xlane.f32.xlu0 %v11141_v50 }
 0xbb6   :  { %v7675_v46 = vpop.f32.mrb[104].mxu0 }
 0xbb7   :  { %v5376_v51 = vpop.f32.mrb[105].mxu0  ;;  %v5397_v40 = vadd.f32 %v7675_v46, %v10492_v56 }
 0xbb8   :  { %v5395_v47 = vadd.f32 %v5376_v51, %v10484_v35  ;;  %v7676_v34 = vpop.f32.mrb[106].mxu0 }
 0xbb9   :  { %v5379_v0 = vpop.f32.mrb[107].mxu0  ;;  %v5398_v22 = vadd.f32 %v7676_v34, %v10495_v26  ;;  %v11154_v23 = vadd.f32 %v7187_v6, %v5397_v40 }
 0xbba   :  { %v5396_v25 = vadd.f32 %v5379_v0, %v10487_v48  ;;  %v11147_v44 = vadd.f32 %v7187_v6, %v5395_v47 }
 0xbbb   :  { %11775 = vst [vmem:[#allocation83_spill] sm:$0xff] %v11154_v23  ;;  %v11157_v35 = vadd.f32 %v7187_v6, %v5398_v22 }
 0xbbc   :  { %11773 = vst [vmem:[#allocation81_spill] sm:$0xff] %v11147_v44  ;;  %5424 = vadd.xlane.f32.xlu0 %v11147_v44  ;;  %v11151_v37 = vadd.f32 %v7187_v6, %v5396_v25 }
 0xbbd   :  { %11776 = vst [vmem:[#allocation84_spill] sm:$0xff] %v11157_v35 }
 0xbbe   :  { %11774 = vst [vmem:[#allocation82_spill] sm:$0xff] %v11151_v37  ;;  %5426 = vadd.xlane.f32.xlu1 %v11151_v37 }
 0xbc0   :  { %5428 = vadd.xlane.f32.xlu0 %v11154_v23 }
 0xbc2   :  { %5430 = vadd.xlane.f32.xlu1 %v11157_v35 }
 0xc34   :  { %v5421_v56 = vpop.xlane.xlu0 %5420 }
 0xc35   :  { %v5434_v48 = vmul.f32 0.0078125, %v5421_v56 }
 0xc37   :  { %v5442_v42 = vsub.f32 %v11130_v16, %v5434_v48  ;;  %v5419_v63 = vpop.xlane.xlu1 %5418 }
 0xc38   :  { %v5417_v5 = vpop.xlane.xlu0 %5416  ;;  %v5433_v33 = vmul.f32 0.0078125, %v5419_v63 }
 0xc39   :  { %v5432_v26 = vmul.f32 0.0078125, %v5417_v5  ;;  %v5450_v30 = vmul.f32 %v5442_v42, %v5442_v42 }
 0xc3a   :  { %v11164_v12 = vsub.f32 %v11134_v20, %v5433_v33 }
 0xc3b   :  { %v5440_v21 = vsub.f32 %v11137_v38, %v5432_v26  ;;  %5460 = vadd.xlane.f32.xlu0 %v5450_v30 }
 0xc3c   :  { %v5423_v45 = vpop.xlane.xlu0 %5422  ;;  %v5449_v14 = vmul.f32 %v11164_v12, %v11164_v12 }
 0xc3d   :  { %v5435_v27 = vmul.f32 0.0078125, %v5423_v45  ;;  %v5448_v15 = vmul.f32 %v5440_v21, %v5440_v21  ;;  %v7188_v45 = vld [vmem:[#allocation21] ss:$0 sm:$0xff] }
 0xc3f   :  { %v5443_v43 = vsub.f32 %v11141_v50, %v5435_v27  ;;  %5456 = vadd.xlane.f32.xlu0 %v5448_v15  ;;  %v7189_v15 = vld [vmem:[#allocation23] ss:$0 sm:$0xff] }
 0xc41   :  { %v5451_v53 = vmul.f32 %v5443_v43, %v5443_v43 }
 0xc43   :  { %5462 = vadd.xlane.f32.xlu1 %v5451_v53 }
 0xc47   :  { %5458 = vadd.xlane.f32.xlu1 %v5449_v14 }
 0xc49   :  { %v5425_v7 = vpop.xlane.xlu0 %5424 }
 0xc4a   :  { %v5436_v13 = vmul.f32 0.0078125, %v5425_v7 }
 0xc4b   :  { %v5427_v39 = vpop.xlane.xlu1 %5426 }
 0xc4c   :  { %v11169_v52 = vsub.f32 %v11147_v44, %v5436_v13  ;;  %v5437_v60 = vmul.f32 0.0078125, %v5427_v39 }
 0xc4d   :  { %v5429_v32 = vpop.xlane.xlu0 %5428 }
 0xc4e   :  { %v11172_v6 = vsub.f32 %v11151_v37, %v5437_v60  ;;  %v5438_v8 = vmul.f32 0.0078125, %v5429_v32  ;;  %v5452_v62 = vmul.f32 %v11169_v52, %v11169_v52 }
 0xc4f   :  { %v5431_v55 = vpop.xlane.xlu1 %5430 }
 0xc50   :  { %v11177_v36 = vsub.f32 %v11154_v23, %v5438_v8  ;;  %v5439_v24 = vmul.f32 0.0078125, %v5431_v55  ;;  %5464 = vadd.xlane.f32.xlu0 %v5452_v62  ;;  %v5453_v61 = vmul.f32 %v11172_v6, %v11172_v6 }
 0xc52   :  { %v11182_v28 = vsub.f32 %v11157_v35, %v5439_v24  ;;  %5466 = vadd.xlane.f32.xlu1 %v5453_v61  ;;  %v5454_v46 = vmul.f32 %v11177_v36, %v11177_v36 }
 0xc54   :  { %5468 = vadd.xlane.f32.xlu0 %v5454_v46  ;;  %v5455_v51 = vmul.f32 %v11182_v28, %v11182_v28 }
 0xc56   :  { %5470 = vadd.xlane.f32.xlu1 %v5455_v51 }
 0xcc8   :  { %v5461_v47 = vpop.xlane.xlu0 %5460 }
 0xcc9   :  { %v5474_v34 = vmul.f32 0.0078125, %v5461_v47 }
 0xccb   :  { %v5482_v0 = vadd.f32 1e-05, %v5474_v34 }
 0xccc   :  { %v5457_v40 = vpop.xlane.xlu0 %5456 }
 0xccd   :  { %7961 = vrsqrt.f32 %v5482_v0  ;;  %v5472_v25 = vmul.f32 0.0078125, %v5457_v40 }
 0xccf   :  { %v5480_v22 = vadd.f32 1e-05, %v5472_v25 }
 0xcd0   :  { %v5463_v56 = vpop.xlane.xlu1 %5462 }
 0xcd1   :  { %7963 = vrsqrt.f32 %v5480_v22  ;;  %v5475_v48 = vmul.f32 0.0078125, %v5463_v56 }
 0xcd3   :  { %v5483_v5 = vadd.f32 1e-05, %v5475_v48 }
 0xcd4   :  { %v5459_v26 = vpop.xlane.xlu1 %5458 }
 0xcd5   :  { %7965 = vrsqrt.f32 %v5483_v5  ;;  %v5473_v30 = vmul.f32 0.0078125, %v5459_v26 }
 0xcd7   :  { %v7962_v63 = vpop.eup %7961  ;;  %v5481_v33 = vadd.f32 1e-05, %v5473_v30 }
 0xcd8   :  { %v5498_v27 = vmul.f32 %v7962_v63, %v5442_v42 }
 0xcd9   :  { %7967 = vrsqrt.f32 %v5481_v33 }
 0xcda   :  { %v5512_v53 = vmul.f32 %v7188_v45, %v5498_v27 }
 0xcdb   :  { %v7964_v14 = vpop.eup %7963 }
 0xcdc   :  { %v11188_v7 = vadd.f32 %v7189_v15, %v5512_v53  ;;  %v5496_v13 = vmul.f32 %v7964_v14, %v5440_v21 }
 0xcdd   :  { %v5465_v39 = vpop.xlane.xlu0 %5464 }
 0xcde   :  { %v5510_v60 = vmul.f32 %v7188_v45, %v5496_v13  ;;  %v5476_v32 = vmul.f32 0.0078125, %v5465_v39 }
 0xcdf   :  { %v7966_v8 = vpop.eup %7965  ;;  %v5467_v62 = vpop.xlane.xlu1 %5466 }
 0xce0   :  { %v11190_v55 = vadd.f32 %v7189_v15, %v5510_v60  ;;  %v5499_v24 = vmul.f32 %v7966_v8, %v5443_v43  ;;  %v5484_v61 = vadd.f32 1e-05, %v5476_v32  ;;  %v5477_v46 = vmul.f32 0.0078125, %v5467_v62 }
 0xce1   :  { %v5469_v51 = vpop.xlane.xlu0 %5468 }
 0xce2   :  { %v5513_v47 = vmul.f32 %v7188_v45, %v5499_v24  ;;  %7969 = vrsqrt.f32 %v5484_v61  ;;  %v5485_v42 = vadd.f32 1e-05, %v5477_v46  ;;  %v5478_v34 = vmul.f32 0.0078125, %v5469_v51 }
 0xce3   :  { %v7968_v0 = vpop.eup %7967  ;;  %v5471_v40 = vpop.xlane.xlu1 %5470 }
 0xce4   :  { %v11192_v25 = vadd.f32 %v7189_v15, %v5513_v47  ;;  %v5497_v21 = vmul.f32 %v7968_v0, %v11164_v12  ;;  %7971 = vrsqrt.f32 %v5485_v42  ;;  %v5486_v22 = vadd.f32 1e-05, %v5478_v34 }
 0xce5   :  { %v5479_v56 = vmul.f32 0.0078125, %v5471_v40 }
 0xce6   :  { %v5511_v48 = vmul.f32 %v7188_v45, %v5497_v21  ;;  %7973 = vrsqrt.f32 %v5486_v22 }
 0xce7   :  { %v5487_v5 = vadd.f32 1e-05, %v5479_v56 }
 0xce8   :  { %v11195_v43 = vadd.f32 %v7189_v15, %v5511_v48 }
 0xce9   :  { %7975 = vrsqrt.f32 %v5487_v5 }
 0xcec   :  { %v7970_v26 = vpop.eup %7969 }
 0xced   :  { %v5500_v30 = vmul.f32 %v7970_v26, %v11169_v52 }
 0xcee   :  { %v7972_v63 = vpop.eup %7971 }
 0xcef   :  { %v5514_v33 = vmul.f32 %v7188_v45, %v5500_v30  ;;  %v5501_v27 = vmul.f32 %v7972_v63, %v11172_v6 }
 0xcf0   :  { %v7974_v53 = vpop.eup %7973 }
 0xcf1   :  { %v11199_v14 = vadd.f32 %v7189_v15, %v5514_v33  ;;  %v5515_v12 = vmul.f32 %v7188_v45, %v5501_v27  ;;  %v5502_v13 = vmul.f32 %v7974_v53, %v11177_v36 }
 0xcf3   :  { %v7976_v39 = vpop.eup %7975  ;;  %v11202_v60 = vadd.f32 %v7189_v15, %v5515_v12  ;;  %v5516_v32 = vmul.f32 %v7188_v45, %v5502_v13 }
 0xcf4   :  { %v5503_v8 = vmul.f32 %v7976_v39, %v11182_v28 }
 0xcf5   :  { %v11205_v62 = vadd.f32 %v7189_v15, %v5516_v32 }
 0xcf6   :  { %v5517_v24 = vmul.f32 %v7188_v45, %v5503_v8 }
 0xcf8   :  { %v11207_v52 = vadd.f32 %v7189_v15, %v5517_v24 }
 0xcf9   :  { %8499 = dma.done.wait [#allocation6], 4096 }
 0xcfa   :  { %8500 = vsyncadd [#allocation6], 4294963200  ;;  %5626 = vmatprep.mubr.bf16.mxu1 %v11758_v54  ;;  %5699 = vmatprep.mubr.bf16.mxu0 %v11758_v54  ;;  %v5541_v6 = vld [vmem:[#allocation2 + $0x8] sm:$0xff]  ;;  %v5543_v61 = vld [vmem:[#allocation2 + $0x18] sm:$0xff] }
 0xcfb   :  { %v5540_v36 = vld [vmem:[#allocation2] sm:$0xff]  ;;  %5594 = vmatprep.subr.bf16.mxu1 %v5541_v6  ;;  %5667 = vmatprep.subr.bf16.mxu0 %v5543_v61  ;;  %v5542_v46 = vld [vmem:[#allocation2 + $0x10] sm:$0xff]  ;;  %v5545_v51 = vld [vmem:[#allocation2 + $0x28] sm:$0xff] }
 0xcfc   :  { %v5547_v47 = vld [vmem:[#allocation2 + $0x38] sm:$0xff]  ;;  %5595 = vmatpush1.bf16.msra.mxu1 %v5540_v36  ;;  %5668 = vmatpush1.bf16.msra.mxu0 %v5542_v46  ;;  %v5544_v28 = vld [vmem:[#allocation2 + $0x20] sm:$0xff]  ;;  %v5546_v45 = vld [vmem:[#allocation2 + $0x30] sm:$0xff]  ;;  %v5536_v36 = vpack.c.bf16 %v11195_v43, %v11190_v55  ;;  %v5537_v46 = vpack.c.bf16 %v11192_v25, %v11188_v7  ;;  %v5538_v55 = vpack.c.bf16 %v11202_v60, %v11199_v14  ;;  %v11226_v25 = vsub.s32 3, %v10639_v31 }
 0xcfd   :  { %5596 = vmatprep.subr.bf16.mxu1 %v5545_v51  ;;  %5669 = vmatprep.subr.bf16.mxu0 %v5547_v47  ;;  %v5549_v15 = vld [vmem:[#allocation2 + $0x48] sm:$0xff]  ;;  %v5551_v42 = vld [vmem:[#allocation2 + $0x58] sm:$0xff]  ;;  %v5548_v34 = vld [vmem:[#allocation2 + $0x40] sm:$0xff]  ;;  %v5539_v43 = vpack.c.bf16 %v11207_v52, %v11205_v62 }
 0xcfe   :  { %v5550_v0 = vld [vmem:[#allocation2 + $0x50] sm:$0xff]  ;;  %v5553_v40 = vld [vmem:[#allocation2 + $0x68] sm:$0xff]  ;;  %v5555_v21 = vld [vmem:[#allocation2 + $0x78] sm:$0xff]  ;;  %11777 = vst [vmem:[#allocation85_spill] sm:$0xff] %v11226_v25 }
 0xcff   :  { %v5552_v22 = vld [vmem:[#allocation2 + $0x60] sm:$0xff]  ;;  %v5554_v56 = vld [vmem:[#allocation2 + $0x70] sm:$0xff]  ;;  %v5557_v48 = vld [vmem:[#allocation2 + $0x88] sm:$0xff] }
 0xd00   :  { %5597 = vmatpush1.bf16.msra.mxu1 %v5544_v28  ;;  %5670 = vmatpush1.bf16.msra.mxu0 %v5546_v45  ;;  %v5559_v5 = vld [vmem:[#allocation2 + $0x98] sm:$0xff]  ;;  %v5556_v26 = vld [vmem:[#allocation2 + $0x80] sm:$0xff]  ;;  %v5558_v30 = vld [vmem:[#allocation2 + $0x90] sm:$0xff] }
 0xd01   :  { %5598 = vmatprep.subr.bf16.mxu1 %v5549_v15  ;;  %5671 = vmatprep.subr.bf16.mxu0 %v5551_v42  ;;  %v5561_v63 = vld [vmem:[#allocation2 + $0xa8] sm:$0xff]  ;;  %v5563_v33 = vld [vmem:[#allocation2 + $0xb8] sm:$0xff]  ;;  %v5560_v27 = vld [vmem:[#allocation2 + $0xa0] sm:$0xff] }
 0xd02   :  { %v5562_v53 = vld [vmem:[#allocation2 + $0xb0] sm:$0xff]  ;;  %v5565_v12 = vld [vmem:[#allocation2 + $0xc8] sm:$0xff]  ;;  %v5567_v13 = vld [vmem:[#allocation2 + $0xd8] sm:$0xff] }
 0xd03   :  { %v5564_v39 = vld [vmem:[#allocation2 + $0xc0] sm:$0xff]  ;;  %v5566_v32 = vld [vmem:[#allocation2 + $0xd0] sm:$0xff]  ;;  %v5569_v8 = vld [vmem:[#allocation2 + $0xe8] sm:$0xff] }
 0xd04   :  { %5599 = vmatpush1.bf16.msra.mxu1 %v5548_v34  ;;  %5672 = vmatpush1.bf16.msra.mxu0 %v5550_v0  ;;  %v5571_v24 = vld [vmem:[#allocation2 + $0xf8] sm:$0xff]  ;;  %v5568_v6 = vld [vmem:[#allocation2 + $0xe0] sm:$0xff]  ;;  %v5570_v61 = vld [vmem:[#allocation2 + $0xf0] sm:$0xff] }
 0xd05   :  { %5600 = vmatprep.subr.bf16.mxu1 %v5553_v40  ;;  %5673 = vmatprep.subr.bf16.mxu0 %v5555_v21  ;;  %v5572_v7 = vld [vmem:[#allocation24] sm:$0xf] }
 0xd06   :  { %v11229_v51 = vrot.slane %v5572_v7, %v10647_v29  ;;  %v11232_v14 = vrot.slane %v5572_v7, %v10693_v41  ;;  %v11235_v60 = vrot.slane %v5572_v7, %v10642_v49  ;;  %v11238_v47 = vrot.slane %v5572_v7, %v11226_v25 }
 0xd08   :  { %5601 = vmatpush1.bf16.msra.mxu1 %v5552_v22  ;;  %5674 = vmatpush1.bf16.msra.mxu0 %v5554_v56 }
 0xd09   :  { %5602 = vmatprep.subr.bf16.mxu1 %v5557_v48  ;;  %5675 = vmatprep.subr.bf16.mxu0 %v5559_v5 }
 0xd0c   :  { %5603 = vmatpush1.bf16.msra.mxu1 %v5556_v26  ;;  %5676 = vmatpush1.bf16.msra.mxu0 %v5558_v30 }
 0xd0d   :  { %5604 = vmatprep.subr.bf16.mxu1 %v5561_v63  ;;  %5677 = vmatprep.subr.bf16.mxu0 %v5563_v33 }
 0xd10   :  { %5605 = vmatpush1.bf16.msra.mxu1 %v5560_v27  ;;  %5678 = vmatpush1.bf16.msra.mxu0 %v5562_v53 }
 0xd11   :  { %5606 = vmatprep.subr.bf16.mxu1 %v5565_v12  ;;  %5679 = vmatprep.subr.bf16.mxu0 %v5567_v13 }
 0xd14   :  { %5607 = vmatpush1.bf16.msra.mxu1 %v5564_v39  ;;  %5680 = vmatpush1.bf16.msra.mxu0 %v5566_v32 }
 0xd15   :  { %5608 = vmatprep.subr.bf16.mxu1 %v5569_v8  ;;  %5681 = vmatprep.subr.bf16.mxu0 %v5571_v24 }
 0xd18   :  { %5609 = vmatpush1.bf16.msra.mxu1 %v5568_v6  ;;  %5682 = vmatpush1.bf16.msra.mxu0 %v5570_v61 }
 0xd19   :  { %7357 = vmatprep.subr.bf16.mxu1 %v9073_v1  ;;  %7397 = vmatprep.subr.bf16.mxu0 %v9153_v17 }
 0xd1b   :  { %5627 = vmatmul.mubr.bf16.vlgmr.msra.gmra.mrb[68].mxu1 %v5536_v36  ;;  %5700 = vmatmul.mubr.bf16.vlgmr.msra.gmra.mrb[108].mxu0 %v5536_v36 }
 0xd1c   :  { %5636 = vmatprep.mubr.bf16.mxu1 %v11758_v54  ;;  %5709 = vmatprep.mubr.bf16.mxu0 %v11758_v54 }
 0xd23   :  { %5637 = vmatmul.mubr.bf16.gmra.mrb[72].mxu1 %v5537_v46  ;;  %5710 = vmatmul.mubr.bf16.gmra.mrb[112].mxu0 %v5537_v46 }
 0xd24   :  { %5646 = vmatprep.mubr.bf16.mxu1 %v11758_v54  ;;  %5719 = vmatprep.mubr.bf16.mxu0 %v11758_v54 }
 0xd2b   :  { %5647 = vmatmul.mubr.bf16.gmra.mrb[76].mxu1 %v5538_v55  ;;  %5720 = vmatmul.mubr.bf16.gmra.mrb[116].mxu0 %v5538_v55 }
 0xd2c   :  { %5656 = vmatprep.mubr.bf16.mxu1 %v11758_v54  ;;  %5729 = vmatprep.mubr.bf16.mxu0 %v11758_v54 }
 0xd33   :  { %5657 = vmatmul.mubr.bf16.gmra.mrb[80].mxu1 %v5539_v43  ;;  %5730 = vmatmul.mubr.bf16.gmra.mrb[120].mxu0 %v5539_v43 }
 0xdee   :  { %v5628_v28 = vpop.f32.mrb[68].mxu1  ;;  %v5701_v62 = vpop.f32.mrb[108].mxu0 }
 0xdef   :  { %v11241_v52 = vadd.f32 %v5628_v28, %v11229_v51  ;;  %v11244_v45 = vadd.f32 %v5701_v62, %v11232_v14  ;;  %v5630_v15 = vpop.f32.mrb[69].mxu1  ;;  %v5703_v42 = vpop.f32.mrb[109].mxu0 }
 0xdf0   :  { %v11247_v34 = vadd.f32 %v5630_v15, %v11235_v60  ;;  %v11250_v0 = vadd.f32 %v5703_v42, %v11238_v47  ;;  %v5632_v40 = vpop.f32.mrb[70].mxu1  ;;  %v5705_v21 = vpop.f32.mrb[110].mxu0 }
 0xdf1   :  { %v7190_v22 = vmul.f32 -1.702, %v11241_v52  ;;  %v7192_v56 = vmul.f32 -1.702, %v11244_v45  ;;  %v11255_v48 = vadd.f32 %v5632_v40, %v11229_v51  ;;  %v11258_v5 = vadd.f32 %v5705_v21, %v11232_v14  ;;  %v5634_v26 = vpop.f32.mrb[71].mxu1  ;;  %v5707_v30 = vpop.f32.mrb[111].mxu0 }
 0xdf2   :  { %v7191_v63 = vmul.f32 -1.702, %v11247_v34  ;;  %v7193_v33 = vmul.f32 -1.702, %v11250_v0  ;;  %v11263_v27 = vadd.f32 %v5634_v26, %v11235_v60  ;;  %v11266_v53 = vadd.f32 %v5707_v30, %v11238_v47 }
 0xdf3   :  { %v5804_v12 = vmul.f32 1.442695, %v7190_v22  ;;  %v5808_v13 = vmul.f32 1.442695, %v7192_v56  ;;  %v7194_v39 = vmul.f32 -1.702, %v11255_v48 }
 0xdf4   :  { %v5806_v32 = vmul.f32 1.442695, %v7191_v63  ;;  %v5810_v8 = vmul.f32 1.442695, %v7193_v33  ;;  %v7196_v24 = vmul.f32 -1.702, %v11258_v5 }
 0xdf5   :  { %7977 = vpow2.f32 %v5804_v12  ;;  %v5812_v6 = vmul.f32 1.442695, %v7194_v39  ;;  %v7195_v61 = vmul.f32 -1.702, %v11263_v27  ;;  %v7197_v36 = vmul.f32 -1.702, %v11266_v53 }
 0xdf6   :  { %7979 = vpow2.f32 %v5808_v13  ;;  %v5816_v46 = vmul.f32 1.442695, %v7196_v24  ;;  %v5638_v55 = vpop.f32.mrb[72].mxu1  ;;  %v5711_v43 = vpop.f32.mrb[112].mxu0 }
 0xdf7   :  { %7981 = vpow2.f32 %v5806_v32  ;;  %v5814_v7 = vmul.f32 1.442695, %v7195_v61  ;;  %v5818_v28 = vmul.f32 1.442695, %v7197_v36  ;;  %v11273_v62 = vadd.f32 %v5638_v55, %v11229_v51  ;;  %v5640_v15 = vpop.f32.mrb[73].mxu1  ;;  %v5713_v42 = vpop.f32.mrb[113].mxu0 }
 0xdf8   :  { %7983 = vpow2.f32 %v5810_v8  ;;  %v11276_v40 = vadd.f32 %v5711_v43, %v11232_v14  ;;  %v11279_v21 = vadd.f32 %v5640_v15, %v11235_v60  ;;  %v11282_v22 = vadd.f32 %v5713_v42, %v11238_v47  ;;  %v5642_v56 = vpop.f32.mrb[74].mxu1  ;;  %v5715_v26 = vpop.f32.mrb[114].mxu0 }
 0xdf9   :  { %7985 = vpow2.f32 %v5812_v6  ;;  %v7198_v30 = vmul.f32 -1.702, %v11273_v62  ;;  %v11286_v63 = vadd.f32 %v5642_v56, %v11229_v51  ;;  %v5644_v33 = vpop.f32.mrb[75].mxu1  ;;  %v5717_v12 = vpop.f32.mrb[115].mxu0  ;;  %v11293_v42 = vadd.f32 %v5715_v26, %v11232_v14 }
 0xdfa   :  { %7987 = vpow2.f32 %v5816_v46  ;;  %v7200_v13 = vmul.f32 -1.702, %v11276_v40  ;;  %v7199_v39 = vmul.f32 -1.702, %v11279_v21  ;;  %v7201_v32 = vmul.f32 -1.702, %v11282_v22 }
 0xdfb   :  { %7989 = vpow2.f32 %v5814_v7  ;;  %v5820_v8 = vmul.f32 1.442695, %v7198_v30  ;;  %v7202_v24 = vmul.f32 -1.702, %v11286_v63  ;;  %v7204_v49 = vmul.f32 -1.702, %v11293_v42 }
 0xdfc   :  { %7991 = vpow2.f32 %v5818_v28  ;;  %v5824_v6 = vmul.f32 1.442695, %v7200_v13  ;;  %v5822_v61 = vmul.f32 1.442695, %v7199_v39  ;;  %v5826_v36 = vmul.f32 1.442695, %v7201_v32 }
 0xdfd   :  { %7993 = vpow2.f32 %v5820_v8  ;;  %v5828_v55 = vmul.f32 1.442695, %v7202_v24  ;;  %v11296_v28 = vadd.f32 %v5644_v33, %v11235_v60  ;;  %v11299_v24 = vadd.f32 %v5717_v12, %v11238_v47 }
 0xdfe   :  { %7995 = vpow2.f32 %v5824_v6  ;;  %v5648_v43 = vpop.f32.mrb[76].mxu1  ;;  %v5721_v15 = vpop.f32.mrb[116].mxu0 }
 0xdff   :  { %v7978_v46 = vpop.eup %7977  ;;  %7997 = vpow2.f32 %v5822_v61  ;;  %v5650_v56 = vpop.f32.mrb[77].mxu1  ;;  %v11302_v25 = vadd.f32 %v5648_v43, %v11229_v51  ;;  %v11307_v12 = vadd.f32 %v5721_v15, %v11232_v14  ;;  %v7205_v43 = vmul.f32 -1.702, %v11299_v24 }
 0xe00   :  { %v5723_v31 = vpop.f32.mrb[117].mxu0  ;;  %v7980_v7 = vpop.eup %7979  ;;  %v5868_v30 = vadd.f32 1.0, %v7978_v46  ;;  %7999 = vpow2.f32 %v5826_v36  ;;  %v11312_v37 = vadd.f32 %v5650_v56, %v11235_v60 }
 0xe01   :  { %v5652_v13 = vpop.f32.mrb[78].mxu1  ;;  %v5725_v39 = vpop.f32.mrb[118].mxu0  ;;  %v5870_v8 = vadd.f32 1.0, %v7980_v7  ;;  %8001 = vpow2.f32 %v5828_v55  ;;  %v7203_v55 = vmul.f32 -1.702, %v11296_v28 }
 0xe02   :  { %v7982_v32 = vpop.eup %7981  ;;  %v5654_v6 = vpop.f32.mrb[79].mxu1  ;;  %8003 = vrcp.f32 %v5868_v30 }
 0xe03   :  { %v7984_v61 = vpop.eup %7983  ;;  %v5869_v26 = vadd.f32 1.0, %v7982_v32  ;;  %v5727_v46 = vpop.f32.mrb[119].mxu0  ;;  %8005 = vrcp.f32 %v5870_v8  ;;  %v7206_v8 = vmul.f32 -1.702, %v11302_v25 }
 0xe04   :  { %v7986_v36 = vpop.eup %7985  ;;  %v5871_v33 = vadd.f32 1.0, %v7984_v61 }
 0xe05   :  { %v7988_v41 = vpop.eup %7987  ;;  %8007 = vrcp.f32 %v5869_v26  ;;  %v5872_v7 = vadd.f32 1.0, %v7986_v36  ;;  %v5832_v36 = vmul.f32 1.442695, %v7204_v49  ;;  %v11322_v49 = vadd.f32 %v5723_v31, %v11238_v47 }
 0xe06   :  { %v7990_v29 = vpop.eup %7989  ;;  %8009 = vrcp.f32 %v5871_v33  ;;  %v5874_v30 = vadd.f32 1.0, %v7988_v41  ;;  %v5658_v61 = vpop.f32.mrb[80].mxu1  ;;  %v5836_v4 = vmul.f32 1.442695, %v7206_v8  ;;  %v11335_v31 = vadd.f32 %v5725_v39, %v11232_v14 }
 0xe07   :  { %v7992_v32 = vpop.eup %7991  ;;  %8011 = vrcp.f32 %v5872_v7  ;;  %v5873_v54 = vadd.f32 1.0, %v7990_v29  ;;  %v5731_v35 = vpop.f32.mrb[120].mxu0  ;;  %v5830_v7 = vmul.f32 1.442695, %v7203_v55  ;;  %v7208_v29 = vmul.f32 -1.702, %v11307_v12 }
 0xe08   :  { %v7994_v23 = vpop.eup %7993  ;;  %8013 = vrcp.f32 %v5874_v30  ;;  %v5875_v26 = vadd.f32 1.0, %v7992_v32  ;;  %v11314_v15 = vpop.f32.mrb[81].mxu1  ;;  %v5834_v32 = vmul.f32 1.442695, %v7205_v43  ;;  %v7207_v43 = vmul.f32 -1.702, %v11312_v37 }
 0xe09   :  { %v11316_v33 = vpop.f32.mrb[121].mxu0  ;;  %v7996_v41 = vpop.eup %7995  ;;  %8015 = vrcp.f32 %v5873_v54  ;;  %v5876_v44 = vadd.f32 1.0, %v7994_v23  ;;  %v11327_v54 = vadd.f32 %v5652_v13, %v11229_v51  ;;  %v11338_v8 = vadd.f32 %v5654_v6, %v11235_v60 }
 0xe0a   :  { %v11319_v38 = vpop.f32.mrb[82].mxu1  ;;  %v7998_v50 = vpop.eup %7997  ;;  %8017 = vrcp.f32 %v5875_v26  ;;  %v5878_v30 = vadd.f32 1.0, %v7996_v41 }
 0xe0b   :  { %v11324_v56 = vpop.f32.mrb[122].mxu0  ;;  %v8000_v16 = vpop.eup %7999  ;;  %8019 = vrcp.f32 %v5876_v44  ;;  %v5877_v20 = vadd.f32 1.0, %v7998_v50  ;;  %v5840_v50 = vmul.f32 1.442695, %v7208_v29  ;;  %v7212_v29 = vmul.f32 -1.702, %v11335_v31 }
 0xe0c   :  { %v11329_v23 = vpop.f32.mrb[83].mxu1  ;;  %v11331_v55 = vpop.f32.mrb[123].mxu0  ;;  %8021 = vrcp.f32 %v5878_v30  ;;  %v5879_v26 = vadd.f32 1.0, %v8000_v16  ;;  %v7209_v30 = vmul.f32 -1.702, %v11322_v49  ;;  %v11345_v16 = vadd.f32 %v5727_v46, %v11238_v47 }
 0xe0d   :  { %v8002_v11 = vpop.eup %8001  ;;  %8023 = vrcp.f32 %v5877_v20  ;;  %v11352_v20 = vadd.f32 %v5658_v61, %v11229_v51  ;;  %v11359_v46 = vadd.f32 %v5731_v35, %v11232_v14 }
 0xe0e   :  { %v8004_v41 = vpop.eup %8003  ;;  %v5880_v44 = vadd.f32 1.0, %v8002_v11  ;;  %8025 = vrcp.f32 %v5879_v26  ;;  %v7210_v11 = vmul.f32 -1.702, %v11327_v54 }
 0xe0f   :  { %v8006_v13 = vpop.eup %8005  ;;  %v11341_v59 = vmul.f32 %v8004_v41, %v11241_v52  ;;  %v5838_v41 = vmul.f32 1.442695, %v7207_v43 }
 0xe10   :  { %v8008_v19 = vpop.eup %8007  ;;  %v11348_v39 = vmul.f32 %v8006_v13, %v11244_v45  ;;  %8027 = vrcp.f32 %v5880_v44  ;;  %v7211_v44 = vmul.f32 -1.702, %v11338_v8 }
 0xe11   :  { %v8010_v6 = vpop.eup %8009  ;;  %v11355_v52 = vmul.f32 %v8008_v19, %v11247_v34  ;;  %8029 = vpow2.f32 %v5832_v36  ;;  %v5842_v19 = vmul.f32 1.442695, %v7209_v30  ;;  %v7213_v34 = vmul.f32 -1.702, %v11345_v16 }
 0xe12   :  { %11778 = vst [vmem:[#allocation86_spill] sm:$0xff] %v11348_v39  ;;  %v8012_v26 = vpop.eup %8011  ;;  %v11362_v45 = vmul.f32 %v8010_v6, %v11250_v0  ;;  %8031 = vpow2.f32 %v5830_v7  ;;  %v5844_v39 = vmul.f32 1.442695, %v7210_v11  ;;  %v7214_v0 = vmul.f32 -1.702, %v11352_v20 }
 0xe13   :  { %v8014_v61 = vpop.eup %8013  ;;  %v11366_v13 = vmul.f32 %v8012_v26, %v11255_v48  ;;  %8033 = vpow2.f32 %v5834_v32  ;;  %v5848_v6 = vmul.f32 1.442695, %v7212_v29  ;;  %v7216_v48 = vmul.f32 -1.702, %v11359_v46 }
 0xe14   :  { %v8016_v36 = vpop.eup %8015  ;;  %v11370_v35 = vmul.f32 %v8014_v61, %v11258_v5  ;;  %8035 = vpow2.f32 %v5836_v4  ;;  %v5846_v26 = vmul.f32 1.442695, %v7211_v44  ;;  %v5850_v11 = vmul.f32 1.442695, %v7213_v34 }
 0xe15   :  { %v8018_v7 = vpop.eup %8017  ;;  %v11374_v43 = vmul.f32 %v8016_v36, %v11263_v27  ;;  %8037 = vpow2.f32 %v5840_v50  ;;  %v5852_v50 = vmul.f32 1.442695, %v7214_v0 }
 0xe16   :  { %v8020_v32 = vpop.eup %8019  ;;  %v11378_v30 = vmul.f32 %v8018_v7, %v11266_v53  ;;  %8039 = vpow2.f32 %v5838_v41  ;;  %v5856_v53 = vmul.f32 1.442695, %v7216_v48 }
 0xe17   :  { %v8022_v5 = vpop.eup %8021  ;;  %v11381_v4 = vmul.f32 %v8020_v32, %v11273_v62  ;;  %8041 = vpow2.f32 %v5842_v19 }
 0xe18   :  { %v8024_v61 = vpop.eup %8023  ;;  %v11384_v27 = vmul.f32 %v8022_v5, %v11276_v40  ;;  %8043 = vpow2.f32 %v5844_v39 }
 0xe19   :  { %v8026_v29 = vpop.eup %8025  ;;  %v11387_v36 = vmul.f32 %v8024_v61, %v11279_v21  ;;  %8045 = vpow2.f32 %v5848_v6  ;;  %v11405_v61 = vadd.f32 %v11319_v38, %v11229_v51 }
 0xe1a   :  { %v8028_v41 = vpop.eup %8027  ;;  %v11390_v44 = vmul.f32 %v8026_v29, %v11282_v22  ;;  %8047 = vpow2.f32 %v5846_v26  ;;  %v11397_v22 = vadd.f32 %v11314_v15, %v11235_v60  ;;  %v11401_v26 = vadd.f32 %v11316_v33, %v11238_v47 }
 0xe1b   :  { %v8030_v62 = vpop.eup %8029  ;;  %v11393_v19 = vmul.f32 %v8028_v41, %v11286_v63  ;;  %8049 = vpow2.f32 %v5850_v11  ;;  %v11409_v15 = vadd.f32 %v11324_v56, %v11232_v14 }
 0xe1c   :  { %v8032_v40 = vpop.eup %8031  ;;  %v5882_v34 = vadd.f32 1.0, %v8030_v62  ;;  %8051 = vpow2.f32 %v5852_v50  ;;  %v7215_v33 = vmul.f32 -1.702, %v11397_v22  ;;  %v11414_v62 = vadd.f32 %v11329_v23, %v11235_v60 }
 0xe1d   :  { %v8034_v39 = vpop.eup %8033  ;;  %v5881_v0 = vadd.f32 1.0, %v8032_v40  ;;  %8053 = vpow2.f32 %v5856_v53  ;;  %v7217_v51 = vmul.f32 -1.702, %v11401_v26  ;;  %v7220_v60 = vmul.f32 -1.702, %v11409_v15 }
 0xe1e   :  { %v8036_v21 = vpop.eup %8035  ;;  %8055 = vrcp.f32 %v5882_v34  ;;  %v5883_v7 = vadd.f32 1.0, %v8034_v39  ;;  %v11419_v34 = vadd.f32 %v11331_v55, %v11238_v47  ;;  %v7218_v39 = vmul.f32 -1.702, %v11405_v61 }
 0xe1f   :  { %v8038_v6 = vpop.eup %8037  ;;  %8057 = vrcp.f32 %v5881_v0  ;;  %v5884_v48 = vadd.f32 1.0, %v8036_v21  ;;  %v5858_v55 = vmul.f32 1.442695, %v7217_v51 }
 0xe20   :  { %v8040_v32 = vpop.eup %8039  ;;  %8059 = vrcp.f32 %v5883_v7  ;;  %v5886_v63 = vadd.f32 1.0, %v8038_v6  ;;  %v5854_v6 = vmul.f32 1.442695, %v7215_v33 }
 0xe21   :  { %v8042_v5 = vpop.eup %8041  ;;  %8061 = vrcp.f32 %v5884_v48  ;;  %v5885_v11 = vadd.f32 1.0, %v8040_v32  ;;  %v7219_v48 = vmul.f32 -1.702, %v11414_v62 }
 0xe22   :  { %v8044_v50 = vpop.eup %8043  ;;  %8063 = vrcp.f32 %v5886_v63  ;;  %v5887_v29 = vadd.f32 1.0, %v8042_v5  ;;  %v7221_v63 = vmul.f32 -1.702, %v11419_v34 }
 0xe23   :  { %v8046_v53 = vpop.eup %8045  ;;  %8065 = vrcp.f32 %v5885_v11  ;;  %v5888_v41 = vadd.f32 1.0, %v8044_v50  ;;  %v5860_v50 = vmul.f32 1.442695, %v7218_v39 }
 0xe24   :  { %v8048_v40 = vpop.eup %8047  ;;  %8067 = vrcp.f32 %v5887_v29  ;;  %v5890_v38 = vadd.f32 1.0, %v8046_v53 }
 0xe25   :  { %v8050_v14 = vpop.eup %8049  ;;  %8069 = vrcp.f32 %v5888_v41  ;;  %v5889_v56 = vadd.f32 1.0, %v8048_v40  ;;  %v5864_v41 = vmul.f32 1.442695, %v7220_v60 }
 0xe26   :  { %v8052_v0 = vpop.eup %8051  ;;  %8071 = vrcp.f32 %v5890_v38  ;;  %v5891_v21 = vadd.f32 1.0, %v8050_v14  ;;  %v5862_v38 = vmul.f32 1.442695, %v7219_v48 }
 0xe27   :  { %v8054_v23 = vpop.eup %8053  ;;  %8073 = vrcp.f32 %v5889_v56  ;;  %v5892_v7 = vadd.f32 1.0, %v8052_v0 }
 0xe28   :  { %v8056_v32 = vpop.eup %8055  ;;  %8075 = vrcp.f32 %v5891_v21  ;;  %v5894_v47 = vadd.f32 1.0, %v8054_v23 }
 0xe29   :  { %v8058_v5 = vpop.eup %8057  ;;  %v11426_v11 = vmul.f32 %v8056_v32, %v11293_v42  ;;  %8077 = vrcp.f32 %v5892_v7  ;;  %v5866_v42 = vmul.f32 1.442695, %v7221_v63 }
 0xe2a   :  { %v8060_v29 = vpop.eup %8059  ;;  %v11429_v53 = vmul.f32 %v8058_v5, %v11296_v28  ;;  %8079 = vrcp.f32 %v5894_v47 }
 0xe2b   :  { %v8062_v33 = vpop.eup %8061  ;;  %v11432_v40 = vmul.f32 %v8060_v29, %v11299_v24  ;;  %8081 = vpow2.f32 %v5854_v6 }
 0xe2c   :  { %v8064_v51 = vpop.eup %8063  ;;  %v11435_v14 = vmul.f32 %v8062_v33, %v11302_v25  ;;  %8083 = vpow2.f32 %v5858_v55 }
 0xe2d   :  { %v8066_v56 = vpop.eup %8065  ;;  %v11438_v39 = vmul.f32 %v8064_v51, %v11307_v12  ;;  %8085 = vpow2.f32 %v5860_v50 }
 0xe2e   :  { %v8068_v28 = vpop.eup %8067  ;;  %v11441_v0 = vmul.f32 %v8066_v56, %v11312_v37  ;;  %8087 = vpow2.f32 %v5864_v41 }
 0xe2f   :  { %v8070_v24 = vpop.eup %8069  ;;  %v11444_v21 = vmul.f32 %v8068_v28, %v11322_v49  ;;  %8089 = vpow2.f32 %v5862_v38 }
 0xe30   :  { %v8072_v60 = vpop.eup %8071  ;;  %v11447_v25 = vmul.f32 %v8070_v24, %v11327_v54  ;;  %8091 = vpow2.f32 %v5866_v42 }
 0xe31   :  { %v8074_v23 = vpop.eup %8073  ;;  %v11450_v12 = vmul.f32 %v8072_v60, %v11335_v31 }
 0xe32   :  { %v8076_v7 = vpop.eup %8075  ;;  %v11453_v6 = vmul.f32 %v8074_v23, %v11338_v8 }
 0xe33   :  { %v8078_v37 = vpop.eup %8077  ;;  %v11456_v48 = vmul.f32 %v8076_v7, %v11345_v16 }
 0xe34   :  { %v8080_v49 = vpop.eup %8079  ;;  %v11459_v32 = vmul.f32 %v8078_v37, %v11352_v20 }
 0xe35   :  { %v8082_v47 = vpop.eup %8081  ;;  %v11462_v54 = vmul.f32 %v8080_v49, %v11359_v46 }
 0xe36   :  { %v8084_v55 = vpop.eup %8083  ;;  %v5893_v63 = vadd.f32 1.0, %v8082_v47 }
 0xe37   :  { %v8086_v31 = vpop.eup %8085  ;;  %v5895_v5 = vadd.f32 1.0, %v8084_v55 }
 0xe38   :  { %v8088_v50 = vpop.eup %8087  ;;  %8093 = vrcp.f32 %v5893_v63  ;;  %v5896_v8 = vadd.f32 1.0, %v8086_v31 }
 0xe39   :  { %v8090_v29 = vpop.eup %8089  ;;  %8095 = vrcp.f32 %v5895_v5  ;;  %v5898_v41 = vadd.f32 1.0, %v8088_v50 }
 0xe3a   :  { %v8092_v16 = vpop.eup %8091  ;;  %8097 = vrcp.f32 %v5896_v8  ;;  %v5897_v33 = vadd.f32 1.0, %v8090_v29 }
 0xe3b   :  { %8099 = vrcp.f32 %v5898_v41  ;;  %v5899_v20 = vadd.f32 1.0, %v8092_v16 }
 0xe3c   :  { %8101 = vrcp.f32 %v5897_v33 }
 0xe3d   :  { %8103 = vrcp.f32 %v5899_v20 }
 0xe42   :  { %v8094_v38 = vpop.eup %8093 }
 0xe43   :  { %v8096_v46 = vpop.eup %8095  ;;  %v11465_v51 = vmul.f32 %v8094_v38, %v11397_v22  ;;  %v6001_v22 = vpack.c.bf16 %v11374_v43, %v11355_v52 }
 0xe44   :  { %v8098_v42 = vpop.eup %8097  ;;  %v11468_v56 = vmul.f32 %v8096_v46, %v11401_v26  ;;  %v6003_v26 = vpack.c.bf16 %v11378_v30, %v11362_v45 }
 0xe45   :  { %v8100_v28 = vpop.eup %8099  ;;  %v11471_v24 = vmul.f32 %v8098_v42, %v11405_v61 }
 0xe46   :  { %v8102_v60 = vpop.eup %8101  ;;  %v11474_v23 = vmul.f32 %v8100_v28, %v11409_v15 }
 0xe47   :  { %v8104_v7 = vpop.eup %8103  ;;  %v5993_v37 = vmul.f32 %v8102_v60, %v11414_v62 }
 0xe48   :  { %v5995_v49 = vmul.f32 %v8104_v7, %v11419_v34 }
 0xe49   :  { %8501 = dma.done.wait [#allocation6 + $0x1], 4096 }
 0xe4a   :  { %8502 = vsyncadd [#allocation6 + $0x1], 4294963200  ;;  %7358 = vmatpush3.bf16.msra.mxu1 %v9033_v57  ;;  %7398 = vmatpush3.bf16.msra.mxu0 %v9113_v9  ;;  %v11779_v1 = vld [vmem:[#allocation67_spill] sm:$0xff]  ;;  %v11780_v17 = vld [vmem:[#allocation50_spill] sm:$0xff]  ;;  %v6000_v5 = vpack.c.bf16 %v11366_v13, %v11341_v59  ;;  %v6005_v16 = vpack.c.bf16 %v11429_v53, %v11387_v36  ;;  %v6007_v33 = vpack.c.bf16 %v11432_v40, %v11390_v44  ;;  %vm6204_vm5 = vcmask 1041409  }
 0xe4b   :  { %7359 = vmatprep.subr.bf16.mxu1 %v9078_v2  ;;  %7399 = vmatprep.subr.bf16.mxu0 %v9158_v18  ;;  %v11781_v52 = vld [vmem:[#allocation61_spill] sm:$0xff]  ;;  %v11782_v57 = vld [vmem:[#allocation56_spill] sm:$0xff]  ;;  %v11784_v2 = vld [vmem:[#allocation51_spill] sm:$0xff]  ;;  %v6004_v59 = vpack.c.bf16 %v11393_v19, %v11381_v4  ;;  %v6006_v13 = vpack.c.bf16 %v11426_v11, %v11384_v27  ;;  %v6011_v20 = vpack.c.bf16 %v11456_v48, %v11444_v21  ;;  %vm6207_vm6 = vcmask 1042434  }
 0xe4c   :  { %6087 = vmatprep.mubr.bf16.mxu1 %v6001_v22  ;;  %6152 = vmatprep.mubr.bf16.mxu0 %v6003_v26  ;;  %v11783_v9 = vld [vmem:[#allocation68_spill] sm:$0xff]  ;;  %v11785_v18 = vld [vmem:[#allocation62_spill] sm:$0xff]  ;;  %v11786_v45 = vld [vmem:[#allocation57_spill] sm:$0xff]  ;;  %v6008_v36 = vpack.c.bf16 %v11447_v25, %v11435_v14  ;;  %v6010_v44 = vpack.c.bf16 %v11450_v12, %v11438_v39  ;;  %v6013_v4 = vpack.c.bf16 %v5993_v37, %v11465_v51  ;;  %vm6210_vm7 = vcmask 1043459  }
 0xe4d   :  { %v11790_v43 = vld [vmem:[#allocation58_spill] sm:$0xff]  ;;  %v11792_v61 = vld [vmem:[#allocation53_spill] sm:$0xff]  ;;  %v11793_v15 = vld [vmem:[#allocation64_spill] sm:$0xff]  ;;  %v6015_v27 = vpack.c.bf16 %v5995_v49, %v11468_v56  ;;  %v6012_v19 = vpack.c.bf16 %v11471_v24, %v11459_v32  ;;  %v6014_v11 = vpack.c.bf16 %v11474_v23, %v11462_v54  ;;  %vm6213_vm8 = vcmask 1044484  }
 0xe4e   :  { %7360 = vmatpush3.bf16.msra.mxu1 %v9038_v58  ;;  %7400 = vmatpush3.bf16.msra.mxu0 %v9118_v10  ;;  %v11787_v58 = vld [vmem:[#allocation69_spill] sm:$0xff]  ;;  %v11788_v10 = vld [vmem:[#allocation52_spill] sm:$0xff]  ;;  %v11791_v30 = vld [vmem:[#allocation70_spill] sm:$0xff]  ;;  %vm6216_vm9 = vcmask 1045509   ;;  %vm6219_vm10 = vcmask 1046534   ;;  %vm6222_vm11 = vcmask 1047559  }
 0xe4f   :  { %7361 = vmatprep.subr.bf16.mxu1 %v9083_v3  ;;  %7401 = vmatprep.subr.bf16.mxu0 %v11779_v1  ;;  %v11789_v3 = vld [vmem:[#allocation63_spill] sm:$0xff]  ;;  %v11796_v47 = vld [vmem:[#allocation54_spill] sm:$0xff]  ;;  %v11797_v55 = vld [vmem:[#allocation65_spill] sm:$0xff] }
 0xe50   :  { %v11794_v62 = vld [vmem:[#allocation59_spill] sm:$0xff]  ;;  %v11798_v63 = vld [vmem:[#allocation60_spill] sm:$0xff]  ;;  %v11800_v50 = vld [vmem:[#allocation86_spill] sm:$0xff] }
 0xe51   :  { %v11795_v34 = vld [vmem:[#allocation71_spill] sm:$0xff]  ;;  %v11799_v31 = vld [vmem:[#allocation72_spill] sm:$0xff]  ;;  %v6002_v8 = vpack.c.bf16 %v11370_v35, %v11800_v50  ;;  %v11802_v41 = vld [vmem:[#allocation66_spill] sm:$0xff]  ;;  %v6009_v35 = vpack.c.bf16 %v11453_v6, %v11441_v0 }
 0xe52   :  { %7362 = vmatpush3.bf16.msra.mxu1 %v11780_v17  ;;  %7402 = vmatpush3.bf16.msra.mxu0 %v11781_v52  ;;  %v11801_v29 = vld [vmem:[#allocation55_spill] sm:$0xff]  ;;  %v11540_v14 = vld [vmem:[#allocation26] ss:$0 sm:$0xff] }
 0xe53   :  { %7363 = vmatprep.subr.bf16.mxu1 %v11782_v57  ;;  %7403 = vmatprep.subr.bf16.mxu0 %v11783_v9 }
 0xe56   :  { %7364 = vmatpush3.bf16.msra.mxu1 %v11784_v2  ;;  %7404 = vmatpush3.bf16.msra.mxu0 %v11785_v18 }
 0xe57   :  { %7365 = vmatprep.subr.bf16.mxu1 %v11786_v45  ;;  %7405 = vmatprep.subr.bf16.mxu0 %v11787_v58 }
 0xe5a   :  { %7366 = vmatpush3.bf16.msra.mxu1 %v11788_v10  ;;  %7406 = vmatpush3.bf16.msra.mxu0 %v11789_v3 }
 0xe5b   :  { %7367 = vmatprep.subr.bf16.mxu1 %v11790_v43  ;;  %7407 = vmatprep.subr.bf16.mxu0 %v11791_v30  ;;  %v11803_v43 = vld [vmem:[#allocation78_spill] sm:$0xff] }
 0xe5e   :  { %7368 = vmatpush3.bf16.msra.mxu1 %v11792_v61  ;;  %7408 = vmatpush3.bf16.msra.mxu0 %v11793_v15 }
 0xe5f   :  { %7369 = vmatprep.subr.bf16.mxu1 %v11794_v62  ;;  %7409 = vmatprep.subr.bf16.mxu0 %v11795_v34 }
 0xe62   :  { %7370 = vmatpush3.bf16.msra.mxu1 %v11796_v47  ;;  %7410 = vmatpush3.bf16.msra.mxu0 %v11797_v55  ;;  %v11804_v47 = vld [vmem:[#allocation77_spill] sm:$0xff] }
 0xe63   :  { %7371 = vmatprep.subr.bf16.mxu1 %v11798_v63  ;;  %7411 = vmatprep.subr.bf16.mxu0 %v11799_v31 }
 0xe66   :  { %7372 = vmatpush3.bf16.msra.mxu1 %v11801_v29  ;;  %7412 = vmatpush3.bf16.msra.mxu0 %v11802_v41 }
 0xe69   :  { %6088 = vmatmul.mubr.bf16.vlgmr.msra.gmra.mrb[84].mxu1 %v6000_v5  ;;  %6153 = vmatmul.mubr.bf16.vlgmr.msra.gmra.mrb[124].mxu0 %v6002_v8 }
 0xe6a   :  { %6095 = vmatprep.mubr.bf16.mxu1 %v6005_v16  ;;  %6160 = vmatprep.mubr.bf16.mxu0 %v6007_v33 }
 0xe71   :  { %6096 = vmatmul.mubr.bf16.gmra.mrb[88].mxu1 %v6004_v59  ;;  %6161 = vmatmul.mubr.bf16.gmra.mrb[128].mxu0 %v6006_v13  ;;  %v11805_v59 = vld [vmem:[#allocation80_spill] sm:$0xff] }
 0xe72   :  { %6103 = vmatprep.mubr.bf16.mxu1 %v6009_v35  ;;  %6168 = vmatprep.mubr.bf16.mxu0 %v6011_v20  ;;  %v11806_v35 = vld [vmem:[#allocation79_spill] sm:$0xff] }
 0xe79   :  { %6104 = vmatmul.mubr.bf16.gmra.mrb[92].mxu1 %v6008_v36  ;;  %6169 = vmatmul.mubr.bf16.gmra.mrb[132].mxu0 %v6010_v44  ;;  %v11807_v36 = vld [vmem:[#allocation81_spill] sm:$0xff] }
 0xe7a   :  { %6111 = vmatprep.mubr.bf16.mxu1 %v6013_v4  ;;  %6176 = vmatprep.mubr.bf16.mxu0 %v6015_v27 }
 0xe81   :  { %6112 = vmatmul.mubr.bf16.gmra.mrb[96].mxu1 %v6012_v19  ;;  %6177 = vmatmul.mubr.bf16.gmra.mrb[136].mxu0 %v6014_v11 }
 0xf3c   :  { %v7373_v53 = vpop.f32.mrb[84].mxu1  ;;  %v7413_v40 = vpop.f32.mrb[124].mxu0 }
 0xf3d   :  { %v7374_v39 = vpop.f32.mrb[85].mxu1  ;;  %v7414_v0 = vpop.f32.mrb[125].mxu0 }
 0xf3e   :  { %v7375_v21 = vadd.f32 %v7374_v39, %v7373_v53  ;;  %v7415_v25 = vadd.f32 %v7414_v0, %v7413_v40  ;;  %v7376_v12 = vpop.f32.mrb[86].mxu1  ;;  %v7416_v6 = vpop.f32.mrb[126].mxu0 }
 0xf3f   :  { %v7377_v48 = vpop.f32.mrb[87].mxu1  ;;  %v7417_v38 = vpop.f32.mrb[127].mxu0 }
 0xf40   :  { %v6090_v46 = vadd.f32 %v7375_v21, %v11540_v14  ;;  %v7378_v32 = vadd.f32 %v7377_v48, %v7376_v12  ;;  %v7418_v51 = vadd.f32 %v7417_v38, %v7416_v6  ;;  %v11808_v48 = vld [vmem:[#allocation82_spill] sm:$0xff] }
 0xf42   :  { %v6155_v42 = vadd.f32 %v7415_v25, %v6090_v46  ;;  %v6093_v54 = vadd.f32 %v7378_v32, %v11540_v14 }
 0xf44   :  { %v6158_v56 = vadd.f32 %v7418_v51, %v6093_v54  ;;  %v7379_v28 = vpop.f32.mrb[88].mxu1  ;;  %v7419_v24 = vpop.f32.mrb[128].mxu0  ;;  %v6185_v20 = vadd.f32 %v6155_v42, %v11806_v35 }
 0xf45   :  { %v7380_v60 = vpop.f32.mrb[89].mxu1  ;;  %v7420_v23 = vpop.f32.mrb[129].mxu0 }
 0xf46   :  { %v7381_v7 = vadd.f32 %v7380_v60, %v7379_v28  ;;  %v7421_v37 = vadd.f32 %v7420_v23, %v7419_v24  ;;  %v7382_v49 = vpop.f32.mrb[90].mxu1  ;;  %v7422_v22 = vpop.f32.mrb[130].mxu0  ;;  %v11547_v30 = vadd.f32 %v6158_v56, %v11803_v43 }
 0xf47   :  { %v7383_v26 = vpop.f32.mrb[91].mxu1  ;;  %v7423_v1 = vpop.f32.mrb[131].mxu0 }
 0xf48   :  { %v6098_v17 = vadd.f32 %v7381_v7, %v11540_v14  ;;  %v7384_v52 = vadd.f32 %v7383_v26, %v7382_v49  ;;  %v7424_v57 = vadd.f32 %v7423_v1, %v7422_v22  ;;  %v6203_v29 = vrot.slane %v11547_v30, 7  ;;  %v11809_v7 = vld [vmem:[#allocation83_spill] sm:$0xff]  ;;  %v11810_v1 = vld [vmem:[#allocation84_spill] sm:$0xff] }
 0xf4a   :  { %v6163_v9 = vadd.f32 %v7421_v37, %v6098_v17  ;;  %v6101_v2 = vadd.f32 %v7384_v52, %v11540_v14  ;;  %v6205_v40 = vsel %vm6204_vm5, %v6203_v29, %v6185_v20 }
 0xf4c   :  { %v6166_v18 = vadd.f32 %v7424_v57, %v6101_v2  ;;  %v7385_v45 = vpop.f32.mrb[92].mxu1  ;;  %v7425_v58 = vpop.f32.mrb[132].mxu0  ;;  %v11550_v55 = vadd.f32 %v6163_v9, %v11804_v47 }
 0xf4d   :  { %v7386_v10 = vpop.f32.mrb[93].mxu1  ;;  %v7426_v3 = vpop.f32.mrb[133].mxu0 }
 0xf4e   :  { %v7387_v61 = vadd.f32 %v7386_v10, %v7385_v45  ;;  %v7427_v15 = vadd.f32 %v7426_v3, %v7425_v58  ;;  %v7388_v62 = vpop.f32.mrb[94].mxu1  ;;  %v7428_v34 = vpop.f32.mrb[134].mxu0  ;;  %v6206_v33 = vrot.slane %v11550_v55, 6  ;;  %v6188_v13 = vadd.f32 %v6166_v18, %v11805_v59 }
 0xf4f   :  { %v7389_v63 = vpop.f32.mrb[95].mxu1  ;;  %v7429_v31 = vpop.f32.mrb[135].mxu0 }
 0xf50   :  { %v6106_v5 = vadd.f32 %v7387_v61, %v11540_v14  ;;  %v7390_v50 = vadd.f32 %v7389_v63, %v7388_v62  ;;  %v7430_v8 = vadd.f32 %v7429_v31, %v7428_v34  ;;  %v6208_v12 = vsel %vm6207_vm6, %v6206_v33, %v6205_v40 }
 0xf51   :  { %v6209_v6 = vrot.slane %v6188_v13, 5 }
 0xf52   :  { %v6171_v41 = vadd.f32 %v7427_v15, %v6106_v5  ;;  %v6109_v16 = vadd.f32 %v7390_v50, %v11540_v14 }
 0xf53   :  { %v6211_v23 = vsel %vm6210_vm7, %v6209_v6, %v6208_v12 }
 0xf54   :  { %v6189_v44 = vadd.f32 %v6171_v41, %v11807_v36  ;;  %v6174_v4 = vadd.f32 %v7430_v8, %v6109_v16  ;;  %v7391_v27 = vpop.f32.mrb[96].mxu1  ;;  %v7431_v19 = vpop.f32.mrb[136].mxu0 }
 0xf55   :  { %v7392_v11 = vpop.f32.mrb[97].mxu1  ;;  %v7432_v53 = vpop.f32.mrb[137].mxu0 }
 0xf56   :  { %v7393_v39 = vadd.f32 %v7392_v11, %v7391_v27  ;;  %v7433_v0 = vadd.f32 %v7432_v53, %v7431_v19  ;;  %v7394_v21 = vpop.f32.mrb[98].mxu1  ;;  %v7434_v25 = vpop.f32.mrb[138].mxu0  ;;  %v6190_v38 = vadd.f32 %v6174_v4, %v11808_v48  ;;  %v6212_v51 = vrot.slane %v6189_v44, 4 }
 0xf57   :  { %v7395_v46 = vpop.f32.mrb[99].mxu1  ;;  %v7435_v32 = vpop.f32.mrb[139].mxu0 }
 0xf58   :  { %v6114_v42 = vadd.f32 %v7393_v39, %v11540_v14  ;;  %v7396_v54 = vadd.f32 %v7395_v46, %v7394_v21  ;;  %v7436_v56 = vadd.f32 %v7435_v32, %v7434_v25  ;;  %v6215_v60 = vrot.slane %v6190_v38, 3  ;;  %v7223_v46 = vld [vmem:[#allocation27] ss:$0 sm:$0xff] }
 0xf59   :  { %v6214_v22 = vsel %vm6213_vm8, %v6212_v51, %v6211_v23  ;;  %v7224_v23 = vld [vmem:[#allocation29] ss:$0 sm:$0xff] }
 0xf5a   :  { %v6179_v28 = vadd.f32 %v7433_v0, %v6114_v42  ;;  %v6117_v24 = vadd.f32 %v7396_v54, %v11540_v14  ;;  %v6217_v52 = vsel %vm6216_vm9, %v6215_v60, %v6214_v22 }
 0xf5c   :  { %v6191_v37 = vadd.f32 %v6179_v28, %v11809_v7  ;;  %v6182_v49 = vadd.f32 %v7436_v56, %v6117_v24 }
 0xf5e   :  { %v6218_v26 = vrot.slane %v6191_v37, 2  ;;  %v6192_v17 = vadd.f32 %v6182_v49, %v11810_v1 }
 0xf60   :  { %v6220_v57 = vsel %vm6219_vm10, %v6218_v26, %v6217_v52  ;;  %v6221_v9 = vrot.slane %v6192_v17, 1 }
 0xf62   :  { %v6223_v14 = vsel %vm6222_vm11, %v6221_v9, %v6220_v57 }
 0xf63   :  { %6225 = vadd.xlane.f32.xlu0 %v6223_v14 }
 0xff0   :  { %v6226_v2 = vpop.xlane.xlu0 %6225 }
 0xff1   :  { %v6227_v18 = vmul.f32 0.0078125, %v6226_v2 }
 0xff3   :  { %v6229_v45 = vrot.slane %v6227_v18, 1  ;;  %v6230_v58 = vrot.slane %v6227_v18, 2  ;;  %v6231_v10 = vrot.slane %v6227_v18, 3  ;;  %v6232_v3 = vrot.slane %v6227_v18, 4 }
 0xff4   :  { %v6233_v43 = vrot.slane %v6227_v18, 5  ;;  %v6234_v61 = vrot.slane %v6227_v18, 6  ;;  %v6235_v15 = vrot.slane %v6227_v18, 7  ;;  %v6244_v62 = vsub.f32 %v6185_v20, %v6227_v18 }
 0xff5   :  { %v6245_v34 = vsub.f32 %v11547_v30, %v6229_v45  ;;  %v6246_v47 = vsub.f32 %v11550_v55, %v6230_v58  ;;  %v6247_v63 = vsub.f32 %v6188_v13, %v6231_v10  ;;  %v6248_v31 = vsub.f32 %v6189_v44, %v6232_v3 }
 0xff6   :  { %v6249_v5 = vsub.f32 %v6190_v38, %v6233_v43  ;;  %v6250_v50 = vsub.f32 %v6191_v37, %v6234_v61  ;;  %v6251_v8 = vsub.f32 %v6192_v17, %v6235_v15  ;;  %v6252_v59 = vmul.f32 %v6244_v62, %v6244_v62 }
 0xff7   :  { %v6253_v29 = vmul.f32 %v6245_v34, %v6245_v34  ;;  %v6254_v41 = vmul.f32 %v6246_v47, %v6246_v47  ;;  %v6255_v16 = vmul.f32 %v6247_v63, %v6247_v63  ;;  %v6256_v33 = vmul.f32 %v6248_v31, %v6248_v31 }
 0xff8   :  { %v6257_v35 = vmul.f32 %v6249_v5, %v6249_v5  ;;  %v6258_v27 = vmul.f32 %v6250_v50, %v6250_v50  ;;  %v6259_v19 = vmul.f32 %v6251_v8, %v6251_v8 }
 0xff9   :  { %v6268_v36 = vrot.slane %v6253_v29, 7  ;;  %v6270_v4 = vrot.slane %v6254_v41, 6  ;;  %v6272_v30 = vrot.slane %v6255_v16, 5  ;;  %v6274_v13 = vrot.slane %v6256_v33, 4 }
 0xffa   :  { %v6276_v11 = vrot.slane %v6257_v35, 3  ;;  %v6278_v40 = vrot.slane %v6258_v27, 2  ;;  %v6280_v0 = vrot.slane %v6259_v19, 1 }
 0xffb   :  { %v6269_v20 = vsel %vm6204_vm5, %v6268_v36, %v6252_v59 }
 0xffc   :  { %v6271_v55 = vsel %vm6207_vm6, %v6270_v4, %v6269_v20 }
 0xffd   :  { %v6273_v44 = vsel %vm6210_vm7, %v6272_v30, %v6271_v55 }
 0xffe   :  { %v6275_v53 = vsel %vm6213_vm8, %v6274_v13, %v6273_v44 }
 0xfff   :  { %v6277_v39 = vsel %vm6216_vm9, %v6276_v11, %v6275_v53 }
0x1000   :  { %v6279_v21 = vsel %vm6219_vm10, %v6278_v40, %v6277_v39 }
0x1001   :  { %v6281_v25 = vsel %vm6222_vm11, %v6280_v0, %v6279_v21 }
0x1002   :  { %6283 = vadd.xlane.f32.xlu0 %v6281_v25 }
0x108f   :  { %v6284_v12 = vpop.xlane.xlu0 %6283 }
0x1090   :  { %v6285_v6 = vmul.f32 0.0078125, %v6284_v12 }
0x1092   :  { %v6286_v48 = vadd.f32 1e-05, %v6285_v6 }
0x1094   :  { %8105 = vrsqrt.f32 %v6286_v48 }
0x109e   :  { %v8106_v38 = vpop.eup %8105 }
0x109f   :  { %v6289_v32 = vrot.slane %v8106_v38, 1  ;;  %v6290_v51 = vrot.slane %v8106_v38, 2  ;;  %v6291_v42 = vrot.slane %v8106_v38, 3  ;;  %v6292_v54 = vrot.slane %v8106_v38, 4 }
0x10a0   :  { %v6293_v56 = vrot.slane %v8106_v38, 5  ;;  %v6294_v28 = vrot.slane %v8106_v38, 6  ;;  %v6295_v24 = vrot.slane %v8106_v38, 7  ;;  %v6304_v60 = vmul.f32 %v8106_v38, %v6244_v62 }
0x10a1   :  { %v6305_v7 = vmul.f32 %v6289_v32, %v6245_v34  ;;  %v6306_v37 = vmul.f32 %v6290_v51, %v6246_v47  ;;  %v6307_v49 = vmul.f32 %v6291_v42, %v6247_v63  ;;  %v6308_v22 = vmul.f32 %v6292_v54, %v6248_v31 }
0x10a2   :  { %v6309_v26 = vmul.f32 %v6293_v56, %v6249_v5  ;;  %v6310_v1 = vmul.f32 %v6294_v28, %v6250_v50  ;;  %v6311_v17 = vmul.f32 %v6295_v24, %v6251_v8  ;;  %v6318_v52 = vmul.f32 %v7223_v46, %v6304_v60 }
0x10a3   :  { %v6319_v57 = vmul.f32 %v7223_v46, %v6305_v7  ;;  %v6320_v9 = vmul.f32 %v7223_v46, %v6306_v37  ;;  %v6321_v14 = vmul.f32 %v7223_v46, %v6307_v49  ;;  %v6322_v2 = vmul.f32 %v7223_v46, %v6308_v22 }
0x10a4   :  { %v6323_v18 = vmul.f32 %v7223_v46, %v6309_v26  ;;  %v6324_v45 = vmul.f32 %v7223_v46, %v6310_v1  ;;  %v6325_v58 = vmul.f32 %v7223_v46, %v6311_v17  ;;  %v6332_v10 = vadd.f32 %v7224_v23, %v6318_v52 }
0x10a5   :  { %v6333_v3 = vadd.f32 %v7224_v23, %v6319_v57  ;;  %v6334_v43 = vadd.f32 %v7224_v23, %v6320_v9  ;;  %v6335_v61 = vadd.f32 %v7224_v23, %v6321_v14  ;;  %v6336_v15 = vadd.f32 %v7224_v23, %v6322_v2 }
0x10a6   :  { %v6337_v62 = vadd.f32 %v7224_v23, %v6323_v18  ;;  %v11580_v34 = vadd.f32 %v7224_v23, %v6324_v45  ;;  %v11582_v47 = vadd.f32 %v7224_v23, %v6325_v58 }
0x10a7   :  { %8503 = dma.done.wait [#allocation6 + $0x2], 4096 }
0x10a8   :  { %8504 = vsyncadd [#allocation6 + $0x2], 4294963200  ;;  %v11811_v63 = vmov 0   ;;  %v6343_v31 = vpack.c.bf16 %v6333_v3, %v6333_v3  ;;  %v6344_v5 = vpack.c.bf16 %v6334_v43, %v6334_v43  ;;  %v6351_v50 = vld [vmem:[#allocation4 + $0x8] sm:$0xff]  ;;  %v6353_v8 = vld [vmem:[#allocation4 + $0x18] sm:$0xff]  ;;  %v6342_v41 = vpack.c.bf16 %v6332_v10, %v6332_v10 }
0x10a9   :  { %6468 = vmatprep.mubr.bf16.mxu1 %v11811_v63  ;;  %6509 = vmatprep.mubr.bf16.mxu0 %v11811_v63  ;;  %v6350_v29 = vld [vmem:[#allocation4] sm:$0xff]  ;;  %v6352_v33 = vld [vmem:[#allocation4 + $0x10] sm:$0xff]  ;;  %v6355_v59 = vld [vmem:[#allocation4 + $0x28] sm:$0xff]  ;;  %v6345_v36 = vpack.c.bf16 %v6335_v61, %v6335_v61  ;;  %v6346_v44 = vpack.c.bf16 %v6336_v15, %v6336_v15  ;;  %v6347_v25 = vpack.c.bf16 %v6337_v62, %v6337_v62 }
0x10aa   :  { %v6413_v16 = vunpack.c.l.b16 %v6343_v31  ;;  %6436 = vmatprep.subr.bf16.mxu1 %v6351_v50  ;;  %6477 = vmatprep.subr.bf16.mxu0 %v6353_v8  ;;  %v6357_v35 = vld [vmem:[#allocation4 + $0x38] sm:$0xff]  ;;  %v6354_v4 = vld [vmem:[#allocation4 + $0x20] sm:$0xff]  ;;  %v6356_v27 = vld [vmem:[#allocation4 + $0x30] sm:$0xff]  ;;  %v6414_v19 = vunpack.c.l.b16 %v6344_v5  ;;  %v6412_v55 = vunpack.c.l.b16 %v6342_v41  ;;  %v6348_v32 = vpack.c.bf16 %v11580_v34, %v11580_v34 }
0x10ab   :  { %6437 = vmatpush1.bf16.msra.mxu1 %v6350_v29  ;;  %6478 = vmatpush1.bf16.msra.mxu0 %v6352_v33  ;;  %v6359_v20 = vld [vmem:[#allocation4 + $0x48] sm:$0xff]  ;;  %v6361_v30 = vld [vmem:[#allocation4 + $0x58] sm:$0xff]  ;;  %v6415_v11 = vunpack.c.l.b16 %v6345_v36  ;;  %v6358_v53 = vld [vmem:[#allocation4 + $0x40] sm:$0xff]  ;;  %v6416_v6 = vunpack.c.l.b16 %v6346_v44  ;;  %v6417_v56 = vunpack.c.l.b16 %v6347_v25  ;;  %v6349_v24 = vpack.c.bf16 %v11582_v47, %v11582_v47 }
0x10ac   :  { %6438 = vmatprep.subr.bf16.mxu1 %v6355_v59  ;;  %6479 = vmatprep.subr.bf16.mxu0 %v6357_v35  ;;  %v6420_v13 = vrot.slane %v6413_v16, 7  ;;  %v6360_v40 = vld [vmem:[#allocation4 + $0x50] sm:$0xff]  ;;  %v6422_v39 = vrot.slane %v6414_v19, 6  ;;  %v6363_v0 = vld [vmem:[#allocation4 + $0x68] sm:$0xff]  ;;  %v6365_v21 = vld [vmem:[#allocation4 + $0x78] sm:$0xff]  ;;  %v6418_v37 = vunpack.c.l.b16 %v6348_v32 }
0x10ad   :  { %v6424_v48 = vrot.slane %v6415_v11, 5  ;;  %v6362_v38 = vld [vmem:[#allocation4 + $0x60] sm:$0xff]  ;;  %v6364_v46 = vld [vmem:[#allocation4 + $0x70] sm:$0xff]  ;;  %v6367_v42 = vld [vmem:[#allocation4 + $0x88] sm:$0xff]  ;;  %v6426_v28 = vrot.slane %v6416_v6, 4  ;;  %v6428_v26 = vrot.slane %v6417_v56, 3  ;;  %v6419_v17 = vunpack.c.l.b16 %v6349_v24 }
0x10ae   :  { %v6421_v12 = vsel %vm6204_vm5, %v6420_v13, %v6412_v55  ;;  %v6369_v54 = vld [vmem:[#allocation4 + $0x98] sm:$0xff]  ;;  %v6366_v23 = vld [vmem:[#allocation4 + $0x80] sm:$0xff]  ;;  %v6368_v7 = vld [vmem:[#allocation4 + $0x90] sm:$0xff]  ;;  %v6430_v9 = vrot.slane %v6418_v37, 2 }
0x10af   :  { %6439 = vmatpush1.bf16.msra.mxu1 %v6354_v4  ;;  %6480 = vmatpush1.bf16.msra.mxu0 %v6356_v27  ;;  %v6423_v51 = vsel %vm6207_vm6, %v6422_v39, %v6421_v12  ;;  %v6371_v49 = vld [vmem:[#allocation4 + $0xa8] sm:$0xff]  ;;  %v6373_v22 = vld [vmem:[#allocation4 + $0xb8] sm:$0xff]  ;;  %v6370_v52 = vld [vmem:[#allocation4 + $0xa0] sm:$0xff]  ;;  %v6432_v45 = vrot.slane %v6419_v17, 1 }
0x10b0   :  { %6440 = vmatprep.subr.bf16.mxu1 %v6359_v20  ;;  %6481 = vmatprep.subr.bf16.mxu0 %v6361_v30  ;;  %v6425_v60 = vsel %vm6210_vm7, %v6424_v48, %v6423_v51  ;;  %v6372_v57 = vld [vmem:[#allocation4 + $0xb0] sm:$0xff]  ;;  %v6375_v14 = vld [vmem:[#allocation4 + $0xc8] sm:$0xff]  ;;  %v6377_v2 = vld [vmem:[#allocation4 + $0xd8] sm:$0xff] }
0x10b1   :  { %v6427_v1 = vsel %vm6213_vm8, %v6426_v28, %v6425_v60  ;;  %v6374_v58 = vld [vmem:[#allocation4 + $0xc0] sm:$0xff]  ;;  %v6376_v10 = vld [vmem:[#allocation4 + $0xd0] sm:$0xff]  ;;  %v6379_v43 = vld [vmem:[#allocation4 + $0xe8] sm:$0xff] }
0x10b2   :  { %v6429_v18 = vsel %vm6216_vm9, %v6428_v26, %v6427_v1  ;;  %v6381_v61 = vld [vmem:[#allocation4 + $0xf8] sm:$0xff]  ;;  %v6378_v62 = vld [vmem:[#allocation4 + $0xe0] sm:$0xff]  ;;  %v6380_v34 = vld [vmem:[#allocation4 + $0xf0] sm:$0xff] }
0x10b3   :  { %6441 = vmatpush1.bf16.msra.mxu1 %v6358_v53  ;;  %6482 = vmatpush1.bf16.msra.mxu0 %v6360_v40  ;;  %v6431_v3 = vsel %vm6219_vm10, %v6430_v9, %v6429_v18  ;;  %v6382_v63 = vld [vmem:[#allocation30] sm:$0xf]  ;;  %v11812_v31 = vld [vmem:[#allocation75_spill] sm:$0xff]  ;;  %v11814_v29 = vld [vmem:[#allocation74_spill] sm:$0xff] }
0x10b4   :  { %6442 = vmatprep.subr.bf16.mxu1 %v6363_v0  ;;  %6483 = vmatprep.subr.bf16.mxu0 %v6365_v21  ;;  %v6433_v15 = vsel %vm6222_vm11, %v6432_v45, %v6431_v3  ;;  %v6387_v5 = vrot.slane %v6382_v63, %v11812_v31  ;;  %v11813_v50 = vld [vmem:[#allocation76_spill] sm:$0xff]  ;;  %v6391_v41 = vrot.slane %v6382_v63, %v11814_v29  ;;  %v11815_v16 = vld [vmem:[#allocation85_spill] sm:$0xff] }
0x10b5   :  { %v6434_v47 = vpack.c.b16 %v6433_v15, %v6433_v15  ;;  %v6395_v8 = vrot.slane %v6382_v63, %v11813_v50  ;;  %v6399_v33 = vrot.slane %v6382_v63, %v11815_v16 }
0x10b7   :  { %6443 = vmatpush1.bf16.msra.mxu1 %v6362_v38  ;;  %6484 = vmatpush1.bf16.msra.mxu0 %v6364_v46 }
0x10b8   :  { %6444 = vmatprep.subr.bf16.mxu1 %v6367_v42  ;;  %6485 = vmatprep.subr.bf16.mxu0 %v6369_v54 }
0x10bb   :  { %6445 = vmatpush1.bf16.msra.mxu1 %v6366_v23  ;;  %6486 = vmatpush1.bf16.msra.mxu0 %v6368_v7 }
0x10bc   :  { %6446 = vmatprep.subr.bf16.mxu1 %v6371_v49  ;;  %6487 = vmatprep.subr.bf16.mxu0 %v6373_v22 }
0x10bf   :  { %6447 = vmatpush1.bf16.msra.mxu1 %v6370_v52  ;;  %6488 = vmatpush1.bf16.msra.mxu0 %v6372_v57 }
0x10c0   :  { %6448 = vmatprep.subr.bf16.mxu1 %v6375_v14  ;;  %6489 = vmatprep.subr.bf16.mxu0 %v6377_v2 }
0x10c3   :  { %6449 = vmatpush1.bf16.msra.mxu1 %v6374_v58  ;;  %6490 = vmatpush1.bf16.msra.mxu0 %v6376_v10 }
0x10c4   :  { %6450 = vmatprep.subr.bf16.mxu1 %v6379_v43  ;;  %6491 = vmatprep.subr.bf16.mxu0 %v6381_v61 }
0x10c7   :  { %6451 = vmatpush1.bf16.msra.mxu1 %v6378_v62  ;;  %6492 = vmatpush1.bf16.msra.mxu0 %v6380_v34 }
0x10ca   :  { %6469 = vmatmul.mubr.bf16.vlgmr.msra.gmra.mrb[100].mxu1 %v6434_v47  ;;  %6510 = vmatmul.mubr.bf16.vlgmr.msra.gmra.mrb[140].mxu0 %v6434_v47 }
0x119d   :  { %v6470_v59 = vpop.f32.mrb[100].mxu1  ;;  %v6511_v35 = vpop.f32.mrb[140].mxu0 }
0x119e   :  { %v11601_v36 = vadd.f32 %v6470_v59, %v6387_v5  ;;  %v11603_v4 = vadd.f32 %v6511_v35, %v6395_v8  ;;  %v6472_v27 = vpop.f32.mrb[101].mxu1  ;;  %v6513_v19 = vpop.f32.mrb[141].mxu0 }
0x119f   :  { %v6473_v20 = vadd.f32 %v6472_v27, %v6391_v41  ;;  %v11605_v30 = vadd.f32 %v6513_v19, %v6399_v33  ;;  %v6474_v55 = vpop.f32.mrb[102].mxu1  ;;  %v6515_v13 = vpop.f32.mrb[142].mxu0 }
0x11a0   :  { %v6518_v44 = vmax.f32 %v11601_v36, 0.0  ;;  %v6520_v11 = vmax.f32 %v11603_v4, 0.0  ;;  %v6475_v53 = vpop.f32.mrb[103].mxu1  ;;  %v6516_v40 = vpop.f32.mrb[143].mxu0 }
0x11a1   :  { %v6519_v39 = vmax.f32 %v6473_v20, 0.0  ;;  %v6521_v0 = vmax.f32 %v11605_v30, 0.0 }
0x11a2   :  { %8505 = dma.done.wait [#allocation6 + $0x3], 24576 }
0x11a3   :  { %8506 = vsyncadd [#allocation6 + $0x3], 4294942720  ;;  %v11610_v21 = vpack.c.bf16 %v6519_v39, %v6519_v39  ;;  %v6530_v25 = vld [vmem:[#allocation5 + $0x8] sm:$0xff]  ;;  %v6529_v12 = vld [vmem:[#allocation5] sm:$0xff] }
0x11a4   :  { %v6536_v6 = vld [vmem:[#allocation5 + $0x38] sm:$0xff]  ;;  %6753 = vmatprep.subr.bf16.mxu1 %v6530_v25  ;;  %v6535_v48 = vld [vmem:[#allocation5 + $0x30] sm:$0xff]  ;;  %v6542_v38 = vld [vmem:[#allocation5 + $0x68] sm:$0xff] }
0x11a5   :  { %6785 = vmatprep.mubr.bf16.mxu1 %v11610_v21  ;;  %6867 = vmatprep.mubr.bf16.mxu0 %v11610_v21  ;;  %v6541_v46 = vld [vmem:[#allocation5 + $0x60] sm:$0xff]  ;;  %v6548_v32 = vld [vmem:[#allocation5 + $0x98] sm:$0xff]  ;;  %v6547_v42 = vld [vmem:[#allocation5 + $0x90] sm:$0xff] }
0x11a6   :  { %6754 = vmatpush1.bf16.msra.mxu1 %v6529_v12  ;;  %v6532_v51 = vld [vmem:[#allocation5 + $0x18] sm:$0xff]  ;;  %v6531_v54 = vld [vmem:[#allocation5 + $0x10] sm:$0xff]  ;;  %v6554_v56 = vld [vmem:[#allocation5 + $0xc8] sm:$0xff] }
0x11a7   :  { %6755 = vmatprep.subr.bf16.mxu1 %v6536_v6  ;;  %6835 = vmatprep.subr.bf16.mxu0 %v6532_v51  ;;  %v6538_v28 = vld [vmem:[#allocation5 + $0x48] sm:$0xff]  ;;  %v6537_v24 = vld [vmem:[#allocation5 + $0x40] sm:$0xff]  ;;  %v6544_v60 = vld [vmem:[#allocation5 + $0x78] sm:$0xff]  ;;  %v11617_v51 = vpack.c.bf16 %v6518_v44, %v6518_v44 }
0x11a8   :  { %6836 = vmatpush1.bf16.msra.mxu0 %v6531_v54  ;;  %v6553_v23 = vld [vmem:[#allocation5 + $0xc0] sm:$0xff]  ;;  %v6560_v7 = vld [vmem:[#allocation5 + $0xf8] sm:$0xff]  ;;  %v6543_v37 = vld [vmem:[#allocation5 + $0x70] sm:$0xff] }
0x11a9   :  { %6837 = vmatprep.subr.bf16.mxu0 %v6538_v28  ;;  %v6550_v49 = vld [vmem:[#allocation5 + $0xa8] sm:$0xff]  ;;  %v6559_v22 = vld [vmem:[#allocation5 + $0xf0] sm:$0xff]  ;;  %v6549_v1 = vld [vmem:[#allocation5 + $0xa0] sm:$0xff] }
0x11aa   :  { %6756 = vmatpush1.bf16.msra.mxu1 %v6535_v48  ;;  %v6566_v26 = vld [vmem:[#allocation5 + $0x128] sm:$0xff]  ;;  %v6556_v17 = vld [vmem:[#allocation5 + $0xd8] sm:$0xff]  ;;  %v6565_v52 = vld [vmem:[#allocation5 + $0x120] sm:$0xff] }
0x11ab   :  { %6757 = vmatprep.subr.bf16.mxu1 %v6542_v38  ;;  %v6572_v57 = vld [vmem:[#allocation5 + $0x158] sm:$0xff]  ;;  %v6555_v9 = vld [vmem:[#allocation5 + $0xd0] sm:$0xff]  ;;  %v6562_v14 = vld [vmem:[#allocation5 + $0x108] sm:$0xff] }
0x11ac   :  { %6838 = vmatpush1.bf16.msra.mxu0 %v6537_v24  ;;  %v6571_v2 = vld [vmem:[#allocation5 + $0x150] sm:$0xff]  ;;  %v6578_v18 = vld [vmem:[#allocation5 + $0x188] sm:$0xff]  ;;  %v6561_v45 = vld [vmem:[#allocation5 + $0x100] sm:$0xff] }
0x11ad   :  { %6839 = vmatprep.subr.bf16.mxu0 %v6544_v60  ;;  %v6568_v58 = vld [vmem:[#allocation5 + $0x138] sm:$0xff]  ;;  %v6577_v10 = vld [vmem:[#allocation5 + $0x180] sm:$0xff]  ;;  %v6567_v43 = vld [vmem:[#allocation5 + $0x130] sm:$0xff] }
0x11ae   :  { %6758 = vmatpush1.bf16.msra.mxu1 %v6541_v46  ;;  %v6584_v3 = vld [vmem:[#allocation5 + $0x1b8] sm:$0xff]  ;;  %v6574_v61 = vld [vmem:[#allocation5 + $0x168] sm:$0xff]  ;;  %v6583_v15 = vld [vmem:[#allocation5 + $0x1b0] sm:$0xff] }
0x11af   :  { %6759 = vmatprep.subr.bf16.mxu1 %v6548_v32  ;;  %v6590_v62 = vld [vmem:[#allocation5 + $0x1e8] sm:$0xff]  ;;  %v6573_v34 = vld [vmem:[#allocation5 + $0x160] sm:$0xff]  ;;  %v6580_v47 = vld [vmem:[#allocation5 + $0x198] sm:$0xff] }
0x11b0   :  { %6840 = vmatpush1.bf16.msra.mxu0 %v6543_v37  ;;  %v6589_v63 = vld [vmem:[#allocation5 + $0x1e0] sm:$0xff]  ;;  %v6596_v5 = vld [vmem:[#allocation5 + $0x218] sm:$0xff]  ;;  %v6579_v8 = vld [vmem:[#allocation5 + $0x190] sm:$0xff] }
0x11b1   :  { %6841 = vmatprep.subr.bf16.mxu0 %v6550_v49  ;;  %v6586_v41 = vld [vmem:[#allocation5 + $0x1c8] sm:$0xff]  ;;  %v6595_v33 = vld [vmem:[#allocation5 + $0x210] sm:$0xff]  ;;  %v6585_v35 = vld [vmem:[#allocation5 + $0x1c0] sm:$0xff] }
0x11b2   :  { %6760 = vmatpush1.bf16.msra.mxu1 %v6547_v42  ;;  %v6602_v59 = vld [vmem:[#allocation5 + $0x248] sm:$0xff]  ;;  %v6592_v27 = vld [vmem:[#allocation5 + $0x1f8] sm:$0xff]  ;;  %v6601_v19 = vld [vmem:[#allocation5 + $0x240] sm:$0xff] }
0x11b3   :  { %6761 = vmatprep.subr.bf16.mxu1 %v6554_v56  ;;  %v6608_v20 = vld [vmem:[#allocation5 + $0x278] sm:$0xff]  ;;  %v6591_v55 = vld [vmem:[#allocation5 + $0x1f0] sm:$0xff]  ;;  %v6598_v13 = vld [vmem:[#allocation5 + $0x228] sm:$0xff]  ;;  %v11622_v56 = vpack.c.bf16 %v6521_v0, %v6521_v0 }
0x11b4   :  { %6842 = vmatpush1.bf16.msra.mxu0 %v6549_v1  ;;  %v6607_v53 = vld [vmem:[#allocation5 + $0x270] sm:$0xff]  ;;  %v6614_v40 = vld [vmem:[#allocation5 + $0x2a8] sm:$0xff]  ;;  %v6597_v39 = vld [vmem:[#allocation5 + $0x220] sm:$0xff] }
0x11b5   :  { %6843 = vmatprep.subr.bf16.mxu0 %v6556_v17  ;;  %v6604_v25 = vld [vmem:[#allocation5 + $0x258] sm:$0xff]  ;;  %v6613_v12 = vld [vmem:[#allocation5 + $0x2a0] sm:$0xff]  ;;  %v6603_v48 = vld [vmem:[#allocation5 + $0x250] sm:$0xff] }
0x11b6   :  { %6762 = vmatpush1.bf16.msra.mxu1 %v6553_v23  ;;  %v6620_v6 = vld [vmem:[#allocation5 + $0x2d8] sm:$0xff]  ;;  %v6610_v38 = vld [vmem:[#allocation5 + $0x288] sm:$0xff]  ;;  %v6619_v46 = vld [vmem:[#allocation5 + $0x2d0] sm:$0xff] }
0x11b7   :  { %6763 = vmatprep.subr.bf16.mxu1 %v6560_v7  ;;  %v6626_v32 = vld [vmem:[#allocation5 + $0x308] sm:$0xff]  ;;  %v6609_v42 = vld [vmem:[#allocation5 + $0x280] sm:$0xff]  ;;  %v6616_v54 = vld [vmem:[#allocation5 + $0x2b8] sm:$0xff] }
0x11b8   :  { %6844 = vmatpush1.bf16.msra.mxu0 %v6555_v9  ;;  %v6625_v28 = vld [vmem:[#allocation5 + $0x300] sm:$0xff]  ;;  %v6632_v24 = vld [vmem:[#allocation5 + $0x338] sm:$0xff]  ;;  %v6615_v36 = vld [vmem:[#allocation5 + $0x2b0] sm:$0xff] }
0x11b9   :  { %6845 = vmatprep.subr.bf16.mxu0 %v6562_v14  ;;  %v6622_v44 = vld [vmem:[#allocation5 + $0x2e8] sm:$0xff]  ;;  %v6631_v60 = vld [vmem:[#allocation5 + $0x330] sm:$0xff]  ;;  %v6621_v30 = vld [vmem:[#allocation5 + $0x2e0] sm:$0xff] }
0x11ba   :  { %6764 = vmatpush1.bf16.msra.mxu1 %v6559_v22  ;;  %v6638_v23 = vld [vmem:[#allocation5 + $0x368] sm:$0xff]  ;;  %v6628_v0 = vld [vmem:[#allocation5 + $0x318] sm:$0xff]  ;;  %v6637_v7 = vld [vmem:[#allocation5 + $0x360] sm:$0xff] }
0x11bb   :  { %6765 = vmatprep.subr.bf16.mxu1 %v6566_v26  ;;  %v6644_v37 = vld [vmem:[#allocation5 + $0x398] sm:$0xff]  ;;  %v6627_v49 = vld [vmem:[#allocation5 + $0x310] sm:$0xff]  ;;  %v6634_v22 = vld [vmem:[#allocation5 + $0x348] sm:$0xff] }
0x11bc   :  { %6846 = vmatpush1.bf16.msra.mxu0 %v6561_v45  ;;  %v6643_v26 = vld [vmem:[#allocation5 + $0x390] sm:$0xff]  ;;  %v6650_v1 = vld [vmem:[#allocation5 + $0x3c8] sm:$0xff]  ;;  %v6633_v17 = vld [vmem:[#allocation5 + $0x340] sm:$0xff] }
0x11bd   :  { %6847 = vmatprep.subr.bf16.mxu0 %v6568_v58  ;;  %v6656_v9 = vld [vmem:[#allocation5 + $0x3f8] sm:$0xff]  ;;  %v6639_v14 = vld [vmem:[#allocation5 + $0x370] sm:$0xff]  ;;  %v6662_v45 = vld [vmem:[#allocation5 + $0x428] sm:$0xff] }
0x11be   :  { %6766 = vmatpush1.bf16.msra.mxu1 %v6565_v52  ;;  %v6640_v52 = vld [vmem:[#allocation5 + $0x378] sm:$0xff]  ;;  %v6645_v58 = vld [vmem:[#allocation5 + $0x3a0] sm:$0xff]  ;;  %v6539_v4 = vld [vmem:[#allocation5 + $0x50] sm:$0xff] }
0x11bf   :  { %6767 = vmatprep.subr.bf16.mxu1 %v6572_v57  ;;  %v6649_v57 = vld [vmem:[#allocation5 + $0x3c0] sm:$0xff] }
0x11c0   :  { %6848 = vmatpush1.bf16.msra.mxu0 %v6567_v43  ;;  %v6668_v43 = vld [vmem:[#allocation5 + $0x458] sm:$0xff] }
0x11c1   :  { %6849 = vmatprep.subr.bf16.mxu0 %v6574_v61  ;;  %v6651_v61 = vld [vmem:[#allocation5 + $0x3d0] sm:$0xff] }
0x11c2   :  { %6768 = vmatpush1.bf16.msra.mxu1 %v6571_v2  ;;  %v6646_v2 = vld [vmem:[#allocation5 + $0x3a8] sm:$0xff] }
0x11c3   :  { %6769 = vmatprep.subr.bf16.mxu1 %v6578_v18  ;;  %v6655_v18 = vld [vmem:[#allocation5 + $0x3f0] sm:$0xff] }
0x11c4   :  { %6850 = vmatpush1.bf16.msra.mxu0 %v6573_v34  ;;  %v6674_v34 = vld [vmem:[#allocation5 + $0x488] sm:$0xff] }
0x11c5   :  { %6851 = vmatprep.subr.bf16.mxu0 %v6580_v47  ;;  %v6657_v47 = vld [vmem:[#allocation5 + $0x400] sm:$0xff] }
0x11c6   :  { %6770 = vmatpush1.bf16.msra.mxu1 %v6577_v10  ;;  %v6652_v10 = vld [vmem:[#allocation5 + $0x3d8] sm:$0xff] }
0x11c7   :  { %6771 = vmatprep.subr.bf16.mxu1 %v6584_v3  ;;  %v6661_v3 = vld [vmem:[#allocation5 + $0x420] sm:$0xff] }
0x11c8   :  { %6852 = vmatpush1.bf16.msra.mxu0 %v6579_v8  ;;  %v6680_v8 = vld [vmem:[#allocation5 + $0x4b8] sm:$0xff] }
0x11c9   :  { %6853 = vmatprep.subr.bf16.mxu0 %v6586_v41  ;;  %v6663_v41 = vld [vmem:[#allocation5 + $0x430] sm:$0xff] }
0x11ca   :  { %6772 = vmatpush1.bf16.msra.mxu1 %v6583_v15  ;;  %v6658_v15 = vld [vmem:[#allocation5 + $0x408] sm:$0xff] }
0x11cb   :  { %6773 = vmatprep.subr.bf16.mxu1 %v6590_v62  ;;  %v6667_v62 = vld [vmem:[#allocation5 + $0x450] sm:$0xff] }
0x11cc   :  { %6854 = vmatpush1.bf16.msra.mxu0 %v6585_v35  ;;  %v6686_v35 = vld [vmem:[#allocation5 + $0x4e8] sm:$0xff] }
0x11cd   :  { %6855 = vmatprep.subr.bf16.mxu0 %v6592_v27  ;;  %v6669_v27 = vld [vmem:[#allocation5 + $0x460] sm:$0xff] }
0x11ce   :  { %6774 = vmatpush1.bf16.msra.mxu1 %v6589_v63  ;;  %v6664_v63 = vld [vmem:[#allocation5 + $0x438] sm:$0xff] }
0x11cf   :  { %6775 = vmatprep.subr.bf16.mxu1 %v6596_v5  ;;  %v6673_v5 = vld [vmem:[#allocation5 + $0x480] sm:$0xff] }
0x11d0   :  { %6856 = vmatpush1.bf16.msra.mxu0 %v6591_v55  ;;  %v6692_v55 = vld [vmem:[#allocation5 + $0x518] sm:$0xff] }
0x11d1   :  { %6857 = vmatprep.subr.bf16.mxu0 %v6598_v13  ;;  %v6675_v13 = vld [vmem:[#allocation5 + $0x490] sm:$0xff] }
0x11d2   :  { %6776 = vmatpush1.bf16.msra.mxu1 %v6595_v33  ;;  %v6670_v33 = vld [vmem:[#allocation5 + $0x468] sm:$0xff] }
0x11d3   :  { %6777 = vmatprep.subr.bf16.mxu1 %v6602_v59  ;;  %v6679_v59 = vld [vmem:[#allocation5 + $0x4b0] sm:$0xff] }
0x11d4   :  { %6858 = vmatpush1.bf16.msra.mxu0 %v6597_v39  ;;  %v6698_v39 = vld [vmem:[#allocation5 + $0x548] sm:$0xff] }
0x11d5   :  { %6859 = vmatprep.subr.bf16.mxu0 %v6604_v25  ;;  %v6681_v25 = vld [vmem:[#allocation5 + $0x4c0] sm:$0xff] }
0x11d6   :  { %6778 = vmatpush1.bf16.msra.mxu1 %v6601_v19  ;;  %v6676_v19 = vld [vmem:[#allocation5 + $0x498] sm:$0xff] }
0x11d7   :  { %6779 = vmatprep.subr.bf16.mxu1 %v6608_v20  ;;  %v6685_v20 = vld [vmem:[#allocation5 + $0x4e0] sm:$0xff] }
0x11d8   :  { %6860 = vmatpush1.bf16.msra.mxu0 %v6603_v48  ;;  %v6704_v48 = vld [vmem:[#allocation5 + $0x578] sm:$0xff] }
0x11d9   :  { %6861 = vmatprep.subr.bf16.mxu0 %v6610_v38  ;;  %v6687_v38 = vld [vmem:[#allocation5 + $0x4f0] sm:$0xff] }
0x11da   :  { %6780 = vmatpush1.bf16.msra.mxu1 %v6607_v53  ;;  %v6682_v53 = vld [vmem:[#allocation5 + $0x4c8] sm:$0xff] }
0x11db   :  { %6781 = vmatprep.subr.bf16.mxu1 %v6614_v40  ;;  %v6691_v40 = vld [vmem:[#allocation5 + $0x510] sm:$0xff] }
0x11dc   :  { %6862 = vmatpush1.bf16.msra.mxu0 %v6609_v42  ;;  %v6710_v42 = vld [vmem:[#allocation5 + $0x5a8] sm:$0xff] }
0x11dd   :  { %6863 = vmatprep.subr.bf16.mxu0 %v6616_v54  ;;  %v6693_v54 = vld [vmem:[#allocation5 + $0x520] sm:$0xff] }
0x11de   :  { %6782 = vmatpush1.bf16.msra.mxu1 %v6613_v12  ;;  %v6688_v12 = vld [vmem:[#allocation5 + $0x4f8] sm:$0xff] }
0x11df   :  { %6783 = vmatprep.subr.bf16.mxu1 %v6620_v6  ;;  %v6697_v6 = vld [vmem:[#allocation5 + $0x540] sm:$0xff] }
0x11e0   :  { %6864 = vmatpush1.bf16.msra.mxu0 %v6615_v36  ;;  %v6716_v36 = vld [vmem:[#allocation5 + $0x5d8] sm:$0xff] }
0x11e1   :  { %6865 = vmatprep.subr.bf16.mxu0 %v6622_v44  ;;  %v6699_v44 = vld [vmem:[#allocation5 + $0x550] sm:$0xff] }
0x11e2   :  { %6784 = vmatpush1.bf16.msra.mxu1 %v6619_v46  ;;  %v6694_v46 = vld [vmem:[#allocation5 + $0x528] sm:$0xff] }
0x11e3   :  { %6794 = vmatprep.subr.bf16.mxu1 %v6626_v32  ;;  %v6703_v32 = vld [vmem:[#allocation5 + $0x570] sm:$0xff] }
0x11e4   :  { %6866 = vmatpush1.bf16.msra.mxu0 %v6621_v30  ;;  %v6534_v30 = vld [vmem:[#allocation5 + $0x28] sm:$0xff] }
0x11e5   :  { %6786 = vmatmul.mubr.bf16.vlgmr.msra.gmra.mrb[104].mxu1 %v11617_v51  ;;  %6876 = vmatprep.subr.bf16.mxu0 %v6628_v0  ;;  %v11631_v0 = vpack.c.bf16 %v6520_v11, %v6520_v11  ;;  %v6546_v11 = vld [vmem:[#allocation5 + $0x88] sm:$0xff] }
0x11e6   :  { %6795 = vmatpush1.bf16.msra.mxu1 %v6625_v28  ;;  %6826 = vmatprep.mubr.bf16.mxu1 %v11622_v56  ;;  %v6700_v28 = vld [vmem:[#allocation5 + $0x558] sm:$0xff] }
0x11e7   :  { %6796 = vmatprep.subr.bf16.mxu1 %v6632_v24  ;;  %6868 = vmatmul.mubr.bf16.vlgmr.msra.gmra.mrb[144].mxu0 %v11617_v51  ;;  %v6709_v24 = vld [vmem:[#allocation5 + $0x5a0] sm:$0xff] }
0x11e8   :  { %6877 = vmatpush1.bf16.msra.mxu0 %v6627_v49  ;;  %6908 = vmatprep.mubr.bf16.mxu0 %v11622_v56  ;;  %v6533_v49 = vld [vmem:[#allocation5 + $0x20] sm:$0xff] }
0x11e9   :  { %6878 = vmatprep.subr.bf16.mxu0 %v6634_v22  ;;  %v6540_v22 = vld [vmem:[#allocation5 + $0x58] sm:$0xff] }
0x11ea   :  { %6797 = vmatpush1.bf16.msra.mxu1 %v6631_v60  ;;  %v6706_v60 = vld [vmem:[#allocation5 + $0x588] sm:$0xff] }
0x11eb   :  { %6798 = vmatprep.subr.bf16.mxu1 %v6638_v23  ;;  %v6715_v23 = vld [vmem:[#allocation5 + $0x5d0] sm:$0xff] }
0x11ec   :  { %6879 = vmatpush1.bf16.msra.mxu0 %v6633_v17  ;;  %v6717_v17 = vld [vmem:[#allocation5 + $0x5e0] sm:$0xff] }
0x11ed   :  { %6880 = vmatprep.subr.bf16.mxu0 %v6640_v52  ;;  %v6545_v52 = vld [vmem:[#allocation5 + $0x80] sm:$0xff] }
0x11ee   :  { %6799 = vmatpush1.bf16.msra.mxu1 %v6637_v7  ;;  %v6705_v7 = vld [vmem:[#allocation5 + $0x580] sm:$0xff] }
0x11ef   :  { %6800 = vmatprep.subr.bf16.mxu1 %v6644_v37  ;;  %v6712_v37 = vld [vmem:[#allocation5 + $0x5b8] sm:$0xff] }
0x11f0   :  { %6881 = vmatpush1.bf16.msra.mxu0 %v6639_v14  ;;  %v6558_v14 = vld [vmem:[#allocation5 + $0xe8] sm:$0xff] }
0x11f1   :  { %6882 = vmatprep.subr.bf16.mxu0 %v6646_v2  ;;  %v6564_v2 = vld [vmem:[#allocation5 + $0x118] sm:$0xff] }
0x11f2   :  { %6801 = vmatpush1.bf16.msra.mxu1 %v6643_v26  ;;  %v6711_v26 = vld [vmem:[#allocation5 + $0x5b0] sm:$0xff] }
0x11f3   :  { %6802 = vmatprep.subr.bf16.mxu1 %v6650_v1  ;;  %v6718_v1 = vld [vmem:[#allocation5 + $0x5e8] sm:$0xff] }
0x11f4   :  { %6883 = vmatpush1.bf16.msra.mxu0 %v6645_v58  ;;  %v6569_v58 = vld [vmem:[#allocation5 + $0x140] sm:$0xff] }
0x11f5   :  { %6884 = vmatprep.subr.bf16.mxu0 %v6652_v10  ;;  %v6576_v10 = vld [vmem:[#allocation5 + $0x178] sm:$0xff] }
0x11f6   :  { %6803 = vmatpush1.bf16.msra.mxu1 %v6649_v57  ;;  %v6552_v57 = vld [vmem:[#allocation5 + $0xb8] sm:$0xff] }
0x11f7   :  { %6804 = vmatprep.subr.bf16.mxu1 %v6656_v9  ;;  %v6551_v9 = vld [vmem:[#allocation5 + $0xb0] sm:$0xff] }
0x11f8   :  { %6885 = vmatpush1.bf16.msra.mxu0 %v6651_v61  ;;  %v6581_v61 = vld [vmem:[#allocation5 + $0x1a0] sm:$0xff] }
0x11f9   :  { %6886 = vmatprep.subr.bf16.mxu0 %v6658_v15  ;;  %v6588_v15 = vld [vmem:[#allocation5 + $0x1d8] sm:$0xff] }
0x11fa   :  { %6805 = vmatpush1.bf16.msra.mxu1 %v6655_v18  ;;  %v6563_v18 = vld [vmem:[#allocation5 + $0x110] sm:$0xff] }
0x11fb   :  { %6806 = vmatprep.subr.bf16.mxu1 %v6662_v45  ;;  %v6570_v45 = vld [vmem:[#allocation5 + $0x148] sm:$0xff] }
0x11fc   :  { %6887 = vmatpush1.bf16.msra.mxu0 %v6657_v47  ;;  %v6593_v47 = vld [vmem:[#allocation5 + $0x200] sm:$0xff] }
0x11fd   :  { %6888 = vmatprep.subr.bf16.mxu0 %v6664_v63  ;;  %v6600_v63 = vld [vmem:[#allocation5 + $0x238] sm:$0xff] }
0x11fe   :  { %6807 = vmatpush1.bf16.msra.mxu1 %v6661_v3  ;;  %v6575_v3 = vld [vmem:[#allocation5 + $0x170] sm:$0xff] }
0x11ff   :  { %6808 = vmatprep.subr.bf16.mxu1 %v6668_v43  ;;  %v6582_v43 = vld [vmem:[#allocation5 + $0x1a8] sm:$0xff] }
0x1200   :  { %6889 = vmatpush1.bf16.msra.mxu0 %v6663_v41  ;;  %v6605_v41 = vld [vmem:[#allocation5 + $0x260] sm:$0xff] }
0x1201   :  { %6890 = vmatprep.subr.bf16.mxu0 %v6670_v33  ;;  %v6612_v33 = vld [vmem:[#allocation5 + $0x298] sm:$0xff] }
0x1202   :  { %6809 = vmatpush1.bf16.msra.mxu1 %v6667_v62  ;;  %v6587_v62 = vld [vmem:[#allocation5 + $0x1d0] sm:$0xff] }
0x1203   :  { %6810 = vmatprep.subr.bf16.mxu1 %v6674_v34  ;;  %v6594_v34 = vld [vmem:[#allocation5 + $0x208] sm:$0xff] }
0x1204   :  { %6891 = vmatpush1.bf16.msra.mxu0 %v6669_v27  ;;  %v6617_v27 = vld [vmem:[#allocation5 + $0x2c0] sm:$0xff] }
0x1205   :  { %6892 = vmatprep.subr.bf16.mxu0 %v6676_v19  ;;  %v6624_v19 = vld [vmem:[#allocation5 + $0x2f8] sm:$0xff] }
0x1206   :  { %6811 = vmatpush1.bf16.msra.mxu1 %v6673_v5  ;;  %v6599_v5 = vld [vmem:[#allocation5 + $0x230] sm:$0xff] }
0x1207   :  { %6812 = vmatprep.subr.bf16.mxu1 %v6680_v8  ;;  %v6606_v8 = vld [vmem:[#allocation5 + $0x268] sm:$0xff] }
0x1208   :  { %6893 = vmatpush1.bf16.msra.mxu0 %v6675_v13  ;;  %v6629_v13 = vld [vmem:[#allocation5 + $0x320] sm:$0xff] }
0x1209   :  { %6894 = vmatprep.subr.bf16.mxu0 %v6682_v53  ;;  %v6636_v53 = vld [vmem:[#allocation5 + $0x358] sm:$0xff] }
0x120a   :  { %6813 = vmatpush1.bf16.msra.mxu1 %v6679_v59  ;;  %v6611_v59 = vld [vmem:[#allocation5 + $0x290] sm:$0xff] }
0x120b   :  { %6814 = vmatprep.subr.bf16.mxu1 %v6686_v35  ;;  %v6618_v35 = vld [vmem:[#allocation5 + $0x2c8] sm:$0xff] }
0x120c   :  { %6895 = vmatpush1.bf16.msra.mxu0 %v6681_v25  ;;  %v6641_v25 = vld [vmem:[#allocation5 + $0x380] sm:$0xff] }
0x120d   :  { %6896 = vmatprep.subr.bf16.mxu0 %v6688_v12  ;;  %v6648_v12 = vld [vmem:[#allocation5 + $0x3b8] sm:$0xff] }
0x120e   :  { %6815 = vmatpush1.bf16.msra.mxu1 %v6685_v20  ;;  %v6623_v20 = vld [vmem:[#allocation5 + $0x2f0] sm:$0xff] }
0x120f   :  { %6816 = vmatprep.subr.bf16.mxu1 %v6692_v55  ;;  %v6630_v55 = vld [vmem:[#allocation5 + $0x328] sm:$0xff] }
0x1210   :  { %6897 = vmatpush1.bf16.msra.mxu0 %v6687_v38  ;;  %v6653_v38 = vld [vmem:[#allocation5 + $0x3e0] sm:$0xff] }
0x1211   :  { %6898 = vmatprep.subr.bf16.mxu0 %v6694_v46  ;;  %v6660_v46 = vld [vmem:[#allocation5 + $0x418] sm:$0xff] }
0x1212   :  { %6817 = vmatpush1.bf16.msra.mxu1 %v6691_v40  ;;  %v6635_v40 = vld [vmem:[#allocation5 + $0x350] sm:$0xff] }
0x1213   :  { %6818 = vmatprep.subr.bf16.mxu1 %v6698_v39  ;;  %v6642_v39 = vld [vmem:[#allocation5 + $0x388] sm:$0xff] }
0x1214   :  { %6899 = vmatpush1.bf16.msra.mxu0 %v6693_v54  ;;  %v6671_v54 = vld [vmem:[#allocation5 + $0x470] sm:$0xff] }
0x1215   :  { %6900 = vmatprep.subr.bf16.mxu0 %v6700_v28  ;;  %v6678_v28 = vld [vmem:[#allocation5 + $0x4a8] sm:$0xff] }
0x1216   :  { %6819 = vmatpush1.bf16.msra.mxu1 %v6697_v6  ;;  %v6647_v6 = vld [vmem:[#allocation5 + $0x3b0] sm:$0xff] }
0x1217   :  { %6820 = vmatprep.subr.bf16.mxu1 %v6704_v48  ;;  %v6654_v48 = vld [vmem:[#allocation5 + $0x3e8] sm:$0xff] }
0x1218   :  { %6901 = vmatpush1.bf16.msra.mxu0 %v6699_v44  ;;  %v6683_v44 = vld [vmem:[#allocation5 + $0x4d0] sm:$0xff] }
0x1219   :  { %6902 = vmatprep.subr.bf16.mxu0 %v6706_v60  ;;  %v6690_v60 = vld [vmem:[#allocation5 + $0x508] sm:$0xff] }
0x121a   :  { %6821 = vmatpush1.bf16.msra.mxu1 %v6703_v32  ;;  %v6666_v32 = vld [vmem:[#allocation5 + $0x448] sm:$0xff] }
0x121b   :  { %6822 = vmatprep.subr.bf16.mxu1 %v6710_v42  ;;  %v6672_v42 = vld [vmem:[#allocation5 + $0x478] sm:$0xff] }
0x121c   :  { %6903 = vmatpush1.bf16.msra.mxu0 %v6705_v7  ;;  %v6695_v7 = vld [vmem:[#allocation5 + $0x530] sm:$0xff] }
0x121d   :  { %6904 = vmatprep.subr.bf16.mxu0 %v6712_v37  ;;  %v6702_v37 = vld [vmem:[#allocation5 + $0x568] sm:$0xff] }
0x121e   :  { %6823 = vmatpush1.bf16.msra.mxu1 %v6709_v24  ;;  %v6677_v24 = vld [vmem:[#allocation5 + $0x4a0] sm:$0xff] }
0x121f   :  { %6824 = vmatprep.subr.bf16.mxu1 %v6716_v36  ;;  %v6684_v36 = vld [vmem:[#allocation5 + $0x4d8] sm:$0xff] }
0x1220   :  { %6905 = vmatpush1.bf16.msra.mxu0 %v6711_v26  ;;  %v6707_v26 = vld [vmem:[#allocation5 + $0x590] sm:$0xff] }
0x1221   :  { %6906 = vmatprep.subr.bf16.mxu0 %v6718_v1  ;;  %v6714_v1 = vld [vmem:[#allocation5 + $0x5c8] sm:$0xff] }
0x1222   :  { %6825 = vmatpush1.bf16.msra.mxu1 %v6715_v23  ;;  %v6689_v23 = vld [vmem:[#allocation5 + $0x500] sm:$0xff] }
0x1223   :  { %6917 = vmatprep.subr.bf16.mxu1 %v6534_v30  ;;  %v6696_v30 = vld [vmem:[#allocation5 + $0x538] sm:$0xff] }
0x1224   :  { %6907 = vmatpush1.bf16.msra.mxu0 %v6717_v17  ;;  %v6719_v17 = vld [vmem:[#allocation5 + $0x5f0] sm:$0xff] }
0x1225   :  { %6827 = vmatmul.mubr.bf16.vlgmr.msra.gmra.mrb[104].mxu1 %v11631_v0 }
0x1226   :  { %6918 = vmatpush1.bf16.msra.mxu1 %v6533_v49  ;;  %6949 = vmatprep.mubr.bf16.mxu1 %v11610_v21  ;;  %v6557_v21 = vld [vmem:[#allocation5 + $0xe0] sm:$0xff] }
0x1227   :  { %6919 = vmatprep.subr.bf16.mxu1 %v6540_v22  ;;  %6909 = vmatmul.mubr.bf16.vlgmr.msra.gmra.mrb[144].mxu0 %v11631_v0  ;;  %v6701_v49 = vld [vmem:[#allocation5 + $0x560] sm:$0xff]  ;;  %v6708_v22 = vld [vmem:[#allocation5 + $0x598] sm:$0xff] }
0x122a   :  { %6920 = vmatpush1.bf16.msra.mxu1 %v6539_v4  ;;  %v6713_v4 = vld [vmem:[#allocation5 + $0x5c0] sm:$0xff] }
0x122b   :  { %6921 = vmatprep.subr.bf16.mxu1 %v6546_v11  ;;  %v6720_v11 = vld [vmem:[#allocation5 + $0x5f8] sm:$0xff] }
0x122e   :  { %6922 = vmatpush1.bf16.msra.mxu1 %v6545_v52  ;;  %v6721_v52 = vld [vmem:[#allocation32] sm:$0x3f] }
0x122f   :  { %6923 = vmatprep.subr.bf16.mxu1 %v6552_v57  ;;  %v6726_v57 = vrot.slane %v6721_v52, %v11812_v31  ;;  %v6738_v31 = vrot.slane %v6721_v52, %v11815_v16 }
0x1232   :  { %6924 = vmatpush1.bf16.msra.mxu1 %v6551_v9  ;;  %v6730_v9 = vrot.slane %v6721_v52, %v11814_v29 }
0x1233   :  { %6925 = vmatprep.subr.bf16.mxu1 %v6558_v14 }
0x1236   :  { %6926 = vmatpush1.bf16.msra.mxu1 %v6557_v21 }
0x1237   :  { %6927 = vmatprep.subr.bf16.mxu1 %v6564_v2 }
0x123a   :  { %6928 = vmatpush1.bf16.msra.mxu1 %v6563_v18 }
0x123b   :  { %6929 = vmatprep.subr.bf16.mxu1 %v6570_v45 }
0x123e   :  { %6930 = vmatpush1.bf16.msra.mxu1 %v6569_v58 }
0x123f   :  { %6931 = vmatprep.subr.bf16.mxu1 %v6576_v10 }
0x1242   :  { %6932 = vmatpush1.bf16.msra.mxu1 %v6575_v3 }
0x1243   :  { %6933 = vmatprep.subr.bf16.mxu1 %v6582_v43 }
0x1246   :  { %6934 = vmatpush1.bf16.msra.mxu1 %v6581_v61 }
0x1247   :  { %6935 = vmatprep.subr.bf16.mxu1 %v6588_v15 }
0x124a   :  { %6936 = vmatpush1.bf16.msra.mxu1 %v6587_v62  ;;  %v11816_v62 = vld [vmem:[#allocation73_spill] sm:$0xff] }
0x124b   :  { %6937 = vmatprep.subr.bf16.mxu1 %v6594_v34  ;;  %v6741_v34 = vsub.s32 4, %v11816_v62 }
0x124e   :  { %6938 = vmatpush1.bf16.msra.mxu1 %v6593_v47  ;;  %v6742_v47 = vrot.slane %v6721_v52, %v6741_v34 }
0x124f   :  { %6939 = vmatprep.subr.bf16.mxu1 %v6600_v63 }
0x1252   :  { %6940 = vmatpush1.bf16.msra.mxu1 %v6599_v5 }
0x1253   :  { %6941 = vmatprep.subr.bf16.mxu1 %v6606_v8 }
0x1256   :  { %6942 = vmatpush1.bf16.msra.mxu1 %v6605_v41 }
0x1257   :  { %6943 = vmatprep.subr.bf16.mxu1 %v6612_v33 }
0x125a   :  { %6944 = vmatpush1.bf16.msra.mxu1 %v6611_v59 }
0x125b   :  { %6945 = vmatprep.subr.bf16.mxu1 %v6618_v35 }
0x125e   :  { %6946 = vmatpush1.bf16.msra.mxu1 %v6617_v27 }
0x125f   :  { %6947 = vmatprep.subr.bf16.mxu1 %v6624_v19 }
0x1262   :  { %6948 = vmatpush1.bf16.msra.mxu1 %v6623_v20 }
0x1263   :  { %6958 = vmatprep.subr.bf16.mxu1 %v6630_v55 }
0x1265   :  { %6950 = vmatmul.mubr.bf16.vlgmr.msra.gmra.mrb[108].mxu1 %v11617_v51  ;;  %v6659_v51 = vld [vmem:[#allocation5 + $0x410] sm:$0xff] }
0x1266   :  { %6959 = vmatpush1.bf16.msra.mxu1 %v6629_v13  ;;  %6990 = vmatprep.mubr.bf16.mxu1 %v11622_v56  ;;  %v6665_v56 = vld [vmem:[#allocation5 + $0x440] sm:$0xff] }
0x1267   :  { %6960 = vmatprep.subr.bf16.mxu1 %v6636_v53 }
0x126a   :  { %6961 = vmatpush1.bf16.msra.mxu1 %v6635_v40 }
0x126b   :  { %6962 = vmatprep.subr.bf16.mxu1 %v6642_v39 }
0x126e   :  { %6963 = vmatpush1.bf16.msra.mxu1 %v6641_v25 }
0x126f   :  { %6964 = vmatprep.subr.bf16.mxu1 %v6648_v12 }
0x1272   :  { %6965 = vmatpush1.bf16.msra.mxu1 %v6647_v6 }
0x1273   :  { %6966 = vmatprep.subr.bf16.mxu1 %v6654_v48 }
0x1276   :  { %6967 = vmatpush1.bf16.msra.mxu1 %v6653_v38 }
0x1277   :  { %6968 = vmatprep.subr.bf16.mxu1 %v6660_v46 }
0x127a   :  { %6969 = vmatpush1.bf16.msra.mxu1 %v6659_v51 }
0x127b   :  { %6970 = vmatprep.subr.bf16.mxu1 %v6666_v32 }
0x127e   :  { %6971 = vmatpush1.bf16.msra.mxu1 %v6665_v56 }
0x127f   :  { %6972 = vmatprep.subr.bf16.mxu1 %v6672_v42 }
0x1282   :  { %6973 = vmatpush1.bf16.msra.mxu1 %v6671_v54 }
0x1283   :  { %6974 = vmatprep.subr.bf16.mxu1 %v6678_v28 }
0x1286   :  { %6975 = vmatpush1.bf16.msra.mxu1 %v6677_v24 }
0x1287   :  { %6976 = vmatprep.subr.bf16.mxu1 %v6684_v36 }
0x128a   :  { %6977 = vmatpush1.bf16.msra.mxu1 %v6683_v44 }
0x128b   :  { %6978 = vmatprep.subr.bf16.mxu1 %v6690_v60 }
0x128e   :  { %6979 = vmatpush1.bf16.msra.mxu1 %v6689_v23 }
0x128f   :  { %6980 = vmatprep.subr.bf16.mxu1 %v6696_v30 }
0x1292   :  { %6981 = vmatpush1.bf16.msra.mxu1 %v6695_v7 }
0x1293   :  { %6982 = vmatprep.subr.bf16.mxu1 %v6702_v37 }
0x1296   :  { %6983 = vmatpush1.bf16.msra.mxu1 %v6701_v49 }
0x1297   :  { %6984 = vmatprep.subr.bf16.mxu1 %v6708_v22 }
0x129a   :  { %6985 = vmatpush1.bf16.msra.mxu1 %v6707_v26 }
0x129b   :  { %6986 = vmatprep.subr.bf16.mxu1 %v6714_v1 }
0x129e   :  { %6987 = vmatpush1.bf16.msra.mxu1 %v6713_v4 }
0x129f   :  { %6988 = vmatprep.subr.bf16.mxu1 %v6720_v11 }
0x12a2   :  { %6989 = vmatpush1.bf16.msra.mxu1 %v6719_v17 }
0x12a5   :  { %6991 = vmatmul.mubr.bf16.vlgmr.msra.gmra.mrb[108].mxu1 %v11631_v0  ;;  %v6734_v0 = vrot.slane %v6721_v52, %v11813_v50  ;;  %v6745_v50 = vsub.s32 5, %v11816_v62 }
0x12a7   :  { %v6746_v16 = vrot.slane %v6721_v52, %v6745_v50 }
0x12f8   :  { %v6828_v14 = vpop.f32.mrb[104].mxu1 }
0x12f9   :  { %v7677_v21 = vadd.f32 %v6828_v14, %v6726_v57  ;;  %v6830_v2 = vpop.f32.mrb[105].mxu1 }
0x12fa   :  { %v7678_v18 = vadd.f32 %v6830_v2, %v6730_v9  ;;  %v6832_v45 = vpop.f32.mrb[106].mxu1  ;;  %v6910_v10 = vpop.f32.mrb[144].mxu0 }
0x12fb   :  { %6999 = vst [vmem:[%s11686_s23] sm:$0xff] %v7677_v21  ;;  %v6833_v58 = vpop.f32.mrb[107].mxu1  ;;  %v7679_v29 = vadd.f32 %v6910_v10, %v6734_v0  ;;  %v6912_v3 = vpop.f32.mrb[145].mxu0 }
0x12fc   :  { %7000 = vst [vmem:[%s11686_s23 + $0x8] sm:$0xff] %v7678_v18  ;;  %v7680_v43 = vadd.f32 %v6912_v3, %v6738_v31  ;;  %v6914_v61 = vpop.f32.mrb[146].mxu0 }
0x12fd   :  { %7001 = vst [vmem:[%s11686_s23 + $0x10] sm:$0xff] %v7679_v29  ;;  %v6915_v15 = vpop.f32.mrb[147].mxu0 }
0x12fe   :  { %7002 = vst [vmem:[%s11686_s23 + $0x18] sm:$0xff] %v7680_v43 }
0x1378   :  { %v6992_v63 = vpop.f32.mrb[108].mxu1 }
0x1379   :  { %v7681_v5 = vadd.f32 %v6992_v63, %v6742_v47  ;;  %v6994_v8 = vpop.f32.mrb[109].mxu1 }
0x137a   :  { %v7682_v41 = vadd.f32 %v6994_v8, %v6746_v16  ;;  %v6996_v33 = vpop.f32.mrb[110].mxu1 }
0x137b   :  { %7003 = vst [vmem:[%s11686_s23 + $0x20] sm:$0xff] %v7681_v5  ;;  %v6997_v59 = vpop.f32.mrb[111].mxu1 }
0x137c   :  { %7004 = vst [vmem:[%s11686_s23 + $0x28] sm:$0xff] %v7682_v41 }
0x137d   :  { %7009 = vsyncpa [#allocation8], 1 }
0x137e   :  { %7010 = vsyncpa [#allocation10], 1 }
0x137f   :  { %7011 = vsyncpa [#allocation13], 1 }
0x1380   :  { %7012 = vsyncpa [#allocation16], 1 }
0x1381   :  { %7013 = vsyncpa [#allocation19], 1 }
0x1382   :  { %7014 = vsyncpa [#allocation22], 1 }
0x1383   :  { %7015 = vsyncpa [#allocation25], 1 }
0x1384   :  { %7016 = vsyncpa [#allocation28], 1 }
0x1385   :  { %7017 = vsyncpa [#allocation31], 1 }
0x1386   :  { %7018 = vsyncmov [#allocation6] }
0x1389   :  { %s7019_s0 = vpop.sfrf %7018 }
0x138a   :  { %p7225_p10 = scmp.ne.s32.totalorder %s7019_s0, 0 }
0x138c   :  { %7023 = shalt.err (%p7225_p10)  }
0x138d   :  { %7025 = vsyncmov [#allocation6 + $0x1] }
0x1390   :  { %s7026_s24 = vpop.sfrf %7025 }
0x1391   :  { %p7226_p11 = scmp.ne.s32.totalorder %s7026_s24, 0 }
0x1393   :  { %7030 = shalt.err (%p7226_p11)  }
0x1394   :  { %7032 = vsyncmov [#allocation6 + $0x2] }
0x1397   :  { %s7033_s7 = vpop.sfrf %7032 }
0x1398   :  { %p7227_p12 = scmp.ne.s32.totalorder %s7033_s7, 0 }
0x139a   :  { %7037 = shalt.err (%p7227_p12)  }
0x139b   :  { %7039 = vsyncmov [#allocation6 + $0x3] }
0x139e   :  { %s7040_s23 = vpop.sfrf %7039 }
0x139f   :  { %p7228_p13 = scmp.ne.s32.totalorder %s7040_s23, 0 }
0x13a1   :  { %7044 = shalt.err (%p7228_p13)  }

</bundles_post_ra>
